<compile_context>
chip_gen: v7x
topology: tpu7x:2x2x1
jax: 0.10.0
libtpu: 0.0.40
codegen_flags: <defaults>
</compile_context>

<pallas_src>
import functools

import jax
import jax.numpy as jnp
from jax.experimental import pallas as pl
from jax.experimental.pallas import tpu as pltpu


# ----------------------------- in-kernel helpers ----------------------------

def _sigmoid(x):
    # exact 1/(1+exp(-x)): exp runs on the EUP; keeps outputs strictly in [0,1]
    # (kept exact rather than pl.reciprocal(approx=True) so the numerical pin
    # against the XLA reference stays tight).
    return 1.0 / (1.0 + jnp.exp(-x))


def _swish(x):
    return x * _sigmoid(x)


# ------------------------------- Pallas kernels -----------------------------

def _linear_swish_kernel(z_ref, w_ref, b_ref, o_ref):
    # (Mpad, n_latents) @ (n_latents, 1024) + bias, then Swish.
    y = jnp.dot(z_ref[...], w_ref[...], preferred_element_type=jnp.float32)
    o_ref[...] = _swish(y + b_ref[...])


def _gemm_kernel(x_ref, w_ref, o_ref):
    # Conv-transpose as a wide-N GEMM: act(M, Cin) @ W(Cin, K*K*Cout).
    o_ref[...] = jnp.dot(x_ref[...], w_ref[...],
                         preferred_element_type=jnp.float32)


def _bn_swish_gemm_kernel(x_ref, g_ref, b_ref, w_ref, o_ref, *, eps,
                          valid_rows):
    # Fused: train-mode BatchNorm2d (batch stats over the valid rows) + Swish
    # of the previous conv-transpose output, then this layer's GEMM.
    x = x_ref[...]
    m_rows = x.shape[0]
    inv_n = 1.0 / float(valid_rows)
    if valid_rows == m_rows:
        mean = jnp.sum(x, axis=0, keepdims=True) * inv_n
        xc = x - mean
        var = jnp.sum(xc * xc, axis=0, keepdims=True) * inv_n
    else:
        # Padding rows are zero on input, so the plain sum is already exact;
        # the centered square still needs an explicit row mask.
        row = jax.lax.broadcasted_iota(jnp.int32, x.shape, 0)
        valid = row < valid_rows
        mean = jnp.sum(x, axis=0, keepdims=True) * inv_n
        xc = x - mean
        var = jnp.sum(jnp.where(valid, xc * xc, 0.0), axis=0,
                      keepdims=True) * inv_n
    y = xc * jax.lax.rsqrt(var + eps) * g_ref[...] + b_ref[...]
    a = _swish(y)
    o_ref[...] = jnp.dot(a, w_ref[...], preferred_element_type=jnp.float32)


def _sigmoid_kernel(x_ref, o_ref):
    o_ref[...] = _sigmoid(x_ref[...])


_VMEM = pl.BlockSpec(memory_space=pltpu.MemorySpace.VMEM)


def _pallas(kernel, out_shape, n_in):
    # Single-block call: every operand/result lives entirely in VMEM.  The
    # largest working set (ct1: 2 MiB weight + <0.2 MiB act) is far below the
    # default scoped VMEM limit on v5e/v6e/v7x, so no vmem_limit override.
    # NOTE(v7x): at this tiny batch a grid would only add overhead; if B*H*W
    # grows, add a row-axis grid with dimension_semantics=("parallel",) and
    # switch BN to a two-pass formulation.
    return pl.pallas_call(
        kernel,
        out_shape=out_shape,
        in_specs=[_VMEM] * n_in,
        out_specs=_VMEM,
    )


# -------------------------------- JAX-side glue -----------------------------

def _pad_rows(x, mult=8):
    r = (-x.shape[0]) % mult
    if r:
        x = jnp.pad(x, ((0, r), (0, 0)))
    return x


def _col2im(y, B, H, W, K, C, stride, pad):
    """Scatter-free col2im for a stride-`stride` conv-transpose.

    y: (B*H*W, K*K*C) GEMM output, columns ordered (kh, kw, c).
    Returns (B, Ho, Wo, C) with Ho = (H-1)*stride + K - 2*pad.
    """
    y = y.reshape(B, H, W, K, K, C)
    zero = jnp.array(0.0, y.dtype)
    hf = (H - 1) * stride + K
    wf = (W - 1) * stride + K
    out = jnp.zeros((B, hf, wf, C), y.dtype)
    for kh in range(K):
        for kw in range(K):
            tap = y[:, :, :, kh, kw, :]
            # interior (stride-1) dilation + offset (kh, kw): element (i, j)
            # lands at output position (i*stride + kh, j*stride + kw).
            out = out + jax.lax.pad(
                tap, zero,
                ((0, 0, 0),
                 (kh, K - 1 - kh, stride - 1),
                 (kw, K - 1 - kw, stride - 1),
                 (0, 0, 0)))
    return out[:, pad:hf - pad, pad:wf - pad, :]


@jax.jit
def image_decoder_forward(z, p):
    """z: (B, n_latents) -> (B, 1, 50, 50); matches ImageDecoder.forward."""
    B = z.shape[0]
    eps = 1e-5

    # upsample = Linear(n_latents, 256*2*2) + Swish                 (Pallas)
    z8 = _pad_rows(z)
    y = _pallas(_linear_swish_kernel,
                jax.ShapeDtypeStruct((z8.shape[0], 1024), jnp.float32), 3)(
                    z8, p["fc_w"], p["fc_b"])[:B]

    # z.view(-1, 256, 2, 2) is NCHW -> NHWC rows (b, h, w) x channels
    x = y.reshape(B, 256, 2, 2).transpose(0, 2, 3, 1).reshape(B * 4, 256)

    # ---- ConvTranspose2d(256, 128, 4, 2, 0)   (input already Swish'd) ----
    x = _pad_rows(x)
    g = _pallas(_gemm_kernel,
                jax.ShapeDtypeStruct((x.shape[0], 16 * 128), jnp.float32), 2)(
                    x, p["ct1_w"])
    c = _col2im(g[:B * 4], B, 2, 2, 4, 128, 2, 0)            # (B, 6, 6, 128)

    # ---- BN(128)+Swish + ConvTranspose2d(128, 64, 4, 2, 1) ----
    x = _pad_rows(c.reshape(B * 36, 128))
    k2 = functools.partial(_bn_swish_gemm_kernel, eps=eps, valid_rows=B * 36)
    g = _pallas(k2, jax.ShapeDtypeStruct((x.shape[0], 16 * 64), jnp.float32),
                4)(x, p["bn1_g"], p["bn1_b"], p["ct2_w"])
    c = _col2im(g[:B * 36], B, 6, 6, 4, 64, 2, 1)            # (B, 12, 12, 64)

    # ---- BN(64)+Swish + ConvTranspose2d(64, 32, 5, 2, 1) ----
    x = _pad_rows(c.reshape(B * 144, 64))
    k3 = functools.partial(_bn_swish_gemm_kernel, eps=eps, valid_rows=B * 144)
    g = _pallas(k3, jax.ShapeDtypeStruct((x.shape[0], 25 * 32), jnp.float32),
                4)(x, p["bn2_g"], p["bn2_b"], p["ct3_w"])
    c = _col2im(g[:B * 144], B, 12, 12, 5, 32, 2, 1)         # (B, 25, 25, 32)

    # ---- BN(32)+Swish + ConvTranspose2d(32, 1, 4, 2, 1) ----
    x = _pad_rows(c.reshape(B * 625, 32))                    # 1250 -> 1256 rows
    k4 = functools.partial(_bn_swish_gemm_kernel, eps=eps, valid_rows=B * 625)
    g = _pallas(k4, jax.ShapeDtypeStruct((x.shape[0], 16 * 1), jnp.float32),
                4)(x, p["bn3_g"], p["bn3_b"], p["ct4_w"])
    c = _col2im(g[:B * 625], B, 25, 25, 4, 1, 2, 1)          # (B, 50, 50, 1)

    # ---- final F.sigmoid on a lane-dense (B, 2500) layout          (Pallas)
    out = _pallas(_sigmoid_kernel,
                  jax.ShapeDtypeStruct((B, 2500), jnp.float32), 1)(
                      c.reshape(B, 2500))
    return out.reshape(B, 1, 50, 50)                         # NCHW


# ------------------------------- parameters --------------------------------

def init_torch_params(key, n_latents):
    """Random parameters in the original PyTorch layouts."""
    ks = jax.random.split(key, 12)
    s = 0.05
    return {
        "fc_w": jax.random.normal(ks[0], (1024, n_latents), jnp.float32) * s,
        "fc_b": jax.random.normal(ks[1], (1024,), jnp.float32) * s,
        "ct1_w": jax.random.normal(ks[2], (256, 128, 4, 4), jnp.float32) * s,
        "bn1_g": 1.0 + 0.1 * jax.random.normal(ks[3], (128,), jnp.float32),
        "bn1_b": 0.1 * jax.random.normal(ks[4], (128,), jnp.float32),
        "ct2_w": jax.random.normal(ks[5], (128, 64, 4, 4), jnp.float32) * s,
        "bn2_g": 1.0 + 0.1 * jax.random.normal(ks[6], (64,), jnp.float32),
        "bn2_b": 0.1 * jax.random.normal(ks[7], (64,), jnp.float32),
        "ct3_w": jax.random.normal(ks[8], (64, 32, 5, 5), jnp.float32) * s,
        "bn3_g": 1.0 + 0.1 * jax.random.normal(ks[9], (32,), jnp.float32),
        "bn3_b": 0.1 * jax.random.normal(ks[10], (32,), jnp.float32),
        "ct4_w": jax.random.normal(ks[11], (32, 1, 4, 4), jnp.float32) * s,
    }


def _flatten_ct(w):
    # torch (Cin, Cout, K, K) -> (Cin, K*K*Cout), column order (kh, kw, co)
    cin, cout, k, _ = w.shape
    return jnp.transpose(w, (0, 2, 3, 1)).reshape(cin, k * k * cout)


def prepare_params(tp):
    """One-time layout transforms (done once, outside the jitted forward)."""
    return {
        "fc_w": tp["fc_w"].T,                         # (n_latents, 1024)
        "fc_b": tp["fc_b"].reshape(1, -1),
        "ct1_w": _flatten_ct(tp["ct1_w"]),            # (256, 2048)
        "ct2_w": _flatten_ct(tp["ct2_w"]),            # (128, 1024)
        "ct3_w": _flatten_ct(tp["ct3_w"]),            # (64, 800)
        "ct4_w": _flatten_ct(tp["ct4_w"]),            # (32, 16)
        "bn1_g": tp["bn1_g"].reshape(1, -1), "bn1_b": tp["bn1_b"].reshape(1, -1),
        "bn2_g": tp["bn2_g"].reshape(1, -1), "bn2_b": tp["bn2_b"].reshape(1, -1),
        "bn3_g": tp["bn3_g"].reshape(1, -1), "bn3_b": tp["bn3_b"].reshape(1, -1),
    }


# --------------------- pure-XLA reference (numerics pin) --------------------

def _ref_conv_transpose(x, w, stride, pad):
    # x: (B, Cin, H, W) NCHW; w: torch (Cin, Cout, K, K)
    k = w.shape[2]
    wc = jnp.transpose(jnp.flip(w, (2, 3)), (1, 0, 2, 3))    # (Cout, Cin, K, K)
    return jax.lax.conv_general_dilated(
        x, wc, window_strides=(1, 1),
        padding=[(k - 1 - pad, k - 1 - pad)] * 2,
        lhs_dilation=(stride, stride),
        dimension_numbers=("NCHW", "OIHW", "NCHW"),
        precision=jax.lax.Precision.HIGHEST)


def _ref_bn_swish(x, g, b, eps=1e-5):
    mean = jnp.mean(x, axis=(0, 2, 3), keepdims=True)
    var = jnp.mean(jnp.square(x - mean), axis=(0, 2, 3), keepdims=True)
    y = (x - mean) * jax.lax.rsqrt(var + eps)
    y = y * g.reshape(1, -1, 1, 1) + b.reshape(1, -1, 1, 1)
    return y * jax.nn.sigmoid(y)


@jax.jit
def reference_decoder(z, tp):
    """Pure-XLA reference of ImageDecoder.forward (train-mode BatchNorm)."""
    y = jnp.dot(z, tp["fc_w"].T, precision=jax.lax.Precision.HIGHEST)
    y = y + tp["fc_b"]
    y = y * jax.nn.sigmoid(y)
    x = y.reshape(-1, 256, 2, 2)
    x = _ref_bn_swish(_ref_conv_transpose(x, tp["ct1_w"], 2, 0),
                      tp["bn1_g"], tp["bn1_b"])
    x = _ref_bn_swish(_ref_conv_transpose(x, tp["ct2_w"], 2, 1),
                      tp["bn2_g"], tp["bn2_b"])
    x = _ref_bn_swish(_ref_conv_transpose(x, tp["ct3_w"], 2, 1),
                      tp["bn3_g"], tp["bn3_b"])
    x = _ref_conv_transpose(x, tp["ct4_w"], 2, 1)
    return jax.nn.sigmoid(x)


# ------------------------------------ main ----------------------------------

if __name__ == "__main__":
    n_latents = 32
    batch = 2

    key = jax.random.PRNGKey(0)
    pkey, zkey = jax.random.split(key)
    torch_params = init_torch_params(pkey, n_latents)
    params = prepare_params(torch_params)
    z = jax.random.normal(zkey, (batch, n_latents), jnp.float32)

    out = jax.block_until_ready(image_decoder_forward(z, params))

    assert out.shape == (batch, 1, 50, 50), out.shape
    assert bool(jnp.all(jnp.isfinite(out)))
    assert bool(jnp.all((out >= 0.0) & (out <= 1.0)))   # sigmoid output range

    # pin numerics against a pure-XLA implementation of the same module
    ref = jax.block_until_ready(reference_decoder(z, torch_params))
    assert float(jnp.max(jnp.abs(out - ref))) < 3e-2

    print("KERNEL_OK")
</pallas_src>

<mosaic_0001>
module attributes {stable_mosaic.version = 11 : i64} {
  func.func @_linear_swish_kernel(%arg0: memref<8x32xf32, #tpu.memory_space<vmem>>, %arg1: memref<32x1024xf32, #tpu.memory_space<vmem>>, %arg2: memref<1x1024xf32, #tpu.memory_space<vmem>>, %arg3: memref<8x1024xf32, #tpu.memory_space<vmem>>) attributes {dimension_semantics = [], scalar_prefetch = 0 : i64, scratch_operands = 0 : i64, tpu.core_type = #tpu.core_type<tc>} {
    %c0 = arith.constant 0 : index
    %c0_0 = arith.constant 0 : index
    %0 = vector.load %arg0[%c0, %c0_0] : memref<8x32xf32, #tpu.memory_space<vmem>>, vector<8x32xf32>
    %c0_1 = arith.constant 0 : index
    %c0_2 = arith.constant 0 : index
    %1 = vector.load %arg1[%c0_1, %c0_2] : memref<32x1024xf32, #tpu.memory_space<vmem>>, vector<32x1024xf32>
    %cst = arith.constant dense<0.000000e+00> : vector<8x1024xf32>
    %2 = tpu.matmul %0, %1, %cst {dimension_numbers = #tpu.dot_dimension_numbers<[1], [0], [0], [1], [0, 0, 1, 1], [], []>} : vector<8x32xf32>, vector<32x1024xf32>, vector<8x1024xf32> -> vector<8x1024xf32>
    %c0_3 = arith.constant 0 : index
    %c0_4 = arith.constant 0 : index
    %3 = vector.load %arg2[%c0_3, %c0_4] : memref<1x1024xf32, #tpu.memory_space<vmem>>, vector<1x1024xf32>
    %4 = vector.broadcast %3 : vector<1x1024xf32> to vector<8x1024xf32>
    %5 = arith.addf %2, %4 : vector<8x1024xf32>
    %cst_5 = arith.constant 0.000000e+00 : f32
    %6 = vector.broadcast %cst_5 : f32 to vector<8x1024xf32>
    %7 = arith.subf %6, %5 : vector<8x1024xf32>
    %8 = math.exp %7 : vector<8x1024xf32>
    %cst_6 = arith.constant 1.000000e+00 : f32
    %9 = vector.broadcast %cst_6 : f32 to vector<8x1024xf32>
    %10 = arith.addf %9, %8 : vector<8x1024xf32>
    %cst_7 = arith.constant 1.000000e+00 : f32
    %11 = vector.broadcast %cst_7 : f32 to vector<8x1024xf32>
    %12 = arith.divf %11, %10 : vector<8x1024xf32>
    %13 = arith.mulf %5, %12 : vector<8x1024xf32>
    %c0_8 = arith.constant 0 : index
    %c0_9 = arith.constant 0 : index
    %14 = vector.load %arg3[%c0_8, %c0_9] : memref<8x1024xf32, #tpu.memory_space<vmem>>, vector<8x1024xf32>
    tpu.vector_store %arg3[%c0_8, %c0_9], %13 {strides = array<i32>} : memref<8x1024xf32, #tpu.memory_space<vmem>>, vector<8x1024xf32>,
    return
  }
}

module attributes {stable_mosaic.version = 11 : i64} {
  func.func @_gemm_kernel(%arg0: memref<8x256xf32, #tpu.memory_space<vmem>>, %arg1: memref<256x2048xf32, #tpu.memory_space<vmem>>, %arg2: memref<8x2048xf32, #tpu.memory_space<vmem>>) attributes {dimension_semantics = [], scalar_prefetch = 0 : i64, scratch_operands = 0 : i64, tpu.core_type = #tpu.core_type<tc>} {
    %c0 = arith.constant 0 : index
    %c0_0 = arith.constant 0 : index
    %0 = vector.load %arg0[%c0, %c0_0] : memref<8x256xf32, #tpu.memory_space<vmem>>, vector<8x256xf32>
    %c0_1 = arith.constant 0 : index
    %c0_2 = arith.constant 0 : index
    %1 = vector.load %arg1[%c0_1, %c0_2] : memref<256x2048xf32, #tpu.memory_space<vmem>>, vector<256x2048xf32>
    %cst = arith.constant dense<0.000000e+00> : vector<8x2048xf32>
    %2 = tpu.matmul %0, %1, %cst {dimension_numbers = #tpu.dot_dimension_numbers<[1], [0], [0], [1], [0, 0, 1, 1], [], []>} : vector<8x256xf32>, vector<256x2048xf32>, vector<8x2048xf32> -> vector<8x2048xf32>
    %c0_3 = arith.constant 0 : index
    %c0_4 = arith.constant 0 : index
    %3 = vector.load %arg2[%c0_3, %c0_4] : memref<8x2048xf32, #tpu.memory_space<vmem>>, vector<8x2048xf32>
    tpu.vector_store %arg2[%c0_3, %c0_4], %2 {strides = array<i32>} : memref<8x2048xf32, #tpu.memory_space<vmem>>, vector<8x2048xf32>,
    return
  }
}

module attributes {stable_mosaic.version = 11 : i64} {
  func.func @_bn_swish_gemm_kernel(%arg0: memref<72x128xf32, #tpu.memory_space<vmem>>, %arg1: memref<1x128xf32, #tpu.memory_space<vmem>>, %arg2: memref<1x128xf32, #tpu.memory_space<vmem>>, %arg3: memref<128x1024xf32, #tpu.memory_space<vmem>>, %arg4: memref<72x1024xf32, #tpu.memory_space<vmem>>) attributes {dimension_semantics = [], scalar_prefetch = 0 : i64, scratch_operands = 0 : i64, tpu.core_type = #tpu.core_type<tc>} {
    %c0 = arith.constant 0 : index
    %c0_0 = arith.constant 0 : index
    %0 = vector.load %arg0[%c0, %c0_0] : memref<72x128xf32, #tpu.memory_space<vmem>>, vector<72x128xf32>
    %cst = arith.constant dense<0.000000e+00> : vector<128xf32>
    %1 = vector.multi_reduction <add>, %0, %cst [0] : vector<72x128xf32> to vector<128xf32>
    %2 = vector.shape_cast %1 : vector<128xf32> to vector<1x128xf32>
    %cst_1 = arith.constant 0.013888889 : f32
    %3 = vector.broadcast %cst_1 : f32 to vector<1x128xf32>
    %4 = arith.mulf %2, %3 : vector<1x128xf32>
    %5 = vector.broadcast %4 : vector<1x128xf32> to vector<72x128xf32>
    %6 = arith.subf %0, %5 : vector<72x128xf32>
    %7 = arith.mulf %6, %6 : vector<72x128xf32>
    %cst_2 = arith.constant dense<0.000000e+00> : vector<128xf32>
    %8 = vector.multi_reduction <add>, %7, %cst_2 [0] : vector<72x128xf32> to vector<128xf32>
    %9 = vector.shape_cast %8 : vector<128xf32> to vector<1x128xf32>
    %cst_3 = arith.constant 0.013888889 : f32
    %10 = vector.broadcast %cst_3 : f32 to vector<1x128xf32>
    %11 = arith.mulf %9, %10 : vector<1x128xf32>
    %cst_4 = arith.constant 9.99999974E-6 : f32
    %12 = vector.broadcast %cst_4 : f32 to vector<1x128xf32>
    %13 = arith.addf %11, %12 : vector<1x128xf32>
    %14 = math.rsqrt %13 : vector<1x128xf32>
    %15 = vector.broadcast %14 : vector<1x128xf32> to vector<72x128xf32>
    %16 = arith.mulf %6, %15 : vector<72x128xf32>
    %c0_5 = arith.constant 0 : index
    %c0_6 = arith.constant 0 : index
    %17 = vector.load %arg1[%c0_5, %c0_6] : memref<1x128xf32, #tpu.memory_space<vmem>>, vector<1x128xf32>
    %18 = vector.broadcast %17 : vector<1x128xf32> to vector<72x128xf32>
    %19 = arith.mulf %16, %18 : vector<72x128xf32>
    %c0_7 = arith.constant 0 : index
    %c0_8 = arith.constant 0 : index
    %20 = vector.load %arg2[%c0_7, %c0_8] : memref<1x128xf32, #tpu.memory_space<vmem>>, vector<1x128xf32>
    %21 = vector.broadcast %20 : vector<1x128xf32> to vector<72x128xf32>
    %22 = arith.addf %19, %21 : vector<72x128xf32>
    %cst_9 = arith.constant 0.000000e+00 : f32
    %23 = vector.broadcast %cst_9 : f32 to vector<72x128xf32>
    %24 = arith.subf %23, %22 : vector<72x128xf32>
    %25 = math.exp %24 : vector<72x128xf32>
    %cst_10 = arith.constant 1.000000e+00 : f32
    %26 = vector.broadcast %cst_10 : f32 to vector<72x128xf32>
    %27 = arith.addf %26, %25 : vector<72x128xf32>
    %cst_11 = arith.constant 1.000000e+00 : f32
    %28 = vector.broadcast %cst_11 : f32 to vector<72x128xf32>
    %29 = arith.divf %28, %27 : vector<72x128xf32>
    %30 = arith.mulf %22, %29 : vector<72x128xf32>
    %c0_12 = arith.constant 0 : index
    %c0_13 = arith.constant 0 : index
    %31 = vector.load %arg3[%c0_12, %c0_13] : memref<128x1024xf32, #tpu.memory_space<vmem>>, vector<128x1024xf32>
    %cst_14 = arith.constant dense<0.000000e+00> : vector<72x1024xf32>
    %32 = tpu.matmul %30, %31, %cst_14 {dimension_numbers = #tpu.dot_dimension_numbers<[1], [0], [0], [1], [0, 0, 1, 1], [], []>} : vector<72x128xf32>, vector<128x1024xf32>, vector<72x1024xf32> -> vector<72x1024xf32>
    %c0_15 = arith.constant 0 : index
    %c0_16 = arith.constant 0 : index
    %33 = vector.load %arg4[%c0_15, %c0_16] : memref<72x1024xf32, #tpu.memory_space<vmem>>, vector<72x1024xf32>
    tpu.vector_store %arg4[%c0_15, %c0_16], %32 {strides = array<i32>} : memref<72x1024xf32, #tpu.memory_space<vmem>>, vector<72x1024xf32>,
    return
  }
}

module attributes {stable_mosaic.version = 11 : i64} {
  func.func @_bn_swish_gemm_kernel(%arg0: memref<288x64xf32, #tpu.memory_space<vmem>>, %arg1: memref<1x64xf32, #tpu.memory_space<vmem>>, %arg2: memref<1x64xf32, #tpu.memory_space<vmem>>, %arg3: memref<64x800xf32, #tpu.memory_space<vmem>>, %arg4: memref<288x800xf32, #tpu.memory_space<vmem>>) attributes {dimension_semantics = [], scalar_prefetch = 0 : i64, scratch_operands = 0 : i64, tpu.core_type = #tpu.core_type<tc>} {
    %c0 = arith.constant 0 : index
    %c0_0 = arith.constant 0 : index
    %0 = vector.load %arg0[%c0, %c0_0] : memref<288x64xf32, #tpu.memory_space<vmem>>, vector<288x64xf32>
    %cst = arith.constant dense<0.000000e+00> : vector<64xf32>
    %1 = vector.multi_reduction <add>, %0, %cst [0] : vector<288x64xf32> to vector<64xf32>
    %2 = vector.shape_cast %1 : vector<64xf32> to vector<1x64xf32>
    %cst_1 = arith.constant 0.00347222225 : f32
    %3 = vector.broadcast %cst_1 : f32 to vector<1x64xf32>
    %4 = arith.mulf %2, %3 : vector<1x64xf32>
    %5 = vector.broadcast %4 : vector<1x64xf32> to vector<288x64xf32>
    %6 = arith.subf %0, %5 : vector<288x64xf32>
    %7 = arith.mulf %6, %6 : vector<288x64xf32>
    %cst_2 = arith.constant dense<0.000000e+00> : vector<64xf32>
    %8 = vector.multi_reduction <add>, %7, %cst_2 [0] : vector<288x64xf32> to vector<64xf32>
    %9 = vector.shape_cast %8 : vector<64xf32> to vector<1x64xf32>
    %cst_3 = arith.constant 0.00347222225 : f32
    %10 = vector.broadcast %cst_3 : f32 to vector<1x64xf32>
    %11 = arith.mulf %9, %10 : vector<1x64xf32>
    %cst_4 = arith.constant 9.99999974E-6 : f32
    %12 = vector.broadcast %cst_4 : f32 to vector<1x64xf32>
    %13 = arith.addf %11, %12 : vector<1x64xf32>
    %14 = math.rsqrt %13 : vector<1x64xf32>
    %15 = vector.broadcast %14 : vector<1x64xf32> to vector<288x64xf32>
    %16 = arith.mulf %6, %15 : vector<288x64xf32>
    %c0_5 = arith.constant 0 : index
    %c0_6 = arith.constant 0 : index
    %17 = vector.load %arg1[%c0_5, %c0_6] : memref<1x64xf32, #tpu.memory_space<vmem>>, vector<1x64xf32>
    %18 = vector.broadcast %17 : vector<1x64xf32> to vector<288x64xf32>
    %19 = arith.mulf %16, %18 : vector<288x64xf32>
    %c0_7 = arith.constant 0 : index
    %c0_8 = arith.constant 0 : index
    %20 = vector.load %arg2[%c0_7, %c0_8] : memref<1x64xf32, #tpu.memory_space<vmem>>, vector<1x64xf32>
    %21 = vector.broadcast %20 : vector<1x64xf32> to vector<288x64xf32>
    %22 = arith.addf %19, %21 : vector<288x64xf32>
    %cst_9 = arith.constant 0.000000e+00 : f32
    %23 = vector.broadcast %cst_9 : f32 to vector<288x64xf32>
    %24 = arith.subf %23, %22 : vector<288x64xf32>
    %25 = math.exp %24 : vector<288x64xf32>
    %cst_10 = arith.constant 1.000000e+00 : f32
    %26 = vector.broadcast %cst_10 : f32 to vector<288x64xf32>
    %27 = arith.addf %26, %25 : vector<288x64xf32>
    %cst_11 = arith.constant 1.000000e+00 : f32
    %28 = vector.broadcast %cst_11 : f32 to vector<288x64xf32>
    %29 = arith.divf %28, %27 : vector<288x64xf32>
    %30 = arith.mulf %22, %29 : vector<288x64xf32>
    %c0_12 = arith.constant 0 : index
    %c0_13 = arith.constant 0 : index
    %31 = vector.load %arg3[%c0_12, %c0_13] : memref<64x800xf32, #tpu.memory_space<vmem>>, vector<64x800xf32>
    %cst_14 = arith.constant dense<0.000000e+00> : vector<288x800xf32>
    %32 = tpu.matmul %30, %31, %cst_14 {dimension_numbers = #tpu.dot_dimension_numbers<[1], [0], [0], [1], [0, 0, 1, 1], [], []>} : vector<288x64xf32>, vector<64x800xf32>, vector<288x800xf32> -> vector<288x800xf32>
    %c0_15 = arith.constant 0 : index
    %c0_16 = arith.constant 0 : index
    %33 = vector.load %arg4[%c0_15, %c0_16] : memref<288x800xf32, #tpu.memory_space<vmem>>, vector<288x800xf32>
    tpu.vector_store %arg4[%c0_15, %c0_16], %32 {strides = array<i32>} : memref<288x800xf32, #tpu.memory_space<vmem>>, vector<288x800xf32>,
    return
  }
}

module attributes {stable_mosaic.version = 11 : i64} {
  func.func @_bn_swish_gemm_kernel(%arg0: memref<1256x32xf32, #tpu.memory_space<vmem>>, %arg1: memref<1x32xf32, #tpu.memory_space<vmem>>, %arg2: memref<1x32xf32, #tpu.memory_space<vmem>>, %arg3: memref<32x16xf32, #tpu.memory_space<vmem>>, %arg4: memref<1256x16xf32, #tpu.memory_space<vmem>>) attributes {dimension_semantics = [], scalar_prefetch = 0 : i64, scratch_operands = 0 : i64, tpu.core_type = #tpu.core_type<tc>} {
    %c0 = arith.constant 0 : index
    %c0_0 = arith.constant 0 : index
    %0 = vector.load %arg0[%c0, %c0_0] : memref<1256x32xf32, #tpu.memory_space<vmem>>, vector<1256x32xf32>
    %1 = tpu.iota {dimensions = array<i32: 0>} : vector<1256x32xi32>
    %c1250_i32 = arith.constant 1250 : i32
    %2 = vector.broadcast %c1250_i32 : i32 to vector<1256x32xi32>
    %3 = arith.cmpi slt, %1, %2 : vector<1256x32xi32>
    %cst = arith.constant dense<0.000000e+00> : vector<32xf32>
    %4 = vector.multi_reduction <add>, %0, %cst [0] : vector<1256x32xf32> to vector<32xf32>
    %5 = vector.shape_cast %4 : vector<32xf32> to vector<1x32xf32>
    %cst_1 = arith.constant 8.000000e-04 : f32
    %6 = vector.broadcast %cst_1 : f32 to vector<1x32xf32>
    %7 = arith.mulf %5, %6 : vector<1x32xf32>
    %8 = vector.broadcast %7 : vector<1x32xf32> to vector<1256x32xf32>
    %9 = arith.subf %0, %8 : vector<1256x32xf32>
    %10 = arith.mulf %9, %9 : vector<1256x32xf32>
    %cst_2 = arith.constant 0.000000e+00 : f32
    %11 = vector.broadcast %cst_2 : f32 to vector<1256x32xf32>
    %12 = arith.select %3, %10, %11 : vector<1256x32xi1>, vector<1256x32xf32>
    %cst_3 = arith.constant dense<0.000000e+00> : vector<32xf32>
    %13 = vector.multi_reduction <add>, %12, %cst_3 [0] : vector<1256x32xf32> to vector<32xf32>
    %14 = vector.shape_cast %13 : vector<32xf32> to vector<1x32xf32>
    %cst_4 = arith.constant 8.000000e-04 : f32
    %15 = vector.broadcast %cst_4 : f32 to vector<1x32xf32>
    %16 = arith.mulf %14, %15 : vector<1x32xf32>
    %cst_5 = arith.constant 9.99999974E-6 : f32
    %17 = vector.broadcast %cst_5 : f32 to vector<1x32xf32>
    %18 = arith.addf %16, %17 : vector<1x32xf32>
    %19 = math.rsqrt %18 : vector<1x32xf32>
    %20 = vector.broadcast %19 : vector<1x32xf32> to vector<1256x32xf32>
    %21 = arith.mulf %9, %20 : vector<1256x32xf32>
    %c0_6 = arith.constant 0 : index
    %c0_7 = arith.constant 0 : index
    %22 = vector.load %arg1[%c0_6, %c0_7] : memref<1x32xf32, #tpu.memory_space<vmem>>, vector<1x32xf32>
    %23 = vector.broadcast %22 : vector<1x32xf32> to vector<1256x32xf32>
    %24 = arith.mulf %21, %23 : vector<1256x32xf32>
    %c0_8 = arith.constant 0 : index
    %c0_9 = arith.constant 0 : index
    %25 = vector.load %arg2[%c0_8, %c0_9] : memref<1x32xf32, #tpu.memory_space<vmem>>, vector<1x32xf32>
    %26 = vector.broadcast %25 : vector<1x32xf32> to vector<1256x32xf32>
    %27 = arith.addf %24, %26 : vector<1256x32xf32>
    %cst_10 = arith.constant 0.000000e+00 : f32
    %28 = vector.broadcast %cst_10 : f32 to vector<1256x32xf32>
    %29 = arith.subf %28, %27 : vector<1256x32xf32>
    %30 = math.exp %29 : vector<1256x32xf32>
    %cst_11 = arith.constant 1.000000e+00 : f32
    %31 = vector.broadcast %cst_11 : f32 to vector<1256x32xf32>
    %32 = arith.addf %31, %30 : vector<1256x32xf32>
    %cst_12 = arith.constant 1.000000e+00 : f32
    %33 = vector.broadcast %cst_12 : f32 to vector<1256x32xf32>
    %34 = arith.divf %33, %32 : vector<1256x32xf32>
    %35 = arith.mulf %27, %34 : vector<1256x32xf32>
    %c0_13 = arith.constant 0 : index
    %c0_14 = arith.constant 0 : index
    %36 = vector.load %arg3[%c0_13, %c0_14] : memref<32x16xf32, #tpu.memory_space<vmem>>, vector<32x16xf32>
    %cst_15 = arith.constant dense<0.000000e+00> : vector<1256x16xf32>
    %37 = tpu.matmul %35, %36, %cst_15 {dimension_numbers = #tpu.dot_dimension_numbers<[1], [0], [0], [1], [0, 0, 1, 1], [], []>} : vector<1256x32xf32>, vector<32x16xf32>, vector<1256x16xf32> -> vector<1256x16xf32>
    %c0_16 = arith.constant 0 : index
    %c0_17 = arith.constant 0 : index
    %38 = vector.load %arg4[%c0_16, %c0_17] : memref<1256x16xf32, #tpu.memory_space<vmem>>, vector<1256x16xf32>
    tpu.vector_store %arg4[%c0_16, %c0_17], %37 {strides = array<i32>} : memref<1256x16xf32, #tpu.memory_space<vmem>>, vector<1256x16xf32>,
    return
  }
}

module attributes {stable_mosaic.version = 11 : i64} {
  func.func @_sigmoid_kernel(%arg0: memref<2x2500xf32, #tpu.memory_space<vmem>>, %arg1: memref<2x2500xf32, #tpu.memory_space<vmem>>) attributes {dimension_semantics = [], scalar_prefetch = 0 : i64, scratch_operands = 0 : i64, tpu.core_type = #tpu.core_type<tc>} {
    %c0 = arith.constant 0 : index
    %c0_0 = arith.constant 0 : index
    %0 = vector.load %arg0[%c0, %c0_0] : memref<2x2500xf32, #tpu.memory_space<vmem>>, vector<2x2500xf32>
    %cst = arith.constant 0.000000e+00 : f32
    %1 = vector.broadcast %cst : f32 to vector<2x2500xf32>
    %2 = arith.subf %1, %0 : vector<2x2500xf32>
    %3 = math.exp %2 : vector<2x2500xf32>
    %cst_1 = arith.constant 1.000000e+00 : f32
    %4 = vector.broadcast %cst_1 : f32 to vector<2x2500xf32>
    %5 = arith.addf %4, %3 : vector<2x2500xf32>
    %cst_2 = arith.constant 1.000000e+00 : f32
    %6 = vector.broadcast %cst_2 : f32 to vector<2x2500xf32>
    %7 = arith.divf %6, %5 : vector<2x2500xf32>
    %c0_3 = arith.constant 0 : index
    %c0_4 = arith.constant 0 : index
    %8 = vector.load %arg1[%c0_3, %c0_4] : memref<2x2500xf32, #tpu.memory_space<vmem>>, vector<2x2500xf32>
    tpu.vector_store %arg1[%c0_3, %c0_4], %7 {strides = array<i32>} : memref<2x2500xf32, #tpu.memory_space<vmem>>, vector<2x2500xf32>,
    return
  }
}

</mosaic_0001>

<bundles_post_ra>
// kernel: image_decoder_forward.6
= control target key start
LH: loop header
LB: loop body
LE: loop exit
PB: predicated region body
PF: predicated region fallthrough
CT: control target
= control target key end

     0   :  { %8 = vsyncpa [#allocation3], 0  ;;  %s694_s0 = inlined_call_operand.vmem [shape: f32[8,32], index: 0, kind: input, shape index: {}]   ;;  %s695_s1 = inlined_call_operand.hbm [shape: f32[32,1024], index: 1, kind: input, shape index: {}]   ;;  %s696_s2 = inlined_call_operand.hbm [shape: f32[1,1024], index: 2, kind: input, shape index: {}]   ;;  %s697_s3 = inlined_call_operand.vmem [shape: f32[8,1024], index: 3, kind: output, shape index: {}]  }
   0x1   :  { %9 = vsyncpa [#allocation5], 0  ;;  %s594_s12 = smov [#allocation2]   ;;  %s546_s16 = scalar_lea.hbm %s695_s1, 4096 }
   0x2   :  { %s17_s13 = sshll.u32 %s594_s12, 4  ;;  %p547_p0 = scmp.ne.s32.totalorder %s695_s1, %s546_s16  ;;  %s18_s13 = int_to_ptr.vmem [resolvable:$true] %s17_s13 }
   0x3   :  { %p550_p1 = scmp.lt.u32.totalorder %s546_s16, %s695_s1 }
   0x5   :  { %p552_p2 = pnand %p550_p1, %p547_p0 }
   0x7   :  { %555 = shalt.err (!%p552_p2)
}
   0x8   :  { %s556_s21 = scalar_lea.vmem %s18_s13, 4096  ;;  %p561_p4 = scmp.lt.s32.totalorder %s18_s13, %s18_s13 }
   0x9   :  { %p557_p3 = scmp.ne.s32.totalorder %s18_s13, %s556_s21  ;;  %p562_p5 = scmp.lt.s32.totalorder %s556_s21, %s556_s21 }
   0xb   :  { %p563_p6 = por %p562_p5, %p561_p4 }
   0xd   :  { %p564_p7 = pnand %p563_p6, %p557_p3 }
   0xf   :  { %567 = shalt.err (!%p564_p7)
}
  0x10   :  { %s595_s22 = smov 1024   ;;  %s596_s23 = smov 64  }
  0x11   :  { %23 = dma.hbm_to_vmem [thread:$0]  %s695_s1, 4096, %s18_s13, [#allocation3], %s595_s22, %s595_s22, %s596_s23  }
  0x12   :  { %s597_s26 = smov [#allocation4]   ;;  %s568_s30 = scalar_lea.hbm %s696_s2, 128 }
  0x13   :  { %s30_s27 = sshll.u32 %s597_s26, 4  ;;  %p569_p8 = scmp.ne.s32.totalorder %s696_s2, %s568_s30  ;;  %s31_s27 = int_to_ptr.vmem [resolvable:$true] %s30_s27 }
  0x14   :  { %p572_p9 = scmp.lt.u32.totalorder %s568_s30, %s696_s2 }
  0x16   :  { %p574_p10 = pnand %p572_p9, %p569_p8 }
  0x18   :  { %577 = shalt.err (!%p574_p10)
}
  0x19   :  { %s578_s8 = scalar_lea.vmem %s31_s27, 128  ;;  %p583_p12 = scmp.lt.s32.totalorder %s31_s27, %s31_s27 }
  0x1a   :  { %p579_p11 = scmp.ne.s32.totalorder %s31_s27, %s578_s8  ;;  %p584_p13 = scmp.lt.s32.totalorder %s578_s8, %s578_s8 }
  0x1c   :  { %p585_p0 = por %p584_p13, %p583_p12 }
  0x1e   :  { %p586_p1 = pnand %p585_p0, %p579_p11 }
  0x20   :  { %589 = shalt.err (!%p586_p1)
}
  0x21   :  { %33 = dma.hbm_to_vmem [thread:$0]  %s696_s2, 128, %s31_s27, [#allocation5]  }
  0x22   :  { %590 = dma.done.wait [#allocation3], 4096  }
  0x23   :  { %591 = vsyncadd [#allocation3], 4294963200 }
  0x24   :  { %592 = dma.done.wait [#allocation5], 128  }
  0x25   :  { %593 = vsyncadd [#allocation5], 4294967168  ;;  %v598_v0 = vmov 0.0   ;;  %v42_v1 = vld [vmem:[#allocation2 + $0x8] sm:$0xff]  ;;  %v44_v3 = vld [vmem:[#allocation2 + $0x18] sm:$0xff]  ;;  %vm115_vm0 = vcmask 261120   ;;  %v75_v50 = vlaneseq }
  0x26   :  { %183 = vmatprep.mubr.f32.mxu0 %v598_v0  ;;  %254 = vmatprep.mubr.f32.mxu1 %v598_v0  ;;  %v50_v2 = vld [vmem:[#allocation2 + $0x48] sm:$0xff]  ;;  %v52_v5 = vld [vmem:[#allocation2 + $0x58] sm:$0xff]  ;;  %v41_v6 = vld [vmem:[#allocation2] sm:$0xff] }
  0x27   :  { %v477_v4 = vpack.c.bf16 %v50_v2, %v42_v1  ;;  %v49_v7 = vld [vmem:[#allocation2 + $0x40] sm:$0xff]  ;;  %v485_v8 = vpack.c.bf16 %v52_v5, %v44_v3  ;;  %v43_v10 = vld [vmem:[#allocation2 + $0x10] sm:$0xff]  ;;  %v58_v12 = vld [vmem:[#allocation2 + $0x88] sm:$0xff]  ;;  %v76_v51 = vshrl.u32 %v75_v50, 7 }
  0x28   :  { %v479_v9 = vpack.c.bf16 %v49_v7, %v41_v6  ;;  %v51_v11 = vld [vmem:[#allocation2 + $0x50] sm:$0xff]  ;;  %v66_v14 = vld [vmem:[#allocation2 + $0xc8] sm:$0xff]  ;;  %v60_v15 = vld [vmem:[#allocation2 + $0x98] sm:$0xff] }
  0x29   :  { %478 = vmatprep.subr.bf16.mxu0 %v477_v4  ;;  %v487_v13 = vpack.c.bf16 %v51_v11, %v43_v10  ;;  %v68_v16 = vld [vmem:[#allocation2 + $0xd8] sm:$0xff]  ;;  %486 = vmatprep.subr.bf16.mxu1 %v485_v8  ;;  %v481_v17 = vpack.c.bf16 %v66_v14, %v58_v12  ;;  %v57_v19 = vld [vmem:[#allocation2 + $0x80] sm:$0xff]  ;;  %v59_v21 = vld [vmem:[#allocation2 + $0x90] sm:$0xff]  ;;  %v77_v52 = vsub.s32 0, %v76_v51  ;;  %v85_v54 = vsub.s32 2, %v76_v51 }
  0x2a   :  { %480 = vmatpush1.bf16.msra.mxu0 %v479_v9  ;;  %v489_v18 = vpack.c.bf16 %v68_v16, %v60_v15  ;;  %v65_v20 = vld [vmem:[#allocation2 + $0xc0] sm:$0xff]  ;;  %v67_v23 = vld [vmem:[#allocation2 + $0xd0] sm:$0xff]  ;;  %v46_v24 = vld [vmem:[#allocation2 + $0x28] sm:$0xff]  ;;  %v81_v55 = vsub.s32 1, %v76_v51  ;;  %v89_v56 = vsub.s32 3, %v76_v51  ;;  %v93_v1 = vsub.s32 4, %v76_v51 }
  0x2b   :  { %488 = vmatpush1.bf16.msra.mxu1 %v487_v13  ;;  %v483_v22 = vpack.c.bf16 %v65_v20, %v57_v19  ;;  %482 = vmatprep.subr.bf16.mxu0 %v481_v17  ;;  %v491_v25 = vpack.c.bf16 %v67_v23, %v59_v21  ;;  %v40_v26 = vld [vmem:[%s694_s0] sm:$0xff]  ;;  %v54_v27 = vld [vmem:[#allocation2 + $0x68] sm:$0xff]  ;;  %v48_v28 = vld [vmem:[#allocation2 + $0x38] sm:$0xff]  ;;  %v101_v5 = vsub.s32 6, %v76_v51  ;;  %v97_v6 = vsub.s32 5, %v76_v51 }
  0x2c   :  { %490 = vmatprep.subr.bf16.mxu1 %v489_v18  ;;  %v56_v29 = vld [vmem:[#allocation2 + $0x78] sm:$0xff]  ;;  %v493_v30 = vpack.c.bf16 %v54_v27, %v46_v24  ;;  %v45_v32 = vld [vmem:[#allocation2 + $0x20] sm:$0xff]  ;;  %v47_v34 = vld [vmem:[#allocation2 + $0x30] sm:$0xff]  ;;  %v105_v9 = vsub.s32 7, %v76_v51 }
  0x2d   :  { %v501_v31 = vpack.c.bf16 %v56_v29, %v48_v28  ;;  %v53_v33 = vld [vmem:[#allocation2 + $0x60] sm:$0xff]  ;;  %v55_v36 = vld [vmem:[#allocation2 + $0x70] sm:$0xff]  ;;  %v62_v37 = vld [vmem:[#allocation2 + $0xa8] sm:$0xff] }
  0x2e   :  { %484 = vmatpush1.bf16.msra.mxu0 %v483_v22  ;;  %v495_v35 = vpack.c.bf16 %v53_v33, %v45_v32  ;;  %v70_v38 = vld [vmem:[#allocation2 + $0xe8] sm:$0xff]  ;;  %v503_v39 = vpack.c.bf16 %v55_v36, %v47_v34  ;;  %v64_v41 = vld [vmem:[#allocation2 + $0xb8] sm:$0xff]  ;;  %v61_v43 = vld [vmem:[#allocation2 + $0xa0] sm:$0xff] }
  0x2f   :  { %492 = vmatpush1.bf16.msra.mxu1 %v491_v25  ;;  %494 = vmatprep.subr.bf16.mxu0 %v493_v30  ;;  %v497_v40 = vpack.c.bf16 %v70_v38, %v62_v37  ;;  %v72_v42 = vld [vmem:[#allocation2 + $0xf8] sm:$0xff]  ;;  %v69_v45 = vld [vmem:[#allocation2 + $0xe0] sm:$0xff]  ;;  %v63_v46 = vld [vmem:[#allocation2 + $0xb0] sm:$0xff] }
  0x30   :  { %502 = vmatprep.subr.bf16.mxu1 %v501_v31  ;;  %v505_v44 = vpack.c.bf16 %v72_v42, %v64_v41  ;;  %v71_v47 = vld [vmem:[#allocation2 + $0xf0] sm:$0xff]  ;;  %v499_v48 = vpack.c.bf16 %v69_v45, %v61_v43  ;;  %v73_v53 = vld [vmem:[#allocation4] sm:$0xff] }
  0x31   :  { %473 = vmatmul.mubr.msk.f32.vlgmr.msra.gmra.mrb[0].mxu0 %vm115_vm0, %v40_v26  ;;  %v507_v49 = vpack.c.bf16 %v71_v47, %v63_v46  ;;  %v78_v57 = vrot.slane %v73_v53, %v77_v52  ;;  %v86_v58 = vrot.slane %v73_v53, %v85_v54  ;;  %v82_v59 = vrot.slane %v73_v53, %v81_v55 }
  0x32   :  { %474 = vmatmul.mubr.msk.f32.vlgmr.msra.gmra.mrb[0].mxu1 %vm115_vm0, %v40_v26  ;;  %496 = vmatpush1.bf16.msra.mxu0 %v495_v35  ;;  %v90_v60 = vrot.slane %v73_v53, %v89_v56  ;;  %v94_v14 = vrot.slane %v73_v53, %v93_v1  ;;  %v102_v17 = vrot.slane %v73_v53, %v101_v5 }
  0x33   :  { %504 = vmatpush1.bf16.msra.mxu1 %v503_v39  ;;  %498 = vmatprep.subr.bf16.mxu0 %v497_v40  ;;  %v98_v18 = vrot.slane %v73_v53, %v97_v6  ;;  %v106_v20 = vrot.slane %v73_v53, %v105_v9 }
  0x34   :  { %506 = vmatprep.subr.bf16.mxu1 %v505_v44  ;;  %325 = vmatprep.mubr.f32.mxu0 %v598_v0 }
  0x35   :  { %396 = vmatprep.mubr.f32.mxu1 %v598_v0 }
  0x36   :  { %500 = vmatpush1.bf16.msra.mxu0 %v499_v48 }
  0x37   :  { %508 = vmatpush1.bf16.msra.mxu1 %v507_v49 }
  0x39   :  { %475 = vmatmul.mubr.msk.f32.vlgmr.msra.gmra.mrb[2].mxu0 %vm115_vm0, %v40_v26 }
  0x3a   :  { %476 = vmatmul.mubr.msk.f32.vlgmr.msra.gmra.mrb[2].mxu1 %vm115_vm0, %v40_v26 }
 0x104   :  { %v185_v61 = vpop.f32.mrb[0].mxu0 }
 0x105   :  { %v654_v62 = vadd.f32 %v185_v61, %v78_v57  ;;  %v256_v63 = vpop.f32.mrb[0].mxu1  ;;  %v187_v0 = vpop.f32.mrb[1].mxu0 }
 0x106   :  { %v656_v2 = vadd.f32 %v256_v63, %v86_v58  ;;  %v658_v3 = vadd.f32 %v187_v0, %v82_v59  ;;  %v258_v4 = vpop.f32.mrb[1].mxu1 }
 0x107   :  { %v403_v7 = vsub.f32 0.0, %v654_v62  ;;  %v661_v8 = vadd.f32 %v258_v4, %v90_v60 }
 0x108   :  { %v405_v10 = vsub.f32 0.0, %v656_v2  ;;  %v404_v11 = vsub.f32 0.0, %v658_v3 }
 0x109   :  { %v411_v12 = vmul.f32 1.442695, %v403_v7  ;;  %v406_v13 = vsub.f32 0.0, %v661_v8 }
 0x10a   :  { %v415_v15 = vmul.f32 1.442695, %v405_v10  ;;  %v413_v16 = vmul.f32 1.442695, %v404_v11 }
 0x10b   :  { %514 = vpow2.f32 %v411_v12  ;;  %v417_v19 = vmul.f32 1.442695, %v406_v13 }
 0x10c   :  { %516 = vpow2.f32 %v415_v15  ;;  %v327_v21 = vpop.f32.mrb[2].mxu0 }
 0x10d   :  { %518 = vpow2.f32 %v413_v16  ;;  %v328_v22 = vadd.f32 %v327_v21, %v94_v14  ;;  %v398_v23 = vpop.f32.mrb[2].mxu1  ;;  %v329_v24 = vpop.f32.mrb[3].mxu0 }
 0x10e   :  { %520 = vpow2.f32 %v417_v19  ;;  %v399_v25 = vadd.f32 %v398_v23, %v102_v17  ;;  %v330_v26 = vadd.f32 %v329_v24, %v98_v18  ;;  %v400_v27 = vpop.f32.mrb[3].mxu1 }
 0x10f   :  { %v407_v28 = vsub.f32 0.0, %v328_v22  ;;  %v401_v29 = vadd.f32 %v400_v27, %v106_v20 }
 0x110   :  { %v409_v30 = vsub.f32 0.0, %v399_v25  ;;  %v408_v31 = vsub.f32 0.0, %v330_v26 }
 0x111   :  { %v419_v32 = vmul.f32 1.442695, %v407_v28  ;;  %v410_v33 = vsub.f32 0.0, %v401_v29 }
 0x112   :  { %v423_v34 = vmul.f32 1.442695, %v409_v30  ;;  %v421_v35 = vmul.f32 1.442695, %v408_v31 }
 0x113   :  { %522 = vpow2.f32 %v419_v32  ;;  %v425_v36 = vmul.f32 1.442695, %v410_v33 }
 0x114   :  { %524 = vpow2.f32 %v423_v34 }
 0x115   :  { %v515_v37 = vpop.eup %514  ;;  %526 = vpow2.f32 %v421_v35 }
 0x116   :  { %v517_v38 = vpop.eup %516  ;;  %v427_v39 = vadd.f32 1.0, %v515_v37  ;;  %528 = vpow2.f32 %v425_v36 }
 0x117   :  { %v519_v40 = vpop.eup %518  ;;  %v429_v41 = vadd.f32 1.0, %v517_v38 }
 0x118   :  { %v521_v42 = vpop.eup %520  ;;  %530 = vrcp.f32 %v427_v39  ;;  %v428_v43 = vadd.f32 1.0, %v519_v40 }
 0x119   :  { %532 = vrcp.f32 %v429_v41  ;;  %v430_v44 = vadd.f32 1.0, %v521_v42 }
 0x11a   :  { %534 = vrcp.f32 %v428_v43 }
 0x11b   :  { %536 = vrcp.f32 %v430_v44 }
 0x11d   :  { %v523_v45 = vpop.eup %522 }
 0x11e   :  { %v525_v46 = vpop.eup %524  ;;  %v431_v47 = vadd.f32 1.0, %v523_v45 }
 0x11f   :  { %v527_v48 = vpop.eup %526  ;;  %v433_v49 = vadd.f32 1.0, %v525_v46 }
 0x120   :  { %v529_v50 = vpop.eup %528  ;;  %538 = vrcp.f32 %v431_v47  ;;  %v432_v51 = vadd.f32 1.0, %v527_v48 }
 0x121   :  { %540 = vrcp.f32 %v433_v49  ;;  %v434_v52 = vadd.f32 1.0, %v529_v50 }
 0x122   :  { %v531_v53 = vpop.eup %530  ;;  %542 = vrcp.f32 %v432_v51 }
 0x123   :  { %v533_v54 = vpop.eup %532  ;;  %v451_v55 = vmul.f32 %v531_v53, %v654_v62  ;;  %544 = vrcp.f32 %v434_v52 }
 0x124   :  { %v535_v56 = vpop.eup %534  ;;  %v453_v57 = vmul.f32 %v533_v54, %v656_v2 }
 0x125   :  { %v537_v58 = vpop.eup %536  ;;  %459 = vst [vmem:[%s697_s3] sm:$0xff] %v451_v55  ;;  %v452_v59 = vmul.f32 %v535_v56, %v658_v3 }
 0x126   :  { %461 = vst [vmem:[%s697_s3 + $0x10] sm:$0xff] %v453_v57  ;;  %v454_v60 = vmul.f32 %v537_v58, %v661_v8 }
 0x127   :  { %460 = vst [vmem:[%s697_s3 + $0x8] sm:$0xff] %v452_v59 }
 0x128   :  { %462 = vst [vmem:[%s697_s3 + $0x18] sm:$0xff] %v454_v60 }
 0x12a   :  { %v539_v61 = vpop.eup %538 }
 0x12b   :  { %v541_v62 = vpop.eup %540  ;;  %v455_v63 = vmul.f32 %v539_v61, %v328_v22 }
 0x12c   :  { %v543_v0 = vpop.eup %542  ;;  %v457_v1 = vmul.f32 %v541_v62, %v399_v25 }
 0x12d   :  { %v545_v2 = vpop.eup %544  ;;  %463 = vst [vmem:[%s697_s3 + $0x20] sm:$0xff] %v455_v63  ;;  %v456_v3 = vmul.f32 %v543_v0, %v330_v26 }
 0x12e   :  { %465 = vst [vmem:[%s697_s3 + $0x30] sm:$0xff] %v457_v1  ;;  %v458_v4 = vmul.f32 %v545_v2, %v401_v29 }
 0x12f   :  { %464 = vst [vmem:[%s697_s3 + $0x28] sm:$0xff] %v456_v3 }
 0x130   :  { %466 = vst [vmem:[%s697_s3 + $0x38] sm:$0xff] %v458_v4 }
 0x131   :  { %471 = vsyncpa [#allocation3], 1 }
 0x132   :  { %472 = vsyncpa [#allocation5], 1 }

// kernel: image_decoder_forward.7
= control target key start
LH: loop header
LB: loop body
LE: loop exit
PB: predicated region body
PF: predicated region fallthrough
CT: control target
= control target key end

     0   :  { %7 = vsyncpa [#allocation3], 0  ;;  %s1669_s9 = smov [#allocation2]   ;;  %s1779_s0 = inlined_call_operand.vmem [shape: f32[8,256], index: 0, kind: input, shape index: {}]   ;;  %s1780_s1 = inlined_call_operand.hbm [shape: f32[256,2048], index: 1, kind: input, shape index: {}]   ;;  %s1781_s2 = inlined_call_operand.vmem [shape: f32[8,2048], index: 2, kind: output, shape index: {}]  }
   0x1   :  { %s15_s10 = sshll.u32 %s1669_s9, 4  ;;  %s1645_s13 = scalar_lea.hbm %s1780_s1, 65536  ;;  %s16_s10 = int_to_ptr.vmem [resolvable:$true] %s15_s10 }
   0x2   :  { %p1646_p0 = scmp.ne.s32.totalorder %s1780_s1, %s1645_s13  ;;  %p1649_p1 = scmp.lt.u32.totalorder %s1645_s13, %s1780_s1 }
   0x4   :  { %p1651_p2 = pnand %p1649_p1, %p1646_p0 }
   0x6   :  { %1654 = shalt.err (!%p1651_p2)
}
   0x7   :  { %s1655_s18 = scalar_lea.vmem %s16_s10, 65536  ;;  %p1660_p4 = scmp.lt.s32.totalorder %s16_s10, %s16_s10 }
   0x8   :  { %p1656_p3 = scmp.ne.s32.totalorder %s16_s10, %s1655_s18  ;;  %p1661_p5 = scmp.lt.s32.totalorder %s1655_s18, %s1655_s18 }
   0xa   :  { %p1662_p6 = por %p1661_p5, %p1660_p4 }
   0xc   :  { %p1663_p7 = pnand %p1662_p6, %p1656_p3 }
   0xe   :  { %1666 = shalt.err (!%p1663_p7)
}
   0xf   :  { %s1670_s19 = smov 2048   ;;  %s1671_s20 = smov 128  }
  0x10   :  { %21 = dma.hbm_to_vmem [thread:$0]  %s1780_s1, 65536, %s16_s10, [#allocation3], %s1670_s19, %s1670_s19, %s1671_s20  }
  0x11   :  { %1667 = dma.done.wait [#allocation3], 65536  }
  0x12   :  { %1668 = vsyncadd [#allocation3], 4294901760  ;;  %v28_v0 = vld [vmem:[#allocation2 + $0x8] sm:$0xff]  ;;  %v30_v2 = vld [vmem:[#allocation2 + $0x18] sm:$0xff] }
  0x13   :  { %v44_v1 = vld [vmem:[#allocation2 + $0x88] sm:$0xff]  ;;  %v46_v4 = vld [vmem:[#allocation2 + $0x98] sm:$0xff]  ;;  %v27_v5 = vld [vmem:[#allocation2] sm:$0xff] }
  0x14   :  { %v1128_v3 = vpack.c.bf16 %v44_v1, %v28_v0  ;;  %v43_v6 = vld [vmem:[#allocation2 + $0x80] sm:$0xff]  ;;  %v1192_v7 = vpack.c.bf16 %v46_v4, %v30_v2  ;;  %v29_v9 = vld [vmem:[#allocation2 + $0x10] sm:$0xff]  ;;  %v60_v11 = vld [vmem:[#allocation2 + $0x108] sm:$0xff] }
  0x15   :  { %v1130_v8 = vpack.c.bf16 %v43_v6, %v27_v5  ;;  %v45_v10 = vld [vmem:[#allocation2 + $0x90] sm:$0xff]  ;;  %v76_v13 = vld [vmem:[#allocation2 + $0x188] sm:$0xff]  ;;  %v62_v14 = vld [vmem:[#allocation2 + $0x118] sm:$0xff] }
  0x16   :  { %1129 = vmatprep.subr.bf16.mxu0 %v1128_v3  ;;  %v1194_v12 = vpack.c.bf16 %v45_v10, %v29_v9  ;;  %v78_v15 = vld [vmem:[#allocation2 + $0x198] sm:$0xff]  ;;  %1193 = vmatprep.subr.bf16.mxu1 %v1192_v7  ;;  %v1132_v16 = vpack.c.bf16 %v76_v13, %v60_v11  ;;  %v59_v18 = vld [vmem:[#allocation2 + $0x100] sm:$0xff]  ;;  %v61_v20 = vld [vmem:[#allocation2 + $0x110] sm:$0xff] }
  0x17   :  { %1131 = vmatpush1.bf16.msra.mxu0 %v1130_v8  ;;  %v1196_v17 = vpack.c.bf16 %v78_v15, %v62_v14  ;;  %v75_v19 = vld [vmem:[#allocation2 + $0x180] sm:$0xff]  ;;  %v77_v22 = vld [vmem:[#allocation2 + $0x190] sm:$0xff]  ;;  %v92_v23 = vld [vmem:[#allocation2 + $0x208] sm:$0xff] }
  0x18   :  { %1195 = vmatpush1.bf16.msra.mxu1 %v1194_v12  ;;  %v1134_v21 = vpack.c.bf16 %v75_v19, %v59_v18  ;;  %v108_v24 = vld [vmem:[#allocation2 + $0x288] sm:$0xff]  ;;  %1133 = vmatprep.subr.bf16.mxu0 %v1132_v16  ;;  %v1198_v25 = vpack.c.bf16 %v77_v22, %v61_v20  ;;  %v94_v27 = vld [vmem:[#allocation2 + $0x218] sm:$0xff]  ;;  %v91_v29 = vld [vmem:[#allocation2 + $0x200] sm:$0xff] }
  0x19   :  { %1197 = vmatprep.subr.bf16.mxu1 %v1196_v17  ;;  %v1136_v26 = vpack.c.bf16 %v108_v24, %v92_v23  ;;  %v110_v28 = vld [vmem:[#allocation2 + $0x298] sm:$0xff]  ;;  %v107_v31 = vld [vmem:[#allocation2 + $0x280] sm:$0xff]  ;;  %v93_v32 = vld [vmem:[#allocation2 + $0x210] sm:$0xff] }
  0x1a   :  { %v1200_v30 = vpack.c.bf16 %v110_v28, %v94_v27  ;;  %v109_v33 = vld [vmem:[#allocation2 + $0x290] sm:$0xff]  ;;  %v1138_v34 = vpack.c.bf16 %v107_v31, %v91_v29  ;;  %v124_v35 = vld [vmem:[#allocation2 + $0x308] sm:$0xff]  ;;  %v126_v37 = vld [vmem:[#allocation2 + $0x318] sm:$0xff] }
  0x1b   :  { %1135 = vmatpush1.bf16.msra.mxu0 %v1134_v21  ;;  %v140_v36 = vld [vmem:[#allocation2 + $0x388] sm:$0xff]  ;;  %v1202_v38 = vpack.c.bf16 %v109_v33, %v93_v32  ;;  %v142_v40 = vld [vmem:[#allocation2 + $0x398] sm:$0xff]  ;;  %v123_v41 = vld [vmem:[#allocation2 + $0x300] sm:$0xff] }
  0x1c   :  { %1199 = vmatpush1.bf16.msra.mxu1 %v1198_v25  ;;  %1137 = vmatprep.subr.bf16.mxu0 %v1136_v26  ;;  %v1140_v39 = vpack.c.bf16 %v140_v36, %v124_v35  ;;  %v139_v42 = vld [vmem:[#allocation2 + $0x380] sm:$0xff]  ;;  %v1204_v43 = vpack.c.bf16 %v142_v40, %v126_v37  ;;  %v125_v44 = vld [vmem:[#allocation2 + $0x310] sm:$0xff]  ;;  %v156_v46 = vld [vmem:[#allocation2 + $0x408] sm:$0xff] }
  0x1d   :  { %1201 = vmatprep.subr.bf16.mxu1 %v1200_v30  ;;  %v141_v45 = vld [vmem:[#allocation2 + $0x390] sm:$0xff]  ;;  %v172_v47 = vld [vmem:[#allocation2 + $0x488] sm:$0xff]  ;;  %v158_v48 = vld [vmem:[#allocation2 + $0x418] sm:$0xff]  ;;  %v1142_v50 = vpack.c.bf16 %v139_v42, %v123_v41 }
  0x1e   :  { %v174_v49 = vld [vmem:[#allocation2 + $0x498] sm:$0xff]  ;;  %v1206_v51 = vpack.c.bf16 %v141_v45, %v125_v44  ;;  %v1144_v52 = vpack.c.bf16 %v172_v47, %v156_v46  ;;  %v155_v53 = vld [vmem:[#allocation2 + $0x400] sm:$0xff]  ;;  %v157_v55 = vld [vmem:[#allocation2 + $0x410] sm:$0xff] }
  0x1f   :  { %1139 = vmatpush1.bf16.msra.mxu0 %v1138_v34  ;;  %v171_v54 = vld [vmem:[#allocation2 + $0x480] sm:$0xff]  ;;  %v1208_v56 = vpack.c.bf16 %v174_v49, %v158_v48  ;;  %v173_v57 = vld [vmem:[#allocation2 + $0x490] sm:$0xff]  ;;  %v188_v58 = vld [vmem:[#allocation2 + $0x508] sm:$0xff] }
  0x20   :  { %1203 = vmatpush1.bf16.msra.mxu1 %v1202_v38  ;;  %1141 = vmatprep.subr.bf16.mxu0 %v1140_v39  ;;  %v204_v59 = vld [vmem:[#allocation2 + $0x588] sm:$0xff]  ;;  %v190_v60 = vld [vmem:[#allocation2 + $0x518] sm:$0xff]  ;;  %v1146_v62 = vpack.c.bf16 %v171_v54, %v155_v53  ;;  %v1210_v63 = vpack.c.bf16 %v173_v57, %v157_v55  ;;  %v187_v1 = vld [vmem:[#allocation2 + $0x500] sm:$0xff] }
  0x21   :  { %1205 = vmatprep.subr.bf16.mxu1 %v1204_v43  ;;  %v206_v61 = vld [vmem:[#allocation2 + $0x598] sm:$0xff]  ;;  %v1148_v0 = vpack.c.bf16 %v204_v59, %v188_v58  ;;  %v203_v2 = vld [vmem:[#allocation2 + $0x580] sm:$0xff]  ;;  %v189_v3 = vld [vmem:[#allocation2 + $0x510] sm:$0xff] }
  0x22   :  { %v1212_v4 = vpack.c.bf16 %v206_v61, %v190_v60  ;;  %v205_v5 = vld [vmem:[#allocation2 + $0x590] sm:$0xff]  ;;  %v220_v6 = vld [vmem:[#allocation2 + $0x608] sm:$0xff]  ;;  %v222_v8 = vld [vmem:[#allocation2 + $0x618] sm:$0xff]  ;;  %v1150_v10 = vpack.c.bf16 %v203_v2, %v187_v1 }
  0x23   :  { %1143 = vmatpush1.bf16.msra.mxu0 %v1142_v50  ;;  %v236_v7 = vld [vmem:[#allocation2 + $0x688] sm:$0xff]  ;;  %v238_v9 = vld [vmem:[#allocation2 + $0x698] sm:$0xff]  ;;  %v1214_v11 = vpack.c.bf16 %v205_v5, %v189_v3  ;;  %v219_v13 = vld [vmem:[#allocation2 + $0x600] sm:$0xff] }
  0x24   :  { %1207 = vmatpush1.bf16.msra.mxu1 %v1206_v51  ;;  %1145 = vmatprep.subr.bf16.mxu0 %v1144_v52  ;;  %v1152_v12 = vpack.c.bf16 %v236_v7, %v220_v6  ;;  %v235_v14 = vld [vmem:[#allocation2 + $0x680] sm:$0xff]  ;;  %v221_v15 = vld [vmem:[#allocation2 + $0x610] sm:$0xff]  ;;  %v1216_v16 = vpack.c.bf16 %v238_v9, %v222_v8  ;;  %v252_v18 = vld [vmem:[#allocation2 + $0x708] sm:$0xff] }
  0x25   :  { %1209 = vmatprep.subr.bf16.mxu1 %v1208_v56  ;;  %v237_v17 = vld [vmem:[#allocation2 + $0x690] sm:$0xff]  ;;  %v268_v19 = vld [vmem:[#allocation2 + $0x788] sm:$0xff]  ;;  %v254_v20 = vld [vmem:[#allocation2 + $0x718] sm:$0xff]  ;;  %v1154_v22 = vpack.c.bf16 %v235_v14, %v219_v13 }
  0x26   :  { %v270_v21 = vld [vmem:[#allocation2 + $0x798] sm:$0xff]  ;;  %v1218_v23 = vpack.c.bf16 %v237_v17, %v221_v15  ;;  %v1156_v24 = vpack.c.bf16 %v268_v19, %v252_v18  ;;  %v251_v25 = vld [vmem:[#allocation2 + $0x700] sm:$0xff]  ;;  %v253_v27 = vld [vmem:[#allocation2 + $0x710] sm:$0xff] }
  0x27   :  { %1147 = vmatpush1.bf16.msra.mxu0 %v1146_v62  ;;  %v267_v26 = vld [vmem:[#allocation2 + $0x780] sm:$0xff]  ;;  %v1220_v28 = vpack.c.bf16 %v270_v21, %v254_v20  ;;  %v269_v29 = vld [vmem:[#allocation2 + $0x790] sm:$0xff]  ;;  %v284_v30 = vld [vmem:[#allocation2 + $0x808] sm:$0xff] }
  0x28   :  { %1211 = vmatpush1.bf16.msra.mxu1 %v1210_v63  ;;  %1149 = vmatprep.subr.bf16.mxu0 %v1148_v0  ;;  %v300_v31 = vld [vmem:[#allocation2 + $0x888] sm:$0xff]  ;;  %v286_v32 = vld [vmem:[#allocation2 + $0x818] sm:$0xff]  ;;  %v1158_v34 = vpack.c.bf16 %v267_v26, %v251_v25  ;;  %v1222_v35 = vpack.c.bf16 %v269_v29, %v253_v27  ;;  %v283_v37 = vld [vmem:[#allocation2 + $0x800] sm:$0xff] }
  0x29   :  { %1213 = vmatprep.subr.bf16.mxu1 %v1212_v4  ;;  %v302_v33 = vld [vmem:[#allocation2 + $0x898] sm:$0xff]  ;;  %v1160_v36 = vpack.c.bf16 %v300_v31, %v284_v30  ;;  %v299_v38 = vld [vmem:[#allocation2 + $0x880] sm:$0xff]  ;;  %v285_v39 = vld [vmem:[#allocation2 + $0x810] sm:$0xff] }
  0x2a   :  { %v1224_v40 = vpack.c.bf16 %v302_v33, %v286_v32  ;;  %v301_v41 = vld [vmem:[#allocation2 + $0x890] sm:$0xff]  ;;  %v316_v42 = vld [vmem:[#allocation2 + $0x908] sm:$0xff]  ;;  %v318_v44 = vld [vmem:[#allocation2 + $0x918] sm:$0xff]  ;;  %v1162_v46 = vpack.c.bf16 %v299_v38, %v283_v37 }
  0x2b   :  { %1151 = vmatpush1.bf16.msra.mxu0 %v1150_v10  ;;  %v332_v43 = vld [vmem:[#allocation2 + $0x988] sm:$0xff]  ;;  %v334_v45 = vld [vmem:[#allocation2 + $0x998] sm:$0xff]  ;;  %v1226_v47 = vpack.c.bf16 %v301_v41, %v285_v39  ;;  %v315_v49 = vld [vmem:[#allocation2 + $0x900] sm:$0xff] }
  0x2c   :  { %1215 = vmatpush1.bf16.msra.mxu1 %v1214_v11  ;;  %1153 = vmatprep.subr.bf16.mxu0 %v1152_v12  ;;  %v1164_v48 = vpack.c.bf16 %v332_v43, %v316_v42  ;;  %v331_v50 = vld [vmem:[#allocation2 + $0x980] sm:$0xff]  ;;  %v317_v51 = vld [vmem:[#allocation2 + $0x910] sm:$0xff]  ;;  %v1228_v52 = vpack.c.bf16 %v334_v45, %v318_v44  ;;  %v348_v54 = vld [vmem:[#allocation2 + $0xa08] sm:$0xff] }
  0x2d   :  { %1217 = vmatprep.subr.bf16.mxu1 %v1216_v16  ;;  %v333_v53 = vld [vmem:[#allocation2 + $0x990] sm:$0xff]  ;;  %v364_v55 = vld [vmem:[#allocation2 + $0xa88] sm:$0xff]  ;;  %v350_v56 = vld [vmem:[#allocation2 + $0xa18] sm:$0xff]  ;;  %v1166_v58 = vpack.c.bf16 %v331_v50, %v315_v49 }
  0x2e   :  { %v366_v57 = vld [vmem:[#allocation2 + $0xa98] sm:$0xff]  ;;  %v1230_v59 = vpack.c.bf16 %v333_v53, %v317_v51  ;;  %v1168_v60 = vpack.c.bf16 %v364_v55, %v348_v54  ;;  %v347_v61 = vld [vmem:[#allocation2 + $0xa00] sm:$0xff]  ;;  %v349_v63 = vld [vmem:[#allocation2 + $0xa10] sm:$0xff] }
  0x2f   :  { %1155 = vmatpush1.bf16.msra.mxu0 %v1154_v22  ;;  %v363_v62 = vld [vmem:[#allocation2 + $0xa80] sm:$0xff]  ;;  %v1232_v0 = vpack.c.bf16 %v366_v57, %v350_v56  ;;  %v365_v1 = vld [vmem:[#allocation2 + $0xa90] sm:$0xff]  ;;  %v380_v2 = vld [vmem:[#allocation2 + $0xb08] sm:$0xff] }
  0x30   :  { %1219 = vmatpush1.bf16.msra.mxu1 %v1218_v23  ;;  %1157 = vmatprep.subr.bf16.mxu0 %v1156_v24  ;;  %v396_v3 = vld [vmem:[#allocation2 + $0xb88] sm:$0xff]  ;;  %v382_v4 = vld [vmem:[#allocation2 + $0xb18] sm:$0xff]  ;;  %v1170_v6 = vpack.c.bf16 %v363_v62, %v347_v61  ;;  %v379_v7 = vld [vmem:[#allocation2 + $0xb00] sm:$0xff]  ;;  %v1234_v8 = vpack.c.bf16 %v365_v1, %v349_v63 }
  0x31   :  { %1221 = vmatprep.subr.bf16.mxu1 %v1220_v28  ;;  %v398_v5 = vld [vmem:[#allocation2 + $0xb98] sm:$0xff]  ;;  %v1172_v9 = vpack.c.bf16 %v396_v3, %v380_v2  ;;  %v395_v10 = vld [vmem:[#allocation2 + $0xb80] sm:$0xff]  ;;  %v381_v11 = vld [vmem:[#allocation2 + $0xb10] sm:$0xff] }
  0x32   :  { %v397_v12 = vld [vmem:[#allocation2 + $0xb90] sm:$0xff]  ;;  %v1236_v13 = vpack.c.bf16 %v398_v5, %v382_v4  ;;  %v412_v14 = vld [vmem:[#allocation2 + $0xc08] sm:$0xff]  ;;  %v414_v17 = vld [vmem:[#allocation2 + $0xc18] sm:$0xff]  ;;  %v1174_v19 = vpack.c.bf16 %v395_v10, %v379_v7 }
  0x33   :  { %1159 = vmatpush1.bf16.msra.mxu0 %v1158_v34  ;;  %v428_v15 = vld [vmem:[#allocation2 + $0xc88] sm:$0xff]  ;;  %v430_v18 = vld [vmem:[#allocation2 + $0xc98] sm:$0xff]  ;;  %v1238_v20 = vpack.c.bf16 %v397_v12, %v381_v11  ;;  %v411_v22 = vld [vmem:[#allocation2 + $0xc00] sm:$0xff] }
  0x34   :  { %1223 = vmatpush1.bf16.msra.mxu1 %v1222_v35  ;;  %1161 = vmatprep.subr.bf16.mxu0 %v1160_v36  ;;  %v1702_v16 = vld [vmem:[%s1779_s0 + $0x8] sm:$0xff]  ;;  %v1176_v21 = vpack.c.bf16 %v428_v15, %v412_v14  ;;  %v427_v23 = vld [vmem:[#allocation2 + $0xc80] sm:$0xff]  ;;  %v413_v24 = vld [vmem:[#allocation2 + $0xc10] sm:$0xff]  ;;  %v1240_v25 = vpack.c.bf16 %v430_v18, %v414_v17 }
  0x35   :  { %1225 = vmatprep.subr.bf16.mxu1 %v1224_v40  ;;  %603 = vmatprep.mubr.f32.mxu0 %v1702_v16  ;;  %v429_v26 = vld [vmem:[#allocation2 + $0xc90] sm:$0xff]  ;;  %v444_v27 = vld [vmem:[#allocation2 + $0xd08] sm:$0xff]  ;;  %v446_v29 = vld [vmem:[#allocation2 + $0xd18] sm:$0xff]  ;;  %v1178_v31 = vpack.c.bf16 %v427_v23, %v411_v22 }
  0x36   :  { %674 = vmatprep.mubr.f32.mxu1 %v1702_v16  ;;  %v460_v28 = vld [vmem:[#allocation2 + $0xd88] sm:$0xff]  ;;  %v462_v30 = vld [vmem:[#allocation2 + $0xd98] sm:$0xff]  ;;  %v1242_v32 = vpack.c.bf16 %v429_v26, %v413_v24  ;;  %v443_v34 = vld [vmem:[#allocation2 + $0xd00] sm:$0xff] }
  0x37   :  { %1163 = vmatpush1.bf16.msra.mxu0 %v1162_v46  ;;  %v1180_v33 = vpack.c.bf16 %v460_v28, %v444_v27  ;;  %v459_v35 = vld [vmem:[#allocation2 + $0xd80] sm:$0xff]  ;;  %v445_v36 = vld [vmem:[#allocation2 + $0xd10] sm:$0xff]  ;;  %v1244_v37 = vpack.c.bf16 %v462_v30, %v446_v29  ;;  %v476_v39 = vld [vmem:[#allocation2 + $0xe08] sm:$0xff] }
  0x38   :  { %1227 = vmatpush1.bf16.msra.mxu1 %v1226_v47  ;;  %1165 = vmatprep.subr.bf16.mxu0 %v1164_v48  ;;  %v461_v38 = vld [vmem:[#allocation2 + $0xd90] sm:$0xff]  ;;  %v492_v40 = vld [vmem:[#allocation2 + $0xe88] sm:$0xff]  ;;  %v478_v41 = vld [vmem:[#allocation2 + $0xe18] sm:$0xff]  ;;  %v1182_v43 = vpack.c.bf16 %v459_v35, %v443_v34 }
  0x39   :  { %1229 = vmatprep.subr.bf16.mxu1 %v1228_v52  ;;  %v494_v42 = vld [vmem:[#allocation2 + $0xe98] sm:$0xff]  ;;  %v1246_v44 = vpack.c.bf16 %v461_v38, %v445_v36  ;;  %v1184_v45 = vpack.c.bf16 %v492_v40, %v476_v39  ;;  %v475_v46 = vld [vmem:[#allocation2 + $0xe00] sm:$0xff]  ;;  %v477_v48 = vld [vmem:[#allocation2 + $0xe10] sm:$0xff] }
  0x3a   :  { %v491_v47 = vld [vmem:[#allocation2 + $0xe80] sm:$0xff]  ;;  %v1248_v49 = vpack.c.bf16 %v494_v42, %v478_v41  ;;  %v493_v50 = vld [vmem:[#allocation2 + $0xe90] sm:$0xff]  ;;  %v508_v51 = vld [vmem:[#allocation2 + $0xf08] sm:$0xff] }
  0x3b   :  { %1167 = vmatpush1.bf16.msra.mxu0 %v1166_v58  ;;  %v524_v52 = vld [vmem:[#allocation2 + $0xf88] sm:$0xff]  ;;  %v510_v53 = vld [vmem:[#allocation2 + $0xf18] sm:$0xff]  ;;  %v1186_v55 = vpack.c.bf16 %v491_v47, %v475_v46  ;;  %v1250_v56 = vpack.c.bf16 %v493_v50, %v477_v48  ;;  %v507_v58 = vld [vmem:[#allocation2 + $0xf00] sm:$0xff] }
  0x3c   :  { %1231 = vmatpush1.bf16.msra.mxu1 %v1230_v59  ;;  %1169 = vmatprep.subr.bf16.mxu0 %v1168_v60  ;;  %v526_v54 = vld [vmem:[#allocation2 + $0xf98] sm:$0xff]  ;;  %v1188_v57 = vpack.c.bf16 %v524_v52, %v508_v51  ;;  %v523_v59 = vld [vmem:[#allocation2 + $0xf80] sm:$0xff]  ;;  %v509_v60 = vld [vmem:[#allocation2 + $0xf10] sm:$0xff] }
  0x3d   :  { %1233 = vmatprep.subr.bf16.mxu1 %v1232_v0  ;;  %v1252_v61 = vpack.c.bf16 %v526_v54, %v510_v53  ;;  %v525_v62 = vld [vmem:[#allocation2 + $0xf90] sm:$0xff]  ;;  %v32_v63 = vld [vmem:[#allocation2 + $0x28] sm:$0xff]  ;;  %v34_v1 = vld [vmem:[#allocation2 + $0x38] sm:$0xff]  ;;  %v1190_v3 = vpack.c.bf16 %v523_v59, %v507_v58 }
  0x3e   :  { %v48_v0 = vld [vmem:[#allocation2 + $0xa8] sm:$0xff]  ;;  %v50_v2 = vld [vmem:[#allocation2 + $0xb8] sm:$0xff]  ;;  %v1254_v4 = vpack.c.bf16 %v525_v62, %v509_v60  ;;  %v47_v7 = vld [vmem:[#allocation2 + $0xa0] sm:$0xff] }
  0x3f   :  { %1171 = vmatpush1.bf16.msra.mxu0 %v1170_v6  ;;  %v1256_v5 = vpack.c.bf16 %v48_v0, %v32_v63  ;;  %v31_v6 = vld [vmem:[#allocation2 + $0x20] sm:$0xff]  ;;  %v49_v10 = vld [vmem:[#allocation2 + $0xb0] sm:$0xff]  ;;  %v64_v11 = vld [vmem:[#allocation2 + $0x128] sm:$0xff] }
  0x40   :  { %1235 = vmatpush1.bf16.msra.mxu1 %v1234_v8  ;;  %1173 = vmatprep.subr.bf16.mxu0 %v1172_v9  ;;  %v33_v8 = vld [vmem:[#allocation2 + $0x30] sm:$0xff]  ;;  %v1320_v9 = vpack.c.bf16 %v50_v2, %v34_v1  ;;  %v80_v12 = vld [vmem:[#allocation2 + $0x1a8] sm:$0xff]  ;;  %v82_v14 = vld [vmem:[#allocation2 + $0x1b8] sm:$0xff]  ;;  %v1258_v17 = vpack.c.bf16 %v47_v7, %v31_v6 }
  0x41   :  { %1237 = vmatprep.subr.bf16.mxu1 %v1236_v13  ;;  %v66_v13 = vld [vmem:[#allocation2 + $0x138] sm:$0xff]  ;;  %v1709_v15 = vld [vmem:[%s1779_s0] sm:$0xff]  ;;  %v1322_v18 = vpack.c.bf16 %v49_v10, %v33_v8  ;;  %v65_v22 = vld [vmem:[#allocation2 + $0x130] sm:$0xff] }
  0x42   :  { %v1324_v23 = vpack.c.bf16 %v82_v14, %v66_v13  ;;  %v81_v24 = vld [vmem:[#allocation2 + $0x1b0] sm:$0xff]  ;;  %v112_v26 = vld [vmem:[#allocation2 + $0x2a8] sm:$0xff]  ;;  %v98_v27 = vld [vmem:[#allocation2 + $0x238] sm:$0xff] }
  0x43   :  { %1175 = vmatpush1.bf16.msra.mxu0 %v1174_v19  ;;  %v1260_v19 = vpack.c.bf16 %v80_v12, %v64_v11  ;;  %v114_v28 = vld [vmem:[#allocation2 + $0x2b8] sm:$0xff]  ;;  %v1326_v30 = vpack.c.bf16 %v81_v24, %v65_v22  ;;  %v97_v34 = vld [vmem:[#allocation2 + $0x230] sm:$0xff]  ;;  %v144_v38 = vld [vmem:[#allocation2 + $0x3a8] sm:$0xff] }
  0x44   :  { %1239 = vmatpush1.bf16.msra.mxu1 %v1238_v20  ;;  %1177 = vmatprep.subr.bf16.mxu0 %v1176_v21  ;;  %v63_v20 = vld [vmem:[#allocation2 + $0x120] sm:$0xff]  ;;  %v1328_v35 = vpack.c.bf16 %v114_v28, %v98_v27  ;;  %v113_v36 = vld [vmem:[#allocation2 + $0x2b0] sm:$0xff]  ;;  %v130_v39 = vld [vmem:[#allocation2 + $0x338] sm:$0xff] }
  0x45   :  { %1241 = vmatprep.subr.bf16.mxu1 %v1240_v25  ;;  %v79_v21 = vld [vmem:[#allocation2 + $0x1a0] sm:$0xff]  ;;  %v96_v25 = vld [vmem:[#allocation2 + $0x228] sm:$0xff]  ;;  %v146_v40 = vld [vmem:[#allocation2 + $0x3b8] sm:$0xff]  ;;  %v1330_v42 = vpack.c.bf16 %v113_v36, %v97_v34 }
  0x46   :  { %v1262_v29 = vpack.c.bf16 %v79_v21, %v63_v20  ;;  %v129_v46 = vld [vmem:[#allocation2 + $0x330] sm:$0xff]  ;;  %v1332_v47 = vpack.c.bf16 %v146_v40, %v130_v39  ;;  %v176_v50 = vld [vmem:[#allocation2 + $0x4a8] sm:$0xff]  ;;  %v162_v51 = vld [vmem:[#allocation2 + $0x438] sm:$0xff] }
  0x47   :  { %1179 = vmatpush1.bf16.msra.mxu0 %v1178_v31  ;;  %v1264_v31 = vpack.c.bf16 %v112_v26, %v96_v25  ;;  %v145_v48 = vld [vmem:[#allocation2 + $0x3b0] sm:$0xff]  ;;  %v178_v52 = vld [vmem:[#allocation2 + $0x4b8] sm:$0xff]  ;;  %v208_v62 = vld [vmem:[#allocation2 + $0x5a8] sm:$0xff] }
  0x48   :  { %1243 = vmatpush1.bf16.msra.mxu1 %v1242_v32  ;;  %1181 = vmatprep.subr.bf16.mxu0 %v1180_v33  ;;  %v95_v32 = vld [vmem:[#allocation2 + $0x220] sm:$0xff]  ;;  %v1334_v54 = vpack.c.bf16 %v145_v48, %v129_v46  ;;  %v161_v58 = vld [vmem:[#allocation2 + $0x430] sm:$0xff]  ;;  %v1336_v59 = vpack.c.bf16 %v178_v52, %v162_v51  ;;  %v194_v63 = vld [vmem:[#allocation2 + $0x538] sm:$0xff] }
  0x49   :  { %1245 = vmatprep.subr.bf16.mxu1 %v1244_v37  ;;  %v111_v33 = vld [vmem:[#allocation2 + $0x2a0] sm:$0xff]  ;;  %v128_v37 = vld [vmem:[#allocation2 + $0x328] sm:$0xff]  ;;  %v177_v60 = vld [vmem:[#allocation2 + $0x4b0] sm:$0xff] }
  0x4a   :  { %v1266_v41 = vpack.c.bf16 %v111_v33, %v95_v32  ;;  %v210_v0 = vld [vmem:[#allocation2 + $0x5b8] sm:$0xff]  ;;  %v1338_v2 = vpack.c.bf16 %v177_v60, %v161_v58  ;;  %v193_v6 = vld [vmem:[#allocation2 + $0x530] sm:$0xff]  ;;  %v240_v10 = vld [vmem:[#allocation2 + $0x6a8] sm:$0xff] }
  0x4b   :  { %1183 = vmatpush1.bf16.msra.mxu0 %v1182_v43  ;;  %v1268_v43 = vpack.c.bf16 %v144_v38, %v128_v37  ;;  %v1340_v7 = vpack.c.bf16 %v210_v0, %v194_v63  ;;  %v209_v8 = vld [vmem:[#allocation2 + $0x5b0] sm:$0xff]  ;;  %v226_v11 = vld [vmem:[#allocation2 + $0x638] sm:$0xff]  ;;  %v272_v24 = vld [vmem:[#allocation2 + $0x7a8] sm:$0xff] }
  0x4c   :  { %1247 = vmatpush1.bf16.msra.mxu1 %v1246_v44  ;;  %1185 = vmatprep.subr.bf16.mxu0 %v1184_v45  ;;  %v127_v44 = vld [vmem:[#allocation2 + $0x320] sm:$0xff]  ;;  %v242_v12 = vld [vmem:[#allocation2 + $0x6b8] sm:$0xff]  ;;  %v1342_v14 = vpack.c.bf16 %v209_v8, %v193_v6  ;;  %v225_v20 = vld [vmem:[#allocation2 + $0x630] sm:$0xff] }
  0x4d   :  { %1249 = vmatprep.subr.bf16.mxu1 %v1248_v49  ;;  %v143_v45 = vld [vmem:[#allocation2 + $0x3a0] sm:$0xff]  ;;  %v160_v49 = vld [vmem:[#allocation2 + $0x428] sm:$0xff]  ;;  %v1344_v21 = vpack.c.bf16 %v242_v12, %v226_v11  ;;  %v241_v22 = vld [vmem:[#allocation2 + $0x6b0] sm:$0xff] }
  0x4e   :  { %v1270_v53 = vpack.c.bf16 %v143_v45, %v127_v44  ;;  %v258_v25 = vld [vmem:[#allocation2 + $0x738] sm:$0xff]  ;;  %v1346_v28 = vpack.c.bf16 %v241_v22, %v225_v20  ;;  %v257_v32 = vld [vmem:[#allocation2 + $0x730] sm:$0xff]  ;;  %v304_v36 = vld [vmem:[#allocation2 + $0x8a8] sm:$0xff] }
  0x4f   :  { %1187 = vmatpush1.bf16.msra.mxu0 %v1186_v55  ;;  %v1272_v55 = vpack.c.bf16 %v176_v50, %v160_v49  ;;  %v274_v26 = vld [vmem:[#allocation2 + $0x7b8] sm:$0xff]  ;;  %v273_v34 = vld [vmem:[#allocation2 + $0x7b0] sm:$0xff]  ;;  %v336_v48 = vld [vmem:[#allocation2 + $0x9a8] sm:$0xff] }
  0x50   :  { %1251 = vmatpush1.bf16.msra.mxu1 %v1250_v56  ;;  %1189 = vmatprep.subr.bf16.mxu0 %v1188_v57  ;;  %v159_v56 = vld [vmem:[#allocation2 + $0x420] sm:$0xff]  ;;  %v1348_v33 = vpack.c.bf16 %v274_v26, %v258_v25  ;;  %v290_v37 = vld [vmem:[#allocation2 + $0x838] sm:$0xff]  ;;  %v1350_v40 = vpack.c.bf16 %v273_v34, %v257_v32  ;;  %v289_v44 = vld [vmem:[#allocation2 + $0x830] sm:$0xff] }
  0x51   :  { %1253 = vmatprep.subr.bf16.mxu1 %v1252_v61  ;;  %v175_v57 = vld [vmem:[#allocation2 + $0x4a0] sm:$0xff]  ;;  %v192_v61 = vld [vmem:[#allocation2 + $0x528] sm:$0xff]  ;;  %v306_v38 = vld [vmem:[#allocation2 + $0x8b8] sm:$0xff] }
  0x52   :  { %v1274_v1 = vpack.c.bf16 %v175_v57, %v159_v56  ;;  %v1352_v45 = vpack.c.bf16 %v306_v38, %v290_v37  ;;  %v305_v46 = vld [vmem:[#allocation2 + $0x8b0] sm:$0xff]  ;;  %v322_v49 = vld [vmem:[#allocation2 + $0x938] sm:$0xff]  ;;  %v368_v60 = vld [vmem:[#allocation2 + $0xaa8] sm:$0xff] }
  0x53   :  { %1191 = vmatpush1.bf16.msra.mxu0 %v1190_v3  ;;  %v1276_v3 = vpack.c.bf16 %v208_v62, %v192_v61  ;;  %v338_v50 = vld [vmem:[#allocation2 + $0x9b8] sm:$0xff]  ;;  %v1354_v52 = vpack.c.bf16 %v305_v46, %v289_v44  ;;  %v321_v56 = vld [vmem:[#allocation2 + $0x930] sm:$0xff]  ;;  %v400_v8 = vld [vmem:[#allocation2 + $0xba8] sm:$0xff] }
  0x54   :  { %1255 = vmatpush1.bf16.msra.mxu1 %v1254_v4  ;;  %1257 = vmatprep.subr.bf16.mxu0 %v1256_v5  ;;  %v191_v4 = vld [vmem:[#allocation2 + $0x520] sm:$0xff]  ;;  %v1356_v57 = vpack.c.bf16 %v338_v50, %v322_v49  ;;  %v337_v58 = vld [vmem:[#allocation2 + $0x9b0] sm:$0xff]  ;;  %v354_v61 = vld [vmem:[#allocation2 + $0xa38] sm:$0xff] }
  0x55   :  { %1321 = vmatprep.subr.bf16.mxu1 %v1320_v9  ;;  %v207_v5 = vld [vmem:[#allocation2 + $0x5a0] sm:$0xff]  ;;  %v224_v9 = vld [vmem:[#allocation2 + $0x628] sm:$0xff]  ;;  %v370_v62 = vld [vmem:[#allocation2 + $0xab8] sm:$0xff]  ;;  %v1358_v0 = vpack.c.bf16 %v337_v58, %v321_v56 }
  0x56   :  { %604 = vmatmul.mubr.f32.vlgmr.msra.gmra.mrb[0].mxu0 %v1709_v15  ;;  %v1278_v13 = vpack.c.bf16 %v207_v5, %v191_v4  ;;  %v353_v4 = vld [vmem:[#allocation2 + $0xa30] sm:$0xff]  ;;  %v1360_v5 = vpack.c.bf16 %v370_v62, %v354_v61  ;;  %v432_v22 = vld [vmem:[#allocation2 + $0xca8] sm:$0xff] }
  0x57   :  { %675 = vmatmul.mubr.f32.vlgmr.msra.gmra.mrb[0].mxu1 %v1709_v15  ;;  %1259 = vmatpush1.bf16.msra.mxu0 %v1258_v17  ;;  %v1280_v17 = vpack.c.bf16 %v240_v10, %v224_v9  ;;  %v369_v6 = vld [vmem:[#allocation2 + $0xab0] sm:$0xff]  ;;  %v386_v9 = vld [vmem:[#allocation2 + $0xb38] sm:$0xff]  ;;  %v464_v34 = vld [vmem:[#allocation2 + $0xda8] sm:$0xff] }
  0x58   :  { %1323 = vmatpush1.bf16.msra.mxu1 %v1322_v18  ;;  %1261 = vmatprep.subr.bf16.mxu0 %v1260_v19  ;;  %v223_v18 = vld [vmem:[#allocation2 + $0x620] sm:$0xff]  ;;  %v402_v10 = vld [vmem:[#allocation2 + $0xbb8] sm:$0xff]  ;;  %v1362_v12 = vpack.c.bf16 %v369_v6, %v353_v4  ;;  %v401_v20 = vld [vmem:[#allocation2 + $0xbb0] sm:$0xff] }
  0x59   :  { %1325 = vmatprep.subr.bf16.mxu1 %v1324_v23  ;;  %745 = vmatprep.mubr.f32.mxu0 %v1702_v16  ;;  %v239_v19 = vld [vmem:[#allocation2 + $0x6a0] sm:$0xff]  ;;  %v256_v23 = vld [vmem:[#allocation2 + $0x728] sm:$0xff]  ;;  %v433_v32 = vld [vmem:[#allocation2 + $0xcb0] sm:$0xff] }
  0x5a   :  { %816 = vmatprep.mubr.f32.mxu1 %v1702_v16  ;;  %v1282_v27 = vpack.c.bf16 %v239_v19, %v223_v18  ;;  %v385_v18 = vld [vmem:[#allocation2 + $0xb30] sm:$0xff]  ;;  %v1364_v19 = vpack.c.bf16 %v402_v10, %v386_v9  ;;  %v496_v46 = vld [vmem:[#allocation2 + $0xea8] sm:$0xff] }
  0x5b   :  { %1263 = vmatpush1.bf16.msra.mxu0 %v1262_v29  ;;  %v1284_v29 = vpack.c.bf16 %v272_v24, %v256_v23  ;;  %v418_v23 = vld [vmem:[#allocation2 + $0xc38] sm:$0xff]  ;;  %v1366_v26 = vpack.c.bf16 %v401_v20, %v385_v18  ;;  %v465_v44 = vld [vmem:[#allocation2 + $0xdb0] sm:$0xff]  ;;  %v528_v58 = vld [vmem:[#allocation2 + $0xfa8] sm:$0xff] }
  0x5c   :  { %1327 = vmatpush1.bf16.msra.mxu1 %v1326_v30  ;;  %1265 = vmatprep.subr.bf16.mxu0 %v1264_v31  ;;  %v255_v30 = vld [vmem:[#allocation2 + $0x720] sm:$0xff]  ;;  %v434_v24 = vld [vmem:[#allocation2 + $0xcb8] sm:$0xff]  ;;  %v497_v56 = vld [vmem:[#allocation2 + $0xeb0] sm:$0xff] }
  0x5d   :  { %1329 = vmatprep.subr.bf16.mxu1 %v1328_v35  ;;  %v271_v31 = vld [vmem:[#allocation2 + $0x7a0] sm:$0xff]  ;;  %v288_v35 = vld [vmem:[#allocation2 + $0x828] sm:$0xff]  ;;  %v529_v4 = vld [vmem:[#allocation2 + $0xfb0] sm:$0xff] }
  0x5e   :  { %v1286_v39 = vpack.c.bf16 %v271_v31, %v255_v30  ;;  %v417_v30 = vld [vmem:[#allocation2 + $0xc30] sm:$0xff]  ;;  %v1368_v31 = vpack.c.bf16 %v434_v24, %v418_v23  ;;  %v52_v6 = vld [vmem:[#allocation2 + $0xc8] sm:$0xff] }
  0x5f   :  { %1267 = vmatpush1.bf16.msra.mxu0 %v1266_v41  ;;  %v1288_v41 = vpack.c.bf16 %v304_v36, %v288_v35  ;;  %v450_v35 = vld [vmem:[#allocation2 + $0xd38] sm:$0xff]  ;;  %v1370_v38 = vpack.c.bf16 %v433_v32, %v417_v30  ;;  %v53_v18 = vld [vmem:[#allocation2 + $0xd0] sm:$0xff]  ;;  %v84_v20 = vld [vmem:[#allocation2 + $0x1c8] sm:$0xff] }
  0x60   :  { %1331 = vmatpush1.bf16.msra.mxu1 %v1330_v42  ;;  %1269 = vmatprep.subr.bf16.mxu0 %v1268_v43  ;;  %v287_v42 = vld [vmem:[#allocation2 + $0x820] sm:$0xff]  ;;  %v466_v36 = vld [vmem:[#allocation2 + $0xdb8] sm:$0xff]  ;;  %v85_v30 = vld [vmem:[#allocation2 + $0x1d0] sm:$0xff] }
  0x61   :  { %1333 = vmatprep.subr.bf16.mxu1 %v1332_v47  ;;  %v303_v43 = vld [vmem:[#allocation2 + $0x8a0] sm:$0xff]  ;;  %v320_v47 = vld [vmem:[#allocation2 + $0x928] sm:$0xff] }
  0x62   :  { %v1290_v51 = vpack.c.bf16 %v303_v43, %v287_v42  ;;  %v449_v42 = vld [vmem:[#allocation2 + $0xd30] sm:$0xff]  ;;  %v1372_v43 = vpack.c.bf16 %v466_v36, %v450_v35  ;;  %v116_v32 = vld [vmem:[#allocation2 + $0x2c8] sm:$0xff] }
  0x63   :  { %1271 = vmatpush1.bf16.msra.mxu0 %v1270_v53  ;;  %v1292_v53 = vpack.c.bf16 %v336_v48, %v320_v47  ;;  %v482_v47 = vld [vmem:[#allocation2 + $0xe38] sm:$0xff]  ;;  %v1374_v50 = vpack.c.bf16 %v465_v44, %v449_v42  ;;  %v117_v42 = vld [vmem:[#allocation2 + $0x2d0] sm:$0xff]  ;;  %v148_v44 = vld [vmem:[#allocation2 + $0x3c8] sm:$0xff] }
  0x64   :  { %1335 = vmatpush1.bf16.msra.mxu1 %v1334_v54  ;;  %1273 = vmatprep.subr.bf16.mxu0 %v1272_v55  ;;  %v319_v54 = vld [vmem:[#allocation2 + $0x920] sm:$0xff]  ;;  %v498_v48 = vld [vmem:[#allocation2 + $0xeb8] sm:$0xff] }
  0x65   :  { %1337 = vmatprep.subr.bf16.mxu1 %v1336_v59  ;;  %v335_v55 = vld [vmem:[#allocation2 + $0x9a0] sm:$0xff]  ;;  %v352_v59 = vld [vmem:[#allocation2 + $0xa28] sm:$0xff] }
  0x66   :  { %v1294_v63 = vpack.c.bf16 %v335_v55, %v319_v54  ;;  %v481_v54 = vld [vmem:[#allocation2 + $0xe30] sm:$0xff]  ;;  %v1376_v55 = vpack.c.bf16 %v498_v48, %v482_v47 }
  0x67   :  { %1275 = vmatpush1.bf16.msra.mxu0 %v1274_v1  ;;  %v1296_v1 = vpack.c.bf16 %v368_v60, %v352_v59  ;;  %v514_v59 = vld [vmem:[#allocation2 + $0xf38] sm:$0xff]  ;;  %v1378_v62 = vpack.c.bf16 %v497_v56, %v481_v54  ;;  %v164_v54 = vld [vmem:[#allocation2 + $0x448] sm:$0xff] }
  0x68   :  { %1339 = vmatpush1.bf16.msra.mxu1 %v1338_v2  ;;  %1277 = vmatprep.subr.bf16.mxu0 %v1276_v3  ;;  %v351_v2 = vld [vmem:[#allocation2 + $0xa20] sm:$0xff]  ;;  %v530_v60 = vld [vmem:[#allocation2 + $0xfb8] sm:$0xff] }
  0x69   :  { %1341 = vmatprep.subr.bf16.mxu1 %v1340_v7  ;;  %v367_v3 = vld [vmem:[#allocation2 + $0xaa0] sm:$0xff]  ;;  %v384_v7 = vld [vmem:[#allocation2 + $0xb28] sm:$0xff]  ;;  %v166_v56 = vld [vmem:[#allocation2 + $0x458] sm:$0xff] }
  0x6a   :  { %v1298_v11 = vpack.c.bf16 %v367_v3, %v351_v2  ;;  %v513_v2 = vld [vmem:[#allocation2 + $0xf30] sm:$0xff]  ;;  %v1380_v3 = vpack.c.bf16 %v530_v60, %v514_v59  ;;  %v163_v60 = vld [vmem:[#allocation2 + $0x440] sm:$0xff] }
  0x6b   :  { %1279 = vmatpush1.bf16.msra.mxu0 %v1278_v13  ;;  %v1300_v13 = vpack.c.bf16 %v400_v8, %v384_v7  ;;  %v38_v7 = vld [vmem:[#allocation2 + $0x58] sm:$0xff]  ;;  %v1382_v10 = vpack.c.bf16 %v529_v4, %v513_v2  ;;  %v212_v2 = vld [vmem:[#allocation2 + $0x5c8] sm:$0xff] }
  0x6c   :  { %1343 = vmatpush1.bf16.msra.mxu1 %v1342_v14  ;;  %1281 = vmatprep.subr.bf16.mxu0 %v1280_v17  ;;  %v383_v14 = vld [vmem:[#allocation2 + $0xb20] sm:$0xff]  ;;  %v54_v8 = vld [vmem:[#allocation2 + $0xd8] sm:$0xff] }
  0x6d   :  { %1345 = vmatprep.subr.bf16.mxu1 %v1344_v21  ;;  %v399_v17 = vld [vmem:[#allocation2 + $0xba0] sm:$0xff]  ;;  %v416_v21 = vld [vmem:[#allocation2 + $0xc28] sm:$0xff]  ;;  %v214_v4 = vld [vmem:[#allocation2 + $0x5d8] sm:$0xff] }
  0x6e   :  { %v1302_v25 = vpack.c.bf16 %v399_v17, %v383_v14  ;;  %v37_v14 = vld [vmem:[#allocation2 + $0x50] sm:$0xff]  ;;  %v1448_v17 = vpack.c.bf16 %v54_v8, %v38_v7  ;;  %v195_v8 = vld [vmem:[#allocation2 + $0x540] sm:$0xff] }
  0x6f   :  { %1283 = vmatpush1.bf16.msra.mxu0 %v1282_v27  ;;  %v1304_v27 = vpack.c.bf16 %v432_v22, %v416_v21  ;;  %v70_v21 = vld [vmem:[#allocation2 + $0x158] sm:$0xff]  ;;  %v1450_v24 = vpack.c.bf16 %v53_v18, %v37_v14  ;;  %v244_v14 = vld [vmem:[#allocation2 + $0x6c8] sm:$0xff] }
  0x70   :  { %1347 = vmatpush1.bf16.msra.mxu1 %v1346_v28  ;;  %1285 = vmatprep.subr.bf16.mxu0 %v1284_v29  ;;  %v415_v28 = vld [vmem:[#allocation2 + $0xc20] sm:$0xff]  ;;  %v86_v22 = vld [vmem:[#allocation2 + $0x1d8] sm:$0xff] }
  0x71   :  { %1349 = vmatprep.subr.bf16.mxu1 %v1348_v33  ;;  %v431_v29 = vld [vmem:[#allocation2 + $0xca0] sm:$0xff]  ;;  %v448_v33 = vld [vmem:[#allocation2 + $0xd28] sm:$0xff]  ;;  %v246_v18 = vld [vmem:[#allocation2 + $0x6d8] sm:$0xff] }
  0x72   :  { %v1306_v37 = vpack.c.bf16 %v431_v29, %v415_v28  ;;  %v69_v28 = vld [vmem:[#allocation2 + $0x150] sm:$0xff]  ;;  %v1452_v29 = vpack.c.bf16 %v86_v22, %v70_v21  ;;  %v227_v22 = vld [vmem:[#allocation2 + $0x640] sm:$0xff] }
  0x73   :  { %1287 = vmatpush1.bf16.msra.mxu0 %v1286_v39  ;;  %v1308_v39 = vpack.c.bf16 %v464_v34, %v448_v33  ;;  %v102_v33 = vld [vmem:[#allocation2 + $0x258] sm:$0xff]  ;;  %v1454_v36 = vpack.c.bf16 %v85_v30, %v69_v28  ;;  %v276_v28 = vld [vmem:[#allocation2 + $0x7c8] sm:$0xff] }
  0x74   :  { %1351 = vmatpush1.bf16.msra.mxu1 %v1350_v40  ;;  %1289 = vmatprep.subr.bf16.mxu0 %v1288_v41  ;;  %v447_v40 = vld [vmem:[#allocation2 + $0xd20] sm:$0xff]  ;;  %v118_v34 = vld [vmem:[#allocation2 + $0x2d8] sm:$0xff] }
  0x75   :  { %1353 = vmatprep.subr.bf16.mxu1 %v1352_v45  ;;  %v463_v41 = vld [vmem:[#allocation2 + $0xda0] sm:$0xff]  ;;  %v480_v45 = vld [vmem:[#allocation2 + $0xe28] sm:$0xff]  ;;  %v278_v30 = vld [vmem:[#allocation2 + $0x7d8] sm:$0xff] }
  0x76   :  { %v1310_v49 = vpack.c.bf16 %v463_v41, %v447_v40  ;;  %v101_v40 = vld [vmem:[#allocation2 + $0x250] sm:$0xff]  ;;  %v1456_v41 = vpack.c.bf16 %v118_v34, %v102_v33  ;;  %v259_v34 = vld [vmem:[#allocation2 + $0x740] sm:$0xff] }
  0x77   :  { %1291 = vmatpush1.bf16.msra.mxu0 %v1290_v51  ;;  %v1312_v51 = vpack.c.bf16 %v496_v46, %v480_v45  ;;  %v134_v45 = vld [vmem:[#allocation2 + $0x358] sm:$0xff]  ;;  %v1458_v47 = vpack.c.bf16 %v117_v42, %v101_v40  ;;  %v308_v40 = vld [vmem:[#allocation2 + $0x8c8] sm:$0xff] }
  0x78   :  { %1355 = vmatpush1.bf16.msra.mxu1 %v1354_v52  ;;  %1293 = vmatprep.subr.bf16.mxu0 %v1292_v53  ;;  %v479_v52 = vld [vmem:[#allocation2 + $0xe20] sm:$0xff]  ;;  %v150_v46 = vld [vmem:[#allocation2 + $0x3d8] sm:$0xff] }
  0x79   :  { %1357 = vmatprep.subr.bf16.mxu1 %v1356_v57  ;;  %v495_v53 = vld [vmem:[#allocation2 + $0xea0] sm:$0xff]  ;;  %v512_v57 = vld [vmem:[#allocation2 + $0xf28] sm:$0xff]  ;;  %v310_v42 = vld [vmem:[#allocation2 + $0x8d8] sm:$0xff] }
  0x7a   :  { %v1314_v61 = vpack.c.bf16 %v495_v53, %v479_v52  ;;  %v1460_v52 = vpack.c.bf16 %v150_v46, %v134_v45  ;;  %v149_v53 = vld [vmem:[#allocation2 + $0x3d0] sm:$0xff]  ;;  %v291_v46 = vld [vmem:[#allocation2 + $0x840] sm:$0xff] }
  0x7b   :  { %1295 = vmatpush1.bf16.msra.mxu0 %v1294_v63  ;;  %v1316_v63 = vpack.c.bf16 %v528_v58, %v512_v57  ;;  %v182_v57 = vld [vmem:[#allocation2 + $0x4d8] sm:$0xff] }
  0x7c   :  { %1359 = vmatpush1.bf16.msra.mxu1 %v1358_v0  ;;  %1297 = vmatprep.subr.bf16.mxu0 %v1296_v1  ;;  %v511_v0 = vld [vmem:[#allocation2 + $0xf20] sm:$0xff] }
  0x7d   :  { %1361 = vmatprep.subr.bf16.mxu1 %v1360_v5  ;;  %v527_v1 = vld [vmem:[#allocation2 + $0xfa0] sm:$0xff]  ;;  %v36_v5 = vld [vmem:[#allocation2 + $0x48] sm:$0xff] }
  0x7e   :  { %v1318_v9 = vpack.c.bf16 %v527_v1, %v511_v0  ;;  %v181_v0 = vld [vmem:[#allocation2 + $0x4d0] sm:$0xff]  ;;  %v196_v1 = vld [vmem:[#allocation2 + $0x548] sm:$0xff] }
  0x7f   :  { %1299 = vmatpush1.bf16.msra.mxu0 %v1298_v11  ;;  %v1384_v11 = vpack.c.bf16 %v52_v6, %v36_v5  ;;  %v1404_v7 = vpack.c.bf16 %v212_v2, %v196_v1 }
  0x80   :  { %1363 = vmatpush1.bf16.msra.mxu1 %v1362_v12  ;;  %1301 = vmatprep.subr.bf16.mxu0 %v1300_v13  ;;  %v35_v12 = vld [vmem:[#allocation2 + $0x40] sm:$0xff] }
  0x81   :  { %1365 = vmatprep.subr.bf16.mxu1 %v1364_v19  ;;  %v51_v13 = vld [vmem:[#allocation2 + $0xc0] sm:$0xff]  ;;  %v68_v19 = vld [vmem:[#allocation2 + $0x148] sm:$0xff] }
  0x82   :  { %v1386_v23 = vpack.c.bf16 %v51_v13, %v35_v12  ;;  %v213_v12 = vld [vmem:[#allocation2 + $0x5d0] sm:$0xff]  ;;  %v228_v13 = vld [vmem:[#allocation2 + $0x648] sm:$0xff] }
  0x83   :  { %1303 = vmatpush1.bf16.msra.mxu0 %v1302_v25  ;;  %v1388_v25 = vpack.c.bf16 %v84_v20, %v68_v19  ;;  %v1408_v21 = vpack.c.bf16 %v244_v14, %v228_v13 }
  0x84   :  { %1367 = vmatpush1.bf16.msra.mxu1 %v1366_v26  ;;  %1305 = vmatprep.subr.bf16.mxu0 %v1304_v27  ;;  %v67_v26 = vld [vmem:[#allocation2 + $0x140] sm:$0xff] }
  0x85   :  { %1369 = vmatprep.subr.bf16.mxu1 %v1368_v31  ;;  %v83_v27 = vld [vmem:[#allocation2 + $0x1c0] sm:$0xff]  ;;  %v100_v31 = vld [vmem:[#allocation2 + $0x248] sm:$0xff] }
  0x86   :  { %v1390_v35 = vpack.c.bf16 %v83_v27, %v67_v26  ;;  %v245_v26 = vld [vmem:[#allocation2 + $0x6d0] sm:$0xff]  ;;  %v260_v27 = vld [vmem:[#allocation2 + $0x748] sm:$0xff] }
  0x87   :  { %1307 = vmatpush1.bf16.msra.mxu0 %v1306_v37  ;;  %v1392_v37 = vpack.c.bf16 %v116_v32, %v100_v31  ;;  %v1412_v33 = vpack.c.bf16 %v276_v28, %v260_v27 }
  0x88   :  { %1371 = vmatpush1.bf16.msra.mxu1 %v1370_v38  ;;  %1309 = vmatprep.subr.bf16.mxu0 %v1308_v39  ;;  %v99_v38 = vld [vmem:[#allocation2 + $0x240] sm:$0xff] }
  0x89   :  { %1373 = vmatprep.subr.bf16.mxu1 %v1372_v43  ;;  %v115_v39 = vld [vmem:[#allocation2 + $0x2c0] sm:$0xff]  ;;  %v132_v43 = vld [vmem:[#allocation2 + $0x348] sm:$0xff] }
  0x8a   :  { %v1396_v48 = vpack.c.bf16 %v148_v44, %v132_v43 }
  0x8b   :  { %1311 = vmatpush1.bf16.msra.mxu0 %v1310_v49  ;;  %v131_v49 = vld [vmem:[#allocation2 + $0x340] sm:$0xff] }
  0x8c   :  { %1375 = vmatpush1.bf16.msra.mxu1 %v1374_v50  ;;  %1313 = vmatprep.subr.bf16.mxu0 %v1312_v51  ;;  %v147_v50 = vld [vmem:[#allocation2 + $0x3c0] sm:$0xff]  ;;  %v133_v51 = vld [vmem:[#allocation2 + $0x350] sm:$0xff] }
  0x8d   :  { %1377 = vmatprep.subr.bf16.mxu1 %v1376_v55  ;;  %v180_v55 = vld [vmem:[#allocation2 + $0x4c8] sm:$0xff]  ;;  %v1398_v58 = vpack.c.bf16 %v147_v50, %v131_v49  ;;  %v309_v49 = vld [vmem:[#allocation2 + $0x8d0] sm:$0xff] }
  0x8e   :  { %v1400_v59 = vpack.c.bf16 %v180_v55, %v164_v54  ;;  %v324_v50 = vld [vmem:[#allocation2 + $0x948] sm:$0xff] }
  0x8f   :  { %1315 = vmatpush1.bf16.msra.mxu0 %v1314_v61  ;;  %v179_v61 = vld [vmem:[#allocation2 + $0x4c0] sm:$0xff] }
  0x90   :  { %1379 = vmatpush1.bf16.msra.mxu1 %v1378_v62  ;;  %1317 = vmatprep.subr.bf16.mxu0 %v1316_v63  ;;  %v165_v62 = vld [vmem:[#allocation2 + $0x450] sm:$0xff]  ;;  %v1464_v63 = vpack.c.bf16 %v182_v57, %v166_v56  ;;  %v1402_v5 = vpack.c.bf16 %v179_v61, %v163_v60  ;;  %v323_v57 = vld [vmem:[#allocation2 + $0x940] sm:$0xff]  ;;  %v356_v61 = vld [vmem:[#allocation2 + $0xa48] sm:$0xff] }
  0x91   :  { %1381 = vmatprep.subr.bf16.mxu1 %v1380_v3  ;;  %v198_v3 = vld [vmem:[#allocation2 + $0x558] sm:$0xff]  ;;  %v1466_v6 = vpack.c.bf16 %v181_v0, %v165_v62  ;;  %v341_v60 = vld [vmem:[#allocation2 + $0x9d0] sm:$0xff]  ;;  %v372_v62 = vld [vmem:[#allocation2 + $0xac8] sm:$0xff] }
  0x92   :  { %v374_v0 = vld [vmem:[#allocation2 + $0xad8] sm:$0xff] }
  0x93   :  { %1319 = vmatpush1.bf16.msra.mxu0 %v1318_v9  ;;  %v211_v9 = vld [vmem:[#allocation2 + $0x5c0] sm:$0xff] }
  0x94   :  { %1383 = vmatpush1.bf16.msra.mxu1 %v1382_v10  ;;  %1385 = vmatprep.subr.bf16.mxu0 %v1384_v11  ;;  %v197_v10 = vld [vmem:[#allocation2 + $0x550] sm:$0xff]  ;;  %v1468_v11 = vpack.c.bf16 %v214_v4, %v198_v3  ;;  %v1406_v19 = vpack.c.bf16 %v211_v9, %v195_v8  ;;  %v1424_v3 = vpack.c.bf16 %v372_v62, %v356_v61  ;;  %v355_v4 = vld [vmem:[#allocation2 + $0xa40] sm:$0xff]  ;;  %v388_v9 = vld [vmem:[#allocation2 + $0xb48] sm:$0xff] }
  0x95   :  { %1449 = vmatprep.subr.bf16.mxu1 %v1448_v17  ;;  %v230_v17 = vld [vmem:[#allocation2 + $0x658] sm:$0xff]  ;;  %v1470_v20 = vpack.c.bf16 %v213_v12, %v197_v10  ;;  %v373_v8 = vld [vmem:[#allocation2 + $0xad0] sm:$0xff]  ;;  %v404_v10 = vld [vmem:[#allocation2 + $0xbc8] sm:$0xff] }
  0x96   :  { %746 = vmatmul.mubr.f32.vlgmr.msra.gmra.mrb[2].mxu0 %v1709_v15  ;;  %v406_v12 = vld [vmem:[#allocation2 + $0xbd8] sm:$0xff] }
  0x97   :  { %817 = vmatmul.mubr.f32.vlgmr.msra.gmra.mrb[2].mxu1 %v1709_v15  ;;  %1387 = vmatpush1.bf16.msra.mxu0 %v1386_v23  ;;  %v1394_v15 = vpack.c.bf16 %v115_v39, %v99_v38  ;;  %v243_v23 = vld [vmem:[#allocation2 + $0x6c0] sm:$0xff]  ;;  %v277_v38 = vld [vmem:[#allocation2 + $0x7d0] sm:$0xff]  ;;  %v292_v39 = vld [vmem:[#allocation2 + $0x848] sm:$0xff] }
  0x98   :  { %1451 = vmatpush1.bf16.msra.mxu1 %v1450_v24  ;;  %1389 = vmatprep.subr.bf16.mxu0 %v1388_v25  ;;  %v229_v24 = vld [vmem:[#allocation2 + $0x650] sm:$0xff]  ;;  %v1472_v25 = vpack.c.bf16 %v246_v18, %v230_v17  ;;  %v1410_v31 = vpack.c.bf16 %v243_v23, %v227_v22  ;;  %v1416_v45 = vpack.c.bf16 %v308_v40, %v292_v39  ;;  %v387_v18 = vld [vmem:[#allocation2 + $0xb40] sm:$0xff]  ;;  %v420_v23 = vld [vmem:[#allocation2 + $0xc48] sm:$0xff] }
  0x99   :  { %1453 = vmatprep.subr.bf16.mxu1 %v1452_v29  ;;  %887 = vmatprep.mubr.f32.mxu0 %v1702_v16  ;;  %v262_v29 = vld [vmem:[#allocation2 + $0x758] sm:$0xff]  ;;  %v1474_v32 = vpack.c.bf16 %v245_v26, %v229_v24  ;;  %v1428_v17 = vpack.c.bf16 %v404_v10, %v388_v9  ;;  %v405_v22 = vld [vmem:[#allocation2 + $0xbd0] sm:$0xff]  ;;  %v436_v24 = vld [vmem:[#allocation2 + $0xcc8] sm:$0xff] }
  0x9a   :  { %958 = vmatprep.mubr.f32.mxu1 %v1702_v16  ;;  %v1462_v16 = vpack.c.bf16 %v149_v53, %v133_v51  ;;  %v340_v51 = vld [vmem:[#allocation2 + $0x9c8] sm:$0xff]  ;;  %v342_v53 = vld [vmem:[#allocation2 + $0x9d8] sm:$0xff] }
  0x9b   :  { %1391 = vmatpush1.bf16.msra.mxu0 %v1390_v35  ;;  %v275_v35 = vld [vmem:[#allocation2 + $0x7c0] sm:$0xff]  ;;  %v1420_v56 = vpack.c.bf16 %v340_v51, %v324_v50  ;;  %v438_v26 = vld [vmem:[#allocation2 + $0xcd8] sm:$0xff] }
  0x9c   :  { %1455 = vmatpush1.bf16.msra.mxu1 %v1454_v36  ;;  %1393 = vmatprep.subr.bf16.mxu0 %v1392_v37  ;;  %v261_v36 = vld [vmem:[#allocation2 + $0x750] sm:$0xff]  ;;  %v1476_v37 = vpack.c.bf16 %v278_v30, %v262_v29  ;;  %v1414_v43 = vpack.c.bf16 %v275_v35, %v259_v34  ;;  %v1432_v29 = vpack.c.bf16 %v436_v24, %v420_v23  ;;  %v419_v30 = vld [vmem:[#allocation2 + $0xc40] sm:$0xff]  ;;  %v452_v35 = vld [vmem:[#allocation2 + $0xd48] sm:$0xff] }
  0x9d   :  { %1457 = vmatprep.subr.bf16.mxu1 %v1456_v41  ;;  %v294_v41 = vld [vmem:[#allocation2 + $0x858] sm:$0xff]  ;;  %v1478_v44 = vpack.c.bf16 %v277_v38, %v261_v36  ;;  %v437_v34 = vld [vmem:[#allocation2 + $0xcd0] sm:$0xff]  ;;  %v468_v36 = vld [vmem:[#allocation2 + $0xdc8] sm:$0xff] }
  0x9e   :  { %v470_v38 = vld [vmem:[#allocation2 + $0xdd8] sm:$0xff] }
  0x9f   :  { %1395 = vmatpush1.bf16.msra.mxu0 %v1394_v15  ;;  %v307_v15 = vld [vmem:[#allocation2 + $0x8c0] sm:$0xff] }
  0xa0   :  { %1459 = vmatpush1.bf16.msra.mxu1 %v1458_v47  ;;  %1397 = vmatprep.subr.bf16.mxu0 %v1396_v48  ;;  %v293_v47 = vld [vmem:[#allocation2 + $0x850] sm:$0xff]  ;;  %v1480_v48 = vpack.c.bf16 %v310_v42, %v294_v41  ;;  %v1418_v54 = vpack.c.bf16 %v307_v15, %v291_v46  ;;  %v1436_v41 = vpack.c.bf16 %v468_v36, %v452_v35  ;;  %v451_v42 = vld [vmem:[#allocation2 + $0xd40] sm:$0xff]  ;;  %v484_v15 = vld [vmem:[#allocation2 + $0xe48] sm:$0xff] }
  0xa1   :  { %1461 = vmatprep.subr.bf16.mxu1 %v1460_v52  ;;  %v326_v52 = vld [vmem:[#allocation2 + $0x958] sm:$0xff]  ;;  %v1482_v55 = vpack.c.bf16 %v309_v49, %v293_v47  ;;  %v469_v46 = vld [vmem:[#allocation2 + $0xdd0] sm:$0xff]  ;;  %v500_v47 = vld [vmem:[#allocation2 + $0xec8] sm:$0xff] }
  0xa2   :  { %v502_v49 = vld [vmem:[#allocation2 + $0xed8] sm:$0xff] }
  0xa3   :  { %1399 = vmatpush1.bf16.msra.mxu0 %v1398_v58  ;;  %v339_v58 = vld [vmem:[#allocation2 + $0x9c0] sm:$0xff]  ;;  %v122_v35 = vld [vmem:[#allocation2 + $0x2f8] sm:$0xff] }
  0xa4   :  { %1463 = vmatpush1.bf16.msra.mxu1 %v1462_v16  ;;  %1401 = vmatprep.subr.bf16.mxu0 %v1400_v59  ;;  %v325_v16 = vld [vmem:[#allocation2 + $0x950] sm:$0xff]  ;;  %v1484_v59 = vpack.c.bf16 %v342_v53, %v326_v52  ;;  %v1422_v1 = vpack.c.bf16 %v339_v58, %v323_v57  ;;  %v1440_v52 = vpack.c.bf16 %v500_v47, %v484_v15  ;;  %v483_v53 = vld [vmem:[#allocation2 + $0xe40] sm:$0xff]  ;;  %v516_v58 = vld [vmem:[#allocation2 + $0xf48] sm:$0xff] }
  0xa5   :  { %1465 = vmatprep.subr.bf16.mxu1 %v1464_v63  ;;  %v358_v63 = vld [vmem:[#allocation2 + $0xa58] sm:$0xff]  ;;  %v1486_v2 = vpack.c.bf16 %v341_v60, %v325_v16  ;;  %v501_v57 = vld [vmem:[#allocation2 + $0xed0] sm:$0xff]  ;;  %v532_v16 = vld [vmem:[#allocation2 + $0xfc8] sm:$0xff] }
  0xa6   :  { %v534_v60 = vld [vmem:[#allocation2 + $0xfd8] sm:$0xff] }
  0xa7   :  { %1403 = vmatpush1.bf16.msra.mxu0 %v1402_v5  ;;  %v371_v5 = vld [vmem:[#allocation2 + $0xac0] sm:$0xff]  ;;  %v138_v15 = vld [vmem:[#allocation2 + $0x378] sm:$0xff] }
  0xa8   :  { %1467 = vmatpush1.bf16.msra.mxu1 %v1466_v6  ;;  %1405 = vmatprep.subr.bf16.mxu0 %v1404_v7  ;;  %v357_v6 = vld [vmem:[#allocation2 + $0xa50] sm:$0xff]  ;;  %v1488_v7 = vpack.c.bf16 %v374_v0, %v358_v63  ;;  %v1426_v13 = vpack.c.bf16 %v371_v5, %v355_v4  ;;  %v1444_v63 = vpack.c.bf16 %v532_v16, %v516_v58  ;;  %v515_v0 = vld [vmem:[#allocation2 + $0xf40] sm:$0xff]  ;;  %v40_v5 = vld [vmem:[#allocation2 + $0x68] sm:$0xff] }
  0xa9   :  { %1469 = vmatprep.subr.bf16.mxu1 %v1468_v11  ;;  %v390_v11 = vld [vmem:[#allocation2 + $0xb58] sm:$0xff]  ;;  %v1490_v14 = vpack.c.bf16 %v373_v8, %v357_v6  ;;  %v533_v4 = vld [vmem:[#allocation2 + $0xfd0] sm:$0xff]  ;;  %v56_v6 = vld [vmem:[#allocation2 + $0xe8] sm:$0xff] }
  0xaa   :  { %v58_v8 = vld [vmem:[#allocation2 + $0xf8] sm:$0xff] }
  0xab   :  { %1407 = vmatpush1.bf16.msra.mxu0 %v1406_v19  ;;  %v403_v19 = vld [vmem:[#allocation2 + $0xbc0] sm:$0xff]  ;;  %v154_v47 = vld [vmem:[#allocation2 + $0x3f8] sm:$0xff] }
  0xac   :  { %1471 = vmatpush1.bf16.msra.mxu1 %v1470_v20  ;;  %1409 = vmatprep.subr.bf16.mxu0 %v1408_v21  ;;  %v389_v20 = vld [vmem:[#allocation2 + $0xb50] sm:$0xff]  ;;  %v1492_v21 = vpack.c.bf16 %v406_v12, %v390_v11  ;;  %v1430_v27 = vpack.c.bf16 %v403_v19, %v387_v18  ;;  %v1512_v11 = vpack.c.bf16 %v56_v6, %v40_v5  ;;  %v39_v12 = vld [vmem:[#allocation2 + $0x60] sm:$0xff]  ;;  %v72_v19 = vld [vmem:[#allocation2 + $0x168] sm:$0xff] }
  0xad   :  { %1473 = vmatprep.subr.bf16.mxu1 %v1472_v25  ;;  %v422_v25 = vld [vmem:[#allocation2 + $0xc58] sm:$0xff]  ;;  %v1494_v28 = vpack.c.bf16 %v405_v22, %v389_v20  ;;  %v57_v18 = vld [vmem:[#allocation2 + $0xf0] sm:$0xff]  ;;  %v88_v20 = vld [vmem:[#allocation2 + $0x1e8] sm:$0xff] }
  0xae   :  { %v90_v22 = vld [vmem:[#allocation2 + $0x1f8] sm:$0xff] }
  0xaf   :  { %1411 = vmatpush1.bf16.msra.mxu0 %v1410_v31  ;;  %v435_v31 = vld [vmem:[#allocation2 + $0xcc0] sm:$0xff]  ;;  %v170_v58 = vld [vmem:[#allocation2 + $0x478] sm:$0xff] }
  0xb0   :  { %1475 = vmatpush1.bf16.msra.mxu1 %v1474_v32  ;;  %1413 = vmatprep.subr.bf16.mxu0 %v1412_v33  ;;  %v421_v32 = vld [vmem:[#allocation2 + $0xc50] sm:$0xff]  ;;  %v1496_v33 = vpack.c.bf16 %v438_v26, %v422_v25  ;;  %v1434_v39 = vpack.c.bf16 %v435_v31, %v419_v30  ;;  %v1516_v25 = vpack.c.bf16 %v88_v20, %v72_v19  ;;  %v71_v26 = vld [vmem:[#allocation2 + $0x160] sm:$0xff]  ;;  %v104_v31 = vld [vmem:[#allocation2 + $0x268] sm:$0xff] }
  0xb1   :  { %1477 = vmatprep.subr.bf16.mxu1 %v1476_v37  ;;  %v454_v37 = vld [vmem:[#allocation2 + $0xd58] sm:$0xff]  ;;  %v1498_v40 = vpack.c.bf16 %v437_v34, %v421_v32  ;;  %v89_v30 = vld [vmem:[#allocation2 + $0x1f0] sm:$0xff]  ;;  %v120_v32 = vld [vmem:[#allocation2 + $0x2e8] sm:$0xff] }
  0xb2   :  { %v106_v34 = vld [vmem:[#allocation2 + $0x278] sm:$0xff] }
  0xb3   :  { %1415 = vmatpush1.bf16.msra.mxu0 %v1414_v43  ;;  %v467_v43 = vld [vmem:[#allocation2 + $0xdc0] sm:$0xff]  ;;  %v186_v16 = vld [vmem:[#allocation2 + $0x4f8] sm:$0xff] }
  0xb4   :  { %1479 = vmatpush1.bf16.msra.mxu1 %v1478_v44  ;;  %1417 = vmatprep.subr.bf16.mxu0 %v1416_v45  ;;  %v453_v44 = vld [vmem:[#allocation2 + $0xd50] sm:$0xff]  ;;  %v1500_v45 = vpack.c.bf16 %v470_v38, %v454_v37  ;;  %v1438_v50 = vpack.c.bf16 %v467_v43, %v451_v42  ;;  %v1520_v38 = vpack.c.bf16 %v120_v32, %v104_v31  ;;  %v202_v5 = vld [vmem:[#allocation2 + $0x578] sm:$0xff] }
  0xb5   :  { %1481 = vmatprep.subr.bf16.mxu1 %v1480_v48  ;;  %v486_v48 = vld [vmem:[#allocation2 + $0xe58] sm:$0xff]  ;;  %v1502_v51 = vpack.c.bf16 %v469_v46, %v453_v44  ;;  %v1584_v42 = vpack.c.bf16 %v122_v35, %v106_v34  ;;  %v121_v43 = vld [vmem:[#allocation2 + $0x2f0] sm:$0xff]  ;;  %v136_v44 = vld [vmem:[#allocation2 + $0x368] sm:$0xff] }
  0xb6   :  { %v1644_v46 = vld [vmem:[%s1779_s0 + $0x8] sm:$0xff]  ;;  %v218_v6 = vld [vmem:[#allocation2 + $0x5f8] sm:$0xff] }
  0xb7   :  { %1419 = vmatpush1.bf16.msra.mxu0 %v1418_v54  ;;  %v499_v54 = vld [vmem:[#allocation2 + $0xec0] sm:$0xff]  ;;  %v234_v19 = vld [vmem:[#allocation2 + $0x678] sm:$0xff] }
  0xb8   :  { %1483 = vmatpush1.bf16.msra.mxu1 %v1482_v55  ;;  %1421 = vmatprep.subr.bf16.mxu0 %v1420_v56  ;;  %v485_v55 = vld [vmem:[#allocation2 + $0xe50] sm:$0xff]  ;;  %v1504_v56 = vpack.c.bf16 %v502_v49, %v486_v48  ;;  %v1442_v61 = vpack.c.bf16 %v499_v54, %v483_v53  ;;  %v1588_v54 = vpack.c.bf16 %v154_v47, %v138_v15  ;;  %v250_v20 = vld [vmem:[#allocation2 + $0x6f8] sm:$0xff] }
  0xb9   :  { %1485 = vmatprep.subr.bf16.mxu1 %v1484_v59  ;;  %v518_v59 = vld [vmem:[#allocation2 + $0xf58] sm:$0xff]  ;;  %v1506_v62 = vpack.c.bf16 %v501_v57, %v485_v55  ;;  %v137_v53 = vld [vmem:[#allocation2 + $0x370] sm:$0xff]  ;;  %v184_v57 = vld [vmem:[#allocation2 + $0x4e8] sm:$0xff] }
  0xba   :  { %v153_v55 = vld [vmem:[#allocation2 + $0x3f0] sm:$0xff]  ;;  %v266_v31 = vld [vmem:[#allocation2 + $0x778] sm:$0xff] }
  0xbb   :  { %1423 = vmatpush1.bf16.msra.mxu0 %v1422_v1  ;;  %v531_v1 = vld [vmem:[#allocation2 + $0xfc0] sm:$0xff]  ;;  %v282_v32 = vld [vmem:[#allocation2 + $0x7f8] sm:$0xff] }
  0xbc   :  { %1487 = vmatpush1.bf16.msra.mxu1 %v1486_v2  ;;  %1425 = vmatprep.subr.bf16.mxu0 %v1424_v3  ;;  %v517_v2 = vld [vmem:[#allocation2 + $0xf50] sm:$0xff]  ;;  %v1508_v3 = vpack.c.bf16 %v534_v60, %v518_v59  ;;  %v1446_v9 = vpack.c.bf16 %v531_v1, %v515_v0  ;;  %v1590_v60 = vpack.c.bf16 %v153_v55, %v137_v53  ;;  %v328_v53 = vld [vmem:[#allocation2 + $0x968] sm:$0xff]  ;;  %v330_v55 = vld [vmem:[#allocation2 + $0x978] sm:$0xff] }
  0xbd   :  { %1489 = vmatprep.subr.bf16.mxu1 %v1488_v7  ;;  %v42_v7 = vld [vmem:[#allocation2 + $0x78] sm:$0xff]  ;;  %v1510_v10 = vpack.c.bf16 %v533_v4, %v517_v2  ;;  %v169_v0 = vld [vmem:[#allocation2 + $0x470] sm:$0xff]  ;;  %v1592_v1 = vpack.c.bf16 %v186_v16, %v170_v58  ;;  %v216_v4 = vld [vmem:[#allocation2 + $0x5e8] sm:$0xff] }
  0xbe   :  { %v185_v2 = vld [vmem:[#allocation2 + $0x4f0] sm:$0xff] }
  0xbf   :  { %1427 = vmatpush1.bf16.msra.mxu0 %v1426_v13  ;;  %v55_v13 = vld [vmem:[#allocation2 + $0xe0] sm:$0xff] }
  0xc0   :  { %1491 = vmatpush1.bf16.msra.mxu1 %v1490_v14  ;;  %1429 = vmatprep.subr.bf16.mxu0 %v1428_v17  ;;  %v41_v14 = vld [vmem:[#allocation2 + $0x70] sm:$0xff]  ;;  %v1576_v17 = vpack.c.bf16 %v58_v8, %v42_v7  ;;  %v1514_v23 = vpack.c.bf16 %v55_v13, %v39_v12  ;;  %v1594_v8 = vpack.c.bf16 %v185_v2, %v169_v0  ;;  %v360_v0 = vld [vmem:[#allocation2 + $0xa68] sm:$0xff]  ;;  %v362_v2 = vld [vmem:[#allocation2 + $0xa78] sm:$0xff] }
  0xc1   :  { %1493 = vmatprep.subr.bf16.mxu1 %v1492_v21  ;;  %v74_v21 = vld [vmem:[#allocation2 + $0x178] sm:$0xff]  ;;  %v1578_v24 = vpack.c.bf16 %v57_v18, %v41_v14  ;;  %v201_v12 = vld [vmem:[#allocation2 + $0x570] sm:$0xff]  ;;  %v1596_v13 = vpack.c.bf16 %v218_v6, %v202_v5  ;;  %v248_v18 = vld [vmem:[#allocation2 + $0x6e8] sm:$0xff] }
  0xc2   :  { %v217_v14 = vld [vmem:[#allocation2 + $0x5f0] sm:$0xff] }
  0xc3   :  { %1431 = vmatpush1.bf16.msra.mxu0 %v1430_v27  ;;  %v87_v27 = vld [vmem:[#allocation2 + $0x1e0] sm:$0xff] }
  0xc4   :  { %1495 = vmatpush1.bf16.msra.mxu1 %v1494_v28  ;;  %1433 = vmatprep.subr.bf16.mxu0 %v1432_v29  ;;  %v73_v28 = vld [vmem:[#allocation2 + $0x170] sm:$0xff]  ;;  %v1580_v29 = vpack.c.bf16 %v90_v22, %v74_v21  ;;  %v1518_v36 = vpack.c.bf16 %v87_v27, %v71_v26  ;;  %v1598_v22 = vpack.c.bf16 %v217_v14, %v201_v12  ;;  %v392_v12 = vld [vmem:[#allocation2 + $0xb68] sm:$0xff]  ;;  %v394_v14 = vld [vmem:[#allocation2 + $0xb78] sm:$0xff] }
  0xc5   :  { %1497 = vmatprep.subr.bf16.mxu1 %v1496_v33  ;;  %v1722_v33 = vld [vmem:[%s1779_s0] sm:$0xff]  ;;  %v1582_v37 = vpack.c.bf16 %v89_v30, %v73_v28  ;;  %v233_v26 = vld [vmem:[#allocation2 + $0x670] sm:$0xff]  ;;  %v1600_v27 = vpack.c.bf16 %v250_v20, %v234_v19  ;;  %v280_v30 = vld [vmem:[#allocation2 + $0x7e8] sm:$0xff] }
  0xc6   :  { %v249_v28 = vld [vmem:[#allocation2 + $0x6f0] sm:$0xff] }
  0xc7   :  { %1435 = vmatpush1.bf16.msra.mxu0 %v1434_v39  ;;  %v103_v39 = vld [vmem:[#allocation2 + $0x260] sm:$0xff]  ;;  %v1602_v35 = vpack.c.bf16 %v249_v28, %v233_v26  ;;  %v424_v26 = vld [vmem:[#allocation2 + $0xc68] sm:$0xff]  ;;  %v426_v28 = vld [vmem:[#allocation2 + $0xc78] sm:$0xff] }
  0xc8   :  { %1499 = vmatpush1.bf16.msra.mxu1 %v1498_v40  ;;  %1437 = vmatprep.subr.bf16.mxu0 %v1436_v41  ;;  %v119_v40 = vld [vmem:[#allocation2 + $0x2e0] sm:$0xff]  ;;  %v105_v41 = vld [vmem:[#allocation2 + $0x270] sm:$0xff] }
  0xc9   :  { %1501 = vmatprep.subr.bf16.mxu1 %v1500_v45  ;;  %v152_v45 = vld [vmem:[#allocation2 + $0x3e8] sm:$0xff]  ;;  %v1522_v48 = vpack.c.bf16 %v119_v40, %v103_v39  ;;  %v1586_v49 = vpack.c.bf16 %v121_v43, %v105_v41  ;;  %v265_v39 = vld [vmem:[#allocation2 + $0x770] sm:$0xff]  ;;  %v1604_v40 = vpack.c.bf16 %v282_v32, %v266_v31 }
  0xca   :  { %v281_v41 = vld [vmem:[#allocation2 + $0x7f0] sm:$0xff]  ;;  %v312_v43 = vld [vmem:[#allocation2 + $0x8e8] sm:$0xff] }
  0xcb   :  { %1439 = vmatpush1.bf16.msra.mxu0 %v1438_v50  ;;  %v1524_v50 = vpack.c.bf16 %v152_v45, %v136_v44  ;;  %v298_v44 = vld [vmem:[#allocation2 + $0x878] sm:$0xff]  ;;  %v1606_v15 = vpack.c.bf16 %v281_v41, %v265_v39  ;;  %v456_v39 = vld [vmem:[#allocation2 + $0xd68] sm:$0xff] }
  0xcc   :  { %1503 = vmatpush1.bf16.msra.mxu1 %v1502_v51  ;;  %1441 = vmatprep.subr.bf16.mxu0 %v1440_v52  ;;  %v135_v51 = vld [vmem:[#allocation2 + $0x360] sm:$0xff]  ;;  %v314_v45 = vld [vmem:[#allocation2 + $0x8f8] sm:$0xff] }
  0xcd   :  { %1505 = vmatprep.subr.bf16.mxu1 %v1504_v56  ;;  %v151_v52 = vld [vmem:[#allocation2 + $0x3e0] sm:$0xff]  ;;  %v168_v56 = vld [vmem:[#allocation2 + $0x468] sm:$0xff]  ;;  %v458_v41 = vld [vmem:[#allocation2 + $0xd78] sm:$0xff] }
  0xce   :  { %v1526_v59 = vpack.c.bf16 %v151_v52, %v135_v51  ;;  %v1608_v51 = vpack.c.bf16 %v314_v45, %v298_v44  ;;  %v313_v52 = vld [vmem:[#allocation2 + $0x8f0] sm:$0xff] }
  0xcf   :  { %1443 = vmatpush1.bf16.msra.mxu0 %v1442_v61  ;;  %v1528_v61 = vpack.c.bf16 %v184_v57, %v168_v56  ;;  %v346_v56 = vld [vmem:[#allocation2 + $0x9f8] sm:$0xff] }
  0xd0   :  { %1507 = vmatpush1.bf16.msra.mxu1 %v1506_v62  ;;  %1445 = vmatprep.subr.bf16.mxu0 %v1444_v63  ;;  %v167_v62 = vld [vmem:[#allocation2 + $0x460] sm:$0xff] }
  0xd1   :  { %1509 = vmatprep.subr.bf16.mxu1 %v1508_v3  ;;  %v183_v63 = vld [vmem:[#allocation2 + $0x4e0] sm:$0xff]  ;;  %v200_v3 = vld [vmem:[#allocation2 + $0x568] sm:$0xff] }
  0xd2   :  { %v1530_v7 = vpack.c.bf16 %v183_v63, %v167_v62  ;;  %v1612_v62 = vpack.c.bf16 %v346_v56, %v330_v55  ;;  %v345_v63 = vld [vmem:[#allocation2 + $0x9f0] sm:$0xff] }
  0xd3   :  { %1447 = vmatpush1.bf16.msra.mxu0 %v1446_v9  ;;  %v1532_v9 = vpack.c.bf16 %v216_v4, %v200_v3  ;;  %v378_v3 = vld [vmem:[#allocation2 + $0xaf8] sm:$0xff] }
  0xd4   :  { %1511 = vmatpush1.bf16.msra.mxu1 %v1510_v10  ;;  %1513 = vmatprep.subr.bf16.mxu0 %v1512_v11  ;;  %v199_v10 = vld [vmem:[#allocation2 + $0x560] sm:$0xff] }
  0xd5   :  { %1577 = vmatprep.subr.bf16.mxu1 %v1576_v17  ;;  %v215_v11 = vld [vmem:[#allocation2 + $0x5e0] sm:$0xff]  ;;  %v232_v17 = vld [vmem:[#allocation2 + $0x668] sm:$0xff] }
  0xd6   :  { %888 = vmatmul.mubr.f32.vlgmr.msra.gmra.mrb[4].mxu0 %v1722_v33  ;;  %v1534_v21 = vpack.c.bf16 %v215_v11, %v199_v10  ;;  %v1616_v10 = vpack.c.bf16 %v378_v3, %v362_v2  ;;  %v377_v11 = vld [vmem:[#allocation2 + $0xaf0] sm:$0xff] }
  0xd7   :  { %959 = vmatmul.mubr.f32.vlgmr.msra.gmra.mrb[4].mxu1 %v1722_v33  ;;  %1515 = vmatpush1.bf16.msra.mxu0 %v1514_v23  ;;  %v1536_v23 = vpack.c.bf16 %v248_v18, %v232_v17  ;;  %v410_v17 = vld [vmem:[#allocation2 + $0xbf8] sm:$0xff] }
  0xd8   :  { %1579 = vmatpush1.bf16.msra.mxu1 %v1578_v24  ;;  %1517 = vmatprep.subr.bf16.mxu0 %v1516_v25  ;;  %v231_v24 = vld [vmem:[#allocation2 + $0x660] sm:$0xff] }
  0xd9   :  { %1581 = vmatprep.subr.bf16.mxu1 %v1580_v29  ;;  %1029 = vmatprep.mubr.f32.mxu0 %v1644_v46  ;;  %v247_v25 = vld [vmem:[#allocation2 + $0x6e0] sm:$0xff]  ;;  %v264_v29 = vld [vmem:[#allocation2 + $0x768] sm:$0xff] }
  0xda   :  { %1100 = vmatprep.mubr.f32.mxu1 %v1644_v46  ;;  %v1538_v34 = vpack.c.bf16 %v247_v25, %v231_v24  ;;  %v1620_v24 = vpack.c.bf16 %v410_v17, %v394_v14  ;;  %v409_v25 = vld [vmem:[#allocation2 + $0xbf0] sm:$0xff] }
  0xdb   :  { %1519 = vmatpush1.bf16.msra.mxu0 %v1518_v36  ;;  %v1540_v36 = vpack.c.bf16 %v280_v30, %v264_v29  ;;  %v442_v29 = vld [vmem:[#allocation2 + $0xcf8] sm:$0xff] }
  0xdc   :  { %1583 = vmatpush1.bf16.msra.mxu1 %v1582_v37  ;;  %1521 = vmatprep.subr.bf16.mxu0 %v1520_v38  ;;  %v263_v37 = vld [vmem:[#allocation2 + $0x760] sm:$0xff] }
  0xdd   :  { %1585 = vmatprep.subr.bf16.mxu1 %v1584_v42  ;;  %v279_v38 = vld [vmem:[#allocation2 + $0x7e0] sm:$0xff]  ;;  %v296_v42 = vld [vmem:[#allocation2 + $0x868] sm:$0xff] }
  0xde   :  { %v1542_v46 = vpack.c.bf16 %v279_v38, %v263_v37  ;;  %v1544_v47 = vpack.c.bf16 %v312_v43, %v296_v42  ;;  %v1624_v37 = vpack.c.bf16 %v442_v29, %v426_v28  ;;  %v441_v38 = vld [vmem:[#allocation2 + $0xcf0] sm:$0xff]  ;;  %v474_v42 = vld [vmem:[#allocation2 + $0xdf8] sm:$0xff] }
  0xdf   :  { %1523 = vmatpush1.bf16.msra.mxu0 %v1522_v48  ;;  %v295_v48 = vld [vmem:[#allocation2 + $0x860] sm:$0xff] }
  0xe0   :  { %1587 = vmatpush1.bf16.msra.mxu1 %v1586_v49  ;;  %1525 = vmatprep.subr.bf16.mxu0 %v1524_v50  ;;  %v311_v49 = vld [vmem:[#allocation2 + $0x8e0] sm:$0xff]  ;;  %v297_v50 = vld [vmem:[#allocation2 + $0x870] sm:$0xff] }
  0xe1   :  { %1589 = vmatprep.subr.bf16.mxu1 %v1588_v54  ;;  %v344_v54 = vld [vmem:[#allocation2 + $0x9e8] sm:$0xff]  ;;  %v1546_v57 = vpack.c.bf16 %v311_v49, %v295_v48  ;;  %v1610_v58 = vpack.c.bf16 %v313_v52, %v297_v50  ;;  %v1628_v48 = vpack.c.bf16 %v474_v42, %v458_v41  ;;  %v473_v49 = vld [vmem:[#allocation2 + $0xdf0] sm:$0xff]  ;;  %v490_v52 = vld [vmem:[#allocation2 + $0xe78] sm:$0xff] }
  0xe2   :  { %v1548_v16 = vpack.c.bf16 %v344_v54, %v328_v53  ;;  %v488_v50 = vld [vmem:[#allocation2 + $0xe68] sm:$0xff]  ;;  %v506_v53 = vld [vmem:[#allocation2 + $0xef8] sm:$0xff] }
  0xe3   :  { %1527 = vmatpush1.bf16.msra.mxu0 %v1526_v59  ;;  %v327_v59 = vld [vmem:[#allocation2 + $0x960] sm:$0xff] }
  0xe4   :  { %1591 = vmatpush1.bf16.msra.mxu1 %v1590_v60  ;;  %1529 = vmatprep.subr.bf16.mxu0 %v1528_v61  ;;  %v343_v60 = vld [vmem:[#allocation2 + $0x9e0] sm:$0xff]  ;;  %v329_v61 = vld [vmem:[#allocation2 + $0x970] sm:$0xff] }
  0xe5   :  { %1593 = vmatprep.subr.bf16.mxu1 %v1592_v1  ;;  %v376_v1 = vld [vmem:[#allocation2 + $0xae8] sm:$0xff]  ;;  %v1550_v4 = vpack.c.bf16 %v343_v60, %v327_v59  ;;  %v1614_v5 = vpack.c.bf16 %v345_v63, %v329_v61  ;;  %v1632_v59 = vpack.c.bf16 %v506_v53, %v490_v52  ;;  %v505_v60 = vld [vmem:[#allocation2 + $0xef0] sm:$0xff]  ;;  %v522_v63 = vld [vmem:[#allocation2 + $0xf78] sm:$0xff] }
  0xe6   :  { %v1552_v6 = vpack.c.bf16 %v376_v1, %v360_v0  ;;  %v520_v61 = vld [vmem:[#allocation2 + $0xf68] sm:$0xff]  ;;  %v538_v0 = vld [vmem:[#allocation2 + $0xff8] sm:$0xff] }
  0xe7   :  { %1531 = vmatpush1.bf16.msra.mxu0 %v1530_v7  ;;  %v359_v7 = vld [vmem:[#allocation2 + $0xa60] sm:$0xff] }
  0xe8   :  { %1595 = vmatpush1.bf16.msra.mxu1 %v1594_v8  ;;  %1533 = vmatprep.subr.bf16.mxu0 %v1532_v9  ;;  %v375_v8 = vld [vmem:[#allocation2 + $0xae0] sm:$0xff]  ;;  %v361_v9 = vld [vmem:[#allocation2 + $0xa70] sm:$0xff] }
  0xe9   :  { %1597 = vmatprep.subr.bf16.mxu1 %v1596_v13  ;;  %v408_v13 = vld [vmem:[#allocation2 + $0xbe8] sm:$0xff]  ;;  %v1554_v18 = vpack.c.bf16 %v375_v8, %v359_v7  ;;  %v1618_v19 = vpack.c.bf16 %v377_v11, %v361_v9  ;;  %v521_v7 = vld [vmem:[#allocation2 + $0xf70] sm:$0xff] }
  0xea   :  { %v1556_v20 = vpack.c.bf16 %v408_v13, %v392_v12  ;;  %v537_v8 = vld [vmem:[#allocation2 + $0xff0] sm:$0xff] }
  0xeb   :  { %1535 = vmatpush1.bf16.msra.mxu0 %v1534_v21  ;;  %v391_v21 = vld [vmem:[#allocation2 + $0xb60] sm:$0xff] }
  0xec   :  { %1599 = vmatpush1.bf16.msra.mxu1 %v1598_v22  ;;  %1537 = vmatprep.subr.bf16.mxu0 %v1536_v23  ;;  %v407_v22 = vld [vmem:[#allocation2 + $0xbe0] sm:$0xff]  ;;  %v393_v23 = vld [vmem:[#allocation2 + $0xb70] sm:$0xff] }
  0xed   :  { %1601 = vmatprep.subr.bf16.mxu1 %v1600_v27  ;;  %v440_v27 = vld [vmem:[#allocation2 + $0xce8] sm:$0xff]  ;;  %v1558_v30 = vpack.c.bf16 %v407_v22, %v391_v21  ;;  %v1622_v31 = vpack.c.bf16 %v409_v25, %v393_v23 }
  0xee   :  { %v1560_v32 = vpack.c.bf16 %v440_v27, %v424_v26 }
  0xef   :  { %1539 = vmatpush1.bf16.msra.mxu0 %v1538_v34  ;;  %v423_v34 = vld [vmem:[#allocation2 + $0xc60] sm:$0xff] }
  0xf0   :  { %1603 = vmatpush1.bf16.msra.mxu1 %v1602_v35  ;;  %1541 = vmatprep.subr.bf16.mxu0 %v1540_v36  ;;  %v439_v35 = vld [vmem:[#allocation2 + $0xce0] sm:$0xff]  ;;  %v425_v36 = vld [vmem:[#allocation2 + $0xc70] sm:$0xff] }
  0xf1   :  { %1605 = vmatprep.subr.bf16.mxu1 %v1604_v40  ;;  %v472_v40 = vld [vmem:[#allocation2 + $0xde8] sm:$0xff]  ;;  %v1562_v43 = vpack.c.bf16 %v439_v35, %v423_v34  ;;  %v1626_v44 = vpack.c.bf16 %v441_v38, %v425_v36 }
  0xf2   :  { %v1564_v45 = vpack.c.bf16 %v472_v40, %v456_v39 }
  0xf3   :  { %1543 = vmatpush1.bf16.msra.mxu0 %v1542_v46  ;;  %v455_v46 = vld [vmem:[#allocation2 + $0xd60] sm:$0xff] }
  0xf4   :  { %1607 = vmatpush1.bf16.msra.mxu1 %v1606_v15  ;;  %1545 = vmatprep.subr.bf16.mxu0 %v1544_v47  ;;  %v471_v15 = vld [vmem:[#allocation2 + $0xde0] sm:$0xff]  ;;  %v457_v47 = vld [vmem:[#allocation2 + $0xd70] sm:$0xff] }
  0xf5   :  { %1609 = vmatprep.subr.bf16.mxu1 %v1608_v51  ;;  %v504_v51 = vld [vmem:[#allocation2 + $0xee8] sm:$0xff]  ;;  %v1566_v54 = vpack.c.bf16 %v471_v15, %v455_v46  ;;  %v1630_v55 = vpack.c.bf16 %v473_v49, %v457_v47 }
  0xf6   :  { %v1568_v56 = vpack.c.bf16 %v504_v51, %v488_v50 }
  0xf7   :  { %1547 = vmatpush1.bf16.msra.mxu0 %v1546_v57  ;;  %v487_v57 = vld [vmem:[#allocation2 + $0xe60] sm:$0xff] }
  0xf8   :  { %1611 = vmatpush1.bf16.msra.mxu1 %v1610_v58  ;;  %1549 = vmatprep.subr.bf16.mxu0 %v1548_v16  ;;  %v503_v58 = vld [vmem:[#allocation2 + $0xee0] sm:$0xff]  ;;  %v489_v16 = vld [vmem:[#allocation2 + $0xe70] sm:$0xff] }
  0xf9   :  { %1613 = vmatprep.subr.bf16.mxu1 %v1612_v62  ;;  %v536_v62 = vld [vmem:[#allocation2 + $0xfe8] sm:$0xff]  ;;  %v1570_v1 = vpack.c.bf16 %v503_v58, %v487_v57  ;;  %v1634_v2 = vpack.c.bf16 %v505_v60, %v489_v16 }
  0xfa   :  { %v1572_v3 = vpack.c.bf16 %v536_v62, %v520_v61 }
  0xfb   :  { %1551 = vmatpush1.bf16.msra.mxu0 %v1550_v4  ;;  %v519_v4 = vld [vmem:[#allocation2 + $0xf60] sm:$0xff] }
  0xfc   :  { %1615 = vmatpush1.bf16.msra.mxu1 %v1614_v5  ;;  %1553 = vmatprep.subr.bf16.mxu0 %v1552_v6  ;;  %v535_v5 = vld [vmem:[#allocation2 + $0xfe0] sm:$0xff]  ;;  %v1636_v6 = vpack.c.bf16 %v538_v0, %v522_v63 }
  0xfd   :  { %1617 = vmatprep.subr.bf16.mxu1 %v1616_v10  ;;  %v1574_v9 = vpack.c.bf16 %v535_v5, %v519_v4  ;;  %v1638_v10 = vpack.c.bf16 %v537_v8, %v521_v7 }
  0xff   :  { %1555 = vmatpush1.bf16.msra.mxu0 %v1554_v18 }
 0x100   :  { %1619 = vmatpush1.bf16.msra.mxu1 %v1618_v19  ;;  %1557 = vmatprep.subr.bf16.mxu0 %v1556_v20 }
 0x101   :  { %1621 = vmatprep.subr.bf16.mxu1 %v1620_v24 }
 0x103   :  { %1559 = vmatpush1.bf16.msra.mxu0 %v1558_v30 }
 0x104   :  { %1623 = vmatpush1.bf16.msra.mxu1 %v1622_v31  ;;  %1561 = vmatprep.subr.bf16.mxu0 %v1560_v32 }
 0x105   :  { %1625 = vmatprep.subr.bf16.mxu1 %v1624_v37 }
 0x107   :  { %1563 = vmatpush1.bf16.msra.mxu0 %v1562_v43 }
 0x108   :  { %1627 = vmatpush1.bf16.msra.mxu1 %v1626_v44  ;;  %1565 = vmatprep.subr.bf16.mxu0 %v1564_v45 }
 0x109   :  { %1629 = vmatprep.subr.bf16.mxu1 %v1628_v48 }
 0x10b   :  { %1567 = vmatpush1.bf16.msra.mxu0 %v1566_v54 }
 0x10c   :  { %1631 = vmatpush1.bf16.msra.mxu1 %v1630_v55  ;;  %1569 = vmatprep.subr.bf16.mxu0 %v1568_v56 }
 0x10d   :  { %1633 = vmatprep.subr.bf16.mxu1 %v1632_v59 }
 0x10f   :  { %1571 = vmatpush1.bf16.msra.mxu0 %v1570_v1 }
 0x110   :  { %1635 = vmatpush1.bf16.msra.mxu1 %v1634_v2  ;;  %1573 = vmatprep.subr.bf16.mxu0 %v1572_v3 }
 0x111   :  { %1637 = vmatprep.subr.bf16.mxu1 %v1636_v6 }
 0x113   :  { %1575 = vmatpush1.bf16.msra.mxu0 %v1574_v9 }
 0x114   :  { %1639 = vmatpush1.bf16.msra.mxu1 %v1638_v10 }
 0x116   :  { %1030 = vmatmul.mubr.f32.vlgmr.msra.gmra.mrb[6].mxu0 %v1722_v33 }
 0x117   :  { %1101 = vmatmul.mubr.f32.vlgmr.msra.gmra.mrb[6].mxu1 %v1722_v33 }
 0x129   :  { %v605_v11 = vpop.f32.mrb[0].mxu0 }
 0x12a   :  { %1107 = vst [vmem:[%s1781_s2] sm:$0xff] %v605_v11  ;;  %v676_v12 = vpop.f32.mrb[0].mxu1  ;;  %v607_v13 = vpop.f32.mrb[1].mxu0 }
 0x12b   :  { %1109 = vst [vmem:[%s1781_s2 + $0x10] sm:$0xff] %v676_v12  ;;  %1108 = vst [vmem:[%s1781_s2 + $0x8] sm:$0xff] %v607_v13  ;;  %v678_v14 = vpop.f32.mrb[1].mxu1 }
 0x12c   :  { %1110 = vst [vmem:[%s1781_s2 + $0x18] sm:$0xff] %v678_v14 }
 0x169   :  { %v747_v33 = vpop.f32.mrb[2].mxu0 }
 0x16a   :  { %1111 = vst [vmem:[%s1781_s2 + $0x20] sm:$0xff] %v747_v33  ;;  %v818_v17 = vpop.f32.mrb[2].mxu1  ;;  %v749_v18 = vpop.f32.mrb[3].mxu0 }
 0x16b   :  { %1113 = vst [vmem:[%s1781_s2 + $0x30] sm:$0xff] %v818_v17  ;;  %1112 = vst [vmem:[%s1781_s2 + $0x28] sm:$0xff] %v749_v18  ;;  %v820_v19 = vpop.f32.mrb[3].mxu1 }
 0x16c   :  { %1114 = vst [vmem:[%s1781_s2 + $0x38] sm:$0xff] %v820_v19 }
 0x1a9   :  { %v889_v20 = vpop.f32.mrb[4].mxu0 }
 0x1aa   :  { %1115 = vst [vmem:[%s1781_s2 + $0x40] sm:$0xff] %v889_v20  ;;  %v960_v21 = vpop.f32.mrb[4].mxu1  ;;  %v891_v22 = vpop.f32.mrb[5].mxu0 }
 0x1ab   :  { %1117 = vst [vmem:[%s1781_s2 + $0x50] sm:$0xff] %v960_v21  ;;  %1116 = vst [vmem:[%s1781_s2 + $0x48] sm:$0xff] %v891_v22  ;;  %v962_v23 = vpop.f32.mrb[5].mxu1 }
 0x1ac   :  { %1118 = vst [vmem:[%s1781_s2 + $0x58] sm:$0xff] %v962_v23 }
 0x1e9   :  { %v1031_v24 = vpop.f32.mrb[6].mxu0 }
 0x1ea   :  { %1119 = vst [vmem:[%s1781_s2 + $0x60] sm:$0xff] %v1031_v24  ;;  %v1102_v25 = vpop.f32.mrb[6].mxu1  ;;  %v1033_v26 = vpop.f32.mrb[7].mxu0 }
 0x1eb   :  { %1121 = vst [vmem:[%s1781_s2 + $0x70] sm:$0xff] %v1102_v25  ;;  %1120 = vst [vmem:[%s1781_s2 + $0x68] sm:$0xff] %v1033_v26  ;;  %v1104_v27 = vpop.f32.mrb[7].mxu1 }
 0x1ec   :  { %1122 = vst [vmem:[%s1781_s2 + $0x78] sm:$0xff] %v1104_v27 }
 0x1ed   :  { %1127 = vsyncpa [#allocation3], 1 }

// kernel: image_decoder_forward.8
= control target key start
LH: loop header
LB: loop body
LE: loop exit
PB: predicated region body
PF: predicated region fallthrough
CT: control target
= control target key end

     0   :  { %9 = vsyncpa [#allocation3], 0  ;;  %s1567_s0 = inlined_call_operand.vmem [shape: f32[72,128], index: 0, kind: input, shape index: {}]   ;;  %s1568_s1 = inlined_call_operand.hbm [shape: f32[1,128], index: 1, kind: input, shape index: {}]   ;;  %s1569_s2 = inlined_call_operand.hbm [shape: f32[1,128], index: 2, kind: input, shape index: {}]   ;;  %s1570_s3 = inlined_call_operand.hbm [shape: f32[128,1024], index: 3, kind: input, shape index: {}]   ;;  %s1571_s4 = inlined_call_operand.vmem [shape: f32[72,1024], index: 4, kind: output, shape index: {}]  }
   0x1   :  { %10 = vsyncpa [#allocation5], 0  ;;  %s1143_s15 = smov [#allocation4]   ;;  %s1144_s17 = smov [#allocation2]  }
   0x2   :  { %s29_s16 = sshll.u32 %s1143_s15, 4  ;;  %s19_s18 = sshll.u32 %s1144_s17, 4  ;;  %s30_s16 = int_to_ptr.vmem [resolvable:$true] %s29_s16  ;;  %s20_s18 = int_to_ptr.vmem [resolvable:$true] %s19_s18 }
   0x3   :  { %s1073_s21 = scalar_lea.hbm %s1569_s2, 16 }
   0x4   :  { %p1074_p0 = scmp.ne.s32.totalorder %s1569_s2, %s1073_s21  ;;  %p1077_p1 = scmp.lt.u32.totalorder %s1073_s21, %s1569_s2 }
   0x6   :  { %p1079_p2 = pnand %p1077_p1, %p1074_p0 }
   0x8   :  { %1082 = shalt.err (!%p1079_p2)
}
   0x9   :  { %s1083_s26 = scalar_lea.vmem %s30_s16, 16  ;;  %s1087_s27 = scalar_lea.vmem %s30_s16, 32 }
   0xa   :  { %p1084_p3 = scmp.ne.s32.totalorder %s30_s16, %s1083_s26  ;;  %p1088_p4 = scmp.lt.s32.totalorder %s30_s16, %s30_s16 }
   0xb   :  { %p1089_p5 = scmp.lt.s32.totalorder %s1087_s27, %s1083_s26 }
   0xd   :  { %p1090_p6 = por %p1089_p5, %p1088_p4 }
   0xf   :  { %p1091_p7 = pnand %p1090_p6, %p1084_p3 }
  0x11   :  { %1094 = shalt.err (!%p1091_p7)
}
  0x12   :  { %32 = dma.hbm_to_vmem [thread:$0]  %s1569_s2, 16, %s30_s16, [#allocation5]  }
  0x13   :  { %s1095_s6 = scalar_lea.hbm %s1568_s1, 16 }
  0x14   :  { %p1096_p8 = scmp.ne.s32.totalorder %s1568_s1, %s1095_s6  ;;  %p1099_p9 = scmp.lt.u32.totalorder %s1095_s6, %s1568_s1 }
  0x16   :  { %p1101_p10 = pnand %p1099_p9, %p1096_p8 }
  0x18   :  { %1104 = shalt.err (!%p1101_p10)
}
  0x19   :  { %s1105_s11 = scalar_lea.vmem %s20_s18, 16  ;;  %s1109_s12 = scalar_lea.vmem %s20_s18, 32 }
  0x1a   :  { %p1106_p11 = scmp.ne.s32.totalorder %s20_s18, %s1105_s11  ;;  %p1110_p12 = scmp.lt.s32.totalorder %s20_s18, %s20_s18 }
  0x1b   :  { %p1111_p13 = scmp.lt.s32.totalorder %s1109_s12, %s1105_s11 }
  0x1d   :  { %p1112_p0 = por %p1111_p13, %p1110_p12 }
  0x1f   :  { %p1113_p1 = pnand %p1112_p0, %p1106_p11 }
  0x21   :  { %1116 = shalt.err (!%p1113_p1)
}
  0x22   :  { %22 = dma.hbm_to_vmem [thread:$0]  %s1568_s1, 16, %s20_s18, [#allocation3]  }
  0x23   :  { %s1145_s14 = smov [#allocation6]   ;;  %s1117_s19 = scalar_lea.hbm %s1570_s3, 16384 }
  0x24   :  { %s38_s15 = sshll.u32 %s1145_s14, 4  ;;  %p1118_p2 = scmp.ne.s32.totalorder %s1570_s3, %s1117_s19  ;;  %s39_s15 = int_to_ptr.vmem [resolvable:$true] %s38_s15 }
  0x25   :  { %p1121_p3 = scmp.lt.u32.totalorder %s1117_s19, %s1570_s3 }
  0x27   :  { %p1123_p4 = pnand %p1121_p3, %p1118_p2 }
  0x29   :  { %1126 = shalt.err (!%p1123_p4)
}
  0x2a   :  { %s1127_s24 = scalar_lea.vmem %s39_s15, 16384  ;;  %p1132_p6 = scmp.lt.s32.totalorder %s39_s15, %s39_s15 }
  0x2b   :  { %p1128_p5 = scmp.ne.s32.totalorder %s39_s15, %s1127_s24  ;;  %p1133_p7 = scmp.lt.s32.totalorder %s1127_s24, %s1127_s24 }
  0x2d   :  { %p1134_p8 = por %p1133_p7, %p1132_p6 }
  0x2f   :  { %p1135_p9 = pnand %p1134_p8, %p1128_p5 }
  0x31   :  { %1138 = shalt.err (!%p1135_p9)
}
  0x32   :  { %s1146_s1 = smov 1024   ;;  %s1147_s18 = smov 64  }
  0x33   :  { %44 = dma.hbm_to_vmem [thread:$0]  %s1570_s3, 16384, %s39_s15, [#allocation5], %s1146_s1, %s1146_s1, %s1147_s18  }
  0x34   :  { %1139 = dma.done.wait [#allocation3], 16  }
  0x35   :  { %1140 = vsyncadd [#allocation3], 4294967280 }
  0x36   :  { %1141 = dma.done.wait [#allocation5], 16400  }
  0x37   :  { %1142 = vsyncadd [#allocation5], 4294950896  ;;  %v1148_v0 = vmov 0.0   ;;  %v218_v1 = vld [vmem:[#allocation6 + $0x8] sm:$0xff]  ;;  %v220_v3 = vld [vmem:[#allocation6 + $0x18] sm:$0xff] }
  0x38   :  { %409 = vmatprep.mubr.f32.mxu0 %v1148_v0  ;;  %528 = vmatprep.mubr.f32.mxu1 %v1148_v0  ;;  %v226_v2 = vld [vmem:[#allocation6 + $0x48] sm:$0xff]  ;;  %v228_v5 = vld [vmem:[#allocation6 + $0x58] sm:$0xff]  ;;  %v217_v6 = vld [vmem:[#allocation6] sm:$0xff] }
  0x39   :  { %v901_v4 = vpack.c.bf16 %v226_v2, %v218_v1  ;;  %v225_v7 = vld [vmem:[#allocation6 + $0x40] sm:$0xff]  ;;  %v933_v8 = vpack.c.bf16 %v228_v5, %v220_v3  ;;  %v219_v10 = vld [vmem:[#allocation6 + $0x10] sm:$0xff]  ;;  %v234_v12 = vld [vmem:[#allocation6 + $0x88] sm:$0xff] }
  0x3a   :  { %v903_v9 = vpack.c.bf16 %v225_v7, %v217_v6  ;;  %v227_v11 = vld [vmem:[#allocation6 + $0x50] sm:$0xff]  ;;  %v242_v14 = vld [vmem:[#allocation6 + $0xc8] sm:$0xff]  ;;  %v236_v15 = vld [vmem:[#allocation6 + $0x98] sm:$0xff] }
  0x3b   :  { %902 = vmatprep.subr.bf16.mxu0 %v901_v4  ;;  %v935_v13 = vpack.c.bf16 %v227_v11, %v219_v10  ;;  %v244_v16 = vld [vmem:[#allocation6 + $0xd8] sm:$0xff]  ;;  %934 = vmatprep.subr.bf16.mxu1 %v933_v8  ;;  %v905_v17 = vpack.c.bf16 %v242_v14, %v234_v12  ;;  %v233_v19 = vld [vmem:[#allocation6 + $0x80] sm:$0xff]  ;;  %v235_v21 = vld [vmem:[#allocation6 + $0x90] sm:$0xff] }
  0x3c   :  { %904 = vmatpush1.bf16.msra.mxu0 %v903_v9  ;;  %v937_v18 = vpack.c.bf16 %v244_v16, %v236_v15  ;;  %v241_v20 = vld [vmem:[#allocation6 + $0xc0] sm:$0xff]  ;;  %v243_v23 = vld [vmem:[#allocation6 + $0xd0] sm:$0xff]  ;;  %v250_v24 = vld [vmem:[#allocation6 + $0x108] sm:$0xff] }
  0x3d   :  { %936 = vmatpush1.bf16.msra.mxu1 %v935_v13  ;;  %v907_v22 = vpack.c.bf16 %v241_v20, %v233_v19  ;;  %v258_v25 = vld [vmem:[#allocation6 + $0x148] sm:$0xff]  ;;  %906 = vmatprep.subr.bf16.mxu0 %v905_v17  ;;  %v939_v26 = vpack.c.bf16 %v243_v23, %v235_v21  ;;  %v252_v28 = vld [vmem:[#allocation6 + $0x118] sm:$0xff]  ;;  %v249_v30 = vld [vmem:[#allocation6 + $0x100] sm:$0xff] }
  0x3e   :  { %938 = vmatprep.subr.bf16.mxu1 %v937_v18  ;;  %v909_v27 = vpack.c.bf16 %v258_v25, %v250_v24  ;;  %v260_v29 = vld [vmem:[#allocation6 + $0x158] sm:$0xff]  ;;  %v257_v32 = vld [vmem:[#allocation6 + $0x140] sm:$0xff]  ;;  %v251_v33 = vld [vmem:[#allocation6 + $0x110] sm:$0xff] }
  0x3f   :  { %v941_v31 = vpack.c.bf16 %v260_v29, %v252_v28  ;;  %v259_v34 = vld [vmem:[#allocation6 + $0x150] sm:$0xff]  ;;  %v911_v35 = vpack.c.bf16 %v257_v32, %v249_v30  ;;  %v266_v36 = vld [vmem:[#allocation6 + $0x188] sm:$0xff]  ;;  %v268_v38 = vld [vmem:[#allocation6 + $0x198] sm:$0xff] }
  0x40   :  { %908 = vmatpush1.bf16.msra.mxu0 %v907_v22  ;;  %v274_v37 = vld [vmem:[#allocation6 + $0x1c8] sm:$0xff]  ;;  %v943_v39 = vpack.c.bf16 %v259_v34, %v251_v33  ;;  %v276_v41 = vld [vmem:[#allocation6 + $0x1d8] sm:$0xff]  ;;  %v265_v42 = vld [vmem:[#allocation6 + $0x180] sm:$0xff] }
  0x41   :  { %940 = vmatpush1.bf16.msra.mxu1 %v939_v26  ;;  %910 = vmatprep.subr.bf16.mxu0 %v909_v27  ;;  %v913_v40 = vpack.c.bf16 %v274_v37, %v266_v36  ;;  %v273_v43 = vld [vmem:[#allocation6 + $0x1c0] sm:$0xff]  ;;  %v945_v44 = vpack.c.bf16 %v276_v41, %v268_v38  ;;  %v267_v45 = vld [vmem:[#allocation6 + $0x190] sm:$0xff]  ;;  %v282_v47 = vld [vmem:[#allocation6 + $0x208] sm:$0xff] }
  0x42   :  { %942 = vmatprep.subr.bf16.mxu1 %v941_v31  ;;  %v275_v46 = vld [vmem:[#allocation6 + $0x1d0] sm:$0xff]  ;;  %v290_v48 = vld [vmem:[#allocation6 + $0x248] sm:$0xff]  ;;  %v284_v49 = vld [vmem:[#allocation6 + $0x218] sm:$0xff]  ;;  %v915_v51 = vpack.c.bf16 %v273_v43, %v265_v42 }
  0x43   :  { %v292_v50 = vld [vmem:[#allocation6 + $0x258] sm:$0xff]  ;;  %v947_v52 = vpack.c.bf16 %v275_v46, %v267_v45  ;;  %v917_v53 = vpack.c.bf16 %v290_v48, %v282_v47  ;;  %v281_v54 = vld [vmem:[#allocation6 + $0x200] sm:$0xff]  ;;  %v283_v56 = vld [vmem:[#allocation6 + $0x210] sm:$0xff] }
  0x44   :  { %912 = vmatpush1.bf16.msra.mxu0 %v911_v35  ;;  %v289_v55 = vld [vmem:[#allocation6 + $0x240] sm:$0xff]  ;;  %v949_v57 = vpack.c.bf16 %v292_v50, %v284_v49  ;;  %v291_v58 = vld [vmem:[#allocation6 + $0x250] sm:$0xff]  ;;  %v298_v59 = vld [vmem:[#allocation6 + $0x288] sm:$0xff] }
  0x45   :  { %944 = vmatpush1.bf16.msra.mxu1 %v943_v39  ;;  %914 = vmatprep.subr.bf16.mxu0 %v913_v40  ;;  %v306_v60 = vld [vmem:[#allocation6 + $0x2c8] sm:$0xff]  ;;  %v300_v61 = vld [vmem:[#allocation6 + $0x298] sm:$0xff]  ;;  %v919_v63 = vpack.c.bf16 %v289_v55, %v281_v54  ;;  %v951_v1 = vpack.c.bf16 %v291_v58, %v283_v56  ;;  %v297_v3 = vld [vmem:[#allocation6 + $0x280] sm:$0xff] }
  0x46   :  { %946 = vmatprep.subr.bf16.mxu1 %v945_v44  ;;  %v308_v62 = vld [vmem:[#allocation6 + $0x2d8] sm:$0xff]  ;;  %v921_v2 = vpack.c.bf16 %v306_v60, %v298_v59  ;;  %v305_v4 = vld [vmem:[#allocation6 + $0x2c0] sm:$0xff]  ;;  %v299_v5 = vld [vmem:[#allocation6 + $0x290] sm:$0xff] }
  0x47   :  { %v953_v6 = vpack.c.bf16 %v308_v62, %v300_v61  ;;  %v307_v7 = vld [vmem:[#allocation6 + $0x2d0] sm:$0xff]  ;;  %v314_v8 = vld [vmem:[#allocation6 + $0x308] sm:$0xff]  ;;  %v316_v10 = vld [vmem:[#allocation6 + $0x318] sm:$0xff]  ;;  %v923_v12 = vpack.c.bf16 %v305_v4, %v297_v3 }
  0x48   :  { %916 = vmatpush1.bf16.msra.mxu0 %v915_v51  ;;  %v322_v9 = vld [vmem:[#allocation6 + $0x348] sm:$0xff]  ;;  %v324_v11 = vld [vmem:[#allocation6 + $0x358] sm:$0xff]  ;;  %v313_v13 = vld [vmem:[#allocation6 + $0x300] sm:$0xff]  ;;  %v955_v15 = vpack.c.bf16 %v307_v7, %v299_v5 }
  0x49   :  { %948 = vmatpush1.bf16.msra.mxu1 %v947_v52  ;;  %918 = vmatprep.subr.bf16.mxu0 %v917_v53  ;;  %v321_v14 = vld [vmem:[#allocation6 + $0x340] sm:$0xff]  ;;  %v925_v16 = vpack.c.bf16 %v322_v9, %v314_v8  ;;  %v315_v17 = vld [vmem:[#allocation6 + $0x310] sm:$0xff]  ;;  %v330_v19 = vld [vmem:[#allocation6 + $0x388] sm:$0xff]  ;;  %v957_v20 = vpack.c.bf16 %v324_v11, %v316_v10 }
  0x4a   :  { %950 = vmatprep.subr.bf16.mxu1 %v949_v57  ;;  %v323_v18 = vld [vmem:[#allocation6 + $0x350] sm:$0xff]  ;;  %v338_v21 = vld [vmem:[#allocation6 + $0x3c8] sm:$0xff]  ;;  %v332_v22 = vld [vmem:[#allocation6 + $0x398] sm:$0xff]  ;;  %v927_v27 = vpack.c.bf16 %v321_v14, %v313_v13 }
  0x4b   :  { %v54_v23 = vld [vmem:[%s1567_s0] sm:$0xff]  ;;  %v55_v25 = vld [vmem:[%s1567_s0 + $0x8] sm:$0xff]  ;;  %v56_v26 = vld [vmem:[%s1567_s0 + $0x10] sm:$0xff]  ;;  %v959_v30 = vpack.c.bf16 %v323_v18, %v315_v17  ;;  %v929_v31 = vpack.c.bf16 %v338_v21, %v330_v19 }
  0x4c   :  { %920 = vmatpush1.bf16.msra.mxu0 %v919_v63  ;;  %v340_v24 = vld [vmem:[#allocation6 + $0x3d8] sm:$0xff]  ;;  %v329_v28 = vld [vmem:[#allocation6 + $0x380] sm:$0xff]  ;;  %v63_v29 = vadd.f32 %v55_v25, %v54_v23  ;;  %v331_v33 = vld [vmem:[#allocation6 + $0x390] sm:$0xff] }
  0x4d   :  { %952 = vmatpush1.bf16.msra.mxu1 %v951_v1  ;;  %922 = vmatprep.subr.bf16.mxu0 %v921_v2  ;;  %v337_v32 = vld [vmem:[#allocation6 + $0x3c0] sm:$0xff]  ;;  %v57_v34 = vld [vmem:[%s1567_s0 + $0x18] sm:$0xff]  ;;  %v961_v35 = vpack.c.bf16 %v340_v24, %v332_v22  ;;  %v222_v37 = vld [vmem:[#allocation6 + $0x28] sm:$0xff] }
  0x4e   :  { %954 = vmatprep.subr.bf16.mxu1 %v953_v6  ;;  %v339_v36 = vld [vmem:[#allocation6 + $0x3d0] sm:$0xff]  ;;  %v230_v38 = vld [vmem:[#allocation6 + $0x68] sm:$0xff]  ;;  %v64_v39 = vadd.f32 %v63_v29, %v56_v26  ;;  %v224_v40 = vld [vmem:[#allocation6 + $0x38] sm:$0xff]  ;;  %v931_v43 = vpack.c.bf16 %v337_v32, %v329_v28 }
  0x4f   :  { %v232_v41 = vld [vmem:[#allocation6 + $0x78] sm:$0xff]  ;;  %v963_v45 = vpack.c.bf16 %v339_v36, %v331_v33  ;;  %v965_v46 = vpack.c.bf16 %v230_v38, %v222_v37  ;;  %v59_v47 = vld [vmem:[%s1567_s0 + $0x28] sm:$0xff]  ;;  %v60_v50 = vld [vmem:[%s1567_s0 + $0x30] sm:$0xff] }
  0x50   :  { %924 = vmatpush1.bf16.msra.mxu0 %v923_v12  ;;  %v58_v42 = vld [vmem:[%s1567_s0 + $0x20] sm:$0xff]  ;;  %v65_v44 = vadd.f32 %v64_v39, %v57_v34  ;;  %v997_v48 = vpack.c.bf16 %v232_v41, %v224_v40  ;;  %v61_v52 = vld [vmem:[%s1567_s0 + $0x38] sm:$0xff] }
  0x51   :  { %956 = vmatpush1.bf16.msra.mxu1 %v955_v15  ;;  %926 = vmatprep.subr.bf16.mxu0 %v925_v16  ;;  %v62_v54 = vld [vmem:[%s1567_s0 + $0x40] sm:$0xff] }
  0x52   :  { %958 = vmatprep.subr.bf16.mxu1 %v957_v20  ;;  %v66_v49 = vadd.f32 %v65_v44, %v58_v42  ;;  %v899_v36 = vld [vmem:[#allocation2] ss:$0 sm:$0xff]  ;;  %v900_v41 = vld [vmem:[#allocation4] ss:$0 sm:$0xff] }
  0x54   :  { %928 = vmatpush1.bf16.msra.mxu0 %v927_v27  ;;  %v67_v51 = vadd.f32 %v66_v49, %v59_v47 }
  0x55   :  { %960 = vmatpush1.bf16.msra.mxu1 %v959_v30  ;;  %930 = vmatprep.subr.bf16.mxu0 %v929_v31 }
  0x56   :  { %962 = vmatprep.subr.bf16.mxu1 %v961_v35  ;;  %v68_v53 = vadd.f32 %v67_v51, %v60_v50 }
  0x58   :  { %932 = vmatpush1.bf16.msra.mxu0 %v931_v43  ;;  %v69_v55 = vadd.f32 %v68_v53, %v61_v52 }
  0x59   :  { %964 = vmatpush1.bf16.msra.mxu1 %v963_v45  ;;  %966 = vmatprep.subr.bf16.mxu0 %v965_v46 }
  0x5a   :  { %998 = vmatprep.subr.bf16.mxu1 %v997_v48  ;;  %v70_v56 = vadd.f32 %v69_v55, %v62_v54 }
  0x5c   :  { %v71_v57 = vrot.slane %v70_v56, 4 }
  0x5e   :  { %v72_v58 = vadd.f32 %v71_v57, %v70_v56 }
  0x60   :  { %v73_v59 = vrot.slane %v72_v58, 2 }
  0x62   :  { %v74_v60 = vadd.f32 %v73_v59, %v72_v58 }
  0x64   :  { %v75_v61 = vrot.slane %v74_v60, 1 }
  0x66   :  { %v76_v62 = vadd.f32 %v75_v61, %v74_v60 }
  0x68   :  { %v77_v63 = vmul.f32 0.013888889, %v76_v62 }
  0x6a   :  { %v78_v1 = vsub.f32 %v54_v23, %v77_v63  ;;  %v79_v2 = vsub.f32 %v55_v25, %v77_v63  ;;  %v80_v3 = vsub.f32 %v56_v26, %v77_v63  ;;  %v81_v4 = vsub.f32 %v57_v34, %v77_v63 }
  0x6b   :  { %v82_v5 = vsub.f32 %v58_v42, %v77_v63  ;;  %v83_v9 = vsub.f32 %v59_v47, %v77_v63  ;;  %v84_v12 = vsub.f32 %v60_v50, %v77_v63  ;;  %v85_v15 = vsub.f32 %v61_v52, %v77_v63 }
  0x6c   :  { %v87_v6 = vmul.f32 %v78_v1, %v78_v1  ;;  %v88_v7 = vmul.f32 %v79_v2, %v79_v2  ;;  %v89_v8 = vmul.f32 %v80_v3, %v80_v3  ;;  %v90_v10 = vmul.f32 %v81_v4, %v81_v4 }
  0x6d   :  { %v91_v13 = vmul.f32 %v82_v5, %v82_v5  ;;  %v92_v16 = vmul.f32 %v83_v9, %v83_v9  ;;  %v86_v18 = vsub.f32 %v62_v54, %v77_v63  ;;  %v93_v19 = vmul.f32 %v84_v12, %v84_v12 }
  0x6e   :  { %v96_v11 = vadd.f32 %v88_v7, %v87_v6  ;;  %v94_v21 = vmul.f32 %v85_v15, %v85_v15 }
  0x6f   :  { %v95_v23 = vmul.f32 %v86_v18, %v86_v18 }
  0x70   :  { %v97_v14 = vadd.f32 %v96_v11, %v89_v8 }
  0x72   :  { %v98_v17 = vadd.f32 %v97_v14, %v90_v10 }
  0x74   :  { %v99_v20 = vadd.f32 %v98_v17, %v91_v13 }
  0x76   :  { %v100_v22 = vadd.f32 %v99_v20, %v92_v16 }
  0x78   :  { %v101_v24 = vadd.f32 %v100_v22, %v93_v19 }
  0x7a   :  { %v102_v25 = vadd.f32 %v101_v24, %v94_v21 }
  0x7c   :  { %v103_v26 = vadd.f32 %v102_v25, %v95_v23 }
  0x7e   :  { %v104_v27 = vrot.slane %v103_v26, 4 }
  0x80   :  { %v105_v28 = vadd.f32 %v104_v27, %v103_v26 }
  0x82   :  { %v106_v29 = vrot.slane %v105_v28, 2 }
  0x84   :  { %v107_v30 = vadd.f32 %v106_v29, %v105_v28  ;;  %v221_v28 = vld [vmem:[#allocation6 + $0x20] sm:$0xff] }
  0x85   :  { %v229_v29 = vld [vmem:[#allocation6 + $0x60] sm:$0xff] }
  0x86   :  { %v108_v31 = vrot.slane %v107_v30, 1 }
  0x88   :  { %v109_v32 = vadd.f32 %v108_v31, %v107_v30  ;;  %v223_v30 = vld [vmem:[#allocation6 + $0x30] sm:$0xff] }
  0x89   :  { %v231_v31 = vld [vmem:[#allocation6 + $0x70] sm:$0xff] }
  0x8a   :  { %v110_v33 = vmul.f32 0.013888889, %v109_v32 }
  0x8c   :  { %v111_v34 = vadd.f32 1e-05, %v110_v33  ;;  %v238_v33 = vld [vmem:[#allocation6 + $0xa8] sm:$0xff] }
  0x8e   :  { %1035 = vrsqrt.f32 %v111_v34 }
  0x98   :  { %v1036_v35 = vpop.eup %1035 }
  0x99   :  { %v113_v37 = vmul.f32 %v1036_v35, %v78_v1  ;;  %v114_v38 = vmul.f32 %v1036_v35, %v79_v2  ;;  %v115_v39 = vmul.f32 %v1036_v35, %v80_v3  ;;  %v116_v40 = vmul.f32 %v1036_v35, %v81_v4 }
  0x9a   :  { %v117_v42 = vmul.f32 %v1036_v35, %v82_v5  ;;  %v118_v43 = vmul.f32 %v1036_v35, %v83_v9  ;;  %v119_v55 = vmul.f32 %v1036_v35, %v84_v12  ;;  %v120_v1 = vmul.f32 %v1036_v35, %v85_v15 }
  0x9b   :  { %v129_v44 = vmul.f32 %v899_v36, %v113_v37  ;;  %v130_v45 = vmul.f32 %v899_v36, %v114_v38  ;;  %v131_v46 = vmul.f32 %v899_v36, %v115_v39  ;;  %v132_v47 = vmul.f32 %v899_v36, %v116_v40  ;;  %v240_v37 = vld [vmem:[#allocation6 + $0xb8] sm:$0xff] }
  0x9c   :  { %v133_v48 = vmul.f32 %v899_v36, %v117_v42  ;;  %v134_v54 = vmul.f32 %v899_v36, %v118_v43  ;;  %v135_v63 = vmul.f32 %v899_v36, %v119_v55  ;;  %v136_v6 = vmul.f32 %v899_v36, %v120_v1  ;;  %v248_v38 = vld [vmem:[#allocation6 + $0xf8] sm:$0xff]  ;;  %v237_v42 = vld [vmem:[#allocation6 + $0xa0] sm:$0xff]  ;;  %v254_v55 = vld [vmem:[#allocation6 + $0x128] sm:$0xff] }
  0x9d   :  { %v1239_v49 = vadd.f32 %v900_v41, %v129_v44  ;;  %v1241_v50 = vadd.f32 %v900_v41, %v130_v45  ;;  %v1243_v51 = vadd.f32 %v900_v41, %v131_v46  ;;  %v1245_v52 = vadd.f32 %v900_v41, %v132_v47  ;;  %v245_v45 = vld [vmem:[#allocation6 + $0xe0] sm:$0xff]  ;;  %v239_v46 = vld [vmem:[#allocation6 + $0xb0] sm:$0xff] }
  0x9e   :  { %v1247_v53 = vadd.f32 %v900_v41, %v133_v48  ;;  %v1254_v4 = vadd.f32 %v900_v41, %v134_v54  ;;  %v1256_v5 = vadd.f32 %v900_v41, %v135_v63  ;;  %v121_v9 = vmul.f32 %v1036_v35, %v86_v18  ;;  %v247_v47 = vld [vmem:[#allocation6 + $0xf0] sm:$0xff]  ;;  %v253_v1 = vld [vmem:[#allocation6 + $0x120] sm:$0xff] }
  0x9f   :  { %v154_v56 = vsub.f32 0.0, %v1239_v49  ;;  %v155_v57 = vsub.f32 0.0, %v1241_v50  ;;  %v156_v58 = vsub.f32 0.0, %v1243_v51  ;;  %v157_v59 = vsub.f32 0.0, %v1245_v52 }
  0xa0   :  { %v158_v3 = vsub.f32 0.0, %v1247_v53  ;;  %v159_v8 = vsub.f32 0.0, %v1254_v4  ;;  %v1259_v10 = vadd.f32 %v900_v41, %v136_v6  ;;  %v160_v12 = vsub.f32 0.0, %v1256_v5  ;;  %v263_v6 = vld [vmem:[#allocation6 + $0x170] sm:$0xff] }
  0xa1   :  { %v163_v60 = vmul.f32 1.442695, %v154_v56  ;;  %v165_v61 = vmul.f32 1.442695, %v155_v57  ;;  %v167_v62 = vmul.f32 1.442695, %v156_v58  ;;  %v137_v13 = vmul.f32 %v899_v36, %v121_v9 }
  0xa2   :  { %v169_v2 = vmul.f32 1.442695, %v157_v59  ;;  %v171_v7 = vmul.f32 1.442695, %v158_v3  ;;  %v173_v11 = vmul.f32 1.442695, %v159_v8  ;;  %v967_v40 = vpack.c.bf16 %v229_v29, %v221_v28 }
  0xa3   :  { %1037 = vpow2.f32 %v163_v60  ;;  %v161_v17 = vsub.f32 0.0, %v1259_v10  ;;  %v175_v21 = vmul.f32 1.442695, %v160_v12  ;;  %v1263_v22 = vadd.f32 %v900_v41, %v137_v13  ;;  %v246_v36 = vld [vmem:[#allocation6 + $0xe8] sm:$0xff]  ;;  %v264_v60 = vld [vmem:[#allocation6 + $0x178] sm:$0xff]  ;;  %v255_v3 = vld [vmem:[#allocation6 + $0x130] sm:$0xff] }
  0xa4   :  { %1039 = vpow2.f32 %v165_v61  ;;  %v999_v41 = vpack.c.bf16 %v231_v31, %v223_v30  ;;  %v969_v48 = vpack.c.bf16 %v246_v36, %v238_v33  ;;  %v1001_v54 = vpack.c.bf16 %v248_v38, %v240_v37  ;;  %v262_v59 = vld [vmem:[#allocation6 + $0x168] sm:$0xff]  ;;  %v288_v30 = vld [vmem:[#allocation6 + $0x238] sm:$0xff]  ;;  %v293_v36 = vld [vmem:[#allocation6 + $0x260] sm:$0xff] }
  0xa5   :  { %1041 = vpow2.f32 %v167_v62  ;;  %v177_v24 = vmul.f32 1.442695, %v161_v17  ;;  %v162_v25 = vsub.f32 0.0, %v1263_v22  ;;  %v971_v62 = vpack.c.bf16 %v245_v45, %v237_v42  ;;  %v270_v8 = vld [vmem:[#allocation6 + $0x1a8] sm:$0xff]  ;;  %v296_v31 = vld [vmem:[#allocation6 + $0x278] sm:$0xff]  ;;  %v287_v37 = vld [vmem:[#allocation6 + $0x230] sm:$0xff] }
  0xa6   :  { %1043 = vpow2.f32 %v169_v2  ;;  %v1003_v63 = vpack.c.bf16 %v247_v47, %v239_v46  ;;  %v261_v2 = vld [vmem:[#allocation6 + $0x160] sm:$0xff]  ;;  %v278_v13 = vld [vmem:[#allocation6 + $0x1e8] sm:$0xff]  ;;  %v295_v38 = vld [vmem:[#allocation6 + $0x270] sm:$0xff] }
  0xa7   :  { %1045 = vpow2.f32 %v171_v7  ;;  %v179_v32 = vmul.f32 1.442695, %v162_v25  ;;  %v975_v17 = vpack.c.bf16 %v261_v2, %v253_v1  ;;  %v286_v25 = vld [vmem:[#allocation6 + $0x228] sm:$0xff]  ;;  %v304_v45 = vld [vmem:[#allocation6 + $0x2b8] sm:$0xff] }
  0xa8   :  { %1047 = vpow2.f32 %v173_v11  ;;  %v294_v29 = vld [vmem:[#allocation6 + $0x268] sm:$0xff]  ;;  %v312_v46 = vld [vmem:[#allocation6 + $0x2f8] sm:$0xff] }
  0xa9   :  { %v328_v1 = vld [vmem:[#allocation6 + $0x378] sm:$0xff] }
  0xad   :  { %v1038_v14 = vpop.eup %1037 }
  0xae   :  { %v1040_v15 = vpop.eup %1039  ;;  %v181_v16 = vadd.f32 1.0, %v1038_v14  ;;  %v272_v14 = vld [vmem:[#allocation6 + $0x1b8] sm:$0xff] }
  0xaf   :  { %v1042_v19 = vpop.eup %1041  ;;  %v182_v20 = vadd.f32 1.0, %v1040_v15  ;;  %v280_v15 = vld [vmem:[#allocation6 + $0x1f8] sm:$0xff] }
  0xb0   :  { %1049 = vrcp.f32 %v181_v16  ;;  %v183_v18 = vadd.f32 1.0, %v1042_v19  ;;  %v1044_v23 = vpop.eup %1043  ;;  %v1007_v19 = vpack.c.bf16 %v263_v6, %v255_v3 }
  0xb1   :  { %1051 = vrcp.f32 %v182_v20  ;;  %v184_v26 = vadd.f32 1.0, %v1044_v23  ;;  %v1046_v27 = vpop.eup %1045  ;;  %v269_v20 = vld [vmem:[#allocation6 + $0x1a0] sm:$0xff]  ;;  %v279_v23 = vld [vmem:[#allocation6 + $0x1f0] sm:$0xff] }
  0xb2   :  { %1053 = vpow2.f32 %v175_v21  ;;  %v185_v34 = vadd.f32 1.0, %v1046_v27  ;;  %v1048_v35 = vpop.eup %1047  ;;  %v277_v21 = vld [vmem:[#allocation6 + $0x1e0] sm:$0xff] }
  0xb3   :  { %1055 = vrcp.f32 %v183_v18  ;;  %v186_v56 = vadd.f32 1.0, %v1048_v35  ;;  %v271_v18 = vld [vmem:[#allocation6 + $0x1b0] sm:$0xff]  ;;  %v979_v33 = vpack.c.bf16 %v277_v21, %v269_v20  ;;  %v285_v35 = vld [vmem:[#allocation6 + $0x220] sm:$0xff] }
  0xb4   :  { %1057 = vpow2.f32 %v177_v24  ;;  %v1009_v24 = vpack.c.bf16 %v280_v15, %v272_v14  ;;  %v342_v15 = vld [vmem:[#allocation6 + $0x3e8] sm:$0xff] }
  0xb5   :  { %1059 = vrcp.f32 %v184_v26 }
  0xb6   :  { %1061 = vpow2.f32 %v179_v32 }
  0xb7   :  { %1063 = vrcp.f32 %v185_v34  ;;  %v1011_v34 = vpack.c.bf16 %v279_v23, %v271_v18  ;;  %v333_v18 = vld [vmem:[#allocation6 + $0x3a0] sm:$0xff] }
  0xb8   :  { %1065 = vrcp.f32 %v186_v56  ;;  %v309_v56 = vld [vmem:[#allocation6 + $0x2e0] sm:$0xff] }
  0xba   :  { %v1050_v39 = vpop.eup %1049 }
  0xbb   :  { %v1052_v43 = vpop.eup %1051  ;;  %v1267_v44 = vmul.f32 %v1050_v39, %v1239_v49  ;;  %v256_v49 = vld [vmem:[#allocation6 + $0x138] sm:$0xff]  ;;  %v1013_v39 = vpack.c.bf16 %v296_v31, %v288_v30 }
  0xbc   :  { %v1054_v57 = vpop.eup %1053  ;;  %v1272_v58 = vmul.f32 %v1052_v43, %v1241_v50  ;;  %v973_v50 = vpack.c.bf16 %v262_v59, %v254_v55  ;;  %v1005_v7 = vpack.c.bf16 %v264_v60, %v256_v49  ;;  %v310_v43 = vld [vmem:[#allocation6 + $0x2e8] sm:$0xff]  ;;  %v301_v55 = vld [vmem:[#allocation6 + $0x2a0] sm:$0xff]  ;;  %v1017_v59 = vpack.c.bf16 %v312_v46, %v304_v45  ;;  %v311_v49 = vld [vmem:[#allocation6 + $0x2f0] sm:$0xff] }
  0xbd   :  { %410 = vmatmul.mubr.f32.vlgmr.msra.gmra.mrb[0].mxu0 %v1267_v44  ;;  %529 = vmatmul.mubr.f32.vlgmr.msra.gmra.mrb[0].mxu1 %v1267_v44  ;;  %v1056_v61 = vpop.eup %1055  ;;  %v187_v9 = vadd.f32 1.0, %v1054_v57  ;;  %v318_v60 = vld [vmem:[#allocation6 + $0x328] sm:$0xff]  ;;  %v987_v3 = vpack.c.bf16 %v309_v56, %v301_v55 }
  0xbe   :  { %968 = vmatpush1.bf16.msra.mxu0 %v967_v40  ;;  %1000 = vmatpush1.bf16.msra.mxu1 %v999_v41  ;;  %v1058_v11 = vpop.eup %1057  ;;  %v1279_v12 = vmul.f32 %v1056_v61, %v1243_v51  ;;  %v977_v51 = vpack.c.bf16 %v278_v13, %v270_v8  ;;  %v302_v40 = vld [vmem:[#allocation6 + $0x2a8] sm:$0xff] }
  0xbf   :  { %415 = vmatprep.mubr.f32.mxu0 %v1148_v0  ;;  %534 = vmatprep.mubr.f32.mxu1 %v1148_v0  ;;  %v1060_v16 = vpop.eup %1059  ;;  %1067 = vrcp.f32 %v187_v9  ;;  %v188_v26 = vadd.f32 1.0, %v1058_v11  ;;  %v985_v57 = vpack.c.bf16 %v310_v43, %v302_v40  ;;  %v327_v11 = vld [vmem:[#allocation6 + $0x370] sm:$0xff]  ;;  %v334_v13 = vld [vmem:[#allocation6 + $0x3a8] sm:$0xff] }
  0xc0   :  { %970 = vmatprep.subr.bf16.mxu0 %v969_v48  ;;  %1002 = vmatprep.subr.bf16.mxu1 %v1001_v54  ;;  %v1062_v27 = vpop.eup %1061  ;;  %v1286_v28 = vmul.f32 %v1060_v16, %v1245_v52  ;;  %v981_v52 = vpack.c.bf16 %v294_v29, %v286_v25  ;;  %v983_v48 = vpack.c.bf16 %v293_v36, %v285_v35  ;;  %v336_v16 = vld [vmem:[#allocation6 + $0x3b8] sm:$0xff]  ;;  %v343_v25 = vld [vmem:[#allocation6 + $0x3f0] sm:$0xff] }
  0xc1   :  { %416 = vmatmul.mubr.f32.gmra.mrb[2].mxu0 %v1272_v58  ;;  %535 = vmatmul.mubr.f32.gmra.mrb[2].mxu1 %v1272_v58  ;;  %v1064_v32 = vpop.eup %1063  ;;  %1069 = vrcp.f32 %v188_v26  ;;  %v189_v41 = vadd.f32 1.0, %v1062_v27  ;;  %v1015_v54 = vpack.c.bf16 %v295_v38, %v287_v37  ;;  %v993_v23 = vpack.c.bf16 %v342_v15, %v334_v13 }
  0xc2   :  { %972 = vmatpush1.bf16.msra.mxu0 %v971_v62  ;;  %1004 = vmatpush1.bf16.msra.mxu1 %v1003_v63  ;;  %v1293_v42 = vmul.f32 %v1064_v32, %v1247_v53  ;;  %v1066_v47 = vpop.eup %1065  ;;  %v303_v53 = vld [vmem:[#allocation6 + $0x2b0] sm:$0xff]  ;;  %v326_v62 = vld [vmem:[#allocation6 + $0x368] sm:$0xff]  ;;  %v320_v63 = vld [vmem:[#allocation6 + $0x338] sm:$0xff] }
  0xc3   :  { %421 = vmatprep.mubr.f32.mxu0 %v1148_v0  ;;  %540 = vmatprep.mubr.f32.mxu1 %v1148_v0  ;;  %1071 = vrcp.f32 %v189_v41  ;;  %v1300_v61 = vmul.f32 %v1066_v47, %v1254_v4  ;;  %v1019_v6 = vpack.c.bf16 %v311_v49, %v303_v53  ;;  %v989_v8 = vpack.c.bf16 %v326_v62, %v318_v60  ;;  %v319_v4 = vld [vmem:[#allocation6 + $0x330] sm:$0xff] }
  0xc4   :  { %974 = vmatprep.subr.bf16.mxu0 %v973_v50  ;;  %1006 = vmatprep.subr.bf16.mxu1 %v1005_v7  ;;  %v317_v50 = vld [vmem:[#allocation6 + $0x320] sm:$0xff]  ;;  %v1021_v9 = vpack.c.bf16 %v328_v1, %v320_v63  ;;  %v1023_v21 = vpack.c.bf16 %v327_v11, %v319_v4 }
  0xc5   :  { %422 = vmatmul.mubr.f32.gmra.mrb[4].mxu0 %v1279_v12  ;;  %541 = vmatmul.mubr.f32.gmra.mrb[4].mxu1 %v1279_v12  ;;  %v325_v7 = vld [vmem:[#allocation6 + $0x360] sm:$0xff] }
  0xc6   :  { %976 = vmatpush1.bf16.msra.mxu0 %v975_v17  ;;  %1008 = vmatpush1.bf16.msra.mxu1 %v1007_v19  ;;  %v344_v17 = vld [vmem:[#allocation6 + $0x3f8] sm:$0xff]  ;;  %v991_v20 = vpack.c.bf16 %v325_v7, %v317_v50 }
  0xc7   :  { %427 = vmatprep.mubr.f32.mxu0 %v1148_v0  ;;  %546 = vmatprep.mubr.f32.mxu1 %v1148_v0 }
  0xc8   :  { %978 = vmatprep.subr.bf16.mxu0 %v977_v51  ;;  %1010 = vmatprep.subr.bf16.mxu1 %v1009_v24  ;;  %v1025_v51 = vpack.c.bf16 %v344_v17, %v336_v16  ;;  %v341_v24 = vld [vmem:[#allocation6 + $0x3e0] sm:$0xff] }
  0xc9   :  { %428 = vmatmul.mubr.f32.gmra.mrb[6].mxu0 %v1286_v28  ;;  %547 = vmatmul.mubr.f32.gmra.mrb[6].mxu1 %v1286_v28  ;;  %v1068_v2 = vpop.eup %1067  ;;  %v995_v29 = vpack.c.bf16 %v341_v24, %v333_v18 }
  0xca   :  { %980 = vmatpush1.bf16.msra.mxu0 %v979_v33  ;;  %1012 = vmatpush1.bf16.msra.mxu1 %v1011_v34  ;;  %v1307_v14 = vmul.f32 %v1068_v2, %v1256_v5  ;;  %v335_v5 = vld [vmem:[#allocation6 + $0x3b0] sm:$0xff] }
  0xcb   :  { %433 = vmatprep.mubr.f32.mxu0 %v1148_v0  ;;  %552 = vmatprep.mubr.f32.mxu1 %v1148_v0  ;;  %v1070_v19 = vpop.eup %1069  ;;  %v1027_v30 = vpack.c.bf16 %v343_v25, %v335_v5 }
  0xcc   :  { %982 = vmatprep.subr.bf16.mxu0 %v981_v52  ;;  %1014 = vmatprep.subr.bf16.mxu1 %v1013_v39  ;;  %v215_v26 = vmul.f32 %v1070_v19, %v1259_v10 }
  0xcd   :  { %434 = vmatmul.mubr.f32.gmra.mrb[8].mxu0 %v1293_v42  ;;  %553 = vmatmul.mubr.f32.gmra.mrb[8].mxu1 %v1293_v42  ;;  %v1072_v27 = vpop.eup %1071 }
  0xce   :  { %984 = vmatpush1.bf16.msra.mxu0 %v983_v48  ;;  %1016 = vmatpush1.bf16.msra.mxu1 %v1015_v54  ;;  %v216_v31 = vmul.f32 %v1072_v27, %v1263_v22 }
  0xcf   :  { %439 = vmatprep.mubr.f32.mxu0 %v1148_v0  ;;  %558 = vmatprep.mubr.f32.mxu1 %v1148_v0 }
  0xd0   :  { %986 = vmatprep.subr.bf16.mxu0 %v985_v57  ;;  %1018 = vmatprep.subr.bf16.mxu1 %v1017_v59 }
  0xd1   :  { %440 = vmatmul.mubr.f32.gmra.mrb[10].mxu0 %v1300_v61  ;;  %559 = vmatmul.mubr.f32.gmra.mrb[10].mxu1 %v1300_v61 }
  0xd2   :  { %445 = vmatprep.mubr.f32.mxu0 %v1148_v0  ;;  %564 = vmatprep.mubr.f32.mxu1 %v1148_v0 }
  0xd3   :  { %988 = vmatpush1.bf16.msra.mxu0 %v987_v3  ;;  %1020 = vmatpush1.bf16.msra.mxu1 %v1019_v6 }
  0xd4   :  { %990 = vmatprep.subr.bf16.mxu0 %v989_v8  ;;  %1022 = vmatprep.subr.bf16.mxu1 %v1021_v9 }
  0xd5   :  { %446 = vmatmul.mubr.f32.gmra.mrb[12].mxu0 %v1307_v14  ;;  %565 = vmatmul.mubr.f32.gmra.mrb[12].mxu1 %v1307_v14 }
  0xd6   :  { %451 = vmatprep.mubr.f32.mxu0 %v1148_v0  ;;  %570 = vmatprep.mubr.f32.mxu1 %v1148_v0 }
  0xd7   :  { %992 = vmatpush1.bf16.msra.mxu0 %v991_v20  ;;  %1024 = vmatpush1.bf16.msra.mxu1 %v1023_v21 }
  0xd8   :  { %994 = vmatprep.subr.bf16.mxu0 %v993_v23  ;;  %1026 = vmatprep.subr.bf16.mxu1 %v1025_v51 }
  0xd9   :  { %452 = vmatmul.mubr.f32.gmra.mrb[14].mxu0 %v215_v26  ;;  %571 = vmatmul.mubr.f32.gmra.mrb[14].mxu1 %v215_v26 }
  0xda   :  { %457 = vmatprep.mubr.f32.mxu0 %v1148_v0  ;;  %576 = vmatprep.mubr.f32.mxu1 %v1148_v0 }
  0xdb   :  { %996 = vmatpush1.bf16.msra.mxu0 %v995_v29  ;;  %1028 = vmatpush1.bf16.msra.mxu1 %v1027_v30 }
  0xdd   :  { %458 = vmatmul.mubr.f32.gmra.mrb[16].mxu0 %v216_v31  ;;  %577 = vmatmul.mubr.f32.gmra.mrb[16].mxu1 %v216_v31 }
  0xde   :  { %647 = vmatprep.mubr.f32.mxu0 %v1148_v0  ;;  %766 = vmatprep.mubr.f32.mxu1 %v1148_v0 }
  0xe1   :  { %648 = vmatmul.mubr.f32.vlgmr.msra.gmra.mrb[18].mxu0 %v1267_v44  ;;  %767 = vmatmul.mubr.f32.vlgmr.msra.gmra.mrb[18].mxu1 %v1267_v44 }
  0xe2   :  { %653 = vmatprep.mubr.f32.mxu0 %v1148_v0  ;;  %772 = vmatprep.mubr.f32.mxu1 %v1148_v0 }
  0xe5   :  { %654 = vmatmul.mubr.f32.gmra.mrb[20].mxu0 %v1272_v58  ;;  %773 = vmatmul.mubr.f32.gmra.mrb[20].mxu1 %v1272_v58 }
  0xe6   :  { %659 = vmatprep.mubr.f32.mxu0 %v1148_v0  ;;  %778 = vmatprep.mubr.f32.mxu1 %v1148_v0 }
  0xe9   :  { %660 = vmatmul.mubr.f32.gmra.mrb[22].mxu0 %v1279_v12  ;;  %779 = vmatmul.mubr.f32.gmra.mrb[22].mxu1 %v1279_v12 }
  0xea   :  { %665 = vmatprep.mubr.f32.mxu0 %v1148_v0  ;;  %784 = vmatprep.mubr.f32.mxu1 %v1148_v0 }
  0xed   :  { %666 = vmatmul.mubr.f32.gmra.mrb[24].mxu0 %v1286_v28  ;;  %785 = vmatmul.mubr.f32.gmra.mrb[24].mxu1 %v1286_v28 }
  0xee   :  { %671 = vmatprep.mubr.f32.mxu0 %v1148_v0  ;;  %790 = vmatprep.mubr.f32.mxu1 %v1148_v0 }
  0xf1   :  { %672 = vmatmul.mubr.f32.gmra.mrb[26].mxu0 %v1293_v42  ;;  %791 = vmatmul.mubr.f32.gmra.mrb[26].mxu1 %v1293_v42 }
  0xf2   :  { %677 = vmatprep.mubr.f32.mxu0 %v1148_v0  ;;  %796 = vmatprep.mubr.f32.mxu1 %v1148_v0 }
  0xf5   :  { %678 = vmatmul.mubr.f32.gmra.mrb[28].mxu0 %v1300_v61  ;;  %797 = vmatmul.mubr.f32.gmra.mrb[28].mxu1 %v1300_v61 }
  0xf6   :  { %683 = vmatprep.mubr.f32.mxu0 %v1148_v0  ;;  %802 = vmatprep.mubr.f32.mxu1 %v1148_v0 }
  0xf9   :  { %684 = vmatmul.mubr.f32.gmra.mrb[30].mxu0 %v1307_v14  ;;  %803 = vmatmul.mubr.f32.gmra.mrb[30].mxu1 %v1307_v14 }
  0xfa   :  { %689 = vmatprep.mubr.f32.mxu0 %v1148_v0  ;;  %808 = vmatprep.mubr.f32.mxu1 %v1148_v0 }
  0xfd   :  { %690 = vmatmul.mubr.f32.gmra.mrb[32].mxu0 %v215_v26  ;;  %809 = vmatmul.mubr.f32.gmra.mrb[32].mxu1 %v215_v26 }
  0xfe   :  { %695 = vmatprep.mubr.f32.mxu0 %v1148_v0  ;;  %814 = vmatprep.mubr.f32.mxu1 %v1148_v0 }
 0x101   :  { %696 = vmatmul.mubr.f32.gmra.mrb[34].mxu0 %v216_v31  ;;  %815 = vmatmul.mubr.f32.gmra.mrb[34].mxu1 %v216_v31 }
 0x190   :  { %v411_v10 = vpop.f32.mrb[0].mxu0  ;;  %v530_v22 = vpop.f32.mrb[0].mxu1 }
 0x191   :  { %821 = vst [vmem:[%s1571_s4] sm:$0xff] %v411_v10  ;;  %823 = vst [vmem:[%s1571_s4 + $0x10] sm:$0xff] %v530_v22  ;;  %v413_v44 = vpop.f32.mrb[1].mxu0  ;;  %v532_v58 = vpop.f32.mrb[1].mxu1 }
 0x192   :  { %822 = vst [vmem:[%s1571_s4 + $0x8] sm:$0xff] %v413_v44  ;;  %824 = vst [vmem:[%s1571_s4 + $0x18] sm:$0xff] %v532_v58 }
 0x194   :  { %v417_v0 = vpop.f32.mrb[2].mxu0  ;;  %v536_v12 = vpop.f32.mrb[2].mxu1 }
 0x195   :  { %829 = vst [vmem:[%s1571_s4 + $0x40] sm:$0xff] %v417_v0  ;;  %831 = vst [vmem:[%s1571_s4 + $0x50] sm:$0xff] %v536_v12  ;;  %v419_v28 = vpop.f32.mrb[3].mxu0  ;;  %v538_v32 = vpop.f32.mrb[3].mxu1 }
 0x196   :  { %830 = vst [vmem:[%s1571_s4 + $0x48] sm:$0xff] %v419_v28  ;;  %832 = vst [vmem:[%s1571_s4 + $0x58] sm:$0xff] %v538_v32 }
 0x198   :  { %v423_v33 = vpop.f32.mrb[4].mxu0  ;;  %v542_v34 = vpop.f32.mrb[4].mxu1 }
 0x199   :  { %837 = vst [vmem:[%s1571_s4 + $0x80] sm:$0xff] %v423_v33  ;;  %839 = vst [vmem:[%s1571_s4 + $0x90] sm:$0xff] %v542_v34  ;;  %v425_v35 = vpop.f32.mrb[5].mxu0  ;;  %v544_v36 = vpop.f32.mrb[5].mxu1 }
 0x19a   :  { %838 = vst [vmem:[%s1571_s4 + $0x88] sm:$0xff] %v425_v35  ;;  %840 = vst [vmem:[%s1571_s4 + $0x98] sm:$0xff] %v544_v36 }
 0x19c   :  { %v429_v37 = vpop.f32.mrb[6].mxu0  ;;  %v548_v38 = vpop.f32.mrb[6].mxu1 }
 0x19d   :  { %845 = vst [vmem:[%s1571_s4 + $0xc0] sm:$0xff] %v429_v37  ;;  %847 = vst [vmem:[%s1571_s4 + $0xd0] sm:$0xff] %v548_v38  ;;  %v431_v52 = vpop.f32.mrb[7].mxu0  ;;  %v550_v39 = vpop.f32.mrb[7].mxu1 }
 0x19e   :  { %846 = vst [vmem:[%s1571_s4 + $0xc8] sm:$0xff] %v431_v52  ;;  %848 = vst [vmem:[%s1571_s4 + $0xd8] sm:$0xff] %v550_v39 }
 0x1a0   :  { %v435_v40 = vpop.f32.mrb[8].mxu0  ;;  %v554_v41 = vpop.f32.mrb[8].mxu1 }
 0x1a1   :  { %853 = vst [vmem:[%s1571_s4 + $0x100] sm:$0xff] %v435_v40  ;;  %855 = vst [vmem:[%s1571_s4 + $0x110] sm:$0xff] %v554_v41  ;;  %v437_v42 = vpop.f32.mrb[9].mxu0  ;;  %v556_v43 = vpop.f32.mrb[9].mxu1 }
 0x1a2   :  { %854 = vst [vmem:[%s1571_s4 + $0x108] sm:$0xff] %v437_v42  ;;  %856 = vst [vmem:[%s1571_s4 + $0x118] sm:$0xff] %v556_v43 }
 0x1a4   :  { %v441_v45 = vpop.f32.mrb[10].mxu0  ;;  %v560_v46 = vpop.f32.mrb[10].mxu1 }
 0x1a5   :  { %861 = vst [vmem:[%s1571_s4 + $0x140] sm:$0xff] %v441_v45  ;;  %863 = vst [vmem:[%s1571_s4 + $0x150] sm:$0xff] %v560_v46  ;;  %v443_v47 = vpop.f32.mrb[11].mxu0  ;;  %v562_v48 = vpop.f32.mrb[11].mxu1 }
 0x1a6   :  { %862 = vst [vmem:[%s1571_s4 + $0x148] sm:$0xff] %v443_v47  ;;  %864 = vst [vmem:[%s1571_s4 + $0x158] sm:$0xff] %v562_v48 }
 0x1a8   :  { %v447_v54 = vpop.f32.mrb[12].mxu0  ;;  %v566_v55 = vpop.f32.mrb[12].mxu1 }
 0x1a9   :  { %869 = vst [vmem:[%s1571_s4 + $0x180] sm:$0xff] %v447_v54  ;;  %871 = vst [vmem:[%s1571_s4 + $0x190] sm:$0xff] %v566_v55  ;;  %v449_v56 = vpop.f32.mrb[13].mxu0  ;;  %v568_v57 = vpop.f32.mrb[13].mxu1 }
 0x1aa   :  { %870 = vst [vmem:[%s1571_s4 + $0x188] sm:$0xff] %v449_v56  ;;  %872 = vst [vmem:[%s1571_s4 + $0x198] sm:$0xff] %v568_v57 }
 0x1ac   :  { %v453_v59 = vpop.f32.mrb[14].mxu0  ;;  %v572_v53 = vpop.f32.mrb[14].mxu1 }
 0x1ad   :  { %877 = vst [vmem:[%s1571_s4 + $0x1c0] sm:$0xff] %v453_v59  ;;  %879 = vst [vmem:[%s1571_s4 + $0x1d0] sm:$0xff] %v572_v53  ;;  %v455_v49 = vpop.f32.mrb[15].mxu0  ;;  %v574_v60 = vpop.f32.mrb[15].mxu1 }
 0x1ae   :  { %878 = vst [vmem:[%s1571_s4 + $0x1c8] sm:$0xff] %v455_v49  ;;  %880 = vst [vmem:[%s1571_s4 + $0x1d8] sm:$0xff] %v574_v60 }
 0x1b0   :  { %v459_v61 = vpop.f32.mrb[16].mxu0  ;;  %v578_v62 = vpop.f32.mrb[16].mxu1 }
 0x1b1   :  { %885 = vst [vmem:[%s1571_s4 + $0x200] sm:$0xff] %v459_v61  ;;  %887 = vst [vmem:[%s1571_s4 + $0x210] sm:$0xff] %v578_v62  ;;  %v461_v63 = vpop.f32.mrb[17].mxu0  ;;  %v580_v1 = vpop.f32.mrb[17].mxu1 }
 0x1b2   :  { %886 = vst [vmem:[%s1571_s4 + $0x208] sm:$0xff] %v461_v63  ;;  %888 = vst [vmem:[%s1571_s4 + $0x218] sm:$0xff] %v580_v1 }
 0x1b4   :  { %v649_v2 = vpop.f32.mrb[18].mxu0  ;;  %v768_v3 = vpop.f32.mrb[18].mxu1 }
 0x1b5   :  { %825 = vst [vmem:[%s1571_s4 + $0x20] sm:$0xff] %v649_v2  ;;  %827 = vst [vmem:[%s1571_s4 + $0x30] sm:$0xff] %v768_v3  ;;  %v651_v6 = vpop.f32.mrb[19].mxu0  ;;  %v770_v50 = vpop.f32.mrb[19].mxu1 }
 0x1b6   :  { %826 = vst [vmem:[%s1571_s4 + $0x28] sm:$0xff] %v651_v6  ;;  %828 = vst [vmem:[%s1571_s4 + $0x38] sm:$0xff] %v770_v50 }
 0x1b8   :  { %v655_v7 = vpop.f32.mrb[20].mxu0  ;;  %v774_v8 = vpop.f32.mrb[20].mxu1 }
 0x1b9   :  { %833 = vst [vmem:[%s1571_s4 + $0x60] sm:$0xff] %v655_v7  ;;  %835 = vst [vmem:[%s1571_s4 + $0x70] sm:$0xff] %v774_v8  ;;  %v657_v9 = vpop.f32.mrb[21].mxu0  ;;  %v776_v4 = vpop.f32.mrb[21].mxu1 }
 0x1ba   :  { %834 = vst [vmem:[%s1571_s4 + $0x68] sm:$0xff] %v657_v9  ;;  %836 = vst [vmem:[%s1571_s4 + $0x78] sm:$0xff] %v776_v4 }
 0x1bc   :  { %v661_v11 = vpop.f32.mrb[22].mxu0  ;;  %v780_v13 = vpop.f32.mrb[22].mxu1 }
 0x1bd   :  { %841 = vst [vmem:[%s1571_s4 + $0xa0] sm:$0xff] %v661_v11  ;;  %843 = vst [vmem:[%s1571_s4 + $0xb0] sm:$0xff] %v780_v13  ;;  %v663_v14 = vpop.f32.mrb[23].mxu0  ;;  %v782_v15 = vpop.f32.mrb[23].mxu1 }
 0x1be   :  { %842 = vst [vmem:[%s1571_s4 + $0xa8] sm:$0xff] %v663_v14  ;;  %844 = vst [vmem:[%s1571_s4 + $0xb8] sm:$0xff] %v782_v15 }
 0x1c0   :  { %v667_v16 = vpop.f32.mrb[24].mxu0  ;;  %v786_v17 = vpop.f32.mrb[24].mxu1 }
 0x1c1   :  { %849 = vst [vmem:[%s1571_s4 + $0xe0] sm:$0xff] %v667_v16  ;;  %851 = vst [vmem:[%s1571_s4 + $0xf0] sm:$0xff] %v786_v17  ;;  %v669_v19 = vpop.f32.mrb[25].mxu0  ;;  %v788_v20 = vpop.f32.mrb[25].mxu1 }
 0x1c2   :  { %850 = vst [vmem:[%s1571_s4 + $0xe8] sm:$0xff] %v669_v19  ;;  %852 = vst [vmem:[%s1571_s4 + $0xf8] sm:$0xff] %v788_v20 }
 0x1c4   :  { %v673_v21 = vpop.f32.mrb[26].mxu0  ;;  %v792_v18 = vpop.f32.mrb[26].mxu1 }
 0x1c5   :  { %857 = vst [vmem:[%s1571_s4 + $0x120] sm:$0xff] %v673_v21  ;;  %859 = vst [vmem:[%s1571_s4 + $0x130] sm:$0xff] %v792_v18  ;;  %v675_v23 = vpop.f32.mrb[27].mxu0  ;;  %v794_v51 = vpop.f32.mrb[27].mxu1 }
 0x1c6   :  { %858 = vst [vmem:[%s1571_s4 + $0x128] sm:$0xff] %v675_v23  ;;  %860 = vst [vmem:[%s1571_s4 + $0x138] sm:$0xff] %v794_v51 }
 0x1c8   :  { %v679_v24 = vpop.f32.mrb[28].mxu0  ;;  %v798_v5 = vpop.f32.mrb[28].mxu1 }
 0x1c9   :  { %865 = vst [vmem:[%s1571_s4 + $0x160] sm:$0xff] %v679_v24  ;;  %867 = vst [vmem:[%s1571_s4 + $0x170] sm:$0xff] %v798_v5  ;;  %v681_v25 = vpop.f32.mrb[29].mxu0  ;;  %v800_v26 = vpop.f32.mrb[29].mxu1 }
 0x1ca   :  { %866 = vst [vmem:[%s1571_s4 + $0x168] sm:$0xff] %v681_v25  ;;  %868 = vst [vmem:[%s1571_s4 + $0x178] sm:$0xff] %v800_v26 }
 0x1cc   :  { %v685_v27 = vpop.f32.mrb[30].mxu0  ;;  %v804_v29 = vpop.f32.mrb[30].mxu1 }
 0x1cd   :  { %873 = vst [vmem:[%s1571_s4 + $0x1a0] sm:$0xff] %v685_v27  ;;  %875 = vst [vmem:[%s1571_s4 + $0x1b0] sm:$0xff] %v804_v29  ;;  %v687_v30 = vpop.f32.mrb[31].mxu0  ;;  %v806_v31 = vpop.f32.mrb[31].mxu1 }
 0x1ce   :  { %874 = vst [vmem:[%s1571_s4 + $0x1a8] sm:$0xff] %v687_v30  ;;  %876 = vst [vmem:[%s1571_s4 + $0x1b8] sm:$0xff] %v806_v31 }
 0x1d0   :  { %v691_v10 = vpop.f32.mrb[32].mxu0  ;;  %v810_v22 = vpop.f32.mrb[32].mxu1 }
 0x1d1   :  { %881 = vst [vmem:[%s1571_s4 + $0x1e0] sm:$0xff] %v691_v10  ;;  %883 = vst [vmem:[%s1571_s4 + $0x1f0] sm:$0xff] %v810_v22  ;;  %v693_v44 = vpop.f32.mrb[33].mxu0  ;;  %v812_v58 = vpop.f32.mrb[33].mxu1 }
 0x1d2   :  { %882 = vst [vmem:[%s1571_s4 + $0x1e8] sm:$0xff] %v693_v44  ;;  %884 = vst [vmem:[%s1571_s4 + $0x1f8] sm:$0xff] %v812_v58 }
 0x1d4   :  { %v697_v0 = vpop.f32.mrb[34].mxu0  ;;  %v816_v12 = vpop.f32.mrb[34].mxu1 }
 0x1d5   :  { %889 = vst [vmem:[%s1571_s4 + $0x220] sm:$0xff] %v697_v0  ;;  %891 = vst [vmem:[%s1571_s4 + $0x230] sm:$0xff] %v816_v12  ;;  %v699_v28 = vpop.f32.mrb[35].mxu0  ;;  %v818_v32 = vpop.f32.mrb[35].mxu1 }
 0x1d6   :  { %890 = vst [vmem:[%s1571_s4 + $0x228] sm:$0xff] %v699_v28  ;;  %892 = vst [vmem:[%s1571_s4 + $0x238] sm:$0xff] %v818_v32 }
 0x1d7   :  { %897 = vsyncpa [#allocation3], 1 }
 0x1d8   :  { %898 = vsyncpa [#allocation5], 1 }

// kernel: image_decoder_forward.9
= control target key start
LH: loop header
LB: loop body
LE: loop exit
PB: predicated region body
PF: predicated region fallthrough
CT: control target
= control target key end

     0   :  { %v4993_v3 = vmov 0.0   ;;  %vm53_vm0 = vcmask 523264   ;;  %vm1916_vm1 = vcmask 261120   ;;  %s4988_s3 = inlined_call_operand.vmem [shape: f32[64,800], index: 3, kind: input, shape index: {}]   ;;  %s4989_s0 = inlined_call_operand.vmem [shape: f32[288,64], index: 0, kind: input, shape index: {}]   ;;  %s4990_s1 = inlined_call_operand.vmem [shape: f32[1,64], index: 1, kind: input, shape index: {}]   ;;  %s4991_s2 = inlined_call_operand.vmem [shape: f32[1,64], index: 2, kind: input, shape index: {}]   ;;  %s4992_s4 = inlined_call_operand.vmem [shape: f32[288,800], index: 4, kind: output, shape index: {}]  }
   0x1   :  { %v659_v0 = vld [vmem:[%s4988_s3 + $0x8] sm:$0xff]  ;;  %v666_v1 = vld [vmem:[%s4988_s3 + $0x40] sm:$0xff]  ;;  %886 = vmatprep.mubr.f32.mxu0 %v4993_v3  ;;  %1048 = vmatprep.mubr.f32.mxu1 %v4993_v3  ;;  %v665_v5 = vld [vmem:[%s4988_s3 + $0x38] sm:$0xff] }
   0x2   :  { %v658_v2 = vld [vmem:[%s4988_s3] sm:$0xff]  ;;  %v2427_v4 = vpack.c.bf16 %v666_v1, %v659_v0  ;;  %v673_v6 = vld [vmem:[%s4988_s3 + $0x78] sm:$0xff]  ;;  %v680_v7 = vld [vmem:[%s4988_s3 + $0xb0] sm:$0xff] }
   0x3   :  { %v2429_v8 = vpack.c.bf16 %v665_v5, %v658_v2  ;;  %v2431_v9 = vpack.c.bf16 %v680_v7, %v673_v6  ;;  %v672_v10 = vld [vmem:[%s4988_s3 + $0x70] sm:$0xff]  ;;  %v679_v11 = vld [vmem:[%s4988_s3 + $0xa8] sm:$0xff]  ;;  %v694_v13 = vld [vmem:[%s4988_s3 + $0x120] sm:$0xff] }
   0x4   :  { %v687_v12 = vld [vmem:[%s4988_s3 + $0xe8] sm:$0xff]  ;;  %2428 = vmatprep.subr.bf16.mxu0 %v2427_v4  ;;  %2491 = vmatprep.subr.bf16.mxu1 %v2427_v4  ;;  %v2433_v14 = vpack.c.bf16 %v679_v11, %v672_v10  ;;  %v686_v16 = vld [vmem:[%s4988_s3 + $0xe0] sm:$0xff]  ;;  %v693_v17 = vld [vmem:[%s4988_s3 + $0x118] sm:$0xff] }
   0x5   :  { %2430 = vmatpush1.bf16.msra.mxu0 %v2429_v8  ;;  %2495 = vmatpush1.bf16.msra.mxu1 %v2429_v8  ;;  %v2435_v15 = vpack.c.bf16 %v694_v13, %v687_v12  ;;  %v701_v18 = vld [vmem:[%s4988_s3 + $0x158] sm:$0xff]  ;;  %v708_v19 = vld [vmem:[%s4988_s3 + $0x190] sm:$0xff]  ;;  %v2719_v20 = vld [vmem:[%s4989_s0] sm:$0xff]  ;;  %v2437_v25 = vpack.c.bf16 %v693_v17, %v686_v16 }
   0x6   :  { %2432 = vmatprep.subr.bf16.mxu0 %v2431_v9  ;;  %2492 = vmatprep.subr.bf16.mxu1 %v2431_v9  ;;  %v2724_v21 = vld [vmem:[%s4989_s0 + $0x8] sm:$0xff]  ;;  %v2729_v22 = vld [vmem:[%s4989_s0 + $0x10] sm:$0xff]  ;;  %v2734_v23 = vld [vmem:[%s4989_s0 + $0x18] sm:$0xff]  ;;  %v54_v24 = vsel %vm53_vm0, %v2719_v20, 0.0  ;;  %v2439_v29 = vpack.c.bf16 %v708_v19, %v701_v18 }
   0x7   :  { %v700_v26 = vld [vmem:[%s4988_s3 + $0x150] sm:$0xff]  ;;  %v55_v27 = vsel %vm53_vm0, %v2724_v21, 0.0  ;;  %v57_v28 = vsel %vm53_vm0, %v2729_v22, 0.0  ;;  %v707_v30 = vld [vmem:[%s4988_s3 + $0x188] sm:$0xff]  ;;  %v661_v31 = vld [vmem:[%s4988_s3 + $0x18] sm:$0xff]  ;;  %v59_v37 = vsel %vm53_vm0, %v2734_v23, 0.0 }
   0x8   :  { %v2754_v32 = vld [vmem:[%s4989_s0 + $0x20] sm:$0xff]  ;;  %v56_v33 = vadd.f32 %v55_v27, %v54_v24  ;;  %v668_v34 = vld [vmem:[%s4988_s3 + $0x50] sm:$0xff]  ;;  %v663_v35 = vld [vmem:[%s4988_s3 + $0x28] sm:$0xff]  ;;  %v2441_v40 = vpack.c.bf16 %v707_v30, %v700_v26 }
   0x9   :  { %2434 = vmatpush1.bf16.msra.mxu0 %v2433_v14  ;;  %2496 = vmatpush1.bf16.msra.mxu1 %v2433_v14  ;;  %v670_v36 = vld [vmem:[%s4988_s3 + $0x60] sm:$0xff]  ;;  %v2770_v38 = vld [vmem:[%s4989_s0 + $0x28] sm:$0xff]  ;;  %v61_v41 = vsel %vm53_vm0, %v2754_v32, 0.0  ;;  %v2443_v42 = vpack.c.bf16 %v668_v34, %v661_v31  ;;  %v2777_v44 = vld [vmem:[%s4989_s0 + $0x30] sm:$0xff] }
   0xa   :  { %2436 = vmatprep.subr.bf16.mxu0 %v2435_v15  ;;  %2493 = vmatprep.subr.bf16.mxu1 %v2435_v15  ;;  %v58_v39 = vadd.f32 %v57_v28, %v56_v33  ;;  %v2459_v43 = vpack.c.bf16 %v670_v36, %v663_v35  ;;  %v63_v46 = vsel %vm53_vm0, %v2770_v38, 0.0  ;;  %v2784_v47 = vld [vmem:[%s4989_s0 + $0x38] sm:$0xff]  ;;  %v65_v49 = vsel %vm53_vm0, %v2777_v44, 0.0  ;;  %v2791_v50 = vld [vmem:[%s4989_s0 + $0x40] sm:$0xff]  ;;  %v2798_v53 = vld [vmem:[%s4989_s0 + $0x48] sm:$0xff] }
   0xb   :  { %v67_v52 = vsel %vm53_vm0, %v2784_v47, 0.0  ;;  %v69_v55 = vsel %vm53_vm0, %v2791_v50, 0.0  ;;  %v2805_v56 = vld [vmem:[%s4989_s0 + $0x50] sm:$0xff]  ;;  %v71_v58 = vsel %vm53_vm0, %v2798_v53, 0.0  ;;  %v2812_v59 = vld [vmem:[%s4989_s0 + $0x58] sm:$0xff]  ;;  %v2819_v62 = vld [vmem:[%s4989_s0 + $0x60] sm:$0xff] }
   0xc   :  { %v60_v45 = vadd.f32 %v59_v37, %v58_v39  ;;  %v73_v61 = vsel %vm53_vm0, %v2805_v56, 0.0  ;;  %v75_v0 = vsel %vm53_vm0, %v2812_v59, 0.0  ;;  %v2826_v1 = vld [vmem:[%s4989_s0 + $0x68] sm:$0xff]  ;;  %v77_v4 = vsel %vm53_vm0, %v2819_v62, 0.0  ;;  %v2833_v5 = vld [vmem:[%s4989_s0 + $0x70] sm:$0xff]  ;;  %v2840_v8 = vld [vmem:[%s4989_s0 + $0x78] sm:$0xff] }
   0xd   :  { %2438 = vmatpush1.bf16.msra.mxu0 %v2437_v25  ;;  %2497 = vmatpush1.bf16.msra.mxu1 %v2437_v25  ;;  %v79_v7 = vsel %vm53_vm0, %v2826_v1, 0.0  ;;  %v81_v10 = vsel %vm53_vm0, %v2833_v5, 0.0  ;;  %v2847_v11 = vld [vmem:[%s4989_s0 + $0x80] sm:$0xff]  ;;  %v83_v13 = vsel %vm53_vm0, %v2840_v8, 0.0  ;;  %v2854_v14 = vld [vmem:[%s4989_s0 + $0x88] sm:$0xff]  ;;  %v2861_v17 = vld [vmem:[%s4989_s0 + $0x90] sm:$0xff] }
   0xe   :  { %2440 = vmatprep.subr.bf16.mxu0 %v2439_v29  ;;  %2494 = vmatprep.subr.bf16.mxu1 %v2439_v29  ;;  %v62_v48 = vadd.f32 %v61_v41, %v60_v45  ;;  %v85_v16 = vsel %vm53_vm0, %v2847_v11, 0.0  ;;  %v87_v19 = vsel %vm53_vm0, %v2854_v14, 0.0  ;;  %v2868_v24 = vld [vmem:[%s4989_s0 + $0x98] sm:$0xff]  ;;  %v89_v26 = vsel %vm53_vm0, %v2861_v17, 0.0  ;;  %v2875_v27 = vld [vmem:[%s4989_s0 + $0xa0] sm:$0xff]  ;;  %v2882_v30 = vld [vmem:[%s4989_s0 + $0xa8] sm:$0xff] }
   0xf   :  { %v91_v29 = vsel %vm53_vm0, %v2868_v24, 0.0  ;;  %v93_v33 = vsel %vm53_vm0, %v2875_v27, 0.0  ;;  %v2889_v34 = vld [vmem:[%s4989_s0 + $0xb0] sm:$0xff]  ;;  %v95_v36 = vsel %vm53_vm0, %v2882_v30, 0.0  ;;  %v2896_v37 = vld [vmem:[%s4989_s0 + $0xb8] sm:$0xff]  ;;  %v2903_v41 = vld [vmem:[%s4989_s0 + $0xc0] sm:$0xff] }
  0x10   :  { %v64_v51 = vadd.f32 %v63_v46, %v62_v48  ;;  %v2910_v45 = vld [vmem:[%s4989_s0 + $0xc8] sm:$0xff]  ;;  %v101_v48 = vsel %vm53_vm0, %v2903_v41, 0.0 }
  0x11   :  { %2442 = vmatpush1.bf16.msra.mxu0 %v2441_v40  ;;  %2498 = vmatpush1.bf16.msra.mxu1 %v2441_v40  ;;  %v97_v40 = vsel %vm53_vm0, %v2889_v34, 0.0 }
  0x12   :  { %2444 = vmatprep.subr.bf16.mxu1 %v2443_v42  ;;  %2460 = vmatprep.subr.bf16.mxu0 %v2459_v43  ;;  %v66_v54 = vadd.f32 %v65_v49, %v64_v51  ;;  %v99_v43 = vsel %vm53_vm0, %v2896_v37, 0.0  ;;  %v2917_v49 = vld [vmem:[%s4989_s0 + $0xd0] sm:$0xff] }
  0x14   :  { %v68_v57 = vadd.f32 %v67_v52, %v66_v54  ;;  %v103_v52 = vsel %vm53_vm0, %v2910_v45, 0.0  ;;  %v2924_v54 = vld [vmem:[%s4989_s0 + $0xd8] sm:$0xff] }
  0x16   :  { %v70_v60 = vadd.f32 %v69_v55, %v68_v57  ;;  %v105_v57 = vsel %vm53_vm0, %v2917_v49, 0.0 }
  0x18   :  { %v72_v63 = vadd.f32 %v71_v58, %v70_v60  ;;  %v2931_v58 = vld [vmem:[%s4989_s0 + $0xe0] sm:$0xff] }
  0x1a   :  { %v74_v2 = vadd.f32 %v73_v61, %v72_v63  ;;  %v107_v61 = vsel %vm53_vm0, %v2924_v54, 0.0  ;;  %v2938_v63 = vld [vmem:[%s4989_s0 + $0xe8] sm:$0xff] }
  0x1c   :  { %v76_v6 = vadd.f32 %v75_v0, %v74_v2  ;;  %v109_v2 = vsel %vm53_vm0, %v2931_v58, 0.0 }
  0x1e   :  { %v78_v9 = vadd.f32 %v77_v4, %v76_v6  ;;  %v2945_v4 = vld [vmem:[%s4989_s0 + $0xf0] sm:$0xff] }
  0x20   :  { %v80_v12 = vadd.f32 %v79_v7, %v78_v9  ;;  %v111_v7 = vsel %vm53_vm0, %v2938_v63, 0.0  ;;  %v2952_v9 = vld [vmem:[%s4989_s0 + $0xf8] sm:$0xff] }
  0x22   :  { %v82_v15 = vadd.f32 %v81_v10, %v80_v12  ;;  %v113_v12 = vsel %vm53_vm0, %v2945_v4, 0.0 }
  0x24   :  { %v84_v18 = vadd.f32 %v83_v13, %v82_v15  ;;  %v2959_v13 = vld [vmem:[%s4989_s0 + $0x100] sm:$0xff] }
  0x26   :  { %v86_v25 = vadd.f32 %v85_v16, %v84_v18  ;;  %v115_v16 = vsel %vm53_vm0, %v2952_v9, 0.0  ;;  %v2966_v18 = vld [vmem:[%s4989_s0 + $0x108] sm:$0xff] }
  0x28   :  { %v88_v28 = vadd.f32 %v87_v19, %v86_v25  ;;  %v117_v25 = vsel %vm53_vm0, %v2959_v13, 0.0 }
  0x2a   :  { %v90_v31 = vadd.f32 %v89_v26, %v88_v28  ;;  %v2973_v26 = vld [vmem:[%s4989_s0 + $0x110] sm:$0xff] }
  0x2c   :  { %v92_v35 = vadd.f32 %v91_v29, %v90_v31  ;;  %v119_v29 = vsel %vm53_vm0, %v2966_v18, 0.0  ;;  %v2980_v31 = vld [vmem:[%s4989_s0 + $0x118] sm:$0xff] }
  0x2e   :  { %v94_v39 = vadd.f32 %v93_v33, %v92_v35  ;;  %v121_v35 = vsel %vm53_vm0, %v2973_v26, 0.0 }
  0x30   :  { %v96_v42 = vadd.f32 %v95_v36, %v94_v39  ;;  %v123_v39 = vsel %vm53_vm0, %v2980_v31, 0.0 }
  0x32   :  { %v98_v46 = vadd.f32 %v97_v40, %v96_v42 }
  0x34   :  { %v100_v51 = vadd.f32 %v99_v43, %v98_v46 }
  0x36   :  { %v102_v55 = vadd.f32 %v101_v48, %v100_v51 }
  0x38   :  { %v104_v60 = vadd.f32 %v103_v52, %v102_v55 }
  0x3a   :  { %v106_v0 = vadd.f32 %v105_v57, %v104_v60 }
  0x3c   :  { %v108_v6 = vadd.f32 %v107_v61, %v106_v0 }
  0x3e   :  { %v110_v10 = vadd.f32 %v109_v2, %v108_v6 }
  0x40   :  { %v112_v15 = vadd.f32 %v111_v7, %v110_v10 }
  0x42   :  { %v114_v19 = vadd.f32 %v113_v12, %v112_v15 }
  0x44   :  { %v116_v28 = vadd.f32 %v115_v16, %v114_v19 }
  0x46   :  { %v118_v33 = vadd.f32 %v117_v25, %v116_v28 }
  0x48   :  { %v120_v36 = vadd.f32 %v119_v29, %v118_v33 }
  0x4a   :  { %v122_v40 = vadd.f32 %v121_v35, %v120_v36 }
  0x4c   :  { %v124_v42 = vadd.f32 %v123_v39, %v122_v40 }
  0x4e   :  { %v125_v43 = vrot.slane %v124_v42, 4 }
  0x50   :  { %v126_v46 = vadd.f32 %v125_v43, %v124_v42 }
  0x52   :  { %v127_v48 = vrot.slane %v126_v46, 2 }
  0x54   :  { %v128_v51 = vadd.f32 %v127_v48, %v126_v46 }
  0x56   :  { %v129_v52 = vrot.slane %v128_v51, 1 }
  0x58   :  { %v130_v55 = vadd.f32 %v129_v52, %v128_v51 }
  0x5a   :  { %v2986_v57 = vmul.f32 0.0034722222, %v130_v55 }
  0x5c   :  { %v2990_v60 = vsub.f32 %v2719_v20, %v2986_v57  ;;  %v2994_v61 = vsub.f32 %v2724_v21, %v2986_v57  ;;  %v2998_v0 = vsub.f32 %v2729_v22, %v2986_v57  ;;  %v3002_v2 = vsub.f32 %v2734_v23, %v2986_v57 }
  0x5d   :  { %v3006_v6 = vsub.f32 %v2754_v32, %v2986_v57  ;;  %v3016_v22 = vsub.f32 %v2770_v38, %v2986_v57  ;;  %v3022_v32 = vsub.f32 %v2777_v44, %v2986_v57  ;;  %v3031_v38 = vsub.f32 %v2784_v47, %v2986_v57 }
  0x5e   :  { %v168_v20 = vmul.f32 %v2990_v60, %v2990_v60  ;;  %v169_v7 = vmul.f32 %v2994_v61, %v2994_v61  ;;  %v170_v21 = vmul.f32 %v2998_v0, %v2998_v0  ;;  %v171_v23 = vmul.f32 %v3002_v2, %v3002_v2 }
  0x5f   :  { %v172_v10 = vmul.f32 %v3006_v6, %v3006_v6  ;;  %v173_v25 = vmul.f32 %v3016_v22, %v3016_v22  ;;  %v3038_v29 = vsub.f32 %v2791_v50, %v2986_v57  ;;  %v174_v33 = vmul.f32 %v3022_v32, %v3022_v32 }
  0x60   :  { %v204_v12 = vsel %vm53_vm0, %v168_v20, 0.0  ;;  %v205_v15 = vsel %vm53_vm0, %v169_v7, 0.0  ;;  %v207_v16 = vsel %vm53_vm0, %v170_v21, 0.0  ;;  %v209_v44 = vsel %vm53_vm0, %v171_v23, 0.0 }
  0x61   :  { %v206_v19 = vadd.f32 %v205_v15, %v204_v12  ;;  %v211_v35 = vsel %vm53_vm0, %v172_v10, 0.0  ;;  %v3045_v47 = vsub.f32 %v2798_v53, %v2986_v57  ;;  %v175_v39 = vmul.f32 %v3031_v38, %v3031_v38 }
  0x62   :  { %v213_v40 = vsel %vm53_vm0, %v173_v25, 0.0  ;;  %v3052_v50 = vsub.f32 %v2805_v56, %v2986_v57  ;;  %v176_v43 = vmul.f32 %v3038_v29, %v3038_v29  ;;  %v215_v46 = vsel %vm53_vm0, %v174_v33, 0.0 }
  0x63   :  { %v208_v28 = vadd.f32 %v207_v16, %v206_v19  ;;  %v3059_v53 = vsub.f32 %v2812_v59, %v2986_v57  ;;  %v177_v51 = vmul.f32 %v3045_v47, %v3045_v47  ;;  %v217_v52 = vsel %vm53_vm0, %v175_v39, 0.0 }
  0x64   :  { %v3066_v56 = vsub.f32 %v2819_v62, %v2986_v57  ;;  %v178_v20 = vmul.f32 %v3052_v50, %v3052_v50  ;;  %v219_v7 = vsel %vm53_vm0, %v176_v43, 0.0  ;;  %v3073_v59 = vsub.f32 %v2826_v1, %v2986_v57 }
  0x65   :  { %v210_v36 = vadd.f32 %v209_v44, %v208_v28  ;;  %v179_v23 = vmul.f32 %v3059_v53, %v3059_v53  ;;  %v221_v10 = vsel %vm53_vm0, %v177_v51, 0.0  ;;  %v3080_v62 = vsub.f32 %v2833_v5, %v2986_v57 }
  0x66   :  { %v180_v15 = vmul.f32 %v3066_v56, %v3066_v56  ;;  %v223_v16 = vsel %vm53_vm0, %v178_v20, 0.0  ;;  %v3087_v1 = vsub.f32 %v2840_v8, %v2986_v57  ;;  %v181_v25 = vmul.f32 %v3073_v59, %v3073_v59 }
  0x67   :  { %v212_v42 = vadd.f32 %v211_v35, %v210_v36  ;;  %v225_v44 = vsel %vm53_vm0, %v179_v23, 0.0  ;;  %v3094_v5 = vsub.f32 %v2847_v11, %v2986_v57  ;;  %v182_v33 = vmul.f32 %v3080_v62, %v3080_v62 }
  0x68   :  { %v227_v35 = vsel %vm53_vm0, %v180_v15, 0.0  ;;  %v3101_v8 = vsub.f32 %v2854_v14, %v2986_v57  ;;  %v183_v39 = vmul.f32 %v3087_v1, %v3087_v1  ;;  %v3108_v11 = vsub.f32 %v2861_v17, %v2986_v57 }
  0x69   :  { %v214_v48 = vadd.f32 %v213_v40, %v212_v42  ;;  %v229_v40 = vsel %vm53_vm0, %v181_v25, 0.0  ;;  %v184_v43 = vmul.f32 %v3094_v5, %v3094_v5  ;;  %v3115_v14 = vsub.f32 %v2868_v24, %v2986_v57 }
  0x6a   :  { %v185_v51 = vmul.f32 %v3101_v8, %v3101_v8  ;;  %v3122_v17 = vsub.f32 %v2875_v27, %v2986_v57  ;;  %v186_v20 = vmul.f32 %v3108_v11, %v3108_v11  ;;  %v3129_v24 = vsub.f32 %v2882_v30, %v2986_v57 }
  0x6b   :  { %v216_v55 = vadd.f32 %v215_v46, %v214_v48  ;;  %v231_v46 = vsel %vm53_vm0, %v182_v33, 0.0  ;;  %v187_v23 = vmul.f32 %v3115_v14, %v3115_v14  ;;  %v3136_v27 = vsub.f32 %v2889_v34, %v2986_v57 }
  0x6c   :  { %v188_v15 = vmul.f32 %v3122_v17, %v3122_v17  ;;  %v3143_v30 = vsub.f32 %v2896_v37, %v2986_v57  ;;  %v189_v25 = vmul.f32 %v3129_v24, %v3129_v24  ;;  %v3150_v34 = vsub.f32 %v2903_v41, %v2986_v57 }
  0x6d   :  { %v218_v21 = vadd.f32 %v217_v52, %v216_v55  ;;  %v233_v52 = vsel %vm53_vm0, %v183_v39, 0.0  ;;  %v190_v33 = vmul.f32 %v3136_v27, %v3136_v27  ;;  %v3157_v37 = vsub.f32 %v2910_v45, %v2986_v57 }
  0x6e   :  { %5005 = vst [vmem:[#allocation2_spill] sm:$0xff] %v3143_v30  ;;  %5006 = vst [vmem:[#allocation3_spill] sm:$0xff] %v3150_v34  ;;  %v191_v39 = vmul.f32 %v3143_v30, %v3143_v30  ;;  %v3164_v41 = vsub.f32 %v2917_v49, %v2986_v57  ;;  %v3171_v45 = vsub.f32 %v2924_v54, %v2986_v57 }
  0x6f   :  { %v220_v12 = vadd.f32 %v219_v7, %v218_v21  ;;  %v235_v7 = vsel %vm53_vm0, %v184_v43, 0.0  ;;  %5007 = vst [vmem:[#allocation4_spill] sm:$0xff] %v3157_v37  ;;  %v192_v43 = vmul.f32 %v3150_v34, %v3150_v34  ;;  %v3178_v49 = vsub.f32 %v2931_v58, %v2986_v57 }
  0x70   :  { %5008 = vst [vmem:[#allocation5_spill] sm:$0xff] %v3164_v41  ;;  %v3185_v54 = vsub.f32 %v2938_v63, %v2986_v57  ;;  %v3192_v58 = vsub.f32 %v2945_v4, %v2986_v57  ;;  %v3199_v63 = vsub.f32 %v2952_v9, %v2986_v57  ;;  %v3206_v4 = vsub.f32 %v2959_v13, %v2986_v57 }
  0x71   :  { %v222_v19 = vadd.f32 %v221_v10, %v220_v12  ;;  %v237_v10 = vsel %vm53_vm0, %v185_v51, 0.0  ;;  %v193_v51 = vmul.f32 %v3157_v37, %v3157_v37  ;;  %v3213_v9 = vsub.f32 %v2966_v18, %v2986_v57 }
  0x72   :  { %v3220_v13 = vsub.f32 %v2973_v26, %v2986_v57  ;;  %v3227_v18 = vsub.f32 %v2980_v31, %v2986_v57 }
  0x73   :  { %v224_v28 = vadd.f32 %v223_v16, %v222_v19  ;;  %v239_v16 = vsel %vm53_vm0, %v186_v20, 0.0  ;;  %v194_v20 = vmul.f32 %v3164_v41, %v3164_v41 }
  0x74   :  { %v202_v26 = vmul.f32 %v3220_v13, %v3220_v13 }
  0x75   :  { %v226_v36 = vadd.f32 %v225_v44, %v224_v28  ;;  %v241_v44 = vsel %vm53_vm0, %v187_v23, 0.0  ;;  %v195_v23 = vmul.f32 %v3171_v45, %v3171_v45 }
  0x76   :  { %v271_v31 = vsel %vm53_vm0, %v202_v26, 0.0 }
  0x77   :  { %v228_v42 = vadd.f32 %v227_v35, %v226_v36  ;;  %v243_v35 = vsel %vm53_vm0, %v188_v15, 0.0  ;;  %v196_v15 = vmul.f32 %v3178_v49, %v3178_v49 }
  0x79   :  { %v230_v48 = vadd.f32 %v229_v40, %v228_v42  ;;  %v245_v40 = vsel %vm53_vm0, %v189_v25, 0.0  ;;  %v197_v25 = vmul.f32 %v3185_v54, %v3185_v54 }
  0x7b   :  { %v232_v55 = vadd.f32 %v231_v46, %v230_v48  ;;  %v247_v46 = vsel %vm53_vm0, %v190_v33, 0.0  ;;  %v198_v33 = vmul.f32 %v3192_v58, %v3192_v58 }
  0x7d   :  { %v234_v21 = vadd.f32 %v233_v52, %v232_v55  ;;  %v249_v52 = vsel %vm53_vm0, %v191_v39, 0.0  ;;  %v199_v39 = vmul.f32 %v3199_v63, %v3199_v63 }
  0x7f   :  { %v236_v12 = vadd.f32 %v235_v7, %v234_v21  ;;  %v251_v7 = vsel %vm53_vm0, %v192_v43, 0.0  ;;  %v200_v43 = vmul.f32 %v3206_v4, %v3206_v4 }
  0x81   :  { %v238_v19 = vadd.f32 %v237_v10, %v236_v12  ;;  %v253_v10 = vsel %vm53_vm0, %v193_v51, 0.0  ;;  %v201_v51 = vmul.f32 %v3213_v9, %v3213_v9 }
  0x83   :  { %v240_v28 = vadd.f32 %v239_v16, %v238_v19  ;;  %v255_v16 = vsel %vm53_vm0, %v194_v20, 0.0  ;;  %v267_v20 = vsel %vm53_vm0, %v200_v43, 0.0  ;;  %v3253_v43 = vld [vmem:[%s4988_s3 + $0x20] sm:$0xff] }
  0x85   :  { %v242_v36 = vadd.f32 %v241_v44, %v240_v28  ;;  %v257_v44 = vsel %vm53_vm0, %v195_v23, 0.0  ;;  %v269_v23 = vsel %vm53_vm0, %v201_v51, 0.0  ;;  %v3268_v51 = vld [vmem:[%s4988_s3 + $0xc0] sm:$0xff] }
  0x87   :  { %v244_v42 = vadd.f32 %v243_v35, %v242_v36  ;;  %v259_v35 = vsel %vm53_vm0, %v196_v15, 0.0 }
  0x89   :  { %v246_v48 = vadd.f32 %v245_v40, %v244_v42  ;;  %v261_v40 = vsel %vm53_vm0, %v197_v25, 0.0 }
  0x8b   :  { %v248_v55 = vadd.f32 %v247_v46, %v246_v48  ;;  %v263_v46 = vsel %vm53_vm0, %v198_v33, 0.0 }
  0x8d   :  { %v250_v21 = vadd.f32 %v249_v52, %v248_v55  ;;  %v265_v52 = vsel %vm53_vm0, %v199_v39, 0.0 }
  0x8f   :  { %v252_v12 = vadd.f32 %v251_v7, %v250_v21  ;;  %v203_v21 = vmul.f32 %v3227_v18, %v3227_v18 }
  0x91   :  { %v254_v19 = vadd.f32 %v253_v10, %v252_v12  ;;  %v273_v12 = vsel %vm53_vm0, %v203_v21, 0.0 }
  0x93   :  { %v256_v28 = vadd.f32 %v255_v16, %v254_v19 }
  0x95   :  { %v258_v36 = vadd.f32 %v257_v44, %v256_v28 }
  0x97   :  { %v260_v42 = vadd.f32 %v259_v35, %v258_v36 }
  0x99   :  { %v262_v48 = vadd.f32 %v261_v40, %v260_v42  ;;  %v3243_v40 = vld [vmem:[%s4988_s3 + $0x10] sm:$0xff]  ;;  %v3248_v42 = vld [vmem:[%s4988_s3 + $0x48] sm:$0xff] }
  0x9a   :  { %v5014_v30 = vpack.c.bf16 %v3248_v42, %v3243_v40 }
  0x9b   :  { %v264_v55 = vadd.f32 %v263_v46, %v262_v48  ;;  %v3258_v46 = vld [vmem:[%s4988_s3 + $0x58] sm:$0xff]  ;;  %v3263_v48 = vld [vmem:[%s4988_s3 + $0x88] sm:$0xff] }
  0x9c   :  { %v5016_v42 = vpack.c.bf16 %v3268_v51, %v3263_v48  ;;  %v690_v48 = vld [vmem:[%s4988_s3 + $0x100] sm:$0xff] }
  0x9d   :  { %v266_v7 = vadd.f32 %v265_v52, %v264_v55  ;;  %v3275_v55 = vld [vmem:[%s4990_s1] ss:$0 sm:$0xff] }
  0x9f   :  { %v268_v10 = vadd.f32 %v267_v20, %v266_v7 }
  0xa1   :  { %v270_v57 = vadd.f32 %v269_v23, %v268_v10 }
  0xa3   :  { %v272_v15 = vadd.f32 %v271_v31, %v270_v57  ;;  %v3294_v57 = vld [vmem:[%s4991_s2] ss:$0 sm:$0xff] }
  0xa5   :  { %v274_v16 = vadd.f32 %v273_v12, %v272_v15 }
  0xa7   :  { %v275_v19 = vrot.slane %v274_v16, 4 }
  0xa9   :  { %v276_v25 = vadd.f32 %v275_v19, %v274_v16 }
  0xab   :  { %v277_v44 = vrot.slane %v276_v25, 2 }
  0xad   :  { %v278_v28 = vadd.f32 %v277_v44, %v276_v25 }
  0xaf   :  { %v279_v33 = vrot.slane %v278_v28, 1 }
  0xb1   :  { %v280_v35 = vadd.f32 %v279_v33, %v278_v28 }
  0xb3   :  { %v281_v36 = vmul.f32 0.0034722222, %v280_v35 }
  0xb5   :  { %v282_v39 = vadd.f32 1e-05, %v281_v36 }
  0xb7   :  { %2500 = vrsqrt.f32 %v282_v39 }
  0xc1   :  { %v3270_v52 = vpop.eup %2500 }
  0xc2   :  { %v284_v21 = vmul.f32 %v3270_v52, %v2990_v60  ;;  %v311_v23 = vmul.f32 %v3270_v52, %v3171_v45  ;;  %v285_v10 = vmul.f32 %v3270_v52, %v2994_v61  ;;  %v312_v31 = vmul.f32 %v3270_v52, %v3178_v49 }
  0xc3   :  { %v286_v12 = vmul.f32 %v3270_v52, %v2998_v0  ;;  %v313_v60 = vmul.f32 %v3270_v52, %v3185_v54  ;;  %v287_v45 = vmul.f32 %v3270_v52, %v3002_v2  ;;  %v314_v61 = vmul.f32 %v3270_v52, %v3192_v58 }
  0xc4   :  { %v327_v15 = vmul.f32 %v3275_v55, %v284_v21  ;;  %v354_v49 = vmul.f32 %v3275_v55, %v311_v23  ;;  %v328_v16 = vmul.f32 %v3275_v55, %v285_v10  ;;  %v355_v19 = vmul.f32 %v3275_v55, %v312_v31 }
  0xc5   :  { %v329_v25 = vmul.f32 %v3275_v55, %v286_v12  ;;  %v356_v0 = vmul.f32 %v3275_v55, %v313_v60  ;;  %v330_v54 = vmul.f32 %v3275_v55, %v287_v45  ;;  %v357_v44 = vmul.f32 %v3275_v55, %v314_v61 }
  0xc6   :  { %v3313_v2 = vadd.f32 %v3294_v57, %v327_v15  ;;  %v3316_v58 = vadd.f32 %v3294_v57, %v354_v49  ;;  %v3319_v28 = vadd.f32 %v3294_v57, %v328_v16  ;;  %v3322_v33 = vadd.f32 %v3294_v57, %v355_v19 }
  0xc7   :  { %v3325_v35 = vadd.f32 %v3294_v57, %v329_v25  ;;  %v3328_v36 = vadd.f32 %v3294_v57, %v356_v0  ;;  %v3331_v39 = vadd.f32 %v3294_v57, %v330_v54  ;;  %v3334_v21 = vadd.f32 %v3294_v57, %v357_v44 }
  0xc8   :  { %v406_v23 = vsub.f32 0.0, %v3313_v2  ;;  %v433_v10 = vsub.f32 0.0, %v3316_v58  ;;  %v407_v31 = vsub.f32 0.0, %v3319_v28  ;;  %v434_v12 = vsub.f32 0.0, %v3322_v33 }
  0xc9   :  { %v408_v60 = vsub.f32 0.0, %v3325_v35  ;;  %v435_v45 = vsub.f32 0.0, %v3328_v36  ;;  %v409_v61 = vsub.f32 0.0, %v3331_v39  ;;  %v436_v15 = vsub.f32 0.0, %v3334_v21 }
  0xca   :  { %v442_v49 = vmul.f32 1.442695, %v406_v23  ;;  %v496_v16 = vmul.f32 1.442695, %v433_v10  ;;  %v444_v19 = vmul.f32 1.442695, %v407_v31  ;;  %v288_v25 = vmul.f32 %v3270_v52, %v3006_v6 }
  0xcb   :  { %v498_v0 = vmul.f32 1.442695, %v434_v12  ;;  %v446_v54 = vmul.f32 1.442695, %v408_v60  ;;  %v500_v44 = vmul.f32 1.442695, %v435_v45  ;;  %v315_v7 = vmul.f32 %v3270_v52, %v3199_v63 }
  0xcc   :  { %2502 = vpow2.f32 %v442_v49  ;;  %v448_v3 = vmul.f32 1.442695, %v409_v61  ;;  %v502_v26 = vmul.f32 1.442695, %v436_v15  ;;  %v331_v20 = vmul.f32 %v3275_v55, %v288_v25  ;;  %v3379_v45 = vld [vmem:[%s4988_s3 + $0x98] sm:$0xff]  ;;  %v3384_v61 = vld [vmem:[%s4988_s3 + $0xd0] sm:$0xff] }
  0xcd   :  { %2504 = vpow2.f32 %v496_v16  ;;  %v358_v41 = vmul.f32 %v3275_v55, %v315_v7  ;;  %v289_v23 = vmul.f32 %v3270_v52, %v3016_v22  ;;  %v316_v6 = vmul.f32 %v3270_v52, %v3206_v4 }
  0xce   :  { %2506 = vpow2.f32 %v444_v19  ;;  %v3355_v10 = vadd.f32 %v3294_v57, %v331_v20  ;;  %v290_v63 = vmul.f32 %v3270_v52, %v3022_v32  ;;  %v317_v31 = vmul.f32 %v3270_v52, %v3213_v9 }
  0xcf   :  { %2508 = vpow2.f32 %v498_v0  ;;  %v3362_v12 = vadd.f32 %v3294_v57, %v358_v41  ;;  %v332_v7 = vmul.f32 %v3275_v55, %v289_v23  ;;  %v359_v22 = vmul.f32 %v3275_v55, %v316_v6 }
  0xd0   :  { %2510 = vpow2.f32 %v446_v54  ;;  %v410_v4 = vsub.f32 0.0, %v3355_v10  ;;  %v333_v20 = vmul.f32 %v3275_v55, %v290_v63  ;;  %v360_v60 = vmul.f32 %v3275_v55, %v317_v31 }
  0xd1   :  { %2512 = vpow2.f32 %v500_v44  ;;  %v437_v32 = vsub.f32 0.0, %v3362_v12  ;;  %v3371_v9 = vadd.f32 %v3294_v57, %v332_v7  ;;  %v3374_v41 = vadd.f32 %v3294_v57, %v359_v22 }
  0xd2   :  { %2514 = vpow2.f32 %v448_v3  ;;  %v450_v15 = vmul.f32 1.442695, %v410_v4  ;;  %v3387_v49 = vadd.f32 %v3294_v57, %v333_v20  ;;  %v3390_v16 = vadd.f32 %v3294_v57, %v360_v60 }
  0xd3   :  { %2516 = vpow2.f32 %v502_v26  ;;  %v504_v19 = vmul.f32 1.442695, %v437_v32  ;;  %v411_v25 = vsub.f32 0.0, %v3371_v9  ;;  %v438_v0 = vsub.f32 0.0, %v3374_v41 }
  0xd4   :  { %2518 = vpow2.f32 %v450_v15  ;;  %v412_v54 = vsub.f32 0.0, %v3387_v49  ;;  %v291_v3 = vmul.f32 %v3270_v52, %v3031_v38  ;;  %v318_v26 = vmul.f32 %v3270_v52, %v3220_v13 }
  0xd5   :  { %2520 = vpow2.f32 %v504_v19  ;;  %v452_v23 = vmul.f32 1.442695, %v411_v25  ;;  %v506_v6 = vmul.f32 1.442695, %v438_v0  ;;  %v439_v7 = vsub.f32 0.0, %v3390_v16 }
  0xd6   :  { %v2503_v63 = vpop.eup %2502  ;;  %v3401_v31 = vmul.f32 1.442695, %v412_v54  ;;  %v334_v22 = vmul.f32 %v3275_v55, %v291_v3  ;;  %v292_v4 = vmul.f32 %v3270_v52, %v3038_v29  ;;  %v361_v38 = vmul.f32 %v3275_v55, %v318_v26 }
  0xd7   :  { %v2505_v20 = vpop.eup %2504  ;;  %v514_v60 = vadd.f32 1.0, %v2503_v63  ;;  %2522 = vpow2.f32 %v452_v23  ;;  %v319_v32 = vmul.f32 %v3270_v52, %v3227_v18  ;;  %v298_v51 = vmul.f32 %v3270_v52, %v3080_v62  ;;  %v705_v62 = vld [vmem:[%s4988_s3 + $0x178] sm:$0xff] }
  0xd8   :  { %v2507_v15 = vpop.eup %2506  ;;  %v541_v13 = vadd.f32 1.0, %v2505_v20  ;;  %2524 = vpow2.f32 %v506_v6  ;;  %v3411_v19 = vadd.f32 %v3294_v57, %v334_v22  ;;  %v335_v25 = vmul.f32 %v3275_v55, %v292_v4 }
  0xd9   :  { %v2509_v0 = vpop.eup %2508  ;;  %2526 = vrcp.f32 %v514_v60  ;;  %v515_v54 = vadd.f32 1.0, %v2507_v15  ;;  %v3415_v29 = vadd.f32 %v3294_v57, %v361_v38  ;;  %v362_v3 = vmul.f32 %v3275_v55, %v319_v32 }
  0xda   :  { %v2511_v23 = vpop.eup %2510  ;;  %2528 = vrcp.f32 %v541_v13  ;;  %v542_v26 = vadd.f32 1.0, %v2509_v0  ;;  %v413_v18 = vsub.f32 0.0, %v3411_v19  ;;  %v3420_v6 = vadd.f32 %v3294_v57, %v335_v25 }
  0xdb   :  { %v2513_v63 = vpop.eup %2512  ;;  %2530 = vrcp.f32 %v515_v54  ;;  %v516_v22 = vadd.f32 1.0, %v2511_v23  ;;  %v440_v4 = vsub.f32 0.0, %v3415_v29  ;;  %v3424_v20 = vadd.f32 %v3294_v57, %v362_v3 }
  0xdc   :  { %v2515_v60 = vpop.eup %2514  ;;  %2532 = vrcp.f32 %v542_v26  ;;  %v543_v38 = vadd.f32 1.0, %v2513_v63  ;;  %v508_v32 = vmul.f32 1.442695, %v439_v7  ;;  %v414_v15 = vsub.f32 0.0, %v3420_v6 }
  0xdd   :  { %v2517_v13 = vpop.eup %2516  ;;  %2534 = vrcp.f32 %v516_v22  ;;  %v517_v0 = vadd.f32 1.0, %v2515_v60  ;;  %v456_v44 = vmul.f32 1.442695, %v413_v18  ;;  %v3427_v25 = vmul.f32 1.442695, %v440_v4 }
  0xde   :  { %v2519_v37 = vpop.eup %2518  ;;  %2536 = vrcp.f32 %v543_v38  ;;  %v544_v54 = vadd.f32 1.0, %v2517_v13  ;;  %v441_v23 = vsub.f32 0.0, %v3424_v20  ;;  %v293_v3 = vmul.f32 %v3270_v52, %v3045_v47 }
  0xdf   :  { %v2521_v34 = vpop.eup %2520  ;;  %2538 = vrcp.f32 %v517_v0  ;;  %v518_v26 = vadd.f32 1.0, %v2519_v37  ;;  %v3432_v7 = vmul.f32 1.442695, %v414_v15  ;;  %v294_v63 = vmul.f32 %v3270_v52, %v3052_v50 }
  0xe0   :  { %2540 = vrcp.f32 %v544_v54  ;;  %v545_v18 = vadd.f32 1.0, %v2521_v34  ;;  %v336_v22 = vmul.f32 %v3275_v55, %v293_v3  ;;  %v295_v4 = vmul.f32 %v3270_v52, %v3059_v53 }
  0xe1   :  { %v2523_v60 = vpop.eup %2522  ;;  %2542 = vrcp.f32 %v518_v26  ;;  %v337_v38 = vmul.f32 %v3275_v55, %v294_v63  ;;  %v296_v47 = vmul.f32 %v3270_v52, %v3066_v56  ;;  %v297_v37 = vmul.f32 %v3270_v52, %v3073_v59  ;;  %v3459_v26 = vld [vmem:[%s4988_s3 + $0x80] sm:$0xff]  ;;  %v3464_v63 = vld [vmem:[%s4988_s3 + $0xb8] sm:$0xff] }
  0xe2   :  { %v2525_v15 = vpop.eup %2524  ;;  %2544 = vrcp.f32 %v545_v18  ;;  %v519_v50 = vadd.f32 1.0, %v2523_v60  ;;  %v3445_v34 = vadd.f32 %v3294_v57, %v336_v22  ;;  %v338_v13 = vmul.f32 %v3275_v55, %v295_v4  ;;  %v3476_v4 = vld [vmem:[%s4988_s3 + $0xf8] sm:$0xff]  ;;  %v3481_v60 = vld [vmem:[%s4988_s3 + $0x130] sm:$0xff] }
  0xe3   :  { %v2527_v0 = vpop.eup %2526  ;;  %v546_v53 = vadd.f32 1.0, %v2525_v15  ;;  %2546 = vpow2.f32 %v3401_v31  ;;  %v3450_v54 = vadd.f32 %v3294_v57, %v337_v38  ;;  %v339_v56 = vmul.f32 %v3275_v55, %v296_v47  ;;  %v3486_v38 = vld [vmem:[%s4988_s3 + $0x90] sm:$0xff] }
  0xe4   :  { %v2529_v3 = vpop.eup %2528  ;;  %v3454_v59 = vmul.f32 %v2527_v0, %v3313_v2  ;;  %2548 = vrcp.f32 %v519_v50  ;;  %v415_v31 = vsub.f32 0.0, %v3445_v34  ;;  %v3468_v18 = vadd.f32 %v3294_v57, %v338_v13  ;;  %v683_v13 = vld [vmem:[%s4988_s3 + $0xc8] sm:$0xff] }
  0xe5   :  { %5009 = vst [vmem:[#allocation6_spill] sm:$0xff] %v3450_v54  ;;  %v2531_v22 = vpop.eup %2530  ;;  %v3471_v2 = vmul.f32 %v2529_v3, %v3316_v58  ;;  %2550 = vrcp.f32 %v546_v53  ;;  %v512_v47 = vmul.f32 1.442695, %v441_v23  ;;  %v416_v58 = vsub.f32 0.0, %v3450_v54  ;;  %v3504_v23 = vld [vmem:[%s4988_s3 + $0x108] sm:$0xff] }
  0xe6   :  { %5010 = vst [vmem:[#allocation7_spill] sm:$0xff] %v3454_v59  ;;  %5011 = vst [vmem:[#allocation8_spill] sm:$0xff] %v3468_v18  ;;  %v2533_v15 = vpop.eup %2532  ;;  %2169 = vmatmul.mubr.msk.f32.vlgmr.msra.gmra.mrb[0].mxu0 %vm53_vm0, %v3454_v59  ;;  %v3492_v50 = vmul.f32 %v2531_v22, %v3319_v28  ;;  %2552 = vpow2.f32 %v508_v32  ;;  %v417_v0 = vsub.f32 0.0, %v3468_v18  ;;  %v3499_v53 = vadd.f32 %v3294_v57, %v339_v56  ;;  %v3509_v28 = vld [vmem:[%s4988_s3 + $0x140] sm:$0xff] }
  0xe7   :  { %5012 = vst [vmem:[#allocation9_spill] sm:$0xff] %v3471_v2  ;;  %v2535_v32 = vpop.eup %2534  ;;  %2196 = vmatmul.mubr.msk.f32.vlgmr.msra.gmra.mrb[0].mxu1 %vm53_vm0, %v3471_v2  ;;  %v5013_v3 = vpack.c.bf16 %v3258_v46, %v3253_v43  ;;  %v3517_v56 = vmul.f32 %v2533_v15, %v3322_v33  ;;  %v2449_v22 = vpack.c.bf16 %v3464_v63, %v3459_v26  ;;  %2554 = vpow2.f32 %v456_v44  ;;  %v3530_v43 = vld [vmem:[%s4988_s3 + $0xf0] sm:$0xff]  ;;  %v3535_v46 = vld [vmem:[%s4988_s3 + $0x128] sm:$0xff]  ;;  %v3551_v26 = vld [vmem:[%s4988_s3 + $0x1a0] sm:$0xff] }
  0xe8   :  { %v460_v18 = vmul.f32 1.442695, %v415_v31  ;;  %v2537_v59 = vpop.eup %2536  ;;  %2446 = vmatpush1.bf16.msra.mxu1 %v5014_v30  ;;  %v5015_v54 = vmov 0.0   ;;  %v2451_v2 = vpack.c.bf16 %v3481_v60, %v3476_v4  ;;  %2556 = vpow2.f32 %v3427_v25  ;;  %v3546_v44 = vld [vmem:[%s4988_s3 + $0x168] sm:$0xff] }
  0xe9   :  { %2462 = vmatpush1.bf16.msra.mxu0 %v5013_v3  ;;  %892 = vmatprep.mubr.f32.mxu0 %v5015_v54  ;;  %v462_v33 = vmul.f32 1.442695, %v416_v58  ;;  %v340_v30 = vmul.f32 %v3275_v55, %v297_v37  ;;  %v2539_v40 = vpop.eup %2538  ;;  %v2465_v25 = vpack.c.bf16 %v683_v13, %v3486_v38  ;;  %2558 = vpow2.f32 %v3432_v7  ;;  %v697_v38 = vld [vmem:[%s4988_s3 + $0x138] sm:$0xff] }
  0xea   :  { %1054 = vmatprep.mubr.f32.mxu1 %v5015_v54  ;;  %2448 = vmatprep.subr.bf16.mxu1 %v5016_v42  ;;  %v2467_v37 = vpack.c.bf16 %v3509_v28, %v3504_v23  ;;  %v2541_v63 = vpop.eup %2540  ;;  %v3565_v31 = vmul.f32 %v2535_v32, %v3325_v35  ;;  %v5017_v7 = vpack.c.bf16 %v3384_v61, %v3379_v45  ;;  %2560 = vpow2.f32 %v512_v47  ;;  %v712_v35 = vld [vmem:[%s4988_s3 + $0x1b0] sm:$0xff]  ;;  %v711_v42 = vld [vmem:[%s4988_s3 + $0x1a8] sm:$0xff] }
  0xeb   :  { %2170 = vmatmul.mubr.msk.f32.gmra.mrb[2].mxu0 %vm53_vm0, %v3492_v50  ;;  %v464_v4 = vmul.f32 1.442695, %v417_v0  ;;  %v418_v60 = vsub.f32 0.0, %v3499_v53  ;;  %v2543_v58 = vpop.eup %2542  ;;  %2197 = vmatmul.mubr.msk.f32.gmra.mrb[2].mxu1 %vm53_vm0, %v3517_v56  ;;  %v3584_v45 = vmul.f32 %v2537_v59, %v3328_v36  ;;  %2562 = vpow2.f32 %v460_v18  ;;  %v702_v59 = vld [vmem:[%s4988_s3 + $0x160] sm:$0xff]  ;;  %v664_v18 = vld [vmem:[%s4988_s3 + $0x30] sm:$0xff] }
  0xec   :  { %2464 = vmatprep.subr.bf16.mxu0 %v5017_v7  ;;  %898 = vmatprep.mubr.f32.mxu0 %v5015_v54  ;;  %v3587_v61 = vadd.f32 %v3294_v57, %v340_v30  ;;  %v299_v47 = vmul.f32 %v3270_v52, %v3087_v1  ;;  %v2545_v15 = vpop.eup %2544  ;;  %v2453_v13 = vpack.c.bf16 %v3535_v46, %v3530_v43  ;;  %2564 = vpow2.f32 %v462_v33  ;;  %v709_v1 = vld [vmem:[%s4988_s3 + $0x198] sm:$0xff]  ;;  %v671_v43 = vld [vmem:[%s4988_s3 + $0x68] sm:$0xff]  ;;  %v704_v30 = vld [vmem:[%s4988_s3 + $0x170] sm:$0xff] }
  0xed   :  { %1060 = vmatprep.mubr.f32.mxu1 %v5015_v54  ;;  %2450 = vmatpush1.bf16.msra.mxu1 %v2449_v22  ;;  %v341_v0 = vmul.f32 %v3275_v55, %v298_v51  ;;  %v2547_v23 = vpop.eup %2546  ;;  %v2455_v36 = vpack.c.bf16 %v3551_v26, %v3546_v44  ;;  %v2469_v28 = vpack.c.bf16 %v697_v38, %v690_v48  ;;  %v466_v46 = vmul.f32 1.442695, %v418_v60 }
  0xee   :  { %2452 = vmatprep.subr.bf16.mxu1 %v2451_v2  ;;  %2466 = vmatpush1.bf16.msra.mxu0 %v2465_v25  ;;  %v2471_v32 = vpack.c.bf16 %v712_v35, %v705_v62  ;;  %v2549_v3 = vpop.eup %2548  ;;  %v3609_v2 = vmul.f32 %v2539_v40, %v3331_v39  ;;  %v520_v22 = vadd.f32 1.0, %v2547_v23  ;;  %v300_v33 = vmul.f32 %v3270_v52, %v3094_v5 }
  0xef   :  { %2171 = vmatmul.mubr.msk.f32.gmra.mrb[4].mxu0 %vm53_vm0, %v3565_v31  ;;  %2468 = vmatprep.subr.bf16.mxu0 %v2467_v37  ;;  %v2551_v39 = vpop.eup %2550  ;;  %v3626_v40 = vmul.f32 %v2541_v63, %v3334_v21  ;;  %2566 = vpow2.f32 %v464_v4  ;;  %v419_v5 = vsub.f32 0.0, %v3587_v61  ;;  %v342_v44 = vmul.f32 %v3275_v55, %v299_v47 }
  0xf0   :  { %2198 = vmatmul.mubr.msk.f32.gmra.mrb[4].mxu1 %vm53_vm0, %v3584_v45  ;;  %904 = vmatprep.mubr.f32.mxu0 %v5015_v54  ;;  %v2553_v26 = vpop.eup %2552  ;;  %2568 = vrcp.f32 %v520_v22  ;;  %v2457_v25 = vpack.c.bf16 %v709_v1, %v702_v59  ;;  %v3632_v37 = vadd.f32 %v3294_v57, %v341_v0  ;;  %v3635_v51 = vmul.f32 %v2543_v58, %v3355_v10 }
  0xf1   :  { %1066 = vmatprep.mubr.f32.mxu1 %v5015_v54  ;;  %2454 = vmatpush1.bf16.msra.mxu1 %v2453_v13  ;;  %v2555_v48 = vpop.eup %2554  ;;  %v547_v21 = vadd.f32 1.0, %v2553_v26  ;;  %v3637_v63 = vpack.c.bf16 %v671_v43, %v664_v18  ;;  %v2473_v7 = vpack.c.bf16 %v711_v42, %v704_v30  ;;  %v3642_v60 = vmul.f32 %v2545_v15, %v3362_v12 }
  0xf2   :  { %2456 = vmatprep.subr.bf16.mxu1 %v2455_v36  ;;  %2470 = vmatpush1.bf16.msra.mxu0 %v2469_v28  ;;  %v2557_v4 = vpop.eup %2556  ;;  %v521_v38 = vadd.f32 1.0, %v2555_v48  ;;  %2570 = vpow2.f32 %v466_v46  ;;  %v343_v62 = vmul.f32 %v3275_v55, %v300_v33  ;;  %v468_v58 = vmul.f32 1.442695, %v419_v5 }
  0xf3   :  { %2172 = vmatmul.mubr.msk.f32.gmra.mrb[6].mxu0 %vm53_vm0, %v3609_v2  ;;  %2472 = vmatprep.subr.bf16.mxu0 %v2471_v32  ;;  %v2559_v10 = vpop.eup %2558  ;;  %2572 = vrcp.f32 %v547_v21  ;;  %v548_v35 = vadd.f32 1.0, %v2557_v4  ;;  %v3649_v47 = vadd.f32 %v3294_v57, %v342_v44  ;;  %v420_v15 = vsub.f32 0.0, %v3632_v37 }
  0xf4   :  { %2199 = vmatmul.mubr.msk.f32.gmra.mrb[6].mxu1 %vm53_vm0, %v3626_v40  ;;  %910 = vmatprep.mubr.f32.mxu0 %v5015_v54  ;;  %v2561_v13 = vpop.eup %2560  ;;  %2574 = vrcp.f32 %v521_v38  ;;  %v522_v12 = vadd.f32 1.0, %v2559_v10  ;;  %v301_v0 = vmul.f32 %v3270_v52, %v3101_v8  ;;  %v3659_v1 = vmul.f32 %v2549_v3, %v3371_v9 }
  0xf5   :  { %1072 = vmatprep.mubr.f32.mxu1 %v5015_v54  ;;  %2458 = vmatpush1.bf16.msra.mxu1 %v2457_v25  ;;  %v2563_v23 = vpop.eup %2562  ;;  %2576 = vrcp.f32 %v548_v35  ;;  %v549_v36 = vadd.f32 1.0, %v2561_v13  ;;  %v3665_v8 = vmul.f32 %v2551_v39, %v3374_v41  ;;  %v3668_v28 = vadd.f32 %v3294_v57, %v343_v62 }
  0xf6   :  { %2476 = vmatprep.subr.bf16.mxu1 %v3637_v63  ;;  %2474 = vmatpush1.bf16.msra.mxu0 %v2473_v7  ;;  %v2565_v59 = vpop.eup %2564  ;;  %2578 = vrcp.f32 %v522_v12  ;;  %v523_v18 = vadd.f32 1.0, %v2563_v23  ;;  %v302_v32 = vmul.f32 %v3270_v52, %v3108_v11  ;;  %v470_v9 = vmul.f32 1.442695, %v420_v15 }
  0xf7   :  { %2173 = vmatmul.mubr.msk.f32.gmra.mrb[8].mxu0 %vm53_vm0, %v3635_v51  ;;  %2580 = vrcp.f32 %v549_v36  ;;  %v421_v3 = vsub.f32 0.0, %v3649_v47  ;;  %v344_v22 = vmul.f32 %v3275_v55, %v301_v0  ;;  %v524_v46 = vadd.f32 1.0, %v2565_v59 }
  0xf8   :  { %2200 = vmatmul.mubr.msk.f32.gmra.mrb[8].mxu1 %vm53_vm0, %v3642_v60  ;;  %916 = vmatprep.mubr.f32.mxu0 %v5015_v54  ;;  %2582 = vpow2.f32 %v468_v58  ;;  %v345_v33 = vmul.f32 %v3275_v55, %v302_v32  ;;  %v303_v30 = vmul.f32 %v3270_v52, %v3115_v14  ;;  %v422_v5 = vsub.f32 0.0, %v3668_v28 }
  0xf9   :  { %1078 = vmatprep.mubr.f32.mxu1 %v5015_v54  ;;  %v2567_v43 = vpop.eup %2566  ;;  %2584 = vrcp.f32 %v523_v18  ;;  %v472_v39 = vmul.f32 1.442695, %v421_v3  ;;  %v3689_v44 = vadd.f32 %v3294_v57, %v344_v22  ;;  %v304_v38 = vmul.f32 %v3270_v52, %v3122_v17 }
  0xfa   :  { %v2569_v41 = vpop.eup %2568  ;;  %2586 = vpow2.f32 %v470_v9  ;;  %v525_v25 = vadd.f32 1.0, %v2567_v43  ;;  %v3701_v7 = vadd.f32 %v3294_v57, %v345_v33  ;;  %v346_v4 = vmul.f32 %v3275_v55, %v303_v30  ;;  %v5018_v30 = vld [vmem:[#allocation6_spill] sm:$0xff] }
  0xfb   :  { %2174 = vmatmul.mubr.msk.f32.gmra.mrb[10].mxu0 %vm53_vm0, %v3659_v1  ;;  %v3681_v11 = vmul.f32 %v2569_v41, %v3387_v49  ;;  %2588 = vrcp.f32 %v524_v46  ;;  %v474_v10 = vmul.f32 1.442695, %v422_v5  ;;  %v347_v0 = vmul.f32 %v3275_v55, %v304_v38 }
  0xfc   :  { %2201 = vmatmul.mubr.msk.f32.gmra.mrb[10].mxu1 %vm53_vm0, %v3665_v8  ;;  %922 = vmatprep.mubr.f32.mxu0 %v5015_v54  ;;  %v2571_v42 = vpop.eup %2570  ;;  %2590 = vpow2.f32 %v472_v39  ;;  %v3721_v15 = vadd.f32 %v3294_v57, %v346_v4  ;;  %v306_v46 = vmul.f32 %v3270_v52, %v3136_v27  ;;  %v692_v27 = vld [vmem:[%s4988_s3 + $0x110] sm:$0xff]  ;;  %v5020_v4 = vld [vmem:[#allocation7_spill] sm:$0xff] }
  0xfd   :  { %1084 = vmatprep.mubr.f32.mxu1 %v5015_v54  ;;  %v2573_v26 = vpop.eup %2572  ;;  %2592 = vrcp.f32 %v525_v25  ;;  %v526_v58 = vadd.f32 1.0, %v2571_v42  ;;  %v5019_v25 = vld [vmem:[#allocation2_spill] sm:$0xff] }
  0xfe   :  { %v2575_v49 = vpop.eup %2574  ;;  %v3694_v48 = vmul.f32 %v2573_v26, %v3390_v16  ;;  %2594 = vpow2.f32 %v474_v10  ;;  %v425_v22 = vsub.f32 0.0, %v3721_v15  ;;  %v349_v10 = vmul.f32 %v3275_v55, %v306_v46 }
  0xff   :  { %2175 = vmatmul.mubr.msk.f32.gmra.mrb[12].mxu0 %vm53_vm0, %v3681_v11  ;;  %v2577_v14 = vpop.eup %2576  ;;  %v3698_v21 = vmul.f32 %v2575_v49, %v3411_v19  ;;  %v423_v19 = vsub.f32 0.0, %v3689_v44  ;;  %2596 = vrcp.f32 %v526_v58  ;;  %v307_v49 = vmul.f32 %v3270_v52, %v5019_v25  ;;  %v5021_v58 = vld [vmem:[#allocation8_spill] sm:$0xff] }
 0x100   :  { %928 = vmatprep.mubr.f32.mxu0 %v5015_v54  ;;  %v2579_v62 = vpop.eup %2578  ;;  %2202 = vmatmul.mubr.msk.f32.gmra.mrb[12].mxu1 %vm53_vm0, %v3694_v48  ;;  %v3709_v16 = vmul.f32 %v2577_v14, %v3415_v29  ;;  %v424_v29 = vsub.f32 0.0, %v3701_v7  ;;  %v480_v26 = vmul.f32 1.442695, %v425_v22  ;;  %v699_v14 = vld [vmem:[%s4988_s3 + $0x148] sm:$0xff] }
 0x101   :  { %v2581_v35 = vpop.eup %2580  ;;  %1090 = vmatprep.mubr.f32.mxu1 %v5015_v54  ;;  %v3716_v17 = vmul.f32 %v2579_v62, %v3420_v6  ;;  %v476_v36 = vmul.f32 1.442695, %v423_v19  ;;  %v305_v6 = vmul.f32 %v3270_v52, %v3129_v24  ;;  %v685_v24 = vld [vmem:[%s4988_s3 + $0xd8] sm:$0xff] }
 0x102   :  { %v2583_v13 = vpop.eup %2582  ;;  %v3727_v23 = vmul.f32 %v2581_v35, %v3424_v20  ;;  %v678_v20 = vld [vmem:[%s4988_s3 + $0xa0] sm:$0xff]  ;;  %v478_v3 = vmul.f32 1.442695, %v424_v29 }
 0x103   :  { %2176 = vmatmul.mubr.msk.f32.gmra.mrb[14].mxu0 %vm53_vm0, %v3698_v21  ;;  %v2585_v12 = vpop.eup %2584  ;;  %v527_v59 = vadd.f32 1.0, %v2583_v13  ;;  %2598 = vpow2.f32 %v476_v36  ;;  %v348_v43 = vmul.f32 %v3275_v55, %v305_v6  ;;  %v2479_v39 = vpack.c.bf16 %v685_v24, %v678_v20  ;;  %v5022_v36 = vld [vmem:[#allocation3_spill] sm:$0xff]  ;;  %v706_v6 = vld [vmem:[%s4988_s3 + $0x180] sm:$0xff] }
 0x104   :  { %934 = vmatprep.mubr.f32.mxu0 %v5015_v54  ;;  %2203 = vmatmul.mubr.msk.f32.gmra.mrb[14].mxu1 %vm53_vm0, %v3709_v16  ;;  %v2587_v18 = vpop.eup %2586  ;;  %v3735_v32 = vmul.f32 %v2585_v12, %v3445_v34  ;;  %v3748_v34 = vadd.f32 %v3294_v57, %v347_v0  ;;  %v2483_v12 = vpack.c.bf16 %v699_v14, %v692_v27 }
 0x105   :  { %1096 = vmatprep.mubr.f32.mxu1 %v5015_v54  ;;  %v2589_v9 = vpop.eup %2588  ;;  %2600 = vrcp.f32 %v527_v59  ;;  %v528_v41 = vadd.f32 1.0, %v2587_v18  ;;  %v3772_v62 = vadd.f32 %v3294_v57, %v348_v43  ;;  %v350_v0 = vmul.f32 %v3275_v55, %v307_v49  ;;  %v713_v59 = vld [vmem:[%s4988_s3 + $0x1b8] sm:$0xff] }
 0x106   :  { %v2591_v33 = vpop.eup %2590  ;;  %v3757_v42 = vmul.f32 %v2589_v9, %v5018_v30  ;;  %2602 = vpow2.f32 %v478_v3  ;;  %v426_v38 = vsub.f32 0.0, %v3748_v34  ;;  %v3796_v20 = vadd.f32 %v3294_v57, %v349_v10 }
 0x107   :  { %2177 = vmatmul.mubr.msk.f32.gmra.mrb[16].mxu0 %vm53_vm0, %v3716_v17  ;;  %v2593_v5 = vpop.eup %2592  ;;  %2604 = vrcp.f32 %v528_v41  ;;  %v529_v19 = vadd.f32 1.0, %v2591_v33  ;;  %v427_v9 = vsub.f32 0.0, %v3772_v62  ;;  %v2487_v43 = vpack.c.bf16 %v713_v59, %v706_v6 }
 0x108   :  { %940 = vmatprep.mubr.f32.mxu0 %v5015_v54  ;;  %2204 = vmatmul.mubr.msk.f32.gmra.mrb[16].mxu1 %vm53_vm0, %v3727_v23  ;;  %v2595_v35 = vpop.eup %2594  ;;  %v3780_v13 = vmul.f32 %v2593_v5, %v5021_v58  ;;  %2606 = vpow2.f32 %v480_v26  ;;  %v482_v18 = vmul.f32 1.442695, %v426_v38  ;;  %v3806_v41 = vadd.f32 %v3294_v57, %v350_v0  ;;  %v5023_v5 = vld [vmem:[#allocation4_spill] sm:$0xff] }
 0x109   :  { %1167 = vmatprep.mubr.f32.mxu1 %v5015_v54  ;;  %v2597_v29 = vpop.eup %2596  ;;  %2608 = vrcp.f32 %v529_v19  ;;  %v530_v24 = vadd.f32 1.0, %v2595_v35  ;;  %v484_v30 = vmul.f32 1.442695, %v427_v9  ;;  %v5024_v35 = vld [vmem:[#allocation5_spill] sm:$0xff] }
 0x10a   :  { %v3802_v22 = vmul.f32 %v2597_v29, %v3499_v53  ;;  %2610 = vpow2.f32 %v482_v18  ;;  %v309_v53 = vmul.f32 %v3270_v52, %v5023_v5  ;;  %v429_v14 = vsub.f32 0.0, %v3806_v41 }
 0x10b   :  { %2178 = vmatmul.mubr.msk.f32.gmra.mrb[18].mxu0 %vm53_vm0, %v3735_v32  ;;  %2612 = vrcp.f32 %v530_v24 }
 0x10c   :  { %946 = vmatprep.mubr.f32.mxu0 %v5015_v54  ;;  %2205 = vmatmul.mubr.msk.f32.vlgmr.msra.gmra.mrb[18].mxu1 %vm53_vm0, %v5020_v4  ;;  %2614 = vpow2.f32 %v484_v30  ;;  %v352_v19 = vmul.f32 %v3275_v55, %v309_v53 }
 0x10d   :  { %2478 = vmatpush3.bf16.msra.mxu1 %v3637_v63  ;;  %1173 = vmatprep.mubr.f32.mxu1 %v5015_v54  ;;  %v308_v63 = vmul.f32 %v3270_v52, %v5022_v36  ;;  %v2599_v3 = vpop.eup %2598  ;;  %v488_v36 = vmul.f32 1.442695, %v429_v14 }
 0x10e   :  { %2480 = vmatprep.subr.bf16.mxu1 %v2479_v39  ;;  %v531_v26 = vadd.f32 1.0, %v2599_v3 }
 0x10f   :  { %2179 = vmatmul.mubr.msk.f32.gmra.mrb[20].mxu0 %vm53_vm0, %v3757_v42  ;;  %v2601_v46 = vpop.eup %2600  ;;  %v351_v33 = vmul.f32 %v3275_v55, %v308_v63  ;;  %v3841_v63 = vadd.f32 %v3294_v57, %v352_v19 }
 0x110   :  { %952 = vmatprep.mubr.f32.mxu0 %v5015_v54  ;;  %2206 = vmatmul.mubr.msk.f32.gmra.mrb[20].mxu1 %vm53_vm0, %v3492_v50  ;;  %v2603_v25 = vpop.eup %2602  ;;  %v3818_v49 = vmul.f32 %v2601_v46, %v3587_v61  ;;  %v310_v61 = vmul.f32 %v3270_v52, %v5024_v35  ;;  %2616 = vrcp.f32 %v531_v26 }
 0x111   :  { %1179 = vmatprep.mubr.f32.mxu1 %v5015_v54  ;;  %2482 = vmatpush3.bf16.msra.mxu1 %v2479_v39  ;;  %v428_v39 = vsub.f32 0.0, %v3796_v20  ;;  %v2605_v27 = vpop.eup %2604  ;;  %v3823_v38 = vadd.f32 %v3294_v57, %v351_v33  ;;  %v532_v58 = vadd.f32 1.0, %v2603_v25 }
 0x112   :  { %2484 = vmatprep.subr.bf16.mxu1 %v2483_v12  ;;  %v3834_v29 = vmul.f32 %v2605_v27, %v3632_v37  ;;  %v353_v6 = vmul.f32 %v3275_v55, %v310_v61  ;;  %v431_v55 = vsub.f32 0.0, %v3841_v63 }
 0x113   :  { %2180 = vmatmul.mubr.msk.f32.gmra.mrb[22].mxu0 %vm53_vm0, %v3780_v13  ;;  %v486_v10 = vmul.f32 1.442695, %v428_v39  ;;  %v430_v52 = vsub.f32 0.0, %v3823_v38 }
 0x114   :  { %958 = vmatprep.mubr.f32.mxu0 %v5015_v54  ;;  %2207 = vmatmul.mubr.msk.f32.gmra.mrb[22].mxu1 %vm53_vm0, %v3565_v31  ;;  %v3855_v3 = vadd.f32 %v3294_v57, %v353_v6  ;;  %v492_v57 = vmul.f32 1.442695, %v431_v55 }
 0x115   :  { %1185 = vmatprep.mubr.f32.mxu1 %v5015_v54  ;;  %2486 = vmatpush3.bf16.msra.mxu1 %v2483_v12  ;;  %v2607_v12 = vpop.eup %2606  ;;  %2618 = vpow2.f32 %v486_v10  ;;  %v490_v24 = vmul.f32 1.442695, %v430_v52 }
 0x116   :  { %2488 = vmatprep.subr.bf16.mxu1 %v2487_v43  ;;  %v2609_v0 = vpop.eup %2608  ;;  %2620 = vrcp.f32 %v532_v58  ;;  %v533_v37 = vadd.f32 1.0, %v2607_v12  ;;  %v432_v30 = vsub.f32 0.0, %v3855_v3 }
 0x117   :  { %2181 = vmatmul.mubr.msk.f32.gmra.mrb[24].mxu0 %vm53_vm0, %v3802_v22  ;;  %v2611_v59 = vpop.eup %2610  ;;  %v3848_v18 = vmul.f32 %v2609_v0, %v3649_v47  ;;  %2622 = vpow2.f32 %v488_v36 }
 0x118   :  { %964 = vmatprep.mubr.f32.mxu0 %v5015_v54  ;;  %2208 = vmatmul.mubr.msk.f32.gmra.mrb[24].mxu1 %vm53_vm0, %v3609_v2  ;;  %v2613_v9 = vpop.eup %2612  ;;  %2624 = vrcp.f32 %v533_v37  ;;  %v494_v26 = vmul.f32 1.442695, %v432_v30 }
 0x119   :  { %1191 = vmatprep.mubr.f32.mxu1 %v5015_v54  ;;  %2490 = vmatpush3.bf16.msra.mxu1 %v2487_v43  ;;  %v534_v43 = vadd.f32 1.0, %v2611_v59  ;;  %v2615_v46 = vpop.eup %2614  ;;  %v3861_v47 = vmul.f32 %v2613_v9, %v3668_v28  ;;  %2626 = vpow2.f32 %v490_v24 }
 0x11a   :  { %v2617_v33 = vpop.eup %2616  ;;  %v535_v39 = vadd.f32 1.0, %v2615_v46 }
 0x11b   :  { %2182 = vmatmul.mubr.msk.f32.gmra.mrb[26].mxu0 %vm53_vm0, %v3818_v49  ;;  %2628 = vrcp.f32 %v534_v43  ;;  %v3871_v28 = vmul.f32 %v2617_v33, %v3689_v44 }
 0x11c   :  { %970 = vmatprep.mubr.f32.mxu0 %v5015_v54  ;;  %2209 = vmatmul.mubr.msk.f32.gmra.mrb[26].mxu1 %vm53_vm0, %v3635_v51  ;;  %2630 = vpow2.f32 %v492_v57 }
 0x11d   :  { %1197 = vmatprep.mubr.f32.mxu1 %v5015_v54  ;;  %2632 = vrcp.f32 %v535_v39 }
 0x11e   :  { %2634 = vpow2.f32 %v494_v26 }
 0x11f   :  { %2183 = vmatmul.mubr.msk.f32.gmra.mrb[28].mxu0 %vm53_vm0, %v3834_v29  ;;  %v2619_v5 = vpop.eup %2618 }
 0x120   :  { %976 = vmatprep.mubr.f32.mxu0 %v5015_v54  ;;  %2210 = vmatmul.mubr.msk.f32.gmra.mrb[28].mxu1 %vm53_vm0, %v3659_v1  ;;  %v2621_v53 = vpop.eup %2620  ;;  %v536_v25 = vadd.f32 1.0, %v2619_v5 }
 0x121   :  { %1203 = vmatprep.mubr.f32.mxu1 %v5015_v54  ;;  %v2623_v27 = vpop.eup %2622  ;;  %v3880_v14 = vmul.f32 %v2621_v53, %v3701_v7 }
 0x122   :  { %v2625_v44 = vpop.eup %2624  ;;  %2636 = vrcp.f32 %v536_v25  ;;  %v537_v10 = vadd.f32 1.0, %v2623_v27 }
 0x123   :  { %2184 = vmatmul.mubr.msk.f32.gmra.mrb[30].mxu0 %vm53_vm0, %v3848_v18  ;;  %v2627_v19 = vpop.eup %2626  ;;  %v3889_v35 = vmul.f32 %v2625_v44, %v3721_v15 }
 0x124   :  { %982 = vmatprep.mubr.f32.mxu0 %v5015_v54  ;;  %2211 = vmatmul.mubr.msk.f32.gmra.mrb[30].mxu1 %vm53_vm0, %v3681_v11  ;;  %2638 = vrcp.f32 %v537_v10  ;;  %v538_v61 = vadd.f32 1.0, %v2627_v19 }
 0x125   :  { %1209 = vmatprep.mubr.f32.mxu1 %v5015_v54  ;;  %v2629_v7 = vpop.eup %2628 }
 0x126   :  { %v2631_v58 = vpop.eup %2630  ;;  %v3898_v12 = vmul.f32 %v2629_v7, %v3748_v34  ;;  %2640 = vrcp.f32 %v538_v61 }
 0x127   :  { %2185 = vmatmul.mubr.msk.f32.gmra.mrb[32].mxu0 %vm53_vm0, %v3861_v47  ;;  %v2633_v0 = vpop.eup %2632  ;;  %v539_v15 = vadd.f32 1.0, %v2631_v58 }
 0x128   :  { %988 = vmatprep.mubr.f32.mxu0 %v5015_v54  ;;  %2212 = vmatmul.mubr.msk.f32.gmra.mrb[32].mxu1 %vm53_vm0, %v3698_v21  ;;  %v2635_v36 = vpop.eup %2634  ;;  %v3907_v52 = vmul.f32 %v2633_v0, %v3772_v62 }
 0x129   :  { %1215 = vmatprep.mubr.f32.mxu1 %v5015_v54  ;;  %2642 = vrcp.f32 %v539_v15  ;;  %v540_v34 = vadd.f32 1.0, %v2635_v36 }
 0x12b   :  { %2186 = vmatmul.mubr.msk.f32.gmra.mrb[34].mxu0 %vm53_vm0, %v3871_v28  ;;  %2644 = vrcp.f32 %v540_v34 }
 0x12c   :  { %994 = vmatprep.mubr.f32.mxu0 %v5015_v54  ;;  %2213 = vmatmul.mubr.msk.f32.gmra.mrb[34].mxu1 %vm53_vm0, %v3716_v17  ;;  %v2637_v6 = vpop.eup %2636 }
 0x12d   :  { %1221 = vmatprep.mubr.f32.mxu1 %v5015_v54  ;;  %v3916_v37 = vmul.f32 %v2637_v6, %v3796_v20 }
 0x12e   :  { %v2639_v59 = vpop.eup %2638 }
 0x12f   :  { %2187 = vmatmul.mubr.msk.f32.gmra.mrb[36].mxu0 %vm53_vm0, %v3880_v14  ;;  %v3925_v62 = vmul.f32 %v2639_v59, %v3806_v41 }
 0x130   :  { %1000 = vmatprep.mubr.f32.mxu0 %v5015_v54  ;;  %2214 = vmatmul.mubr.msk.f32.gmra.mrb[36].mxu1 %vm53_vm0, %v3735_v32  ;;  %v2641_v9 = vpop.eup %2640 }
 0x131   :  { %1227 = vmatprep.mubr.f32.mxu1 %v5015_v54  ;;  %v3934_v20 = vmul.f32 %v2641_v9, %v3823_v38 }
 0x133   :  { %2188 = vmatmul.mubr.msk.f32.gmra.mrb[38].mxu0 %vm53_vm0, %v3889_v35  ;;  %v2643_v24 = vpop.eup %2642 }
 0x134   :  { %1006 = vmatprep.mubr.f32.mxu0 %v5015_v54  ;;  %2215 = vmatmul.mubr.msk.f32.gmra.mrb[38].mxu1 %vm53_vm0, %v3757_v42  ;;  %v3943_v41 = vmul.f32 %v2643_v24, %v3841_v63  ;;  %v5025_v63 = vld [vmem:[#allocation9_spill] sm:$0xff] }
 0x135   :  { %1233 = vmatprep.mubr.f32.mxu1 %v5015_v54  ;;  %v2645_v55 = vpop.eup %2644 }
 0x136   :  { %v3952_v38 = vmul.f32 %v2645_v55, %v3855_v3 }
 0x137   :  { %2189 = vmatmul.mubr.msk.f32.gmra.mrb[40].mxu0 %vm53_vm0, %v3898_v12 }
 0x138   :  { %1012 = vmatprep.mubr.f32.mxu0 %v5015_v54  ;;  %2216 = vmatmul.mubr.msk.f32.gmra.mrb[40].mxu1 %vm53_vm0, %v3780_v13 }
 0x139   :  { %1239 = vmatprep.mubr.f32.mxu1 %v5015_v54 }
 0x13b   :  { %2190 = vmatmul.mubr.msk.f32.gmra.mrb[42].mxu0 %vm53_vm0, %v3907_v52 }
 0x13c   :  { %1018 = vmatprep.mubr.f32.mxu0 %v5015_v54  ;;  %2217 = vmatmul.mubr.msk.f32.gmra.mrb[42].mxu1 %vm53_vm0, %v3802_v22 }
 0x13d   :  { %1245 = vmatprep.mubr.f32.mxu1 %v5015_v54 }
 0x13f   :  { %2191 = vmatmul.mubr.msk.f32.gmra.mrb[44].mxu0 %vm53_vm0, %v3916_v37 }
 0x140   :  { %1024 = vmatprep.mubr.f32.mxu0 %v5015_v54  ;;  %2218 = vmatmul.mubr.msk.f32.gmra.mrb[44].mxu1 %vm53_vm0, %v3818_v49 }
 0x141   :  { %1251 = vmatprep.mubr.f32.mxu1 %v5015_v54 }
 0x143   :  { %2192 = vmatmul.mubr.msk.f32.gmra.mrb[46].mxu0 %vm53_vm0, %v3925_v62 }
 0x144   :  { %1030 = vmatprep.mubr.f32.mxu0 %v5015_v54  ;;  %2219 = vmatmul.mubr.msk.f32.gmra.mrb[46].mxu1 %vm53_vm0, %v3834_v29 }
 0x145   :  { %1257 = vmatprep.mubr.f32.mxu1 %v5015_v54 }
 0x147   :  { %2193 = vmatmul.mubr.msk.f32.gmra.mrb[48].mxu0 %vm53_vm0, %v3934_v20 }
 0x148   :  { %1036 = vmatprep.mubr.f32.mxu0 %v5015_v54  ;;  %2220 = vmatmul.mubr.msk.f32.gmra.mrb[48].mxu1 %vm53_vm0, %v3848_v18 }
 0x149   :  { %1263 = vmatprep.mubr.f32.mxu1 %v5015_v54 }
 0x14b   :  { %2194 = vmatmul.mubr.msk.f32.gmra.mrb[50].mxu0 %vm53_vm0, %v3943_v41 }
 0x14c   :  { %1042 = vmatprep.mubr.f32.mxu0 %v5015_v54  ;;  %2221 = vmatmul.mubr.msk.f32.gmra.mrb[50].mxu1 %vm53_vm0, %v3861_v47 }
 0x14d   :  { %1269 = vmatprep.mubr.f32.mxu1 %v5015_v54 }
 0x14f   :  { %2195 = vmatmul.mubr.msk.f32.gmra.mrb[52].mxu0 %vm53_vm0, %v3952_v38 }
 0x150   :  { %1448 = vmatprep.mubr.f32.mxu0 %v5015_v54  ;;  %2222 = vmatmul.mubr.msk.f32.gmra.mrb[52].mxu1 %vm53_vm0, %v3871_v28 }
 0x151   :  { %1275 = vmatprep.mubr.f32.mxu1 %v5015_v54 }
 0x153   :  { %2241 = vmatmul.mubr.msk.f32.vlgmr.msra.gmra.mrb[54].mxu0 %vm53_vm0, %v5020_v4 }
 0x154   :  { %1454 = vmatprep.mubr.f32.mxu0 %v5015_v54  ;;  %2223 = vmatmul.mubr.msk.f32.gmra.mrb[54].mxu1 %vm53_vm0, %v3880_v14 }
 0x155   :  { %1281 = vmatprep.mubr.f32.mxu1 %v5015_v54 }
 0x157   :  { %2242 = vmatmul.mubr.msk.f32.gmra.mrb[56].mxu0 %vm53_vm0, %v3492_v50 }
 0x158   :  { %1460 = vmatprep.mubr.f32.mxu0 %v5015_v54  ;;  %2224 = vmatmul.mubr.msk.f32.gmra.mrb[56].mxu1 %vm53_vm0, %v3889_v35 }
 0x159   :  { %1287 = vmatprep.mubr.f32.mxu1 %v5015_v54 }
 0x15b   :  { %2243 = vmatmul.mubr.msk.f32.gmra.mrb[58].mxu0 %vm53_vm0, %v3565_v31 }
 0x15c   :  { %1466 = vmatprep.mubr.f32.mxu0 %v5015_v54  ;;  %2225 = vmatmul.mubr.msk.f32.gmra.mrb[58].mxu1 %vm53_vm0, %v3898_v12 }
 0x15d   :  { %1293 = vmatprep.mubr.f32.mxu1 %v5015_v54 }
 0x15f   :  { %2244 = vmatmul.mubr.msk.f32.gmra.mrb[60].mxu0 %vm53_vm0, %v3609_v2 }
 0x160   :  { %1472 = vmatprep.mubr.f32.mxu0 %v5015_v54  ;;  %2226 = vmatmul.mubr.msk.f32.gmra.mrb[60].mxu1 %vm53_vm0, %v3907_v52 }
 0x161   :  { %1299 = vmatprep.mubr.f32.mxu1 %v5015_v54 }
 0x163   :  { %2245 = vmatmul.mubr.msk.f32.gmra.mrb[62].mxu0 %vm53_vm0, %v3635_v51 }
 0x164   :  { %1478 = vmatprep.mubr.f32.mxu0 %v5015_v54  ;;  %2227 = vmatmul.mubr.msk.f32.gmra.mrb[62].mxu1 %vm53_vm0, %v3916_v37 }
 0x165   :  { %1305 = vmatprep.mubr.f32.mxu1 %v5015_v54 }
 0x167   :  { %2246 = vmatmul.mubr.msk.f32.gmra.mrb[64].mxu0 %vm53_vm0, %v3659_v1 }
 0x168   :  { %1484 = vmatprep.mubr.f32.mxu0 %v5015_v54  ;;  %2228 = vmatmul.mubr.msk.f32.gmra.mrb[64].mxu1 %vm53_vm0, %v3925_v62 }
 0x169   :  { %1311 = vmatprep.mubr.f32.mxu1 %v5015_v54 }
 0x16b   :  { %2247 = vmatmul.mubr.msk.f32.gmra.mrb[66].mxu0 %vm53_vm0, %v3681_v11 }
 0x16c   :  { %1490 = vmatprep.mubr.f32.mxu0 %v5015_v54  ;;  %2229 = vmatmul.mubr.msk.f32.gmra.mrb[66].mxu1 %vm53_vm0, %v3934_v20 }
 0x16d   :  { %1317 = vmatprep.mubr.f32.mxu1 %v5015_v54 }
 0x16f   :  { %2248 = vmatmul.mubr.msk.f32.gmra.mrb[68].mxu0 %vm53_vm0, %v3698_v21 }
 0x170   :  { %1496 = vmatprep.mubr.f32.mxu0 %v5015_v54  ;;  %2230 = vmatmul.mubr.msk.f32.gmra.mrb[68].mxu1 %vm53_vm0, %v3943_v41 }
 0x171   :  { %1323 = vmatprep.mubr.f32.mxu1 %v5015_v54 }
 0x173   :  { %2249 = vmatmul.mubr.msk.f32.gmra.mrb[70].mxu0 %vm53_vm0, %v3716_v17 }
 0x174   :  { %1502 = vmatprep.mubr.f32.mxu0 %v5015_v54  ;;  %2231 = vmatmul.mubr.msk.f32.gmra.mrb[70].mxu1 %vm53_vm0, %v3952_v38 }
 0x175   :  { %1329 = vmatprep.mubr.f32.mxu1 %v5015_v54 }
 0x177   :  { %2250 = vmatmul.mubr.msk.f32.gmra.mrb[72].mxu0 %vm53_vm0, %v3735_v32 }
 0x178   :  { %1508 = vmatprep.mubr.f32.mxu0 %v5015_v54  ;;  %2232 = vmatmul.mubr.msk.f32.gmra.mrb[72].mxu1 %vm53_vm0, %v5025_v63 }
 0x179   :  { %1335 = vmatprep.mubr.f32.mxu1 %v5015_v54 }
 0x17b   :  { %2251 = vmatmul.mubr.msk.f32.gmra.mrb[74].mxu0 %vm53_vm0, %v3757_v42 }
 0x17c   :  { %1514 = vmatprep.mubr.f32.mxu0 %v5015_v54  ;;  %2233 = vmatmul.mubr.msk.f32.gmra.mrb[74].mxu1 %vm53_vm0, %v3517_v56 }
 0x17d   :  { %1341 = vmatprep.mubr.f32.mxu1 %v5015_v54 }
 0x17f   :  { %2252 = vmatmul.mubr.msk.f32.gmra.mrb[76].mxu0 %vm53_vm0, %v3780_v13 }
 0x180   :  { %1520 = vmatprep.mubr.f32.mxu0 %v5015_v54  ;;  %2234 = vmatmul.mubr.msk.f32.gmra.mrb[76].mxu1 %vm53_vm0, %v3584_v45 }
 0x181   :  { %1347 = vmatprep.mubr.f32.mxu1 %v5015_v54 }
 0x183   :  { %2253 = vmatmul.mubr.msk.f32.gmra.mrb[78].mxu0 %vm53_vm0, %v3802_v22 }
 0x184   :  { %1526 = vmatprep.mubr.f32.mxu0 %v5015_v54  ;;  %2235 = vmatmul.mubr.msk.f32.gmra.mrb[78].mxu1 %vm53_vm0, %v3626_v40 }
 0x185   :  { %1353 = vmatprep.mubr.f32.mxu1 %v5015_v54 }
 0x187   :  { %2254 = vmatmul.mubr.msk.f32.gmra.mrb[80].mxu0 %vm53_vm0, %v3818_v49 }
 0x188   :  { %1532 = vmatprep.mubr.f32.mxu0 %v5015_v54  ;;  %2236 = vmatmul.mubr.msk.f32.gmra.mrb[80].mxu1 %vm53_vm0, %v3642_v60 }
 0x189   :  { %1359 = vmatprep.mubr.f32.mxu1 %v5015_v54 }
 0x18b   :  { %2255 = vmatmul.mubr.msk.f32.gmra.mrb[82].mxu0 %vm53_vm0, %v3834_v29 }
 0x18c   :  { %1538 = vmatprep.mubr.f32.mxu0 %v5015_v54  ;;  %2237 = vmatmul.mubr.msk.f32.gmra.mrb[82].mxu1 %vm53_vm0, %v3665_v8 }
 0x18d   :  { %1365 = vmatprep.mubr.f32.mxu1 %v5015_v54 }
 0x18f   :  { %2256 = vmatmul.mubr.msk.f32.gmra.mrb[84].mxu0 %vm53_vm0, %v3848_v18 }
 0x190   :  { %1544 = vmatprep.mubr.f32.mxu0 %v5015_v54  ;;  %2238 = vmatmul.mubr.msk.f32.gmra.mrb[84].mxu1 %vm53_vm0, %v3694_v48 }
 0x191   :  { %1371 = vmatprep.mubr.f32.mxu1 %v5015_v54 }
 0x193   :  { %2257 = vmatmul.mubr.msk.f32.gmra.mrb[86].mxu0 %vm53_vm0, %v3861_v47 }
 0x194   :  { %1550 = vmatprep.mubr.f32.mxu0 %v5015_v54  ;;  %2239 = vmatmul.mubr.msk.f32.gmra.mrb[86].mxu1 %vm53_vm0, %v3709_v16 }
 0x195   :  { %1377 = vmatprep.mubr.f32.mxu1 %v5015_v54 }
 0x197   :  { %2258 = vmatmul.mubr.msk.f32.gmra.mrb[88].mxu0 %vm53_vm0, %v3871_v28 }
 0x198   :  { %1556 = vmatprep.mubr.f32.mxu0 %v5015_v54  ;;  %2240 = vmatmul.mubr.msk.f32.gmra.mrb[88].mxu1 %vm53_vm0, %v3727_v23 }
 0x199   :  { %2373 = vmatprep.mubr.msk.f32.mxu1 %vm53_vm0, %v5020_v4 }
 0x19b   :  { %2259 = vmatmul.mubr.msk.f32.gmra.mrb[90].mxu0 %vm53_vm0, %v3880_v14 }
 0x19c   :  { %1562 = vmatprep.mubr.f32.mxu0 %v5015_v54  ;;  %2374 = vmatmul.mubr.msk.f32.vlgmr.msra.gmra.mrb[90].mxu1 %vm53_vm0, %v3492_v50 }
 0x19d   :  { %2376 = vmatprep.mubr.msk.f32.mxu1 %vm53_vm0, %v3565_v31 }
 0x19f   :  { %2260 = vmatmul.mubr.msk.f32.gmra.mrb[92].mxu0 %vm53_vm0, %v3889_v35 }
 0x1a0   :  { %1568 = vmatprep.mubr.f32.mxu0 %v5015_v54  ;;  %2377 = vmatmul.mubr.msk.f32.gmra.mrb[92].mxu1 %vm53_vm0, %v3609_v2 }
 0x1a1   :  { %2379 = vmatprep.mubr.msk.f32.mxu1 %vm53_vm0, %v3635_v51 }
 0x1a3   :  { %2261 = vmatmul.mubr.msk.f32.gmra.mrb[94].mxu0 %vm53_vm0, %v3898_v12 }
 0x1a4   :  { %1574 = vmatprep.mubr.f32.mxu0 %v5015_v54  ;;  %2380 = vmatmul.mubr.msk.f32.gmra.mrb[94].mxu1 %vm53_vm0, %v3659_v1 }
 0x1a5   :  { %2382 = vmatprep.mubr.msk.f32.mxu1 %vm53_vm0, %v3681_v11 }
 0x1a7   :  { %2262 = vmatmul.mubr.msk.f32.gmra.mrb[96].mxu0 %vm53_vm0, %v3907_v52 }
 0x1a8   :  { %1580 = vmatprep.mubr.f32.mxu0 %v5015_v54  ;;  %2383 = vmatmul.mubr.msk.f32.gmra.mrb[96].mxu1 %vm53_vm0, %v3698_v21 }
 0x1a9   :  { %2385 = vmatprep.mubr.msk.f32.mxu1 %vm53_vm0, %v3716_v17 }
 0x1ab   :  { %2263 = vmatmul.mubr.msk.f32.gmra.mrb[98].mxu0 %vm53_vm0, %v3916_v37 }
 0x1ac   :  { %1586 = vmatprep.mubr.f32.mxu0 %v5015_v54  ;;  %2386 = vmatmul.mubr.msk.f32.gmra.mrb[98].mxu1 %vm53_vm0, %v3735_v32 }
 0x1ad   :  { %2388 = vmatprep.mubr.msk.f32.mxu1 %vm53_vm0, %v3757_v42 }
 0x1af   :  { %2264 = vmatmul.mubr.msk.f32.gmra.mrb[100].mxu0 %vm53_vm0, %v3925_v62 }
 0x1b0   :  { %1592 = vmatprep.mubr.f32.mxu0 %v5015_v54  ;;  %2389 = vmatmul.mubr.msk.f32.gmra.mrb[100].mxu1 %vm53_vm0, %v3780_v13 }
 0x1b1   :  { %2391 = vmatprep.mubr.msk.f32.mxu1 %vm53_vm0, %v3802_v22 }
 0x1b3   :  { %2265 = vmatmul.mubr.msk.f32.gmra.mrb[102].mxu0 %vm53_vm0, %v3934_v20 }
 0x1b4   :  { %1598 = vmatprep.mubr.f32.mxu0 %v5015_v54  ;;  %2392 = vmatmul.mubr.msk.f32.gmra.mrb[102].mxu1 %vm53_vm0, %v3818_v49 }
 0x1b5   :  { %2394 = vmatprep.mubr.msk.f32.mxu1 %vm53_vm0, %v3834_v29 }
 0x1b7   :  { %2266 = vmatmul.mubr.msk.f32.gmra.mrb[104].mxu0 %vm53_vm0, %v3943_v41 }
 0x1b8   :  { %1604 = vmatprep.mubr.f32.mxu0 %v5015_v54  ;;  %2395 = vmatmul.mubr.msk.f32.gmra.mrb[104].mxu1 %vm53_vm0, %v3848_v18 }
 0x1b9   :  { %v888_v50 = vpop.f32.mrb[0].mxu0  ;;  %2397 = vmatprep.mubr.msk.f32.mxu1 %vm53_vm0, %v3861_v47 }
 0x1ba   :  { %1910 = vst [vmem:[%s4992_s4] sm:$0xff] %v888_v50  ;;  %v1050_v31 = vpop.f32.mrb[0].mxu1  ;;  %v890_v2 = vpop.f32.mrb[1].mxu0 }
 0x1bb   :  { %2267 = vmatmul.mubr.msk.f32.gmra.mrb[106].mxu0 %vm53_vm0, %v3952_v38  ;;  %2100 = vst [vmem:[%s4992_s4 + $0x5e8] sm:$0xff] %v1050_v31  ;;  %1911 = vst [vmem:[%s4992_s4 + $0x8] sm:$0xff] %v890_v2  ;;  %v1052_v51 = vpop.f32.mrb[1].mxu1 }
 0x1bc   :  { %1610 = vmatprep.mubr.f32.mxu0 %v5015_v54  ;;  %2101 = vst [vmem:[%s4992_s4 + $0x5f0] sm:$0xff] %v1052_v51  ;;  %2398 = vmatmul.mubr.msk.f32.gmra.mrb[106].mxu1 %vm53_vm0, %v3871_v28 }
 0x1bd   :  { %2400 = vmatprep.mubr.msk.f32.mxu1 %vm53_vm0, %v3880_v14 }
 0x1be   :  { %v894_v1 = vpop.f32.mrb[2].mxu0  ;;  %v1056_v11 = vpop.f32.mrb[2].mxu1 }
 0x1bf   :  { %1918 = vst [vmem:[%s4992_s4 + $0x38] sm:$0xff] %v894_v1  ;;  %v896_v21 = vpop.f32.mrb[3].mxu0  ;;  %2268 = vmatmul.mubr.msk.f32.gmra.mrb[108].mxu0 %vm53_vm0, %v5025_v63  ;;  %2107 = vst [vmem:[%s4992_s4 + $0x620] sm:$0xff] %v1056_v11  ;;  %v1058_v17 = vpop.f32.mrb[3].mxu1 }
 0x1c0   :  { %1919 = vst [vmem:[%s4992_s4 + $0x40] sm:$0xff] %v896_v21  ;;  %1616 = vmatprep.mubr.f32.mxu0 %v5015_v54  ;;  %2108 = vst [vmem:[%s4992_s4 + $0x628] sm:$0xff] %v1058_v17  ;;  %2401 = vmatmul.mubr.msk.f32.gmra.mrb[108].mxu1 %vm53_vm0, %v3889_v35 }
 0x1c1   :  { %2403 = vmatprep.mubr.msk.f32.mxu1 %vm53_vm0, %v3898_v12 }
 0x1c2   :  { %v900_v32 = vpop.f32.mrb[4].mxu0 }
 0x1c3   :  { %1925 = vst [vmem:[%s4992_s4 + $0x70] sm:$0xff] %v900_v32  ;;  %v1062_v42 = vpop.f32.mrb[4].mxu1  ;;  %v902_v4 = vpop.f32.mrb[5].mxu0  ;;  %2269 = vmatmul.mubr.msk.f32.gmra.mrb[110].mxu0 %vm53_vm0, %v3517_v56 }
 0x1c4   :  { %2114 = vst [vmem:[%s4992_s4 + $0x658] sm:$0xff] %v1062_v42  ;;  %1926 = vst [vmem:[%s4992_s4 + $0x78] sm:$0xff] %v902_v4  ;;  %v1064_v13 = vpop.f32.mrb[5].mxu1  ;;  %1622 = vmatprep.mubr.f32.mxu0 %v5015_v54  ;;  %2404 = vmatmul.mubr.msk.f32.gmra.mrb[110].mxu1 %vm53_vm0, %v3907_v52 }
 0x1c5   :  { %2115 = vst [vmem:[%s4992_s4 + $0x660] sm:$0xff] %v1064_v13  ;;  %2406 = vmatprep.mubr.msk.f32.mxu1 %vm53_vm0, %v3916_v37 }
 0x1c6   :  { %v906_v22 = vpop.f32.mrb[6].mxu0 }
 0x1c7   :  { %1932 = vst [vmem:[%s4992_s4 + $0xa8] sm:$0xff] %v906_v22  ;;  %v1068_v49 = vpop.f32.mrb[6].mxu1  ;;  %v908_v29 = vpop.f32.mrb[7].mxu0  ;;  %2270 = vmatmul.mubr.msk.f32.gmra.mrb[112].mxu0 %vm53_vm0, %v3584_v45 }
 0x1c8   :  { %2121 = vst [vmem:[%s4992_s4 + $0x690] sm:$0xff] %v1068_v49  ;;  %1933 = vst [vmem:[%s4992_s4 + $0xb0] sm:$0xff] %v908_v29  ;;  %v1070_v18 = vpop.f32.mrb[7].mxu1  ;;  %1628 = vmatprep.mubr.f32.mxu0 %v5015_v54  ;;  %2407 = vmatmul.mubr.msk.f32.gmra.mrb[112].mxu1 %vm53_vm0, %v3925_v62 }
 0x1c9   :  { %2122 = vst [vmem:[%s4992_s4 + $0x698] sm:$0xff] %v1070_v18  ;;  %2409 = vmatprep.mubr.msk.f32.mxu1 %vm53_vm0, %v3934_v20 }
 0x1ca   :  { %v912_v3 = vpop.f32.mrb[8].mxu0 }
 0x1cb   :  { %1939 = vst [vmem:[%s4992_s4 + $0xe0] sm:$0xff] %v912_v3  ;;  %v1074_v43 = vpop.f32.mrb[8].mxu1  ;;  %v914_v46 = vpop.f32.mrb[9].mxu0  ;;  %2271 = vmatmul.mubr.msk.f32.gmra.mrb[114].mxu0 %vm53_vm0, %v3626_v40 }
 0x1cc   :  { %2128 = vst [vmem:[%s4992_s4 + $0x6c8] sm:$0xff] %v1074_v43  ;;  %1940 = vst [vmem:[%s4992_s4 + $0xe8] sm:$0xff] %v914_v46  ;;  %v1076_v47 = vpop.f32.mrb[9].mxu1  ;;  %1634 = vmatprep.mubr.f32.mxu0 %v5015_v54  ;;  %2410 = vmatmul.mubr.msk.f32.gmra.mrb[114].mxu1 %vm53_vm0, %v3943_v41 }
 0x1cd   :  { %2129 = vst [vmem:[%s4992_s4 + $0x6d0] sm:$0xff] %v1076_v47  ;;  %2412 = vmatprep.mubr.msk.f32.mxu1 %vm53_vm0, %v3952_v38 }
 0x1ce   :  { %v918_v33 = vpop.f32.mrb[10].mxu0 }
 0x1cf   :  { %1946 = vst [vmem:[%s4992_s4 + $0x118] sm:$0xff] %v918_v33  ;;  %v1080_v57 = vpop.f32.mrb[10].mxu1  ;;  %v920_v30 = vpop.f32.mrb[11].mxu0  ;;  %2272 = vmatmul.mubr.msk.f32.gmra.mrb[116].mxu0 %vm53_vm0, %v3642_v60 }
 0x1d0   :  { %2135 = vst [vmem:[%s4992_s4 + $0x700] sm:$0xff] %v1080_v57  ;;  %1947 = vst [vmem:[%s4992_s4 + $0x120] sm:$0xff] %v920_v30  ;;  %v1082_v39 = vpop.f32.mrb[11].mxu1  ;;  %1640 = vmatprep.mubr.f32.mxu0 %v5015_v54  ;;  %2413 = vmatmul.mubr.msk.f32.gmra.mrb[116].mxu1 %vm53_vm0, %v5025_v63 }
 0x1d1   :  { %2136 = vst [vmem:[%s4992_s4 + $0x708] sm:$0xff] %v1082_v39  ;;  %2415 = vmatprep.mubr.msk.f32.mxu1 %vm53_vm0, %v3517_v56 }
 0x1d2   :  { %v924_v5 = vpop.f32.mrb[12].mxu0 }
 0x1d3   :  { %1953 = vst [vmem:[%s4992_s4 + $0x150] sm:$0xff] %v924_v5  ;;  %v926_v28 = vpop.f32.mrb[13].mxu0  ;;  %2273 = vmatmul.mubr.msk.f32.gmra.mrb[118].mxu0 %vm53_vm0, %v3665_v8  ;;  %v1086_v53 = vpop.f32.mrb[12].mxu1 }
 0x1d4   :  { %1954 = vst [vmem:[%s4992_s4 + $0x158] sm:$0xff] %v926_v28  ;;  %1646 = vmatprep.mubr.f32.mxu0 %v5015_v54  ;;  %2142 = vst [vmem:[%s4992_s4 + $0x738] sm:$0xff] %v1086_v53  ;;  %v1088_v56 = vpop.f32.mrb[13].mxu1  ;;  %2416 = vmatmul.mubr.msk.f32.gmra.mrb[118].mxu1 %vm53_vm0, %v3584_v45 }
 0x1d5   :  { %2143 = vst [vmem:[%s4992_s4 + $0x740] sm:$0xff] %v1088_v56  ;;  %2418 = vmatprep.mubr.msk.f32.mxu1 %vm53_vm0, %v3626_v40 }
 0x1d6   :  { %v930_v26 = vpop.f32.mrb[14].mxu0 }
 0x1d7   :  { %1960 = vst [vmem:[%s4992_s4 + $0x188] sm:$0xff] %v930_v26  ;;  %v932_v25 = vpop.f32.mrb[15].mxu0  ;;  %2274 = vmatmul.mubr.msk.f32.gmra.mrb[120].mxu0 %vm53_vm0, %v3694_v48  ;;  %v1092_v27 = vpop.f32.mrb[14].mxu1 }
 0x1d8   :  { %1961 = vst [vmem:[%s4992_s4 + $0x190] sm:$0xff] %v932_v25  ;;  %1652 = vmatprep.mubr.f32.mxu0 %v5015_v54  ;;  %2149 = vst [vmem:[%s4992_s4 + $0x770] sm:$0xff] %v1092_v27  ;;  %v1094_v45 = vpop.f32.mrb[15].mxu1  ;;  %2419 = vmatmul.mubr.msk.f32.gmra.mrb[120].mxu1 %vm53_vm0, %v3642_v60 }
 0x1d9   :  { %2150 = vst [vmem:[%s4992_s4 + $0x778] sm:$0xff] %v1094_v45  ;;  %2421 = vmatprep.mubr.msk.f32.mxu1 %vm53_vm0, %v3665_v8 }
 0x1da   :  { %v936_v40 = vpop.f32.mrb[16].mxu0 }
 0x1db   :  { %1967 = vst [vmem:[%s4992_s4 + $0x1c0] sm:$0xff] %v936_v40  ;;  %v938_v14 = vpop.f32.mrb[17].mxu0  ;;  %2275 = vmatmul.mubr.msk.f32.gmra.mrb[122].mxu0 %vm53_vm0, %v3709_v16  ;;  %v1098_v44 = vpop.f32.mrb[16].mxu1 }
 0x1dc   :  { %1968 = vst [vmem:[%s4992_s4 + $0x1c8] sm:$0xff] %v938_v14  ;;  %1658 = vmatprep.mubr.f32.mxu0 %v5015_v54  ;;  %2156 = vst [vmem:[%s4992_s4 + $0x7a8] sm:$0xff] %v1098_v44  ;;  %v1100_v60 = vpop.f32.mrb[17].mxu1  ;;  %2422 = vmatmul.mubr.msk.f32.gmra.mrb[122].mxu1 %vm53_vm0, %v3694_v48 }
 0x1dd   :  { %2157 = vst [vmem:[%s4992_s4 + $0x7b0] sm:$0xff] %v1100_v60  ;;  %2424 = vmatprep.mubr.msk.f32.mxu1 %vm53_vm0, %v3709_v16 }
 0x1de   :  { %v942_v8 = vpop.f32.mrb[18].mxu0 }
 0x1df   :  { %1974 = vst [vmem:[%s4992_s4 + $0x1f8] sm:$0xff] %v942_v8  ;;  %v944_v54 = vpop.f32.mrb[19].mxu0  ;;  %2276 = vmatmul.mubr.msk.f32.gmra.mrb[124].mxu0 %vm53_vm0, %v3727_v23  ;;  %v1169_v10 = vpop.f32.mrb[18].mxu1 }
 0x1e0   :  { %1975 = vst [vmem:[%s4992_s4 + $0x200] sm:$0xff] %v944_v54  ;;  %1912 = vst [vmem:[%s4992_s4 + $0x10] sm:$0xff] %v1169_v10  ;;  %v1171_v48 = vpop.f32.mrb[19].mxu1  ;;  %2425 = vmatmul.mubr.msk.f32.gmra.mrb[124].mxu1 %vm53_vm0, %v3727_v23 }
 0x1e1   :  { %1913 = vst [vmem:[%s4992_s4 + $0x18] sm:$0xff] %v1171_v48 }
 0x1e2   :  { %v948_v16 = vpop.f32.mrb[20].mxu0 }
 0x1e3   :  { %1981 = vst [vmem:[%s4992_s4 + $0x230] sm:$0xff] %v948_v16  ;;  %v950_v19 = vpop.f32.mrb[21].mxu0  ;;  %v1175_v35 = vpop.f32.mrb[20].mxu1 }
 0x1e4   :  { %1982 = vst [vmem:[%s4992_s4 + $0x238] sm:$0xff] %v950_v19  ;;  %1920 = vst [vmem:[%s4992_s4 + $0x48] sm:$0xff] %v1175_v35  ;;  %v1177_v23 = vpop.f32.mrb[21].mxu1 }
 0x1e5   :  { %1921 = vst [vmem:[%s4992_s4 + $0x50] sm:$0xff] %v1177_v23 }
 0x1e6   :  { %v954_v7 = vpop.f32.mrb[22].mxu0 }
 0x1e7   :  { %1988 = vst [vmem:[%s4992_s4 + $0x268] sm:$0xff] %v954_v7  ;;  %v956_v61 = vpop.f32.mrb[23].mxu0  ;;  %v1181_v58 = vpop.f32.mrb[22].mxu1 }
 0x1e8   :  { %1989 = vst [vmem:[%s4992_s4 + $0x270] sm:$0xff] %v956_v61  ;;  %1927 = vst [vmem:[%s4992_s4 + $0x80] sm:$0xff] %v1181_v58  ;;  %v1183_v12 = vpop.f32.mrb[23].mxu1 }
 0x1e9   :  { %1928 = vst [vmem:[%s4992_s4 + $0x88] sm:$0xff] %v1183_v12 }
 0x1ea   :  { %v960_v0 = vpop.f32.mrb[24].mxu0 }
 0x1eb   :  { %1995 = vst [vmem:[%s4992_s4 + $0x2a0] sm:$0xff] %v960_v0  ;;  %v962_v15 = vpop.f32.mrb[25].mxu0  ;;  %v1187_v36 = vpop.f32.mrb[24].mxu1 }
 0x1ec   :  { %1996 = vst [vmem:[%s4992_s4 + $0x2a8] sm:$0xff] %v962_v15  ;;  %1934 = vst [vmem:[%s4992_s4 + $0xb8] sm:$0xff] %v1187_v36  ;;  %v1189_v52 = vpop.f32.mrb[25].mxu1 }
 0x1ed   :  { %1935 = vst [vmem:[%s4992_s4 + $0xc0] sm:$0xff] %v1189_v52 }
 0x1ee   :  { %v966_v6 = vpop.f32.mrb[26].mxu0 }
 0x1ef   :  { %2002 = vst [vmem:[%s4992_s4 + $0x2d8] sm:$0xff] %v966_v6  ;;  %v968_v34 = vpop.f32.mrb[27].mxu0  ;;  %v1193_v37 = vpop.f32.mrb[26].mxu1 }
 0x1f0   :  { %2003 = vst [vmem:[%s4992_s4 + $0x2e0] sm:$0xff] %v968_v34  ;;  %1941 = vst [vmem:[%s4992_s4 + $0xf0] sm:$0xff] %v1193_v37  ;;  %v1195_v59 = vpop.f32.mrb[27].mxu1 }
 0x1f1   :  { %1942 = vst [vmem:[%s4992_s4 + $0xf8] sm:$0xff] %v1195_v59 }
 0x1f2   :  { %v972_v62 = vpop.f32.mrb[28].mxu0 }
 0x1f3   :  { %2009 = vst [vmem:[%s4992_s4 + $0x310] sm:$0xff] %v972_v62  ;;  %v974_v9 = vpop.f32.mrb[29].mxu0  ;;  %v1199_v20 = vpop.f32.mrb[28].mxu1 }
 0x1f4   :  { %2010 = vst [vmem:[%s4992_s4 + $0x318] sm:$0xff] %v974_v9  ;;  %1948 = vst [vmem:[%s4992_s4 + $0x128] sm:$0xff] %v1199_v20  ;;  %v1201_v24 = vpop.f32.mrb[29].mxu1 }
 0x1f5   :  { %1949 = vst [vmem:[%s4992_s4 + $0x130] sm:$0xff] %v1201_v24 }
 0x1f6   :  { %v978_v41 = vpop.f32.mrb[30].mxu0 }
 0x1f7   :  { %2016 = vst [vmem:[%s4992_s4 + $0x348] sm:$0xff] %v978_v41  ;;  %v980_v55 = vpop.f32.mrb[31].mxu0  ;;  %v1205_v38 = vpop.f32.mrb[30].mxu1 }
 0x1f8   :  { %2017 = vst [vmem:[%s4992_s4 + $0x350] sm:$0xff] %v980_v55  ;;  %1955 = vst [vmem:[%s4992_s4 + $0x160] sm:$0xff] %v1205_v38  ;;  %v1207_v63 = vpop.f32.mrb[31].mxu1 }
 0x1f9   :  { %1956 = vst [vmem:[%s4992_s4 + $0x168] sm:$0xff] %v1207_v63 }
 0x1fa   :  { %v984_v50 = vpop.f32.mrb[32].mxu0 }
 0x1fb   :  { %2023 = vst [vmem:[%s4992_s4 + $0x380] sm:$0xff] %v984_v50  ;;  %v986_v31 = vpop.f32.mrb[33].mxu0  ;;  %v1211_v2 = vpop.f32.mrb[32].mxu1 }
 0x1fc   :  { %2024 = vst [vmem:[%s4992_s4 + $0x388] sm:$0xff] %v986_v31  ;;  %1962 = vst [vmem:[%s4992_s4 + $0x198] sm:$0xff] %v1211_v2  ;;  %v1213_v51 = vpop.f32.mrb[33].mxu1 }
 0x1fd   :  { %1963 = vst [vmem:[%s4992_s4 + $0x1a0] sm:$0xff] %v1213_v51 }
 0x1fe   :  { %v990_v1 = vpop.f32.mrb[34].mxu0 }
 0x1ff   :  { %2030 = vst [vmem:[%s4992_s4 + $0x3b8] sm:$0xff] %v990_v1  ;;  %v992_v11 = vpop.f32.mrb[35].mxu0  ;;  %v1217_v21 = vpop.f32.mrb[34].mxu1 }
 0x200   :  { %2031 = vst [vmem:[%s4992_s4 + $0x3c0] sm:$0xff] %v992_v11  ;;  %1969 = vst [vmem:[%s4992_s4 + $0x1d0] sm:$0xff] %v1217_v21  ;;  %v1219_v17 = vpop.f32.mrb[35].mxu1 }
 0x201   :  { %1970 = vst [vmem:[%s4992_s4 + $0x1d8] sm:$0xff] %v1219_v17 }
 0x202   :  { %v996_v32 = vpop.f32.mrb[36].mxu0 }
 0x203   :  { %2037 = vst [vmem:[%s4992_s4 + $0x3f0] sm:$0xff] %v996_v32  ;;  %v998_v42 = vpop.f32.mrb[37].mxu0  ;;  %v1223_v4 = vpop.f32.mrb[36].mxu1 }
 0x204   :  { %2038 = vst [vmem:[%s4992_s4 + $0x3f8] sm:$0xff] %v998_v42  ;;  %1976 = vst [vmem:[%s4992_s4 + $0x208] sm:$0xff] %v1223_v4  ;;  %v1225_v13 = vpop.f32.mrb[37].mxu1 }
 0x205   :  { %1977 = vst [vmem:[%s4992_s4 + $0x210] sm:$0xff] %v1225_v13 }
 0x206   :  { %v1002_v22 = vpop.f32.mrb[38].mxu0 }
 0x207   :  { %2044 = vst [vmem:[%s4992_s4 + $0x428] sm:$0xff] %v1002_v22  ;;  %v1004_v49 = vpop.f32.mrb[39].mxu0  ;;  %v1229_v29 = vpop.f32.mrb[38].mxu1 }
 0x208   :  { %2045 = vst [vmem:[%s4992_s4 + $0x430] sm:$0xff] %v1004_v49  ;;  %1983 = vst [vmem:[%s4992_s4 + $0x240] sm:$0xff] %v1229_v29  ;;  %v1231_v18 = vpop.f32.mrb[39].mxu1 }
 0x209   :  { %1984 = vst [vmem:[%s4992_s4 + $0x248] sm:$0xff] %v1231_v18 }
 0x20a   :  { %v1008_v3 = vpop.f32.mrb[40].mxu0 }
 0x20b   :  { %2051 = vst [vmem:[%s4992_s4 + $0x460] sm:$0xff] %v1008_v3  ;;  %v1010_v43 = vpop.f32.mrb[41].mxu0  ;;  %v1235_v46 = vpop.f32.mrb[40].mxu1 }
 0x20c   :  { %2052 = vst [vmem:[%s4992_s4 + $0x468] sm:$0xff] %v1010_v43  ;;  %1990 = vst [vmem:[%s4992_s4 + $0x278] sm:$0xff] %v1235_v46  ;;  %v1237_v47 = vpop.f32.mrb[41].mxu1 }
 0x20d   :  { %1991 = vst [vmem:[%s4992_s4 + $0x280] sm:$0xff] %v1237_v47 }
 0x20e   :  { %v1014_v33 = vpop.f32.mrb[42].mxu0 }
 0x20f   :  { %2058 = vst [vmem:[%s4992_s4 + $0x498] sm:$0xff] %v1014_v33  ;;  %v1016_v57 = vpop.f32.mrb[43].mxu0  ;;  %v1241_v30 = vpop.f32.mrb[42].mxu1 }
 0x210   :  { %2059 = vst [vmem:[%s4992_s4 + $0x4a0] sm:$0xff] %v1016_v57  ;;  %1997 = vst [vmem:[%s4992_s4 + $0x2b0] sm:$0xff] %v1241_v30  ;;  %v1243_v39 = vpop.f32.mrb[43].mxu1 }
 0x211   :  { %1998 = vst [vmem:[%s4992_s4 + $0x2b8] sm:$0xff] %v1243_v39 }
 0x212   :  { %v1020_v5 = vpop.f32.mrb[44].mxu0 }
 0x213   :  { %2065 = vst [vmem:[%s4992_s4 + $0x4d0] sm:$0xff] %v1020_v5  ;;  %v1022_v28 = vpop.f32.mrb[45].mxu0  ;;  %v1247_v53 = vpop.f32.mrb[44].mxu1 }
 0x214   :  { %2066 = vst [vmem:[%s4992_s4 + $0x4d8] sm:$0xff] %v1022_v28  ;;  %2004 = vst [vmem:[%s4992_s4 + $0x2e8] sm:$0xff] %v1247_v53  ;;  %v1249_v56 = vpop.f32.mrb[45].mxu1 }
 0x215   :  { %2005 = vst [vmem:[%s4992_s4 + $0x2f0] sm:$0xff] %v1249_v56 }
 0x216   :  { %v1026_v26 = vpop.f32.mrb[46].mxu0 }
 0x217   :  { %2072 = vst [vmem:[%s4992_s4 + $0x508] sm:$0xff] %v1026_v26  ;;  %v1028_v25 = vpop.f32.mrb[47].mxu0  ;;  %v1253_v27 = vpop.f32.mrb[46].mxu1 }
 0x218   :  { %2073 = vst [vmem:[%s4992_s4 + $0x510] sm:$0xff] %v1028_v25  ;;  %2011 = vst [vmem:[%s4992_s4 + $0x320] sm:$0xff] %v1253_v27  ;;  %v1255_v45 = vpop.f32.mrb[47].mxu1 }
 0x219   :  { %2012 = vst [vmem:[%s4992_s4 + $0x328] sm:$0xff] %v1255_v45 }
 0x21a   :  { %v1032_v40 = vpop.f32.mrb[48].mxu0 }
 0x21b   :  { %2079 = vst [vmem:[%s4992_s4 + $0x540] sm:$0xff] %v1032_v40  ;;  %v1034_v14 = vpop.f32.mrb[49].mxu0  ;;  %v1259_v44 = vpop.f32.mrb[48].mxu1 }
 0x21c   :  { %2080 = vst [vmem:[%s4992_s4 + $0x548] sm:$0xff] %v1034_v14  ;;  %2018 = vst [vmem:[%s4992_s4 + $0x358] sm:$0xff] %v1259_v44  ;;  %v1261_v60 = vpop.f32.mrb[49].mxu1 }
 0x21d   :  { %2019 = vst [vmem:[%s4992_s4 + $0x360] sm:$0xff] %v1261_v60 }
 0x21e   :  { %v1038_v8 = vpop.f32.mrb[50].mxu0 }
 0x21f   :  { %2086 = vst [vmem:[%s4992_s4 + $0x578] sm:$0xff] %v1038_v8  ;;  %v1040_v54 = vpop.f32.mrb[51].mxu0  ;;  %v1265_v10 = vpop.f32.mrb[50].mxu1 }
 0x220   :  { %2087 = vst [vmem:[%s4992_s4 + $0x580] sm:$0xff] %v1040_v54  ;;  %2025 = vst [vmem:[%s4992_s4 + $0x390] sm:$0xff] %v1265_v10  ;;  %v1267_v48 = vpop.f32.mrb[51].mxu1 }
 0x221   :  { %2026 = vst [vmem:[%s4992_s4 + $0x398] sm:$0xff] %v1267_v48 }
 0x222   :  { %v1044_v16 = vpop.f32.mrb[52].mxu0 }
 0x223   :  { %2093 = vst [vmem:[%s4992_s4 + $0x5b0] sm:$0xff] %v1044_v16  ;;  %v1046_v19 = vpop.f32.mrb[53].mxu0  ;;  %v1271_v35 = vpop.f32.mrb[52].mxu1 }
 0x224   :  { %2094 = vst [vmem:[%s4992_s4 + $0x5b8] sm:$0xff] %v1046_v19  ;;  %2032 = vst [vmem:[%s4992_s4 + $0x3c8] sm:$0xff] %v1271_v35  ;;  %v1273_v23 = vpop.f32.mrb[53].mxu1 }
 0x225   :  { %2033 = vst [vmem:[%s4992_s4 + $0x3d0] sm:$0xff] %v1273_v23 }
 0x226   :  { %v1450_v7 = vpop.f32.mrb[54].mxu0 }
 0x227   :  { %1914 = vst [vmem:[%s4992_s4 + $0x20] sm:$0xff] %v1450_v7  ;;  %v1452_v61 = vpop.f32.mrb[55].mxu0  ;;  %v1277_v58 = vpop.f32.mrb[54].mxu1 }
 0x228   :  { %1915 = vst [vmem:[%s4992_s4 + $0x28] sm:$0xff] %v1452_v61  ;;  %2039 = vst [vmem:[%s4992_s4 + $0x400] sm:$0xff] %v1277_v58  ;;  %v1279_v12 = vpop.f32.mrb[55].mxu1 }
 0x229   :  { %2040 = vst [vmem:[%s4992_s4 + $0x408] sm:$0xff] %v1279_v12 }
 0x22a   :  { %v1456_v0 = vpop.f32.mrb[56].mxu0 }
 0x22b   :  { %1922 = vst [vmem:[%s4992_s4 + $0x58] sm:$0xff] %v1456_v0  ;;  %v1458_v15 = vpop.f32.mrb[57].mxu0  ;;  %v1283_v36 = vpop.f32.mrb[56].mxu1 }
 0x22c   :  { %1923 = vst [vmem:[%s4992_s4 + $0x60] sm:$0xff] %v1458_v15  ;;  %2046 = vst [vmem:[%s4992_s4 + $0x438] sm:$0xff] %v1283_v36  ;;  %v1285_v52 = vpop.f32.mrb[57].mxu1 }
 0x22d   :  { %2047 = vst [vmem:[%s4992_s4 + $0x440] sm:$0xff] %v1285_v52 }
 0x22e   :  { %v1462_v6 = vpop.f32.mrb[58].mxu0 }
 0x22f   :  { %1929 = vst [vmem:[%s4992_s4 + $0x90] sm:$0xff] %v1462_v6  ;;  %v1464_v34 = vpop.f32.mrb[59].mxu0  ;;  %v1289_v37 = vpop.f32.mrb[58].mxu1 }
 0x230   :  { %1930 = vst [vmem:[%s4992_s4 + $0x98] sm:$0xff] %v1464_v34  ;;  %2053 = vst [vmem:[%s4992_s4 + $0x470] sm:$0xff] %v1289_v37  ;;  %v1291_v59 = vpop.f32.mrb[59].mxu1 }
 0x231   :  { %2054 = vst [vmem:[%s4992_s4 + $0x478] sm:$0xff] %v1291_v59 }
 0x232   :  { %v1468_v62 = vpop.f32.mrb[60].mxu0 }
 0x233   :  { %1936 = vst [vmem:[%s4992_s4 + $0xc8] sm:$0xff] %v1468_v62  ;;  %v1470_v9 = vpop.f32.mrb[61].mxu0  ;;  %v1295_v20 = vpop.f32.mrb[60].mxu1 }
 0x234   :  { %1937 = vst [vmem:[%s4992_s4 + $0xd0] sm:$0xff] %v1470_v9  ;;  %2060 = vst [vmem:[%s4992_s4 + $0x4a8] sm:$0xff] %v1295_v20  ;;  %v1297_v24 = vpop.f32.mrb[61].mxu1 }
 0x235   :  { %2061 = vst [vmem:[%s4992_s4 + $0x4b0] sm:$0xff] %v1297_v24 }
 0x236   :  { %v1474_v41 = vpop.f32.mrb[62].mxu0 }
 0x237   :  { %1943 = vst [vmem:[%s4992_s4 + $0x100] sm:$0xff] %v1474_v41  ;;  %v1476_v55 = vpop.f32.mrb[63].mxu0  ;;  %v1301_v38 = vpop.f32.mrb[62].mxu1 }
 0x238   :  { %1944 = vst [vmem:[%s4992_s4 + $0x108] sm:$0xff] %v1476_v55  ;;  %2067 = vst [vmem:[%s4992_s4 + $0x4e0] sm:$0xff] %v1301_v38  ;;  %v1303_v63 = vpop.f32.mrb[63].mxu1 }
 0x239   :  { %2068 = vst [vmem:[%s4992_s4 + $0x4e8] sm:$0xff] %v1303_v63 }
 0x23a   :  { %v1480_v50 = vpop.f32.mrb[64].mxu0 }
 0x23b   :  { %1950 = vst [vmem:[%s4992_s4 + $0x138] sm:$0xff] %v1480_v50  ;;  %v1482_v31 = vpop.f32.mrb[65].mxu0  ;;  %v1307_v2 = vpop.f32.mrb[64].mxu1 }
 0x23c   :  { %1951 = vst [vmem:[%s4992_s4 + $0x140] sm:$0xff] %v1482_v31  ;;  %2074 = vst [vmem:[%s4992_s4 + $0x518] sm:$0xff] %v1307_v2  ;;  %v1309_v51 = vpop.f32.mrb[65].mxu1 }
 0x23d   :  { %2075 = vst [vmem:[%s4992_s4 + $0x520] sm:$0xff] %v1309_v51 }
 0x23e   :  { %v1486_v1 = vpop.f32.mrb[66].mxu0 }
 0x23f   :  { %1957 = vst [vmem:[%s4992_s4 + $0x170] sm:$0xff] %v1486_v1  ;;  %v1488_v11 = vpop.f32.mrb[67].mxu0  ;;  %v1313_v21 = vpop.f32.mrb[66].mxu1 }
 0x240   :  { %1958 = vst [vmem:[%s4992_s4 + $0x178] sm:$0xff] %v1488_v11  ;;  %2081 = vst [vmem:[%s4992_s4 + $0x550] sm:$0xff] %v1313_v21  ;;  %v1315_v17 = vpop.f32.mrb[67].mxu1 }
 0x241   :  { %2082 = vst [vmem:[%s4992_s4 + $0x558] sm:$0xff] %v1315_v17 }
 0x242   :  { %v1492_v32 = vpop.f32.mrb[68].mxu0 }
 0x243   :  { %1964 = vst [vmem:[%s4992_s4 + $0x1a8] sm:$0xff] %v1492_v32  ;;  %v1494_v42 = vpop.f32.mrb[69].mxu0  ;;  %v1319_v4 = vpop.f32.mrb[68].mxu1 }
 0x244   :  { %1965 = vst [vmem:[%s4992_s4 + $0x1b0] sm:$0xff] %v1494_v42  ;;  %2088 = vst [vmem:[%s4992_s4 + $0x588] sm:$0xff] %v1319_v4  ;;  %v1321_v13 = vpop.f32.mrb[69].mxu1 }
 0x245   :  { %2089 = vst [vmem:[%s4992_s4 + $0x590] sm:$0xff] %v1321_v13 }
 0x246   :  { %v1498_v22 = vpop.f32.mrb[70].mxu0 }
 0x247   :  { %1971 = vst [vmem:[%s4992_s4 + $0x1e0] sm:$0xff] %v1498_v22  ;;  %v1500_v49 = vpop.f32.mrb[71].mxu0  ;;  %v1325_v29 = vpop.f32.mrb[70].mxu1 }
 0x248   :  { %1972 = vst [vmem:[%s4992_s4 + $0x1e8] sm:$0xff] %v1500_v49  ;;  %2095 = vst [vmem:[%s4992_s4 + $0x5c0] sm:$0xff] %v1325_v29  ;;  %v1327_v18 = vpop.f32.mrb[71].mxu1 }
 0x249   :  { %2096 = vst [vmem:[%s4992_s4 + $0x5c8] sm:$0xff] %v1327_v18 }
 0x24a   :  { %v1504_v3 = vpop.f32.mrb[72].mxu0 }
 0x24b   :  { %1978 = vst [vmem:[%s4992_s4 + $0x218] sm:$0xff] %v1504_v3  ;;  %v1506_v43 = vpop.f32.mrb[73].mxu0  ;;  %v1331_v46 = vpop.f32.mrb[72].mxu1 }
 0x24c   :  { %1979 = vst [vmem:[%s4992_s4 + $0x220] sm:$0xff] %v1506_v43  ;;  %2102 = vst [vmem:[%s4992_s4 + $0x5f8] sm:$0xff] %v1331_v46  ;;  %v1333_v47 = vpop.f32.mrb[73].mxu1 }
 0x24d   :  { %2103 = vst [vmem:[%s4992_s4 + $0x600] sm:$0xff] %v1333_v47 }
 0x24e   :  { %v1510_v33 = vpop.f32.mrb[74].mxu0 }
 0x24f   :  { %1985 = vst [vmem:[%s4992_s4 + $0x250] sm:$0xff] %v1510_v33  ;;  %v1512_v57 = vpop.f32.mrb[75].mxu0  ;;  %v1337_v30 = vpop.f32.mrb[74].mxu1 }
 0x250   :  { %1986 = vst [vmem:[%s4992_s4 + $0x258] sm:$0xff] %v1512_v57  ;;  %2109 = vst [vmem:[%s4992_s4 + $0x630] sm:$0xff] %v1337_v30  ;;  %v1339_v39 = vpop.f32.mrb[75].mxu1 }
 0x251   :  { %2110 = vst [vmem:[%s4992_s4 + $0x638] sm:$0xff] %v1339_v39 }
 0x252   :  { %v1516_v5 = vpop.f32.mrb[76].mxu0 }
 0x253   :  { %1992 = vst [vmem:[%s4992_s4 + $0x288] sm:$0xff] %v1516_v5  ;;  %v1518_v28 = vpop.f32.mrb[77].mxu0  ;;  %v1343_v53 = vpop.f32.mrb[76].mxu1 }
 0x254   :  { %1993 = vst [vmem:[%s4992_s4 + $0x290] sm:$0xff] %v1518_v28  ;;  %2116 = vst [vmem:[%s4992_s4 + $0x668] sm:$0xff] %v1343_v53  ;;  %v1345_v56 = vpop.f32.mrb[77].mxu1 }
 0x255   :  { %2117 = vst [vmem:[%s4992_s4 + $0x670] sm:$0xff] %v1345_v56 }
 0x256   :  { %v1522_v26 = vpop.f32.mrb[78].mxu0 }
 0x257   :  { %1999 = vst [vmem:[%s4992_s4 + $0x2c0] sm:$0xff] %v1522_v26  ;;  %v1524_v25 = vpop.f32.mrb[79].mxu0  ;;  %v1349_v27 = vpop.f32.mrb[78].mxu1 }
 0x258   :  { %2000 = vst [vmem:[%s4992_s4 + $0x2c8] sm:$0xff] %v1524_v25  ;;  %2123 = vst [vmem:[%s4992_s4 + $0x6a0] sm:$0xff] %v1349_v27  ;;  %v1351_v45 = vpop.f32.mrb[79].mxu1 }
 0x259   :  { %2124 = vst [vmem:[%s4992_s4 + $0x6a8] sm:$0xff] %v1351_v45 }
 0x25a   :  { %v1528_v40 = vpop.f32.mrb[80].mxu0 }
 0x25b   :  { %2006 = vst [vmem:[%s4992_s4 + $0x2f8] sm:$0xff] %v1528_v40  ;;  %v1530_v14 = vpop.f32.mrb[81].mxu0  ;;  %v1355_v44 = vpop.f32.mrb[80].mxu1 }
 0x25c   :  { %2007 = vst [vmem:[%s4992_s4 + $0x300] sm:$0xff] %v1530_v14  ;;  %2130 = vst [vmem:[%s4992_s4 + $0x6d8] sm:$0xff] %v1355_v44  ;;  %v1357_v60 = vpop.f32.mrb[81].mxu1 }
 0x25d   :  { %2131 = vst [vmem:[%s4992_s4 + $0x6e0] sm:$0xff] %v1357_v60 }
 0x25e   :  { %v1534_v8 = vpop.f32.mrb[82].mxu0 }
 0x25f   :  { %2013 = vst [vmem:[%s4992_s4 + $0x330] sm:$0xff] %v1534_v8  ;;  %v1536_v54 = vpop.f32.mrb[83].mxu0  ;;  %v1361_v10 = vpop.f32.mrb[82].mxu1 }
 0x260   :  { %2014 = vst [vmem:[%s4992_s4 + $0x338] sm:$0xff] %v1536_v54  ;;  %2137 = vst [vmem:[%s4992_s4 + $0x710] sm:$0xff] %v1361_v10  ;;  %v1363_v48 = vpop.f32.mrb[83].mxu1 }
 0x261   :  { %2138 = vst [vmem:[%s4992_s4 + $0x718] sm:$0xff] %v1363_v48 }
 0x262   :  { %v1540_v16 = vpop.f32.mrb[84].mxu0 }
 0x263   :  { %2020 = vst [vmem:[%s4992_s4 + $0x368] sm:$0xff] %v1540_v16  ;;  %v1542_v19 = vpop.f32.mrb[85].mxu0  ;;  %v1367_v35 = vpop.f32.mrb[84].mxu1 }
 0x264   :  { %2021 = vst [vmem:[%s4992_s4 + $0x370] sm:$0xff] %v1542_v19  ;;  %2144 = vst [vmem:[%s4992_s4 + $0x748] sm:$0xff] %v1367_v35  ;;  %v1369_v23 = vpop.f32.mrb[85].mxu1 }
 0x265   :  { %2145 = vst [vmem:[%s4992_s4 + $0x750] sm:$0xff] %v1369_v23 }
 0x266   :  { %v1546_v7 = vpop.f32.mrb[86].mxu0 }
 0x267   :  { %2027 = vst [vmem:[%s4992_s4 + $0x3a0] sm:$0xff] %v1546_v7  ;;  %v1548_v61 = vpop.f32.mrb[87].mxu0  ;;  %v1373_v58 = vpop.f32.mrb[86].mxu1 }
 0x268   :  { %2028 = vst [vmem:[%s4992_s4 + $0x3a8] sm:$0xff] %v1548_v61  ;;  %2151 = vst [vmem:[%s4992_s4 + $0x780] sm:$0xff] %v1373_v58  ;;  %v1375_v12 = vpop.f32.mrb[87].mxu1 }
 0x269   :  { %2152 = vst [vmem:[%s4992_s4 + $0x788] sm:$0xff] %v1375_v12 }
 0x26a   :  { %v1552_v0 = vpop.f32.mrb[88].mxu0 }
 0x26b   :  { %2034 = vst [vmem:[%s4992_s4 + $0x3d8] sm:$0xff] %v1552_v0  ;;  %v1554_v15 = vpop.f32.mrb[89].mxu0  ;;  %v1379_v36 = vpop.f32.mrb[88].mxu1 }
 0x26c   :  { %2035 = vst [vmem:[%s4992_s4 + $0x3e0] sm:$0xff] %v1554_v15  ;;  %2158 = vst [vmem:[%s4992_s4 + $0x7b8] sm:$0xff] %v1379_v36  ;;  %v1381_v52 = vpop.f32.mrb[89].mxu1 }
 0x26d   :  { %2159 = vst [vmem:[%s4992_s4 + $0x7c0] sm:$0xff] %v1381_v52 }
 0x26e   :  { %v1558_v6 = vpop.f32.mrb[90].mxu0 }
 0x26f   :  { %2041 = vst [vmem:[%s4992_s4 + $0x410] sm:$0xff] %v1558_v6  ;;  %v1560_v34 = vpop.f32.mrb[91].mxu0  ;;  %v2375_v37 = vpop.f32.mrb[90].mxu1 }
 0x270   :  { %2042 = vst [vmem:[%s4992_s4 + $0x418] sm:$0xff] %v1560_v34  ;;  %1924 = vst.msk [vmem:[%s4992_s4 + $0x68] sm:$0xff] %vm1916_vm1, %v2375_v37  ;;  %v1731_v59 = vpop.f32.mrb[91].mxu1 }
 0x271   :  { %1917 = vst.msk [vmem:[%s4992_s4 + $0x30] sm:$0xff] %vm1916_vm1, %v1731_v59 }
 0x272   :  { %v1564_v62 = vpop.f32.mrb[92].mxu0 }
 0x273   :  { %2048 = vst [vmem:[%s4992_s4 + $0x448] sm:$0xff] %v1564_v62  ;;  %v1566_v9 = vpop.f32.mrb[93].mxu0  ;;  %v2378_v20 = vpop.f32.mrb[92].mxu1 }
 0x274   :  { %2049 = vst [vmem:[%s4992_s4 + $0x450] sm:$0xff] %v1566_v9  ;;  %1938 = vst.msk [vmem:[%s4992_s4 + $0xd8] sm:$0xff] %vm1916_vm1, %v2378_v20  ;;  %v1741_v24 = vpop.f32.mrb[93].mxu1 }
 0x275   :  { %1931 = vst.msk [vmem:[%s4992_s4 + $0xa0] sm:$0xff] %vm1916_vm1, %v1741_v24 }
 0x276   :  { %v1570_v41 = vpop.f32.mrb[94].mxu0 }
 0x277   :  { %2055 = vst [vmem:[%s4992_s4 + $0x480] sm:$0xff] %v1570_v41  ;;  %v1572_v55 = vpop.f32.mrb[95].mxu0  ;;  %v2381_v38 = vpop.f32.mrb[94].mxu1 }
 0x278   :  { %2056 = vst [vmem:[%s4992_s4 + $0x488] sm:$0xff] %v1572_v55  ;;  %1952 = vst.msk [vmem:[%s4992_s4 + $0x148] sm:$0xff] %vm1916_vm1, %v2381_v38  ;;  %v1751_v63 = vpop.f32.mrb[95].mxu1 }
 0x279   :  { %1945 = vst.msk [vmem:[%s4992_s4 + $0x110] sm:$0xff] %vm1916_vm1, %v1751_v63 }
 0x27a   :  { %v1576_v50 = vpop.f32.mrb[96].mxu0 }
 0x27b   :  { %2062 = vst [vmem:[%s4992_s4 + $0x4b8] sm:$0xff] %v1576_v50  ;;  %v1578_v31 = vpop.f32.mrb[97].mxu0  ;;  %v2384_v2 = vpop.f32.mrb[96].mxu1 }
 0x27c   :  { %2063 = vst [vmem:[%s4992_s4 + $0x4c0] sm:$0xff] %v1578_v31  ;;  %1966 = vst.msk [vmem:[%s4992_s4 + $0x1b8] sm:$0xff] %vm1916_vm1, %v2384_v2  ;;  %v1761_v51 = vpop.f32.mrb[97].mxu1 }
 0x27d   :  { %1959 = vst.msk [vmem:[%s4992_s4 + $0x180] sm:$0xff] %vm1916_vm1, %v1761_v51 }
 0x27e   :  { %v1582_v1 = vpop.f32.mrb[98].mxu0 }
 0x27f   :  { %2069 = vst [vmem:[%s4992_s4 + $0x4f0] sm:$0xff] %v1582_v1  ;;  %v1584_v11 = vpop.f32.mrb[99].mxu0  ;;  %v2387_v21 = vpop.f32.mrb[98].mxu1 }
 0x280   :  { %2070 = vst [vmem:[%s4992_s4 + $0x4f8] sm:$0xff] %v1584_v11  ;;  %1980 = vst.msk [vmem:[%s4992_s4 + $0x228] sm:$0xff] %vm1916_vm1, %v2387_v21  ;;  %v1771_v17 = vpop.f32.mrb[99].mxu1 }
 0x281   :  { %1973 = vst.msk [vmem:[%s4992_s4 + $0x1f0] sm:$0xff] %vm1916_vm1, %v1771_v17 }
 0x282   :  { %v1588_v32 = vpop.f32.mrb[100].mxu0 }
 0x283   :  { %2076 = vst [vmem:[%s4992_s4 + $0x528] sm:$0xff] %v1588_v32  ;;  %v1590_v42 = vpop.f32.mrb[101].mxu0  ;;  %v2390_v4 = vpop.f32.mrb[100].mxu1 }
 0x284   :  { %2077 = vst [vmem:[%s4992_s4 + $0x530] sm:$0xff] %v1590_v42  ;;  %1994 = vst.msk [vmem:[%s4992_s4 + $0x298] sm:$0xff] %vm1916_vm1, %v2390_v4  ;;  %v1781_v13 = vpop.f32.mrb[101].mxu1 }
 0x285   :  { %1987 = vst.msk [vmem:[%s4992_s4 + $0x260] sm:$0xff] %vm1916_vm1, %v1781_v13 }
 0x286   :  { %v1594_v22 = vpop.f32.mrb[102].mxu0 }
 0x287   :  { %2083 = vst [vmem:[%s4992_s4 + $0x560] sm:$0xff] %v1594_v22  ;;  %v1596_v49 = vpop.f32.mrb[103].mxu0  ;;  %v2393_v29 = vpop.f32.mrb[102].mxu1 }
 0x288   :  { %2084 = vst [vmem:[%s4992_s4 + $0x568] sm:$0xff] %v1596_v49  ;;  %2008 = vst.msk [vmem:[%s4992_s4 + $0x308] sm:$0xff] %vm1916_vm1, %v2393_v29  ;;  %v1791_v18 = vpop.f32.mrb[103].mxu1 }
 0x289   :  { %2001 = vst.msk [vmem:[%s4992_s4 + $0x2d0] sm:$0xff] %vm1916_vm1, %v1791_v18 }
 0x28a   :  { %v1600_v3 = vpop.f32.mrb[104].mxu0 }
 0x28b   :  { %2090 = vst [vmem:[%s4992_s4 + $0x598] sm:$0xff] %v1600_v3  ;;  %v1602_v43 = vpop.f32.mrb[105].mxu0  ;;  %v2396_v46 = vpop.f32.mrb[104].mxu1 }
 0x28c   :  { %2091 = vst [vmem:[%s4992_s4 + $0x5a0] sm:$0xff] %v1602_v43  ;;  %2022 = vst.msk [vmem:[%s4992_s4 + $0x378] sm:$0xff] %vm1916_vm1, %v2396_v46  ;;  %v1801_v47 = vpop.f32.mrb[105].mxu1 }
 0x28d   :  { %2015 = vst.msk [vmem:[%s4992_s4 + $0x340] sm:$0xff] %vm1916_vm1, %v1801_v47 }
 0x28e   :  { %v1606_v33 = vpop.f32.mrb[106].mxu0 }
 0x28f   :  { %2097 = vst [vmem:[%s4992_s4 + $0x5d0] sm:$0xff] %v1606_v33  ;;  %v1608_v57 = vpop.f32.mrb[107].mxu0  ;;  %v2399_v30 = vpop.f32.mrb[106].mxu1 }
 0x290   :  { %2098 = vst [vmem:[%s4992_s4 + $0x5d8] sm:$0xff] %v1608_v57  ;;  %2036 = vst.msk [vmem:[%s4992_s4 + $0x3e8] sm:$0xff] %vm1916_vm1, %v2399_v30  ;;  %v1811_v39 = vpop.f32.mrb[107].mxu1 }
 0x291   :  { %2029 = vst.msk [vmem:[%s4992_s4 + $0x3b0] sm:$0xff] %vm1916_vm1, %v1811_v39 }
 0x292   :  { %v1612_v5 = vpop.f32.mrb[108].mxu0 }
 0x293   :  { %2104 = vst [vmem:[%s4992_s4 + $0x608] sm:$0xff] %v1612_v5  ;;  %v1614_v28 = vpop.f32.mrb[109].mxu0  ;;  %v2402_v53 = vpop.f32.mrb[108].mxu1 }
 0x294   :  { %2105 = vst [vmem:[%s4992_s4 + $0x610] sm:$0xff] %v1614_v28  ;;  %2050 = vst.msk [vmem:[%s4992_s4 + $0x458] sm:$0xff] %vm1916_vm1, %v2402_v53  ;;  %v1821_v56 = vpop.f32.mrb[109].mxu1 }
 0x295   :  { %2043 = vst.msk [vmem:[%s4992_s4 + $0x420] sm:$0xff] %vm1916_vm1, %v1821_v56 }
 0x296   :  { %v1618_v26 = vpop.f32.mrb[110].mxu0 }
 0x297   :  { %2111 = vst [vmem:[%s4992_s4 + $0x640] sm:$0xff] %v1618_v26  ;;  %v1620_v25 = vpop.f32.mrb[111].mxu0  ;;  %v2405_v27 = vpop.f32.mrb[110].mxu1 }
 0x298   :  { %2112 = vst [vmem:[%s4992_s4 + $0x648] sm:$0xff] %v1620_v25  ;;  %2064 = vst.msk [vmem:[%s4992_s4 + $0x4c8] sm:$0xff] %vm1916_vm1, %v2405_v27  ;;  %v1831_v45 = vpop.f32.mrb[111].mxu1 }
 0x299   :  { %2057 = vst.msk [vmem:[%s4992_s4 + $0x490] sm:$0xff] %vm1916_vm1, %v1831_v45 }
 0x29a   :  { %v1624_v40 = vpop.f32.mrb[112].mxu0 }
 0x29b   :  { %2118 = vst [vmem:[%s4992_s4 + $0x678] sm:$0xff] %v1624_v40  ;;  %v1626_v14 = vpop.f32.mrb[113].mxu0  ;;  %v2408_v44 = vpop.f32.mrb[112].mxu1 }
 0x29c   :  { %2119 = vst [vmem:[%s4992_s4 + $0x680] sm:$0xff] %v1626_v14  ;;  %2078 = vst.msk [vmem:[%s4992_s4 + $0x538] sm:$0xff] %vm1916_vm1, %v2408_v44  ;;  %v1841_v60 = vpop.f32.mrb[113].mxu1 }
 0x29d   :  { %2071 = vst.msk [vmem:[%s4992_s4 + $0x500] sm:$0xff] %vm1916_vm1, %v1841_v60 }
 0x29e   :  { %v1630_v8 = vpop.f32.mrb[114].mxu0 }
 0x29f   :  { %2125 = vst [vmem:[%s4992_s4 + $0x6b0] sm:$0xff] %v1630_v8  ;;  %v1632_v54 = vpop.f32.mrb[115].mxu0  ;;  %v2411_v10 = vpop.f32.mrb[114].mxu1 }
 0x2a0   :  { %2126 = vst [vmem:[%s4992_s4 + $0x6b8] sm:$0xff] %v1632_v54  ;;  %2092 = vst.msk [vmem:[%s4992_s4 + $0x5a8] sm:$0xff] %vm1916_vm1, %v2411_v10  ;;  %v1851_v48 = vpop.f32.mrb[115].mxu1 }
 0x2a1   :  { %2085 = vst.msk [vmem:[%s4992_s4 + $0x570] sm:$0xff] %vm1916_vm1, %v1851_v48 }
 0x2a2   :  { %v1636_v16 = vpop.f32.mrb[116].mxu0 }
 0x2a3   :  { %2132 = vst [vmem:[%s4992_s4 + $0x6e8] sm:$0xff] %v1636_v16  ;;  %v1638_v19 = vpop.f32.mrb[117].mxu0  ;;  %v2414_v35 = vpop.f32.mrb[116].mxu1 }
 0x2a4   :  { %2133 = vst [vmem:[%s4992_s4 + $0x6f0] sm:$0xff] %v1638_v19  ;;  %2106 = vst.msk [vmem:[%s4992_s4 + $0x618] sm:$0xff] %vm1916_vm1, %v2414_v35  ;;  %v1861_v23 = vpop.f32.mrb[117].mxu1 }
 0x2a5   :  { %2099 = vst.msk [vmem:[%s4992_s4 + $0x5e0] sm:$0xff] %vm1916_vm1, %v1861_v23 }
 0x2a6   :  { %v1642_v7 = vpop.f32.mrb[118].mxu0 }
 0x2a7   :  { %2139 = vst [vmem:[%s4992_s4 + $0x720] sm:$0xff] %v1642_v7  ;;  %v1644_v61 = vpop.f32.mrb[119].mxu0  ;;  %v2417_v58 = vpop.f32.mrb[118].mxu1 }
 0x2a8   :  { %2140 = vst [vmem:[%s4992_s4 + $0x728] sm:$0xff] %v1644_v61  ;;  %2120 = vst.msk [vmem:[%s4992_s4 + $0x688] sm:$0xff] %vm1916_vm1, %v2417_v58  ;;  %v1871_v12 = vpop.f32.mrb[119].mxu1 }
 0x2a9   :  { %2113 = vst.msk [vmem:[%s4992_s4 + $0x650] sm:$0xff] %vm1916_vm1, %v1871_v12 }
 0x2aa   :  { %v1648_v0 = vpop.f32.mrb[120].mxu0 }
 0x2ab   :  { %2146 = vst [vmem:[%s4992_s4 + $0x758] sm:$0xff] %v1648_v0  ;;  %v1650_v15 = vpop.f32.mrb[121].mxu0  ;;  %v2420_v36 = vpop.f32.mrb[120].mxu1 }
 0x2ac   :  { %2147 = vst [vmem:[%s4992_s4 + $0x760] sm:$0xff] %v1650_v15  ;;  %2134 = vst.msk [vmem:[%s4992_s4 + $0x6f8] sm:$0xff] %vm1916_vm1, %v2420_v36  ;;  %v1881_v52 = vpop.f32.mrb[121].mxu1 }
 0x2ad   :  { %2127 = vst.msk [vmem:[%s4992_s4 + $0x6c0] sm:$0xff] %vm1916_vm1, %v1881_v52 }
 0x2ae   :  { %v1654_v6 = vpop.f32.mrb[122].mxu0 }
 0x2af   :  { %2153 = vst [vmem:[%s4992_s4 + $0x790] sm:$0xff] %v1654_v6  ;;  %v1656_v34 = vpop.f32.mrb[123].mxu0  ;;  %v2423_v37 = vpop.f32.mrb[122].mxu1 }
 0x2b0   :  { %2154 = vst [vmem:[%s4992_s4 + $0x798] sm:$0xff] %v1656_v34  ;;  %2148 = vst.msk [vmem:[%s4992_s4 + $0x768] sm:$0xff] %vm1916_vm1, %v2423_v37  ;;  %v1891_v59 = vpop.f32.mrb[123].mxu1 }
 0x2b1   :  { %2141 = vst.msk [vmem:[%s4992_s4 + $0x730] sm:$0xff] %vm1916_vm1, %v1891_v59 }
 0x2b2   :  { %v1660_v62 = vpop.f32.mrb[124].mxu0 }
 0x2b3   :  { %2160 = vst [vmem:[%s4992_s4 + $0x7c8] sm:$0xff] %v1660_v62  ;;  %v1662_v9 = vpop.f32.mrb[125].mxu0  ;;  %v2426_v20 = vpop.f32.mrb[124].mxu1 }
 0x2b4   :  { %2161 = vst [vmem:[%s4992_s4 + $0x7d0] sm:$0xff] %v1662_v9  ;;  %2162 = vst.msk [vmem:[%s4992_s4 + $0x7d8] sm:$0xff] %vm1916_vm1, %v2426_v20  ;;  %v1901_v24 = vpop.f32.mrb[125].mxu1 }
 0x2b5   :  { %2155 = vst.msk [vmem:[%s4992_s4 + $0x7a0] sm:$0xff] %vm1916_vm1, %v1901_v24 }

// kernel: image_decoder_forward.10
= control target key start
LH: loop header
LB: loop body
LE: loop exit
PB: predicated region body
PF: predicated region fallthrough
CT: control target
= control target key end

     0   :  { %v6238_v0 = vmov 0.0|0.0   ;;  %vm489_vm0 = vcmask 261120   ;;  %vm6239_vm1 = vmmov 0   ;;  %v10800_v6 = vmov 0.0   ;;  %s10795_s3 = inlined_call_operand.vmem [shape: f32[32,16], index: 3, kind: input, shape index: {}]   ;;  %s10796_s0 = inlined_call_operand.vmem [shape: f32[1256,32], index: 0, kind: input, shape index: {}]   ;;  %s10797_s1 = inlined_call_operand.vmem [shape: f32[1,32], index: 1, kind: input, shape index: {}]   ;;  %s10798_s2 = inlined_call_operand.vmem [shape: f32[1,32], index: 2, kind: input, shape index: {}]   ;;  %s10799_s4 = inlined_call_operand.vmem [shape: f32[1256,16], index: 4, kind: output, shape index: {}]  }
   0x1   :  { %5473 = vmatprep.subr.bf16.mxu0 %v6238_v0  ;;  %v3187_v1 = vld [vmem:[%s10795_s3] sm:$0xff]  ;;  %v3188_v2 = vld [vmem:[%s10795_s3 + $0x8] sm:$0xff]  ;;  %5479 = vmatprep.subr.bf16.mxu1 %v6238_v0  ;;  %v3189_v3 = vld [vmem:[%s10795_s3 + $0x10] sm:$0xff]  ;;  %vm4512_vm3 = vcmask 130048  }
   0x2   :  { %v5474_v4 = vpack.c.bf16 %v3188_v2, %v3187_v1  ;;  %v3190_v5 = vld [vmem:[%s10795_s3 + $0x18] sm:$0xff]  ;;  %5002 = vmatprep.mubr.msk.f32.mxu0 %vm6239_vm1, %v10800_v6  ;;  %v6283_v7 = vld [vmem:[%s10796_s0] sm:$0xff]  ;;  %v6288_v8 = vld [vmem:[%s10796_s0 + $0x8] sm:$0xff]  ;;  %5239 = vmatprep.mubr.msk.f32.mxu1 %vm6239_vm1, %v10800_v6 }
   0x3   :  { %v6295_v9 = vld [vmem:[%s10796_s0 + $0x10] sm:$0xff]  ;;  %v6300_v10 = vld [vmem:[%s10796_s0 + $0x18] sm:$0xff]  ;;  %v490_v11 = vsel %vm489_vm0, %v6283_v7, 0.0  ;;  %v491_v12 = vsel %vm489_vm0, %v6288_v8, 0.0  ;;  %v5477_v13 = vpack.c.bf16 %v3190_v5, %v3189_v3  ;;  %v6309_v14 = vld [vmem:[%s10796_s0 + $0x20] sm:$0xff] }
   0x4   :  { %5475 = vmatpush3.bf16.msra.mxu0 %v5474_v4  ;;  %5481 = vmatpush3.bf16.msra.mxu1 %v5474_v4  ;;  %v492_v15 = vadd.f32 %v491_v12, %v490_v11  ;;  %v493_v16 = vsel %vm489_vm0, %v6295_v9, 0.0  ;;  %v495_v17 = vsel %vm489_vm0, %v6300_v10, 0.0  ;;  %v6318_v18 = vld [vmem:[%s10796_s0 + $0x28] sm:$0xff]  ;;  %v497_v20 = vsel %vm489_vm0, %v6309_v14, 0.0  ;;  %v6325_v21 = vld [vmem:[%s10796_s0 + $0x30] sm:$0xff]  ;;  %v6332_v24 = vld [vmem:[%s10796_s0 + $0x38] sm:$0xff] }
   0x5   :  { %5476 = vmatprep.subr.bf16.mxu0 %v6238_v0  ;;  %5480 = vmatprep.subr.bf16.mxu1 %v6238_v0  ;;  %v499_v23 = vsel %vm489_vm0, %v6318_v18, 0.0  ;;  %v501_v26 = vsel %vm489_vm0, %v6325_v21, 0.0  ;;  %v6339_v27 = vld [vmem:[%s10796_s0 + $0x40] sm:$0xff]  ;;  %v503_v29 = vsel %vm489_vm0, %v6332_v24, 0.0  ;;  %v6346_v30 = vld [vmem:[%s10796_s0 + $0x48] sm:$0xff]  ;;  %v6353_v33 = vld [vmem:[%s10796_s0 + $0x50] sm:$0xff] }
   0x6   :  { %v494_v19 = vadd.f32 %v493_v16, %v492_v15  ;;  %v505_v32 = vsel %vm489_vm0, %v6339_v27, 0.0  ;;  %v507_v35 = vsel %vm489_vm0, %v6346_v30, 0.0  ;;  %v6360_v36 = vld [vmem:[%s10796_s0 + $0x58] sm:$0xff]  ;;  %v509_v38 = vsel %vm489_vm0, %v6353_v33, 0.0  ;;  %v6367_v39 = vld [vmem:[%s10796_s0 + $0x60] sm:$0xff]  ;;  %v6374_v42 = vld [vmem:[%s10796_s0 + $0x68] sm:$0xff] }
   0x7   :  { %v511_v41 = vsel %vm489_vm0, %v6360_v36, 0.0  ;;  %v513_v44 = vsel %vm489_vm0, %v6367_v39, 0.0  ;;  %v6381_v45 = vld [vmem:[%s10796_s0 + $0x70] sm:$0xff]  ;;  %v515_v47 = vsel %vm489_vm0, %v6374_v42, 0.0  ;;  %v6388_v48 = vld [vmem:[%s10796_s0 + $0x78] sm:$0xff]  ;;  %v6395_v51 = vld [vmem:[%s10796_s0 + $0x80] sm:$0xff] }
   0x8   :  { %5478 = vmatpush3.bf16.msra.mxu0 %v5477_v13  ;;  %5482 = vmatpush3.bf16.msra.mxu1 %v5477_v13  ;;  %v496_v22 = vadd.f32 %v495_v17, %v494_v19  ;;  %v517_v50 = vsel %vm489_vm0, %v6381_v45, 0.0  ;;  %v519_v53 = vsel %vm489_vm0, %v6388_v48, 0.0  ;;  %v6402_v54 = vld [vmem:[%s10796_s0 + $0x88] sm:$0xff]  ;;  %v521_v56 = vsel %vm489_vm0, %v6395_v51, 0.0  ;;  %v6409_v57 = vld [vmem:[%s10796_s0 + $0x90] sm:$0xff]  ;;  %v6416_v60 = vld [vmem:[%s10796_s0 + $0x98] sm:$0xff] }
   0x9   :  { %v523_v59 = vsel %vm489_vm0, %v6402_v54, 0.0  ;;  %v525_v62 = vsel %vm489_vm0, %v6409_v57, 0.0  ;;  %v6423_v63 = vld [vmem:[%s10796_s0 + $0xa0] sm:$0xff]  ;;  %v527_v1 = vsel %vm489_vm0, %v6416_v60, 0.0  ;;  %v6430_v2 = vld [vmem:[%s10796_s0 + $0xa8] sm:$0xff]  ;;  %v6437_v5 = vld [vmem:[%s10796_s0 + $0xb0] sm:$0xff] }
   0xa   :  { %v498_v25 = vadd.f32 %v497_v20, %v496_v22  ;;  %v529_v4 = vsel %vm489_vm0, %v6423_v63, 0.0  ;;  %v531_v12 = vsel %vm489_vm0, %v6430_v2, 0.0  ;;  %v6444_v13 = vld [vmem:[%s10796_s0 + $0xb8] sm:$0xff]  ;;  %v533_v16 = vsel %vm489_vm0, %v6437_v5, 0.0  ;;  %v6451_v17 = vld [vmem:[%s10796_s0 + $0xc0] sm:$0xff]  ;;  %v6458_v22 = vld [vmem:[%s10796_s0 + $0xc8] sm:$0xff] }
   0xb   :  { %v535_v20 = vsel %vm489_vm0, %v6444_v13, 0.0  ;;  %v6125_v6 = vld [vmem:[%s10796_s0 + $0x198] sm:$0xff] }
   0xc   :  { %v500_v28 = vadd.f32 %v499_v23, %v498_v25  ;;  %v537_v25 = vsel %vm489_vm0, %v6451_v17, 0.0 }
   0xe   :  { %v502_v31 = vadd.f32 %v501_v26, %v500_v28  ;;  %v6465_v26 = vld [vmem:[%s10796_s0 + $0xd0] sm:$0xff] }
  0x10   :  { %v504_v34 = vadd.f32 %v503_v29, %v502_v31  ;;  %v539_v29 = vsel %vm489_vm0, %v6458_v22, 0.0  ;;  %v6472_v31 = vld [vmem:[%s10796_s0 + $0xd8] sm:$0xff] }
  0x12   :  { %v506_v37 = vadd.f32 %v505_v32, %v504_v34  ;;  %v541_v34 = vsel %vm489_vm0, %v6465_v26, 0.0 }
  0x14   :  { %v508_v40 = vadd.f32 %v507_v35, %v506_v37  ;;  %v6479_v35 = vld [vmem:[%s10796_s0 + $0xe0] sm:$0xff] }
  0x16   :  { %v510_v43 = vadd.f32 %v509_v38, %v508_v40  ;;  %v543_v38 = vsel %vm489_vm0, %v6472_v31, 0.0  ;;  %v6486_v40 = vld [vmem:[%s10796_s0 + $0xe8] sm:$0xff] }
  0x18   :  { %v512_v46 = vadd.f32 %v511_v41, %v510_v43  ;;  %v545_v43 = vsel %vm489_vm0, %v6479_v35, 0.0 }
  0x1a   :  { %v514_v49 = vadd.f32 %v513_v44, %v512_v46  ;;  %v6493_v44 = vld [vmem:[%s10796_s0 + $0xf0] sm:$0xff] }
  0x1c   :  { %v516_v52 = vadd.f32 %v515_v47, %v514_v49  ;;  %v547_v47 = vsel %vm489_vm0, %v6486_v40, 0.0  ;;  %v6500_v49 = vld [vmem:[%s10796_s0 + $0xf8] sm:$0xff] }
  0x1e   :  { %v518_v55 = vadd.f32 %v517_v50, %v516_v52  ;;  %v549_v52 = vsel %vm489_vm0, %v6493_v44, 0.0 }
  0x20   :  { %v520_v58 = vadd.f32 %v519_v53, %v518_v55  ;;  %v6507_v53 = vld [vmem:[%s10796_s0 + $0x100] sm:$0xff] }
  0x22   :  { %v522_v61 = vadd.f32 %v521_v56, %v520_v58  ;;  %v551_v56 = vsel %vm489_vm0, %v6500_v49, 0.0  ;;  %v6514_v58 = vld [vmem:[%s10796_s0 + $0x108] sm:$0xff] }
  0x24   :  { %v524_v0 = vadd.f32 %v523_v59, %v522_v61  ;;  %v553_v61 = vsel %vm489_vm0, %v6507_v53, 0.0 }
  0x26   :  { %v526_v3 = vadd.f32 %v525_v62, %v524_v0  ;;  %v6521_v62 = vld [vmem:[%s10796_s0 + $0x110] sm:$0xff] }
  0x28   :  { %v528_v11 = vadd.f32 %v527_v1, %v526_v3  ;;  %v555_v1 = vsel %vm489_vm0, %v6514_v58, 0.0  ;;  %v6528_v3 = vld [vmem:[%s10796_s0 + $0x118] sm:$0xff] }
  0x2a   :  { %v530_v15 = vadd.f32 %v529_v4, %v528_v11  ;;  %v557_v11 = vsel %vm489_vm0, %v6521_v62, 0.0 }
  0x2c   :  { %v532_v19 = vadd.f32 %v531_v12, %v530_v15  ;;  %v6535_v12 = vld [vmem:[%s10796_s0 + $0x120] sm:$0xff] }
  0x2e   :  { %v534_v23 = vadd.f32 %v533_v16, %v532_v19  ;;  %v559_v16 = vsel %vm489_vm0, %v6528_v3, 0.0  ;;  %v6542_v19 = vld [vmem:[%s10796_s0 + $0x128] sm:$0xff] }
  0x30   :  { %v536_v28 = vadd.f32 %v535_v20, %v534_v23  ;;  %v561_v23 = vsel %vm489_vm0, %v6535_v12, 0.0 }
  0x32   :  { %v538_v32 = vadd.f32 %v537_v25, %v536_v28  ;;  %v6549_v25 = vld [vmem:[%s10796_s0 + $0x130] sm:$0xff] }
  0x34   :  { %v540_v37 = vadd.f32 %v539_v29, %v538_v32  ;;  %v563_v29 = vsel %vm489_vm0, %v6542_v19, 0.0  ;;  %v6556_v32 = vld [vmem:[%s10796_s0 + $0x138] sm:$0xff] }
  0x36   :  { %v542_v41 = vadd.f32 %v541_v34, %v540_v37  ;;  %v565_v37 = vsel %vm489_vm0, %v6549_v25, 0.0 }
  0x38   :  { %v544_v46 = vadd.f32 %v543_v38, %v542_v41  ;;  %v6563_v38 = vld [vmem:[%s10796_s0 + $0x140] sm:$0xff] }
  0x3a   :  { %v546_v50 = vadd.f32 %v545_v43, %v544_v46  ;;  %v567_v43 = vsel %vm489_vm0, %v6556_v32, 0.0  ;;  %v6570_v46 = vld [vmem:[%s10796_s0 + $0x148] sm:$0xff] }
  0x3c   :  { %v548_v55 = vadd.f32 %v547_v47, %v546_v50  ;;  %v569_v50 = vsel %vm489_vm0, %v6563_v38, 0.0 }
  0x3e   :  { %v550_v59 = vadd.f32 %v549_v52, %v548_v55  ;;  %v59_v52 = vld [vmem:[%s10796_s0 + $0x150] sm:$0xff] }
  0x40   :  { %v552_v0 = vadd.f32 %v551_v56, %v550_v59  ;;  %v571_v56 = vsel %vm489_vm0, %v6570_v46, 0.0  ;;  %v60_v59 = vld [vmem:[%s10796_s0 + $0x158] sm:$0xff] }
  0x42   :  { %v554_v4 = vadd.f32 %v553_v61, %v552_v0  ;;  %v573_v0 = vsel %vm489_vm0, %v59_v52, 0.0  ;;  %v66_v52 = vld [vmem:[%s10796_s0 + $0x188] sm:$0xff] }
  0x44   :  { %v556_v15 = vadd.f32 %v555_v1, %v554_v4  ;;  %v61_v1 = vld [vmem:[%s10796_s0 + $0x160] sm:$0xff] }
  0x46   :  { %v558_v20 = vadd.f32 %v557_v11, %v556_v15  ;;  %v575_v11 = vsel %vm489_vm0, %v60_v59, 0.0  ;;  %v62_v15 = vld [vmem:[%s10796_s0 + $0x168] sm:$0xff]  ;;  %v67_v59 = vld [vmem:[%s10796_s0 + $0x190] sm:$0xff] }
  0x48   :  { %v560_v28 = vadd.f32 %v559_v16, %v558_v20  ;;  %v577_v20 = vsel %vm489_vm0, %v61_v1, 0.0  ;;  %v68_v1 = vld [vmem:[%s10796_s0 + $0x198] sm:$0xff] }
  0x4a   :  { %v562_v34 = vadd.f32 %v561_v23, %v560_v28  ;;  %v63_v23 = vld [vmem:[%s10796_s0 + $0x170] sm:$0xff] }
  0x4c   :  { %v564_v41 = vadd.f32 %v563_v29, %v562_v34  ;;  %v579_v29 = vsel %vm489_vm0, %v62_v15, 0.0  ;;  %v64_v34 = vld [vmem:[%s10796_s0 + $0x178] sm:$0xff]  ;;  %v69_v15 = vld [vmem:[%s10796_s0 + $0x1a0] sm:$0xff] }
  0x4e   :  { %v566_v47 = vadd.f32 %v565_v37, %v564_v41  ;;  %v581_v41 = vsel %vm489_vm0, %v63_v23, 0.0  ;;  %v70_v23 = vld [vmem:[%s10796_s0 + $0x1a8] sm:$0xff] }
  0x50   :  { %v568_v55 = vadd.f32 %v567_v43, %v566_v47  ;;  %v65_v43 = vld [vmem:[%s10796_s0 + $0x180] sm:$0xff] }
  0x52   :  { %v570_v61 = vadd.f32 %v569_v50, %v568_v55  ;;  %v583_v50 = vsel %vm489_vm0, %v64_v34, 0.0  ;;  %v71_v34 = vld [vmem:[%s10796_s0 + $0x1b0] sm:$0xff] }
  0x54   :  { %v572_v4 = vadd.f32 %v571_v56, %v570_v61  ;;  %v585_v56 = vsel %vm489_vm0, %v65_v43, 0.0  ;;  %v72_v43 = vld [vmem:[%s10796_s0 + $0x1b8] sm:$0xff] }
  0x56   :  { %v574_v16 = vadd.f32 %v573_v0, %v572_v4  ;;  %v587_v0 = vsel %vm489_vm0, %v66_v52, 0.0  ;;  %v73_v52 = vld [vmem:[%s10796_s0 + $0x1c0] sm:$0xff] }
  0x58   :  { %v576_v28 = vadd.f32 %v575_v11, %v574_v16  ;;  %v589_v11 = vsel %vm489_vm0, %v67_v59, 0.0  ;;  %v74_v59 = vld [vmem:[%s10796_s0 + $0x1c8] sm:$0xff] }
  0x5a   :  { %v578_v37 = vadd.f32 %v577_v20, %v576_v28  ;;  %v591_v20 = vsel %vm489_vm0, %v68_v1, 0.0  ;;  %v75_v1 = vld [vmem:[%s10796_s0 + $0x1d0] sm:$0xff] }
  0x5c   :  { %v580_v47 = vadd.f32 %v579_v29, %v578_v37  ;;  %v593_v29 = vsel %vm489_vm0, %v69_v15, 0.0  ;;  %v76_v15 = vld [vmem:[%s10796_s0 + $0x1d8] sm:$0xff] }
  0x5e   :  { %v582_v55 = vadd.f32 %v581_v41, %v580_v47  ;;  %v595_v41 = vsel %vm489_vm0, %v70_v23, 0.0  ;;  %v77_v23 = vld [vmem:[%s10796_s0 + $0x1e0] sm:$0xff] }
  0x60   :  { %v584_v61 = vadd.f32 %v583_v50, %v582_v55  ;;  %v597_v50 = vsel %vm489_vm0, %v71_v34, 0.0  ;;  %v78_v34 = vld [vmem:[%s10796_s0 + $0x1e8] sm:$0xff] }
  0x62   :  { %v586_v4 = vadd.f32 %v585_v56, %v584_v61  ;;  %v599_v56 = vsel %vm489_vm0, %v72_v43, 0.0  ;;  %v79_v43 = vld [vmem:[%s10796_s0 + $0x1f0] sm:$0xff] }
  0x64   :  { %v588_v16 = vadd.f32 %v587_v0, %v586_v4  ;;  %v601_v0 = vsel %vm489_vm0, %v73_v52, 0.0  ;;  %v80_v52 = vld [vmem:[%s10796_s0 + $0x1f8] sm:$0xff] }
  0x66   :  { %v590_v28 = vadd.f32 %v589_v11, %v588_v16  ;;  %v603_v11 = vsel %vm489_vm0, %v74_v59, 0.0  ;;  %v81_v59 = vld [vmem:[%s10796_s0 + $0x200] sm:$0xff] }
  0x68   :  { %v592_v37 = vadd.f32 %v591_v20, %v590_v28  ;;  %v605_v20 = vsel %vm489_vm0, %v75_v1, 0.0  ;;  %v82_v1 = vld [vmem:[%s10796_s0 + $0x208] sm:$0xff] }
  0x6a   :  { %v594_v47 = vadd.f32 %v593_v29, %v592_v37  ;;  %v607_v29 = vsel %vm489_vm0, %v76_v15, 0.0  ;;  %v83_v15 = vld [vmem:[%s10796_s0 + $0x210] sm:$0xff] }
  0x6c   :  { %v596_v55 = vadd.f32 %v595_v41, %v594_v47  ;;  %v609_v41 = vsel %vm489_vm0, %v77_v23, 0.0  ;;  %v84_v23 = vld [vmem:[%s10796_s0 + $0x218] sm:$0xff] }
  0x6e   :  { %v598_v61 = vadd.f32 %v597_v50, %v596_v55  ;;  %v611_v50 = vsel %vm489_vm0, %v78_v34, 0.0  ;;  %v85_v34 = vld [vmem:[%s10796_s0 + $0x220] sm:$0xff] }
  0x70   :  { %v600_v4 = vadd.f32 %v599_v56, %v598_v61  ;;  %v613_v56 = vsel %vm489_vm0, %v79_v43, 0.0  ;;  %v86_v43 = vld [vmem:[%s10796_s0 + $0x228] sm:$0xff] }
  0x72   :  { %v602_v16 = vadd.f32 %v601_v0, %v600_v4  ;;  %v615_v0 = vsel %vm489_vm0, %v80_v52, 0.0  ;;  %v87_v52 = vld [vmem:[%s10796_s0 + $0x230] sm:$0xff] }
  0x74   :  { %v604_v28 = vadd.f32 %v603_v11, %v602_v16  ;;  %v617_v11 = vsel %vm489_vm0, %v81_v59, 0.0  ;;  %v88_v59 = vld [vmem:[%s10796_s0 + $0x238] sm:$0xff] }
  0x76   :  { %v606_v37 = vadd.f32 %v605_v20, %v604_v28  ;;  %v619_v20 = vsel %vm489_vm0, %v82_v1, 0.0  ;;  %v89_v1 = vld [vmem:[%s10796_s0 + $0x240] sm:$0xff] }
  0x78   :  { %v608_v47 = vadd.f32 %v607_v29, %v606_v37  ;;  %v621_v29 = vsel %vm489_vm0, %v83_v15, 0.0  ;;  %v90_v15 = vld [vmem:[%s10796_s0 + $0x248] sm:$0xff] }
  0x7a   :  { %v610_v55 = vadd.f32 %v609_v41, %v608_v47  ;;  %v623_v41 = vsel %vm489_vm0, %v84_v23, 0.0  ;;  %v91_v23 = vld [vmem:[%s10796_s0 + $0x250] sm:$0xff] }
  0x7c   :  { %v612_v61 = vadd.f32 %v611_v50, %v610_v55  ;;  %v625_v50 = vsel %vm489_vm0, %v85_v34, 0.0  ;;  %v92_v34 = vld [vmem:[%s10796_s0 + $0x258] sm:$0xff] }
  0x7e   :  { %v614_v4 = vadd.f32 %v613_v56, %v612_v61  ;;  %v627_v56 = vsel %vm489_vm0, %v86_v43, 0.0  ;;  %v93_v43 = vld [vmem:[%s10796_s0 + $0x260] sm:$0xff] }
  0x80   :  { %v616_v16 = vadd.f32 %v615_v0, %v614_v4  ;;  %v629_v0 = vsel %vm489_vm0, %v87_v52, 0.0  ;;  %v94_v52 = vld [vmem:[%s10796_s0 + $0x268] sm:$0xff] }
  0x82   :  { %v618_v28 = vadd.f32 %v617_v11, %v616_v16  ;;  %v631_v11 = vsel %vm489_vm0, %v88_v59, 0.0  ;;  %v95_v59 = vld [vmem:[%s10796_s0 + $0x270] sm:$0xff] }
  0x84   :  { %v620_v37 = vadd.f32 %v619_v20, %v618_v28  ;;  %v633_v20 = vsel %vm489_vm0, %v89_v1, 0.0  ;;  %v96_v1 = vld [vmem:[%s10796_s0 + $0x278] sm:$0xff] }
  0x86   :  { %v622_v47 = vadd.f32 %v621_v29, %v620_v37  ;;  %v635_v29 = vsel %vm489_vm0, %v90_v15, 0.0  ;;  %v97_v15 = vld [vmem:[%s10796_s0 + $0x280] sm:$0xff] }
  0x88   :  { %v624_v55 = vadd.f32 %v623_v41, %v622_v47  ;;  %v637_v41 = vsel %vm489_vm0, %v91_v23, 0.0  ;;  %v98_v23 = vld [vmem:[%s10796_s0 + $0x288] sm:$0xff] }
  0x8a   :  { %v626_v61 = vadd.f32 %v625_v50, %v624_v55  ;;  %v639_v50 = vsel %vm489_vm0, %v92_v34, 0.0  ;;  %v99_v34 = vld [vmem:[%s10796_s0 + $0x290] sm:$0xff] }
  0x8c   :  { %v628_v4 = vadd.f32 %v627_v56, %v626_v61  ;;  %v641_v56 = vsel %vm489_vm0, %v93_v43, 0.0  ;;  %v100_v43 = vld [vmem:[%s10796_s0 + $0x298] sm:$0xff] }
  0x8e   :  { %v630_v16 = vadd.f32 %v629_v0, %v628_v4  ;;  %v643_v0 = vsel %vm489_vm0, %v94_v52, 0.0  ;;  %v101_v52 = vld [vmem:[%s10796_s0 + $0x2a0] sm:$0xff] }
  0x90   :  { %v632_v28 = vadd.f32 %v631_v11, %v630_v16  ;;  %v645_v11 = vsel %vm489_vm0, %v95_v59, 0.0  ;;  %v102_v59 = vld [vmem:[%s10796_s0 + $0x2a8] sm:$0xff] }
  0x92   :  { %v634_v37 = vadd.f32 %v633_v20, %v632_v28  ;;  %v647_v20 = vsel %vm489_vm0, %v96_v1, 0.0  ;;  %v103_v1 = vld [vmem:[%s10796_s0 + $0x2b0] sm:$0xff] }
  0x94   :  { %v636_v47 = vadd.f32 %v635_v29, %v634_v37  ;;  %v649_v29 = vsel %vm489_vm0, %v97_v15, 0.0  ;;  %v104_v15 = vld [vmem:[%s10796_s0 + $0x2b8] sm:$0xff] }
  0x96   :  { %v638_v55 = vadd.f32 %v637_v41, %v636_v47  ;;  %v651_v41 = vsel %vm489_vm0, %v98_v23, 0.0  ;;  %v105_v23 = vld [vmem:[%s10796_s0 + $0x2c0] sm:$0xff] }
  0x98   :  { %v640_v61 = vadd.f32 %v639_v50, %v638_v55  ;;  %v653_v50 = vsel %vm489_vm0, %v99_v34, 0.0  ;;  %v106_v34 = vld [vmem:[%s10796_s0 + $0x2c8] sm:$0xff] }
  0x9a   :  { %v642_v4 = vadd.f32 %v641_v56, %v640_v61  ;;  %v655_v56 = vsel %vm489_vm0, %v100_v43, 0.0  ;;  %v107_v43 = vld [vmem:[%s10796_s0 + $0x2d0] sm:$0xff] }
  0x9c   :  { %v644_v16 = vadd.f32 %v643_v0, %v642_v4  ;;  %v657_v0 = vsel %vm489_vm0, %v101_v52, 0.0  ;;  %v108_v52 = vld [vmem:[%s10796_s0 + $0x2d8] sm:$0xff] }
  0x9e   :  { %v646_v28 = vadd.f32 %v645_v11, %v644_v16  ;;  %v659_v11 = vsel %vm489_vm0, %v102_v59, 0.0  ;;  %v109_v59 = vld [vmem:[%s10796_s0 + $0x2e0] sm:$0xff] }
  0xa0   :  { %v648_v37 = vadd.f32 %v647_v20, %v646_v28  ;;  %v661_v20 = vsel %vm489_vm0, %v103_v1, 0.0  ;;  %v110_v1 = vld [vmem:[%s10796_s0 + $0x2e8] sm:$0xff] }
  0xa2   :  { %v650_v47 = vadd.f32 %v649_v29, %v648_v37  ;;  %v663_v29 = vsel %vm489_vm0, %v104_v15, 0.0  ;;  %v111_v15 = vld [vmem:[%s10796_s0 + $0x2f0] sm:$0xff] }
  0xa4   :  { %v652_v55 = vadd.f32 %v651_v41, %v650_v47  ;;  %v665_v41 = vsel %vm489_vm0, %v105_v23, 0.0  ;;  %v112_v23 = vld [vmem:[%s10796_s0 + $0x2f8] sm:$0xff] }
  0xa6   :  { %v654_v61 = vadd.f32 %v653_v50, %v652_v55  ;;  %v667_v50 = vsel %vm489_vm0, %v106_v34, 0.0  ;;  %v113_v34 = vld [vmem:[%s10796_s0 + $0x300] sm:$0xff] }
  0xa8   :  { %v656_v4 = vadd.f32 %v655_v56, %v654_v61  ;;  %v669_v56 = vsel %vm489_vm0, %v107_v43, 0.0  ;;  %v114_v43 = vld [vmem:[%s10796_s0 + $0x308] sm:$0xff] }
  0xaa   :  { %v658_v16 = vadd.f32 %v657_v0, %v656_v4  ;;  %v671_v0 = vsel %vm489_vm0, %v108_v52, 0.0  ;;  %v115_v52 = vld [vmem:[%s10796_s0 + $0x310] sm:$0xff] }
  0xac   :  { %v660_v28 = vadd.f32 %v659_v11, %v658_v16  ;;  %v673_v11 = vsel %vm489_vm0, %v109_v59, 0.0  ;;  %v116_v59 = vld [vmem:[%s10796_s0 + $0x318] sm:$0xff] }
  0xae   :  { %v662_v37 = vadd.f32 %v661_v20, %v660_v28  ;;  %v675_v20 = vsel %vm489_vm0, %v110_v1, 0.0  ;;  %v117_v1 = vld [vmem:[%s10796_s0 + $0x320] sm:$0xff] }
  0xb0   :  { %v664_v47 = vadd.f32 %v663_v29, %v662_v37  ;;  %v677_v29 = vsel %vm489_vm0, %v111_v15, 0.0  ;;  %v118_v15 = vld [vmem:[%s10796_s0 + $0x328] sm:$0xff] }
  0xb2   :  { %v666_v55 = vadd.f32 %v665_v41, %v664_v47  ;;  %v679_v41 = vsel %vm489_vm0, %v112_v23, 0.0  ;;  %v119_v23 = vld [vmem:[%s10796_s0 + $0x330] sm:$0xff] }
  0xb4   :  { %v668_v61 = vadd.f32 %v667_v50, %v666_v55  ;;  %v681_v50 = vsel %vm489_vm0, %v113_v34, 0.0  ;;  %v120_v34 = vld [vmem:[%s10796_s0 + $0x338] sm:$0xff] }
  0xb6   :  { %v670_v4 = vadd.f32 %v669_v56, %v668_v61  ;;  %v683_v56 = vsel %vm489_vm0, %v114_v43, 0.0  ;;  %v121_v43 = vld [vmem:[%s10796_s0 + $0x340] sm:$0xff] }
  0xb8   :  { %v672_v16 = vadd.f32 %v671_v0, %v670_v4  ;;  %v685_v0 = vsel %vm489_vm0, %v115_v52, 0.0  ;;  %v122_v52 = vld [vmem:[%s10796_s0 + $0x348] sm:$0xff] }
  0xba   :  { %v674_v28 = vadd.f32 %v673_v11, %v672_v16  ;;  %v687_v11 = vsel %vm489_vm0, %v116_v59, 0.0  ;;  %v123_v59 = vld [vmem:[%s10796_s0 + $0x350] sm:$0xff] }
  0xbc   :  { %v676_v37 = vadd.f32 %v675_v20, %v674_v28  ;;  %v689_v20 = vsel %vm489_vm0, %v117_v1, 0.0  ;;  %v124_v1 = vld [vmem:[%s10796_s0 + $0x358] sm:$0xff] }
  0xbe   :  { %v678_v47 = vadd.f32 %v677_v29, %v676_v37  ;;  %v691_v29 = vsel %vm489_vm0, %v118_v15, 0.0  ;;  %v125_v15 = vld [vmem:[%s10796_s0 + $0x360] sm:$0xff] }
  0xc0   :  { %v680_v55 = vadd.f32 %v679_v41, %v678_v47  ;;  %v693_v41 = vsel %vm489_vm0, %v119_v23, 0.0  ;;  %v126_v23 = vld [vmem:[%s10796_s0 + $0x368] sm:$0xff] }
  0xc2   :  { %v682_v61 = vadd.f32 %v681_v50, %v680_v55  ;;  %v695_v50 = vsel %vm489_vm0, %v120_v34, 0.0  ;;  %v127_v34 = vld [vmem:[%s10796_s0 + $0x370] sm:$0xff] }
  0xc4   :  { %v684_v4 = vadd.f32 %v683_v56, %v682_v61  ;;  %v697_v56 = vsel %vm489_vm0, %v121_v43, 0.0  ;;  %v128_v43 = vld [vmem:[%s10796_s0 + $0x378] sm:$0xff] }
  0xc6   :  { %v686_v16 = vadd.f32 %v685_v0, %v684_v4  ;;  %v699_v0 = vsel %vm489_vm0, %v122_v52, 0.0  ;;  %v129_v52 = vld [vmem:[%s10796_s0 + $0x380] sm:$0xff] }
  0xc8   :  { %v688_v28 = vadd.f32 %v687_v11, %v686_v16  ;;  %v701_v11 = vsel %vm489_vm0, %v123_v59, 0.0  ;;  %v130_v59 = vld [vmem:[%s10796_s0 + $0x388] sm:$0xff] }
  0xca   :  { %v690_v37 = vadd.f32 %v689_v20, %v688_v28  ;;  %v703_v20 = vsel %vm489_vm0, %v124_v1, 0.0  ;;  %v131_v1 = vld [vmem:[%s10796_s0 + $0x390] sm:$0xff] }
  0xcc   :  { %v692_v47 = vadd.f32 %v691_v29, %v690_v37  ;;  %v705_v29 = vsel %vm489_vm0, %v125_v15, 0.0  ;;  %v132_v15 = vld [vmem:[%s10796_s0 + $0x398] sm:$0xff] }
  0xce   :  { %v694_v55 = vadd.f32 %v693_v41, %v692_v47  ;;  %v707_v41 = vsel %vm489_vm0, %v126_v23, 0.0  ;;  %v133_v23 = vld [vmem:[%s10796_s0 + $0x3a0] sm:$0xff] }
  0xd0   :  { %v696_v61 = vadd.f32 %v695_v50, %v694_v55  ;;  %v709_v50 = vsel %vm489_vm0, %v127_v34, 0.0  ;;  %v134_v34 = vld [vmem:[%s10796_s0 + $0x3a8] sm:$0xff] }
  0xd2   :  { %v698_v4 = vadd.f32 %v697_v56, %v696_v61  ;;  %v711_v56 = vsel %vm489_vm0, %v128_v43, 0.0  ;;  %v135_v43 = vld [vmem:[%s10796_s0 + $0x3b0] sm:$0xff] }
  0xd4   :  { %v700_v16 = vadd.f32 %v699_v0, %v698_v4  ;;  %v713_v0 = vsel %vm489_vm0, %v129_v52, 0.0  ;;  %v136_v52 = vld [vmem:[%s10796_s0 + $0x3b8] sm:$0xff] }
  0xd6   :  { %v702_v28 = vadd.f32 %v701_v11, %v700_v16  ;;  %v715_v11 = vsel %vm489_vm0, %v130_v59, 0.0  ;;  %v137_v59 = vld [vmem:[%s10796_s0 + $0x3c0] sm:$0xff] }
  0xd8   :  { %v704_v37 = vadd.f32 %v703_v20, %v702_v28  ;;  %v717_v20 = vsel %vm489_vm0, %v131_v1, 0.0  ;;  %v138_v1 = vld [vmem:[%s10796_s0 + $0x3c8] sm:$0xff] }
  0xda   :  { %v706_v47 = vadd.f32 %v705_v29, %v704_v37  ;;  %v719_v29 = vsel %vm489_vm0, %v132_v15, 0.0  ;;  %v139_v15 = vld [vmem:[%s10796_s0 + $0x3d0] sm:$0xff] }
  0xdc   :  { %v708_v55 = vadd.f32 %v707_v41, %v706_v47  ;;  %v721_v41 = vsel %vm489_vm0, %v133_v23, 0.0  ;;  %v140_v23 = vld [vmem:[%s10796_s0 + $0x3d8] sm:$0xff] }
  0xde   :  { %v710_v61 = vadd.f32 %v709_v50, %v708_v55  ;;  %v723_v50 = vsel %vm489_vm0, %v134_v34, 0.0  ;;  %v141_v34 = vld [vmem:[%s10796_s0 + $0x3e0] sm:$0xff] }
  0xe0   :  { %v712_v4 = vadd.f32 %v711_v56, %v710_v61  ;;  %v725_v56 = vsel %vm489_vm0, %v135_v43, 0.0  ;;  %v142_v43 = vld [vmem:[%s10796_s0 + $0x3e8] sm:$0xff] }
  0xe2   :  { %v714_v16 = vadd.f32 %v713_v0, %v712_v4  ;;  %v727_v0 = vsel %vm489_vm0, %v136_v52, 0.0  ;;  %v143_v52 = vld [vmem:[%s10796_s0 + $0x3f0] sm:$0xff] }
  0xe4   :  { %v716_v28 = vadd.f32 %v715_v11, %v714_v16  ;;  %v729_v11 = vsel %vm489_vm0, %v137_v59, 0.0  ;;  %v144_v59 = vld [vmem:[%s10796_s0 + $0x3f8] sm:$0xff] }
  0xe6   :  { %v718_v37 = vadd.f32 %v717_v20, %v716_v28  ;;  %v731_v20 = vsel %vm489_vm0, %v138_v1, 0.0  ;;  %v145_v1 = vld [vmem:[%s10796_s0 + $0x400] sm:$0xff] }
  0xe8   :  { %v720_v47 = vadd.f32 %v719_v29, %v718_v37  ;;  %v733_v29 = vsel %vm489_vm0, %v139_v15, 0.0  ;;  %v146_v15 = vld [vmem:[%s10796_s0 + $0x408] sm:$0xff] }
  0xea   :  { %v722_v55 = vadd.f32 %v721_v41, %v720_v47  ;;  %v735_v41 = vsel %vm489_vm0, %v140_v23, 0.0 }
  0xec   :  { %v724_v61 = vadd.f32 %v723_v50, %v722_v55  ;;  %v737_v50 = vsel %vm489_vm0, %v141_v34, 0.0 }
  0xee   :  { %v726_v4 = vadd.f32 %v725_v56, %v724_v61  ;;  %v739_v56 = vsel %vm489_vm0, %v142_v43, 0.0  ;;  %v148_v43 = vld [vmem:[%s10796_s0 + $0x418] sm:$0xff] }
  0xf0   :  { %v728_v16 = vadd.f32 %v727_v0, %v726_v4  ;;  %v741_v0 = vsel %vm489_vm0, %v143_v52, 0.0  ;;  %v149_v52 = vld [vmem:[%s10796_s0 + $0x420] sm:$0xff] }
  0xf2   :  { %v730_v28 = vadd.f32 %v729_v11, %v728_v16  ;;  %v743_v11 = vsel %vm489_vm0, %v144_v59, 0.0  ;;  %v150_v59 = vld [vmem:[%s10796_s0 + $0x428] sm:$0xff] }
  0xf4   :  { %v732_v37 = vadd.f32 %v731_v20, %v730_v28  ;;  %v745_v20 = vsel %vm489_vm0, %v145_v1, 0.0  ;;  %v747_v28 = vsel %vm489_vm0, %v146_v15, 0.0  ;;  %v151_v1 = vld [vmem:[%s10796_s0 + $0x430] sm:$0xff]  ;;  %v152_v15 = vld [vmem:[%s10796_s0 + $0x438] sm:$0xff] }
  0xf6   :  { %v734_v47 = vadd.f32 %v733_v29, %v732_v37  ;;  %v147_v29 = vld [vmem:[%s10796_s0 + $0x410] sm:$0xff] }
  0xf8   :  { %v736_v55 = vadd.f32 %v735_v41, %v734_v47  ;;  %v749_v41 = vsel %vm489_vm0, %v147_v29, 0.0 }
  0xfa   :  { %v738_v61 = vadd.f32 %v737_v50, %v736_v55  ;;  %v751_v50 = vsel %vm489_vm0, %v148_v43, 0.0  ;;  %v155_v43 = vld [vmem:[%s10796_s0 + $0x450] sm:$0xff] }
  0xfc   :  { %v740_v4 = vadd.f32 %v739_v56, %v738_v61  ;;  %v753_v56 = vsel %vm489_vm0, %v149_v52, 0.0  ;;  %v156_v52 = vld [vmem:[%s10796_s0 + $0x458] sm:$0xff] }
  0xfe   :  { %v742_v16 = vadd.f32 %v741_v0, %v740_v4  ;;  %v755_v0 = vsel %vm489_vm0, %v150_v59, 0.0  ;;  %v157_v59 = vld [vmem:[%s10796_s0 + $0x460] sm:$0xff] }
 0x100   :  { %v744_v23 = vadd.f32 %v743_v11, %v742_v16  ;;  %v757_v11 = vsel %vm489_vm0, %v151_v1, 0.0  ;;  %v158_v1 = vld [vmem:[%s10796_s0 + $0x468] sm:$0xff] }
 0x102   :  { %v746_v34 = vadd.f32 %v745_v20, %v744_v23  ;;  %v759_v20 = vsel %vm489_vm0, %v152_v15, 0.0  ;;  %v153_v23 = vld [vmem:[%s10796_s0 + $0x440] sm:$0xff]  ;;  %v159_v15 = vld [vmem:[%s10796_s0 + $0x470] sm:$0xff] }
 0x103   :  { %v761_v29 = vsel %vm489_vm0, %v153_v23, 0.0  ;;  %v160_v23 = vld [vmem:[%s10796_s0 + $0x478] sm:$0xff] }
 0x104   :  { %v748_v37 = vadd.f32 %v747_v28, %v746_v34  ;;  %v154_v34 = vld [vmem:[%s10796_s0 + $0x448] sm:$0xff] }
 0x106   :  { %v750_v47 = vadd.f32 %v749_v41, %v748_v37  ;;  %v763_v41 = vsel %vm489_vm0, %v154_v34, 0.0  ;;  %v161_v34 = vld [vmem:[%s10796_s0 + $0x480] sm:$0xff] }
 0x108   :  { %v752_v55 = vadd.f32 %v751_v50, %v750_v47  ;;  %v765_v50 = vsel %vm489_vm0, %v155_v43, 0.0  ;;  %v162_v43 = vld [vmem:[%s10796_s0 + $0x488] sm:$0xff] }
 0x10a   :  { %v754_v61 = vadd.f32 %v753_v56, %v752_v55  ;;  %v767_v56 = vsel %vm489_vm0, %v156_v52, 0.0  ;;  %v163_v52 = vld [vmem:[%s10796_s0 + $0x490] sm:$0xff] }
 0x10c   :  { %v756_v4 = vadd.f32 %v755_v0, %v754_v61  ;;  %v769_v0 = vsel %vm489_vm0, %v157_v59, 0.0  ;;  %v164_v59 = vld [vmem:[%s10796_s0 + $0x498] sm:$0xff] }
 0x10e   :  { %v758_v16 = vadd.f32 %v757_v11, %v756_v4  ;;  %v771_v11 = vsel %vm489_vm0, %v158_v1, 0.0  ;;  %v165_v1 = vld [vmem:[%s10796_s0 + $0x4a0] sm:$0xff] }
 0x110   :  { %v760_v28 = vadd.f32 %v759_v20, %v758_v16  ;;  %v773_v20 = vsel %vm489_vm0, %v159_v15, 0.0  ;;  %v166_v15 = vld [vmem:[%s10796_s0 + $0x4a8] sm:$0xff] }
 0x112   :  { %v762_v37 = vadd.f32 %v761_v29, %v760_v28  ;;  %v775_v29 = vsel %vm489_vm0, %v160_v23, 0.0  ;;  %v167_v23 = vld [vmem:[%s10796_s0 + $0x4b0] sm:$0xff] }
 0x114   :  { %v764_v47 = vadd.f32 %v763_v41, %v762_v37  ;;  %v777_v41 = vsel %vm489_vm0, %v161_v34, 0.0  ;;  %v168_v34 = vld [vmem:[%s10796_s0 + $0x4b8] sm:$0xff] }
 0x116   :  { %v766_v55 = vadd.f32 %v765_v50, %v764_v47  ;;  %v779_v50 = vsel %vm489_vm0, %v162_v43, 0.0  ;;  %v169_v43 = vld [vmem:[%s10796_s0 + $0x4c0] sm:$0xff] }
 0x118   :  { %v768_v61 = vadd.f32 %v767_v56, %v766_v55  ;;  %v781_v56 = vsel %vm489_vm0, %v163_v52, 0.0  ;;  %v170_v52 = vld [vmem:[%s10796_s0 + $0x4c8] sm:$0xff] }
 0x11a   :  { %v770_v4 = vadd.f32 %v769_v0, %v768_v61  ;;  %v783_v0 = vsel %vm489_vm0, %v164_v59, 0.0  ;;  %v171_v59 = vld [vmem:[%s10796_s0 + $0x4d0] sm:$0xff] }
 0x11c   :  { %v772_v16 = vadd.f32 %v771_v11, %v770_v4  ;;  %v785_v11 = vsel %vm489_vm0, %v165_v1, 0.0  ;;  %v172_v1 = vld [vmem:[%s10796_s0 + $0x4d8] sm:$0xff] }
 0x11e   :  { %v774_v28 = vadd.f32 %v773_v20, %v772_v16  ;;  %v787_v20 = vsel %vm489_vm0, %v166_v15, 0.0  ;;  %v173_v15 = vld [vmem:[%s10796_s0 + $0x4e0] sm:$0xff] }
 0x120   :  { %v776_v37 = vadd.f32 %v775_v29, %v774_v28  ;;  %v789_v29 = vsel %vm489_vm0, %v167_v23, 0.0 }
 0x122   :  { %v778_v47 = vadd.f32 %v777_v41, %v776_v37  ;;  %v791_v41 = vsel %vm489_vm0, %v168_v34, 0.0 }
 0x124   :  { %v780_v55 = vadd.f32 %v779_v50, %v778_v47  ;;  %v793_v50 = vsel %vm489_vm0, %v169_v43, 0.0 }
 0x126   :  { %v782_v61 = vadd.f32 %v781_v56, %v780_v55  ;;  %v795_v56 = vsel %vm489_vm0, %v170_v52, 0.0 }
 0x128   :  { %v784_v4 = vadd.f32 %v783_v0, %v782_v61  ;;  %v797_v0 = vsel %vm489_vm0, %v171_v59, 0.0 }
 0x12a   :  { %v786_v16 = vadd.f32 %v785_v11, %v784_v4  ;;  %v799_v11 = vsel %vm489_vm0, %v172_v1, 0.0 }
 0x12c   :  { %v788_v28 = vadd.f32 %v787_v20, %v786_v16  ;;  %v801_v20 = vsel %vm489_vm0, %v173_v15, 0.0 }
 0x12e   :  { %v790_v37 = vadd.f32 %v789_v29, %v788_v28 }
 0x130   :  { %v792_v47 = vadd.f32 %v791_v41, %v790_v37 }
 0x132   :  { %v794_v55 = vadd.f32 %v793_v50, %v792_v47 }
 0x134   :  { %v796_v61 = vadd.f32 %v795_v56, %v794_v55 }
 0x136   :  { %v798_v4 = vadd.f32 %v797_v0, %v796_v61 }
 0x138   :  { %v800_v16 = vadd.f32 %v799_v11, %v798_v4 }
 0x13a   :  { %v802_v23 = vadd.f32 %v801_v20, %v800_v16 }
 0x13c   :  { %v803_v28 = vrot.slane %v802_v23, 4 }
 0x13e   :  { %v804_v29 = vadd.f32 %v803_v28, %v802_v23 }
 0x140   :  { %v805_v34 = vrot.slane %v804_v29, 2 }
 0x142   :  { %v806_v37 = vadd.f32 %v805_v34, %v804_v29 }
 0x144   :  { %v807_v41 = vrot.slane %v806_v37, 1 }
 0x146   :  { %v808_v43 = vadd.f32 %v807_v41, %v806_v37 }
 0x148   :  { %v7036_v47 = vmul.f32 0.0008, %v808_v43 }
 0x14a   :  { %v7040_v50 = vsub.f32 %v6283_v7, %v7036_v47  ;;  %v7044_v52 = vsub.f32 %v6288_v8, %v7036_v47  ;;  %v7048_v55 = vsub.f32 %v6295_v9, %v7036_v47  ;;  %v7052_v56 = vsub.f32 %v6300_v10, %v7036_v47 }
 0x14b   :  { %v7056_v59 = vsub.f32 %v6309_v14, %v7036_v47  ;;  %v7066_v9 = vsub.f32 %v6318_v18, %v7036_v47  ;;  %v7072_v14 = vsub.f32 %v6325_v21, %v7036_v47  ;;  %v7081_v18 = vsub.f32 %v6332_v24, %v7036_v47 }
 0x14c   :  { %v967_v7 = vmul.f32 %v7040_v50, %v7040_v50  ;;  %v968_v61 = vmul.f32 %v7044_v52, %v7044_v52  ;;  %v969_v8 = vmul.f32 %v7048_v55, %v7048_v55  ;;  %v970_v10 = vmul.f32 %v7052_v56, %v7052_v56 }
 0x14d   :  { %v971_v0 = vmul.f32 %v7056_v59, %v7056_v59  ;;  %v972_v16 = vmul.f32 %v7066_v9, %v7066_v9  ;;  %v7088_v23 = vsub.f32 %v6339_v27, %v7036_v47  ;;  %v973_v28 = vmul.f32 %v7072_v14, %v7072_v14 }
 0x14e   :  { %v1281_v1 = vsel %vm489_vm0, %v967_v7, 0.0  ;;  %v1282_v4 = vsel %vm489_vm0, %v968_v61, 0.0  ;;  %v1284_v15 = vsel %vm489_vm0, %v969_v8, 0.0  ;;  %v1286_v21 = vsel %vm489_vm0, %v970_v10, 0.0 }
 0x14f   :  { %v1283_v11 = vadd.f32 %v1282_v4, %v1281_v1  ;;  %v1288_v29 = vsel %vm489_vm0, %v971_v0, 0.0  ;;  %v7095_v24 = vsub.f32 %v6346_v30, %v7036_v47  ;;  %v974_v37 = vmul.f32 %v7081_v18, %v7081_v18 }
 0x150   :  { %v1290_v41 = vsel %vm489_vm0, %v972_v16, 0.0  ;;  %v7102_v27 = vsub.f32 %v6353_v33, %v7036_v47  ;;  %v975_v7 = vmul.f32 %v7088_v23, %v7088_v23  ;;  %v1292_v61 = vsel %vm489_vm0, %v973_v28, 0.0 }
 0x151   :  { %v1285_v20 = vadd.f32 %v1284_v15, %v1283_v11  ;;  %v7109_v30 = vsub.f32 %v6360_v36, %v7036_v47  ;;  %v976_v10 = vmul.f32 %v7095_v24, %v7095_v24  ;;  %v1294_v0 = vsel %vm489_vm0, %v974_v37, 0.0 }
 0x152   :  { %v7116_v33 = vsub.f32 %v6367_v39, %v7036_v47  ;;  %v977_v4 = vmul.f32 %v7102_v27, %v7102_v27  ;;  %v1296_v11 = vsel %vm489_vm0, %v975_v7, 0.0  ;;  %v7123_v36 = vsub.f32 %v6374_v42, %v7036_v47 }
 0x153   :  { %v1287_v34 = vadd.f32 %v1286_v21, %v1285_v20  ;;  %v978_v16 = vmul.f32 %v7109_v30, %v7109_v30  ;;  %v1298_v21 = vsel %vm489_vm0, %v976_v10, 0.0  ;;  %v7130_v39 = vsub.f32 %v6381_v45, %v7036_v47 }
 0x154   :  { %v979_v28 = vmul.f32 %v7116_v33, %v7116_v33  ;;  %v7137_v42 = vsub.f32 %v6388_v48, %v7036_v47  ;;  %v980_v37 = vmul.f32 %v7123_v36, %v7123_v36  ;;  %v7144_v45 = vsub.f32 %v6395_v51, %v7036_v47 }
 0x155   :  { %v1289_v43 = vadd.f32 %v1288_v29, %v1287_v34  ;;  %v1300_v29 = vsel %vm489_vm0, %v977_v4, 0.0  ;;  %v981_v7 = vmul.f32 %v7130_v39, %v7130_v39  ;;  %v7151_v48 = vsub.f32 %v6402_v54, %v7036_v47 }
 0x156   :  { %v982_v10 = vmul.f32 %v7137_v42, %v7137_v42  ;;  %v7158_v51 = vsub.f32 %v6409_v57, %v7036_v47  ;;  %v983_v4 = vmul.f32 %v7144_v45, %v7144_v45  ;;  %v7165_v54 = vsub.f32 %v6416_v60, %v7036_v47 }
 0x157   :  { %v1291_v8 = vadd.f32 %v1290_v41, %v1289_v43  ;;  %v1302_v41 = vsel %vm489_vm0, %v978_v16, 0.0  ;;  %v984_v16 = vmul.f32 %v7151_v48, %v7151_v48  ;;  %v7172_v57 = vsub.f32 %v6423_v63, %v7036_v47 }
 0x158   :  { %v7179_v60 = vsub.f32 %v6430_v2, %v7036_v47  ;;  %v7186_v63 = vsub.f32 %v6437_v5, %v7036_v47  ;;  %v7193_v2 = vsub.f32 %v6444_v13, %v7036_v47  ;;  %v7200_v5 = vsub.f32 %v6451_v17, %v7036_v47 }
 0x159   :  { %v1293_v1 = vadd.f32 %v1292_v61, %v1291_v8  ;;  %v1304_v61 = vsel %vm489_vm0, %v979_v28, 0.0  ;;  %v985_v28 = vmul.f32 %v7158_v51, %v7158_v51  ;;  %v7207_v13 = vsub.f32 %v6458_v22, %v7036_v47 }
 0x15a   :  { %10918 = vst [vmem:[#allocation2_spill] sm:$0xff] %v7179_v60  ;;  %10919 = vst [vmem:[#allocation3_spill] sm:$0xff] %v7186_v63  ;;  %v7214_v17 = vsub.f32 %v6465_v26, %v7036_v47  ;;  %v7221_v22 = vsub.f32 %v6472_v31, %v7036_v47  ;;  %v7228_v26 = vsub.f32 %v6479_v35, %v7036_v47 }
 0x15b   :  { %v1295_v15 = vadd.f32 %v1294_v0, %v1293_v1  ;;  %v1306_v0 = vsel %vm489_vm0, %v980_v37, 0.0  ;;  %v986_v37 = vmul.f32 %v7165_v54, %v7165_v54  ;;  %10920 = vst [vmem:[#allocation4_spill] sm:$0xff] %v7193_v2  ;;  %10921 = vst [vmem:[#allocation5_spill] sm:$0xff] %v7200_v5  ;;  %v7235_v31 = vsub.f32 %v6486_v40, %v7036_v47 }
 0x15c   :  { %10922 = vst [vmem:[#allocation6_spill] sm:$0xff] %v7207_v13  ;;  %10923 = vst [vmem:[#allocation7_spill] sm:$0xff] %v7214_v17  ;;  %v7242_v35 = vsub.f32 %v6493_v44, %v7036_v47  ;;  %v7249_v40 = vsub.f32 %v6500_v49, %v7036_v47  ;;  %v7256_v44 = vsub.f32 %v6507_v53, %v7036_v47 }
 0x15d   :  { %v1297_v20 = vadd.f32 %v1296_v11, %v1295_v15  ;;  %v1308_v11 = vsel %vm489_vm0, %v981_v7, 0.0  ;;  %v987_v7 = vmul.f32 %v7172_v57, %v7172_v57  ;;  %10924 = vst [vmem:[#allocation8_spill] sm:$0xff] %v7221_v22  ;;  %10925 = vst [vmem:[#allocation9_spill] sm:$0xff] %v7228_v26  ;;  %v7263_v49 = vsub.f32 %v6514_v58, %v7036_v47 }
 0x15e   :  { %10926 = vst [vmem:[#allocation10_spill] sm:$0xff] %v7235_v31  ;;  %10927 = vst [vmem:[#allocation11_spill] sm:$0xff] %v7242_v35  ;;  %v7270_v53 = vsub.f32 %v6521_v62, %v7036_v47  ;;  %v7277_v58 = vsub.f32 %v6528_v3, %v7036_v47  ;;  %v7284_v62 = vsub.f32 %v6535_v12, %v7036_v47 }
 0x15f   :  { %v1299_v34 = vadd.f32 %v1298_v21, %v1297_v20  ;;  %v1310_v21 = vsel %vm489_vm0, %v982_v10, 0.0  ;;  %v988_v10 = vmul.f32 %v7179_v60, %v7179_v60  ;;  %10928 = vst [vmem:[#allocation12_spill] sm:$0xff] %v7249_v40  ;;  %10929 = vst [vmem:[#allocation13_spill] sm:$0xff] %v7256_v44  ;;  %v7291_v3 = vsub.f32 %v6542_v19, %v7036_v47 }
 0x160   :  { %10930 = vst [vmem:[#allocation14_spill] sm:$0xff] %v7263_v49  ;;  %10931 = vst [vmem:[#allocation15_spill] sm:$0xff] %v7270_v53  ;;  %v7298_v12 = vsub.f32 %v6549_v25, %v7036_v47  ;;  %v7305_v19 = vsub.f32 %v6556_v32, %v7036_v47  ;;  %v7312_v25 = vsub.f32 %v6563_v38, %v7036_v47  ;;  %v6116_v38 = vld [vmem:[%s10796_s0 + $0x150] sm:$0xff] }
 0x161   :  { %v1301_v43 = vadd.f32 %v1300_v29, %v1299_v34  ;;  %v1312_v29 = vsel %vm489_vm0, %v983_v4, 0.0  ;;  %v989_v4 = vmul.f32 %v7186_v63, %v7186_v63  ;;  %10932 = vst [vmem:[#allocation16_spill] sm:$0xff] %v7277_v58  ;;  %10933 = vst [vmem:[#allocation17_spill] sm:$0xff] %v7284_v62  ;;  %v7319_v32 = vsub.f32 %v6570_v46, %v7036_v47 }
 0x162   :  { %10934 = vst [vmem:[#allocation18_spill] sm:$0xff] %v7291_v3  ;;  %10935 = vst [vmem:[#allocation19_spill] sm:$0xff] %v7298_v12 }
 0x163   :  { %v1303_v8 = vadd.f32 %v1302_v41, %v1301_v43  ;;  %v1314_v41 = vsel %vm489_vm0, %v984_v16, 0.0  ;;  %v990_v16 = vmul.f32 %v7193_v2, %v7193_v2  ;;  %10936 = vst [vmem:[#allocation20_spill] sm:$0xff] %v7305_v19  ;;  %10937 = vst [vmem:[#allocation21_spill] sm:$0xff] %v7312_v25 }
 0x164   :  { %10938 = vst [vmem:[#allocation22_spill] sm:$0xff] %v7319_v32 }
 0x165   :  { %v1305_v1 = vadd.f32 %v1304_v61, %v1303_v8  ;;  %v1316_v61 = vsel %vm489_vm0, %v985_v28, 0.0  ;;  %v991_v28 = vmul.f32 %v7200_v5, %v7200_v5  ;;  %v6180_v5 = vld [vmem:[%s10796_s0 + $0x350] sm:$0xff] }
 0x167   :  { %v1307_v15 = vadd.f32 %v1306_v0, %v1305_v1  ;;  %v1318_v0 = vsel %vm489_vm0, %v986_v37, 0.0  ;;  %v992_v37 = vmul.f32 %v7207_v13, %v7207_v13  ;;  %v6179_v13 = vld [vmem:[%s10796_s0 + $0x348] sm:$0xff] }
 0x169   :  { %v1309_v20 = vadd.f32 %v1308_v11, %v1307_v15  ;;  %v1320_v11 = vsel %vm489_vm0, %v987_v7, 0.0  ;;  %v993_v7 = vmul.f32 %v7214_v17, %v7214_v17  ;;  %v6178_v17 = vld [vmem:[%s10796_s0 + $0x340] sm:$0xff] }
 0x16b   :  { %v1311_v34 = vadd.f32 %v1310_v21, %v1309_v20  ;;  %v1322_v21 = vsel %vm489_vm0, %v988_v10, 0.0  ;;  %v994_v10 = vmul.f32 %v7221_v22, %v7221_v22  ;;  %v6177_v22 = vld [vmem:[%s10796_s0 + $0x338] sm:$0xff] }
 0x16d   :  { %v1313_v43 = vadd.f32 %v1312_v29, %v1311_v34  ;;  %v1324_v29 = vsel %vm489_vm0, %v989_v4, 0.0  ;;  %v995_v4 = vmul.f32 %v7228_v26, %v7228_v26  ;;  %v6176_v26 = vld [vmem:[%s10796_s0 + $0x330] sm:$0xff] }
 0x16f   :  { %v1315_v8 = vadd.f32 %v1314_v41, %v1313_v43  ;;  %v1326_v41 = vsel %vm489_vm0, %v990_v16, 0.0  ;;  %v996_v16 = vmul.f32 %v7235_v31, %v7235_v31  ;;  %v6175_v31 = vld [vmem:[%s10796_s0 + $0x328] sm:$0xff] }
 0x171   :  { %v1317_v1 = vadd.f32 %v1316_v61, %v1315_v8  ;;  %v1328_v61 = vsel %vm489_vm0, %v991_v28, 0.0  ;;  %v997_v28 = vmul.f32 %v7242_v35, %v7242_v35  ;;  %v6174_v35 = vld [vmem:[%s10796_s0 + $0x320] sm:$0xff] }
 0x173   :  { %v1319_v15 = vadd.f32 %v1318_v0, %v1317_v1  ;;  %v1330_v0 = vsel %vm489_vm0, %v992_v37, 0.0  ;;  %v998_v37 = vmul.f32 %v7249_v40, %v7249_v40  ;;  %v6173_v40 = vld [vmem:[%s10796_s0 + $0x318] sm:$0xff] }
 0x175   :  { %v1321_v20 = vadd.f32 %v1320_v11, %v1319_v15  ;;  %v1332_v11 = vsel %vm489_vm0, %v993_v7, 0.0  ;;  %v999_v7 = vmul.f32 %v7256_v44, %v7256_v44  ;;  %v6172_v44 = vld [vmem:[%s10796_s0 + $0x310] sm:$0xff] }
 0x177   :  { %v1323_v34 = vadd.f32 %v1322_v21, %v1321_v20  ;;  %v1334_v21 = vsel %vm489_vm0, %v994_v10, 0.0  ;;  %v1000_v10 = vmul.f32 %v7263_v49, %v7263_v49  ;;  %v6171_v49 = vld [vmem:[%s10796_s0 + $0x308] sm:$0xff] }
 0x179   :  { %v1325_v43 = vadd.f32 %v1324_v29, %v1323_v34  ;;  %v1336_v29 = vsel %vm489_vm0, %v995_v4, 0.0  ;;  %v1001_v4 = vmul.f32 %v7270_v53, %v7270_v53  ;;  %v6170_v53 = vld [vmem:[%s10796_s0 + $0x300] sm:$0xff] }
 0x17b   :  { %v1327_v8 = vadd.f32 %v1326_v41, %v1325_v43  ;;  %v1338_v41 = vsel %vm489_vm0, %v996_v16, 0.0  ;;  %v1002_v16 = vmul.f32 %v7277_v58, %v7277_v58  ;;  %v6169_v58 = vld [vmem:[%s10796_s0 + $0x2f8] sm:$0xff] }
 0x17d   :  { %v1329_v1 = vadd.f32 %v1328_v61, %v1327_v8  ;;  %v1340_v61 = vsel %vm489_vm0, %v997_v28, 0.0  ;;  %v1003_v28 = vmul.f32 %v7284_v62, %v7284_v62  ;;  %v6168_v62 = vld [vmem:[%s10796_s0 + $0x2f0] sm:$0xff] }
 0x17f   :  { %v1331_v15 = vadd.f32 %v1330_v0, %v1329_v1  ;;  %v1342_v0 = vsel %vm489_vm0, %v998_v37, 0.0  ;;  %v1004_v37 = vmul.f32 %v7291_v3, %v7291_v3  ;;  %v6167_v3 = vld [vmem:[%s10796_s0 + $0x2e8] sm:$0xff] }
 0x181   :  { %v1333_v20 = vadd.f32 %v1332_v11, %v1331_v15  ;;  %v1344_v11 = vsel %vm489_vm0, %v999_v7, 0.0  ;;  %v1005_v7 = vmul.f32 %v7298_v12, %v7298_v12  ;;  %v6166_v12 = vld [vmem:[%s10796_s0 + $0x2e0] sm:$0xff] }
 0x183   :  { %v1335_v34 = vadd.f32 %v1334_v21, %v1333_v20  ;;  %v1346_v21 = vsel %vm489_vm0, %v1000_v10, 0.0  ;;  %v1006_v10 = vmul.f32 %v7305_v19, %v7305_v19  ;;  %v6165_v19 = vld [vmem:[%s10796_s0 + $0x2d8] sm:$0xff] }
 0x185   :  { %v1337_v43 = vadd.f32 %v1336_v29, %v1335_v34  ;;  %v1348_v29 = vsel %vm489_vm0, %v1001_v4, 0.0  ;;  %v7328_v4 = vsub.f32 %v6116_v38, %v7036_v47  ;;  %v6120_v38 = vld [vmem:[%s10796_s0 + $0x170] sm:$0xff] }
 0x187   :  { %v1339_v8 = vadd.f32 %v1338_v41, %v1337_v43  ;;  %v1350_v41 = vsel %vm489_vm0, %v1002_v16, 0.0  ;;  %10939 = vst [vmem:[#allocation23_spill] sm:$0xff] %v7328_v4  ;;  %v6117_v16 = vld [vmem:[%s10796_s0 + $0x158] sm:$0xff] }
 0x189   :  { %v1341_v1 = vadd.f32 %v1340_v61, %v1339_v8  ;;  %v1352_v61 = vsel %vm489_vm0, %v1003_v28, 0.0  ;;  %v1358_v28 = vsel %vm489_vm0, %v1006_v10, 0.0 }
 0x18b   :  { %v1343_v15 = vadd.f32 %v1342_v0, %v1341_v1  ;;  %v1354_v0 = vsel %vm489_vm0, %v1004_v37, 0.0 }
 0x18d   :  { %v1345_v20 = vadd.f32 %v1344_v11, %v1343_v15  ;;  %v1007_v11 = vmul.f32 %v7312_v25, %v7312_v25  ;;  %v1356_v15 = vsel %vm489_vm0, %v1005_v7, 0.0  ;;  %v6164_v25 = vld [vmem:[%s10796_s0 + $0x2d0] sm:$0xff] }
 0x18f   :  { %v1347_v34 = vadd.f32 %v1346_v21, %v1345_v20  ;;  %v7337_v21 = vsub.f32 %v6117_v16, %v7036_v47  ;;  %v1008_v20 = vmul.f32 %v7319_v32, %v7319_v32  ;;  %v6163_v32 = vld [vmem:[%s10796_s0 + $0x2c8] sm:$0xff] }
 0x191   :  { %v1349_v43 = vadd.f32 %v1348_v29, %v1347_v34  ;;  %10940 = vst [vmem:[#allocation24_spill] sm:$0xff] %v7337_v21  ;;  %v6118_v34 = vld [vmem:[%s10796_s0 + $0x160] sm:$0xff]  ;;  %v1010_v10 = vmul.f32 %v7337_v21, %v7337_v21  ;;  %v6161_v21 = vld [vmem:[%s10796_s0 + $0x2b8] sm:$0xff] }
 0x192   :  { %v7346_v37 = vsub.f32 %v6118_v34, %v7036_v47 }
 0x193   :  { %v1351_v8 = vadd.f32 %v1350_v41, %v1349_v43  ;;  %v1009_v41 = vmul.f32 %v7328_v4, %v7328_v4  ;;  %v1360_v43 = vsel %vm489_vm0, %v1007_v11, 0.0  ;;  %v7364_v11 = vsub.f32 %v6120_v38, %v7036_v47  ;;  %v6123_v38 = vld [vmem:[%s10796_s0 + $0x188] sm:$0xff]  ;;  %v6162_v4 = vld [vmem:[%s10796_s0 + $0x2c0] sm:$0xff] }
 0x194   :  { %10941 = vst [vmem:[#allocation25_spill] sm:$0xff] %v7346_v37  ;;  %v1366_v34 = vsel %vm489_vm0, %v1010_v10, 0.0  ;;  %v7391_v10 = vsub.f32 %v6123_v38, %v7036_v47 }
 0x195   :  { %v1353_v1 = vadd.f32 %v1352_v61, %v1351_v8  ;;  %v6119_v61 = vld [vmem:[%s10796_s0 + $0x168] sm:$0xff]  ;;  %10943 = vst [vmem:[#allocation27_spill] sm:$0xff] %v7364_v11 }
 0x196   :  { %v7355_v8 = vsub.f32 %v6119_v61, %v7036_v47  ;;  %v1013_v61 = vmul.f32 %v7364_v11, %v7364_v11  ;;  %10946 = vst [vmem:[#allocation30_spill] sm:$0xff] %v7391_v10  ;;  %v6158_v11 = vld [vmem:[%s10796_s0 + $0x2a0] sm:$0xff] }
 0x197   :  { %v1355_v46 = vadd.f32 %v1354_v0, %v1353_v1  ;;  %v1362_v0 = vsel %vm489_vm0, %v1008_v20, 0.0 }
 0x198   :  { %10942 = vst [vmem:[#allocation26_spill] sm:$0xff] %v7355_v8 }
 0x199   :  { %v1357_v29 = vadd.f32 %v1356_v15, %v1355_v46  ;;  %v1011_v15 = vmul.f32 %v7346_v37, %v7346_v37  ;;  %v1364_v46 = vsel %vm489_vm0, %v1009_v41, 0.0  ;;  %v6160_v37 = vld [vmem:[%s10796_s0 + $0x2b0] sm:$0xff] }
 0x19b   :  { %v1359_v7 = vadd.f32 %v1358_v28, %v1357_v29  ;;  %v6121_v28 = vld [vmem:[%s10796_s0 + $0x178] sm:$0xff]  ;;  %v1012_v29 = vmul.f32 %v7355_v8, %v7355_v8  ;;  %v6159_v8 = vld [vmem:[%s10796_s0 + $0x2a8] sm:$0xff] }
 0x19c   :  { %v7373_v20 = vsub.f32 %v6121_v28, %v7036_v47 }
 0x19d   :  { %v1361_v1 = vadd.f32 %v1360_v43, %v1359_v7  ;;  %v6122_v7 = vld [vmem:[%s10796_s0 + $0x180] sm:$0xff] }
 0x19e   :  { %10944 = vst [vmem:[#allocation28_spill] sm:$0xff] %v7373_v20  ;;  %v7382_v41 = vsub.f32 %v6122_v7, %v7036_v47  ;;  %v6124_v7 = vld [vmem:[%s10796_s0 + $0x190] sm:$0xff] }
 0x19f   :  { %v1363_v16 = vadd.f32 %v1362_v0, %v1361_v1  ;;  %v1368_v0 = vsel %vm489_vm0, %v1011_v15, 0.0  ;;  %v7400_v15 = vsub.f32 %v6124_v7, %v7036_v47 }
 0x1a0   :  { %10945 = vst [vmem:[#allocation29_spill] sm:$0xff] %v7382_v41 }
 0x1a1   :  { %v1365_v43 = vadd.f32 %v1364_v46, %v1363_v16  ;;  %v1014_v46 = vmul.f32 %v7373_v20, %v7373_v20  ;;  %v1370_v16 = vsel %vm489_vm0, %v1012_v29, 0.0  ;;  %10947 = vst [vmem:[#allocation31_spill] sm:$0xff] %v7400_v15  ;;  %v7409_v29 = vsub.f32 %v6125_v6, %v7036_v47  ;;  %v6157_v20 = vld [vmem:[%s10796_s0 + $0x298] sm:$0xff] }
 0x1a3   :  { %v1367_v1 = vadd.f32 %v1366_v34, %v1365_v43  ;;  %v1015_v34 = vmul.f32 %v7382_v41, %v7382_v41  ;;  %v1372_v43 = vsel %vm489_vm0, %v1013_v61, 0.0  ;;  %10948 = vst [vmem:[#allocation32_spill] sm:$0xff] %v7409_v29  ;;  %v6126_v41 = vld [vmem:[%s10796_s0 + $0x1a0] sm:$0xff] }
 0x1a4   :  { %v7418_v61 = vsub.f32 %v6126_v41, %v7036_v47 }
 0x1a5   :  { %v1369_v28 = vadd.f32 %v1368_v0, %v1367_v1  ;;  %v1016_v0 = vmul.f32 %v7391_v10, %v7391_v10  ;;  %v1374_v1 = vsel %vm489_vm0, %v1014_v46, 0.0  ;;  %v6127_v10 = vld [vmem:[%s10796_s0 + $0x1a8] sm:$0xff] }
 0x1a6   :  { %10949 = vst [vmem:[#allocation33_spill] sm:$0xff] %v7418_v61  ;;  %v7427_v46 = vsub.f32 %v6127_v10, %v7036_v47 }
 0x1a7   :  { %v1371_v38 = vadd.f32 %v1370_v16, %v1369_v28  ;;  %v1017_v16 = vmul.f32 %v7400_v15, %v7400_v15  ;;  %v1376_v28 = vsel %vm489_vm0, %v1015_v34, 0.0  ;;  %v6128_v15 = vld [vmem:[%s10796_s0 + $0x1b0] sm:$0xff] }
 0x1a8   :  { %10950 = vst [vmem:[#allocation34_spill] sm:$0xff] %v7427_v46  ;;  %v7436_v34 = vsub.f32 %v6128_v15, %v7036_v47 }
 0x1a9   :  { %v1373_v7 = vadd.f32 %v1372_v43, %v1371_v38  ;;  %v1018_v43 = vmul.f32 %v7409_v29, %v7409_v29  ;;  %v1378_v38 = vsel %vm489_vm0, %v1016_v0, 0.0  ;;  %v6129_v29 = vld [vmem:[%s10796_s0 + $0x1b8] sm:$0xff] }
 0x1aa   :  { %10951 = vst [vmem:[#allocation35_spill] sm:$0xff] %v7436_v34  ;;  %v7445_v0 = vsub.f32 %v6129_v29, %v7036_v47 }
 0x1ab   :  { %v1375_v6 = vadd.f32 %v1374_v1, %v1373_v7  ;;  %v1019_v1 = vmul.f32 %v7418_v61, %v7418_v61  ;;  %v1380_v7 = vsel %vm489_vm0, %v1017_v16, 0.0  ;;  %v6130_v61 = vld [vmem:[%s10796_s0 + $0x1c0] sm:$0xff] }
 0x1ac   :  { %10952 = vst [vmem:[#allocation36_spill] sm:$0xff] %v7445_v0  ;;  %v7454_v16 = vsub.f32 %v6130_v61, %v7036_v47 }
 0x1ad   :  { %v1377_v41 = vadd.f32 %v1376_v28, %v1375_v6  ;;  %v1020_v28 = vmul.f32 %v7427_v46, %v7427_v46  ;;  %v1382_v6 = vsel %vm489_vm0, %v1018_v43, 0.0  ;;  %v6131_v46 = vld [vmem:[%s10796_s0 + $0x1c8] sm:$0xff] }
 0x1ae   :  { %10953 = vst [vmem:[#allocation37_spill] sm:$0xff] %v7454_v16  ;;  %v7463_v43 = vsub.f32 %v6131_v46, %v7036_v47 }
 0x1af   :  { %v1379_v10 = vadd.f32 %v1378_v38, %v1377_v41  ;;  %v1021_v38 = vmul.f32 %v7436_v34, %v7436_v34  ;;  %v1384_v41 = vsel %vm489_vm0, %v1019_v1, 0.0  ;;  %v6132_v34 = vld [vmem:[%s10796_s0 + $0x1d0] sm:$0xff] }
 0x1b0   :  { %10954 = vst [vmem:[#allocation38_spill] sm:$0xff] %v7463_v43  ;;  %v7472_v1 = vsub.f32 %v6132_v34, %v7036_v47 }
 0x1b1   :  { %v1381_v15 = vadd.f32 %v1380_v7, %v1379_v10  ;;  %v1022_v7 = vmul.f32 %v7445_v0, %v7445_v0  ;;  %v1386_v10 = vsel %vm489_vm0, %v1020_v28, 0.0  ;;  %v6133_v0 = vld [vmem:[%s10796_s0 + $0x1d8] sm:$0xff] }
 0x1b2   :  { %10955 = vst [vmem:[#allocation39_spill] sm:$0xff] %v7472_v1  ;;  %v7481_v28 = vsub.f32 %v6133_v0, %v7036_v47 }
 0x1b3   :  { %v1383_v29 = vadd.f32 %v1382_v6, %v1381_v15  ;;  %v1023_v6 = vmul.f32 %v7454_v16, %v7454_v16  ;;  %v1388_v15 = vsel %vm489_vm0, %v1021_v38, 0.0  ;;  %v6134_v16 = vld [vmem:[%s10796_s0 + $0x1e0] sm:$0xff] }
 0x1b4   :  { %10956 = vst [vmem:[#allocation40_spill] sm:$0xff] %v7481_v28  ;;  %v7490_v38 = vsub.f32 %v6134_v16, %v7036_v47 }
 0x1b5   :  { %v1385_v61 = vadd.f32 %v1384_v41, %v1383_v29  ;;  %v1024_v41 = vmul.f32 %v7463_v43, %v7463_v43  ;;  %v1390_v29 = vsel %vm489_vm0, %v1022_v7, 0.0  ;;  %v6135_v43 = vld [vmem:[%s10796_s0 + $0x1e8] sm:$0xff] }
 0x1b6   :  { %10957 = vst [vmem:[#allocation41_spill] sm:$0xff] %v7490_v38  ;;  %v7499_v7 = vsub.f32 %v6135_v43, %v7036_v47 }
 0x1b7   :  { %v1387_v46 = vadd.f32 %v1386_v10, %v1385_v61  ;;  %v1025_v10 = vmul.f32 %v7472_v1, %v7472_v1  ;;  %v1392_v61 = vsel %vm489_vm0, %v1023_v6, 0.0  ;;  %v6136_v1 = vld [vmem:[%s10796_s0 + $0x1f0] sm:$0xff] }
 0x1b8   :  { %10958 = vst [vmem:[#allocation42_spill] sm:$0xff] %v7499_v7  ;;  %v7508_v6 = vsub.f32 %v6136_v1, %v7036_v47 }
 0x1b9   :  { %v1389_v34 = vadd.f32 %v1388_v15, %v1387_v46  ;;  %v1026_v15 = vmul.f32 %v7481_v28, %v7481_v28  ;;  %v1394_v46 = vsel %vm489_vm0, %v1024_v41, 0.0  ;;  %v6137_v28 = vld [vmem:[%s10796_s0 + $0x1f8] sm:$0xff] }
 0x1ba   :  { %10959 = vst [vmem:[#allocation43_spill] sm:$0xff] %v7508_v6  ;;  %v7517_v41 = vsub.f32 %v6137_v28, %v7036_v47 }
 0x1bb   :  { %v1391_v0 = vadd.f32 %v1390_v29, %v1389_v34  ;;  %v1027_v29 = vmul.f32 %v7490_v38, %v7490_v38  ;;  %v1396_v34 = vsel %vm489_vm0, %v1025_v10, 0.0  ;;  %v6138_v38 = vld [vmem:[%s10796_s0 + $0x200] sm:$0xff] }
 0x1bc   :  { %10960 = vst [vmem:[#allocation44_spill] sm:$0xff] %v7517_v41  ;;  %v7526_v10 = vsub.f32 %v6138_v38, %v7036_v47 }
 0x1bd   :  { %v1393_v16 = vadd.f32 %v1392_v61, %v1391_v0  ;;  %v1028_v61 = vmul.f32 %v7499_v7, %v7499_v7  ;;  %v1398_v0 = vsel %vm489_vm0, %v1026_v15, 0.0  ;;  %v6139_v7 = vld [vmem:[%s10796_s0 + $0x208] sm:$0xff] }
 0x1be   :  { %10961 = vst [vmem:[#allocation45_spill] sm:$0xff] %v7526_v10  ;;  %v7535_v15 = vsub.f32 %v6139_v7, %v7036_v47 }
 0x1bf   :  { %v1395_v43 = vadd.f32 %v1394_v46, %v1393_v16  ;;  %v1029_v46 = vmul.f32 %v7508_v6, %v7508_v6  ;;  %v1400_v16 = vsel %vm489_vm0, %v1027_v29, 0.0  ;;  %v6140_v6 = vld [vmem:[%s10796_s0 + $0x210] sm:$0xff] }
 0x1c0   :  { %10962 = vst [vmem:[#allocation46_spill] sm:$0xff] %v7535_v15  ;;  %v7544_v29 = vsub.f32 %v6140_v6, %v7036_v47 }
 0x1c1   :  { %v1397_v1 = vadd.f32 %v1396_v34, %v1395_v43  ;;  %v1030_v34 = vmul.f32 %v7517_v41, %v7517_v41  ;;  %v1402_v43 = vsel %vm489_vm0, %v1028_v61, 0.0  ;;  %v6141_v41 = vld [vmem:[%s10796_s0 + $0x218] sm:$0xff] }
 0x1c2   :  { %10963 = vst [vmem:[#allocation47_spill] sm:$0xff] %v7544_v29  ;;  %v7553_v61 = vsub.f32 %v6141_v41, %v7036_v47 }
 0x1c3   :  { %v1399_v28 = vadd.f32 %v1398_v0, %v1397_v1  ;;  %v1031_v0 = vmul.f32 %v7526_v10, %v7526_v10  ;;  %v1404_v1 = vsel %vm489_vm0, %v1029_v46, 0.0  ;;  %v6142_v10 = vld [vmem:[%s10796_s0 + $0x220] sm:$0xff] }
 0x1c4   :  { %10964 = vst [vmem:[#allocation48_spill] sm:$0xff] %v7553_v61  ;;  %v7562_v46 = vsub.f32 %v6142_v10, %v7036_v47 }
 0x1c5   :  { %v1401_v38 = vadd.f32 %v1400_v16, %v1399_v28  ;;  %v1032_v16 = vmul.f32 %v7535_v15, %v7535_v15  ;;  %v1406_v28 = vsel %vm489_vm0, %v1030_v34, 0.0  ;;  %v6143_v15 = vld [vmem:[%s10796_s0 + $0x228] sm:$0xff] }
 0x1c6   :  { %10965 = vst [vmem:[#allocation49_spill] sm:$0xff] %v7562_v46  ;;  %v7571_v34 = vsub.f32 %v6143_v15, %v7036_v47 }
 0x1c7   :  { %v1403_v7 = vadd.f32 %v1402_v43, %v1401_v38  ;;  %v1033_v43 = vmul.f32 %v7544_v29, %v7544_v29  ;;  %v1408_v38 = vsel %vm489_vm0, %v1031_v0, 0.0  ;;  %v6144_v29 = vld [vmem:[%s10796_s0 + $0x230] sm:$0xff] }
 0x1c8   :  { %10966 = vst [vmem:[#allocation50_spill] sm:$0xff] %v7571_v34  ;;  %v7580_v0 = vsub.f32 %v6144_v29, %v7036_v47 }
 0x1c9   :  { %v1405_v6 = vadd.f32 %v1404_v1, %v1403_v7  ;;  %v1034_v1 = vmul.f32 %v7553_v61, %v7553_v61  ;;  %v1410_v7 = vsel %vm489_vm0, %v1032_v16, 0.0  ;;  %v6145_v61 = vld [vmem:[%s10796_s0 + $0x238] sm:$0xff] }
 0x1ca   :  { %10967 = vst [vmem:[#allocation51_spill] sm:$0xff] %v7580_v0  ;;  %v7589_v16 = vsub.f32 %v6145_v61, %v7036_v47 }
 0x1cb   :  { %v1407_v41 = vadd.f32 %v1406_v28, %v1405_v6  ;;  %v1035_v28 = vmul.f32 %v7562_v46, %v7562_v46  ;;  %v1412_v6 = vsel %vm489_vm0, %v1033_v43, 0.0  ;;  %v6146_v46 = vld [vmem:[%s10796_s0 + $0x240] sm:$0xff] }
 0x1cc   :  { %10968 = vst [vmem:[#allocation52_spill] sm:$0xff] %v7589_v16  ;;  %v7598_v43 = vsub.f32 %v6146_v46, %v7036_v47 }
 0x1cd   :  { %v1409_v10 = vadd.f32 %v1408_v38, %v1407_v41  ;;  %v1036_v38 = vmul.f32 %v7571_v34, %v7571_v34  ;;  %v1414_v41 = vsel %vm489_vm0, %v1034_v1, 0.0  ;;  %v6147_v34 = vld [vmem:[%s10796_s0 + $0x248] sm:$0xff] }
 0x1ce   :  { %10969 = vst [vmem:[#allocation53_spill] sm:$0xff] %v7598_v43  ;;  %v7607_v1 = vsub.f32 %v6147_v34, %v7036_v47 }
 0x1cf   :  { %v1411_v15 = vadd.f32 %v1410_v7, %v1409_v10  ;;  %v1037_v7 = vmul.f32 %v7580_v0, %v7580_v0  ;;  %v1416_v10 = vsel %vm489_vm0, %v1035_v28, 0.0  ;;  %v6148_v0 = vld [vmem:[%s10796_s0 + $0x250] sm:$0xff] }
 0x1d0   :  { %10970 = vst [vmem:[#allocation54_spill] sm:$0xff] %v7607_v1  ;;  %v7616_v28 = vsub.f32 %v6148_v0, %v7036_v47 }
 0x1d1   :  { %v1413_v29 = vadd.f32 %v1412_v6, %v1411_v15  ;;  %v1038_v6 = vmul.f32 %v7589_v16, %v7589_v16  ;;  %v1418_v15 = vsel %vm489_vm0, %v1036_v38, 0.0  ;;  %v6149_v16 = vld [vmem:[%s10796_s0 + $0x258] sm:$0xff] }
 0x1d2   :  { %10971 = vst [vmem:[#allocation55_spill] sm:$0xff] %v7616_v28  ;;  %v7625_v38 = vsub.f32 %v6149_v16, %v7036_v47 }
 0x1d3   :  { %v1415_v61 = vadd.f32 %v1414_v41, %v1413_v29  ;;  %v1039_v41 = vmul.f32 %v7598_v43, %v7598_v43  ;;  %v1420_v29 = vsel %vm489_vm0, %v1037_v7, 0.0  ;;  %v6150_v43 = vld [vmem:[%s10796_s0 + $0x260] sm:$0xff] }
 0x1d4   :  { %10972 = vst [vmem:[#allocation56_spill] sm:$0xff] %v7625_v38  ;;  %v7634_v7 = vsub.f32 %v6150_v43, %v7036_v47 }
 0x1d5   :  { %v1417_v46 = vadd.f32 %v1416_v10, %v1415_v61  ;;  %v1040_v10 = vmul.f32 %v7607_v1, %v7607_v1  ;;  %v1422_v61 = vsel %vm489_vm0, %v1038_v6, 0.0  ;;  %v6151_v1 = vld [vmem:[%s10796_s0 + $0x268] sm:$0xff] }
 0x1d6   :  { %10973 = vst [vmem:[#allocation57_spill] sm:$0xff] %v7634_v7  ;;  %v7643_v6 = vsub.f32 %v6151_v1, %v7036_v47 }
 0x1d7   :  { %v1419_v34 = vadd.f32 %v1418_v15, %v1417_v46  ;;  %v1041_v15 = vmul.f32 %v7616_v28, %v7616_v28  ;;  %v1424_v46 = vsel %vm489_vm0, %v1039_v41, 0.0  ;;  %v6152_v28 = vld [vmem:[%s10796_s0 + $0x270] sm:$0xff] }
 0x1d8   :  { %10974 = vst [vmem:[#allocation58_spill] sm:$0xff] %v7643_v6  ;;  %v7652_v41 = vsub.f32 %v6152_v28, %v7036_v47 }
 0x1d9   :  { %v1421_v0 = vadd.f32 %v1420_v29, %v1419_v34  ;;  %v1042_v29 = vmul.f32 %v7625_v38, %v7625_v38  ;;  %v1426_v34 = vsel %vm489_vm0, %v1040_v10, 0.0  ;;  %v6153_v38 = vld [vmem:[%s10796_s0 + $0x278] sm:$0xff] }
 0x1da   :  { %10975 = vst [vmem:[#allocation59_spill] sm:$0xff] %v7652_v41  ;;  %v7661_v10 = vsub.f32 %v6153_v38, %v7036_v47 }
 0x1db   :  { %v1423_v16 = vadd.f32 %v1422_v61, %v1421_v0  ;;  %v1043_v61 = vmul.f32 %v7634_v7, %v7634_v7  ;;  %v1428_v0 = vsel %vm489_vm0, %v1041_v15, 0.0  ;;  %v6154_v7 = vld [vmem:[%s10796_s0 + $0x280] sm:$0xff] }
 0x1dc   :  { %v7670_v15 = vsub.f32 %v6154_v7, %v7036_v47 }
 0x1dd   :  { %v1425_v43 = vadd.f32 %v1424_v46, %v1423_v16  ;;  %v1044_v46 = vmul.f32 %v7643_v6, %v7643_v6  ;;  %v1430_v16 = vsel %vm489_vm0, %v1042_v29, 0.0  ;;  %v6155_v6 = vld [vmem:[%s10796_s0 + $0x288] sm:$0xff] }
 0x1de   :  { %v7679_v29 = vsub.f32 %v6155_v6, %v7036_v47 }
 0x1df   :  { %v1427_v1 = vadd.f32 %v1426_v34, %v1425_v43  ;;  %v1045_v34 = vmul.f32 %v7652_v41, %v7652_v41  ;;  %v1432_v43 = vsel %vm489_vm0, %v1043_v61, 0.0  ;;  %v6156_v41 = vld [vmem:[%s10796_s0 + $0x290] sm:$0xff] }
 0x1e0   :  { %v7688_v61 = vsub.f32 %v6156_v41, %v7036_v47 }
 0x1e1   :  { %v1429_v28 = vadd.f32 %v1428_v0, %v1427_v1  ;;  %v1046_v0 = vmul.f32 %v7661_v10, %v7661_v10  ;;  %v1434_v1 = vsel %vm489_vm0, %v1044_v46, 0.0  ;;  %v7697_v46 = vsub.f32 %v6157_v20, %v7036_v47 }
 0x1e3   :  { %v1431_v38 = vadd.f32 %v1430_v16, %v1429_v28  ;;  %v1047_v16 = vmul.f32 %v7670_v15, %v7670_v15  ;;  %v1436_v28 = vsel %vm489_vm0, %v1045_v34, 0.0  ;;  %v7706_v34 = vsub.f32 %v6158_v11, %v7036_v47 }
 0x1e5   :  { %v1433_v7 = vadd.f32 %v1432_v43, %v1431_v38  ;;  %v1048_v43 = vmul.f32 %v7679_v29, %v7679_v29  ;;  %v1438_v38 = vsel %vm489_vm0, %v1046_v0, 0.0  ;;  %v7715_v0 = vsub.f32 %v6159_v8, %v7036_v47 }
 0x1e7   :  { %v1435_v6 = vadd.f32 %v1434_v1, %v1433_v7  ;;  %v1049_v1 = vmul.f32 %v7688_v61, %v7688_v61  ;;  %v1440_v7 = vsel %vm489_vm0, %v1047_v16, 0.0  ;;  %v7724_v16 = vsub.f32 %v6160_v37, %v7036_v47 }
 0x1e9   :  { %v1437_v41 = vadd.f32 %v1436_v28, %v1435_v6  ;;  %v1050_v28 = vmul.f32 %v7697_v46, %v7697_v46  ;;  %v1442_v6 = vsel %vm489_vm0, %v1048_v43, 0.0  ;;  %v7733_v43 = vsub.f32 %v6161_v21, %v7036_v47 }
 0x1eb   :  { %v1439_v20 = vadd.f32 %v1438_v38, %v1437_v41  ;;  %v1051_v38 = vmul.f32 %v7706_v34, %v7706_v34  ;;  %v1444_v41 = vsel %vm489_vm0, %v1049_v1, 0.0  ;;  %v7742_v1 = vsub.f32 %v6162_v4, %v7036_v47 }
 0x1ed   :  { %v1441_v11 = vadd.f32 %v1440_v7, %v1439_v20  ;;  %v1052_v7 = vmul.f32 %v7715_v0, %v7715_v0  ;;  %v1446_v20 = vsel %vm489_vm0, %v1050_v28, 0.0  ;;  %v7751_v28 = vsub.f32 %v6163_v32, %v7036_v47 }
 0x1ef   :  { %v1443_v8 = vadd.f32 %v1442_v6, %v1441_v11  ;;  %v1053_v6 = vmul.f32 %v7724_v16, %v7724_v16  ;;  %v1448_v11 = vsel %vm489_vm0, %v1051_v38, 0.0  ;;  %v7760_v38 = vsub.f32 %v6164_v25, %v7036_v47 }
 0x1f1   :  { %v1445_v37 = vadd.f32 %v1444_v41, %v1443_v8  ;;  %v1054_v41 = vmul.f32 %v7733_v43, %v7733_v43  ;;  %v1450_v8 = vsel %vm489_vm0, %v1052_v7, 0.0  ;;  %v7769_v7 = vsub.f32 %v6165_v19, %v7036_v47 }
 0x1f3   :  { %v1447_v21 = vadd.f32 %v1446_v20, %v1445_v37  ;;  %v1055_v20 = vmul.f32 %v7742_v1, %v7742_v1  ;;  %v1452_v37 = vsel %vm489_vm0, %v1053_v6, 0.0  ;;  %v7778_v6 = vsub.f32 %v6166_v12, %v7036_v47 }
 0x1f5   :  { %v1449_v4 = vadd.f32 %v1448_v11, %v1447_v21  ;;  %v1056_v11 = vmul.f32 %v7751_v28, %v7751_v28  ;;  %v1454_v21 = vsel %vm489_vm0, %v1054_v41, 0.0  ;;  %v7787_v41 = vsub.f32 %v6167_v3, %v7036_v47 }
 0x1f7   :  { %v1451_v32 = vadd.f32 %v1450_v8, %v1449_v4  ;;  %v1057_v8 = vmul.f32 %v7760_v38, %v7760_v38  ;;  %v1456_v4 = vsel %vm489_vm0, %v1055_v20, 0.0  ;;  %v7796_v20 = vsub.f32 %v6168_v62, %v7036_v47 }
 0x1f9   :  { %v1453_v25 = vadd.f32 %v1452_v37, %v1451_v32  ;;  %v1058_v37 = vmul.f32 %v7769_v7, %v7769_v7  ;;  %v1458_v32 = vsel %vm489_vm0, %v1056_v11, 0.0  ;;  %v7805_v11 = vsub.f32 %v6169_v58, %v7036_v47 }
 0x1fb   :  { %v1455_v19 = vadd.f32 %v1454_v21, %v1453_v25  ;;  %v1059_v21 = vmul.f32 %v7778_v6, %v7778_v6  ;;  %v1460_v25 = vsel %vm489_vm0, %v1057_v8, 0.0  ;;  %v7814_v8 = vsub.f32 %v6170_v53, %v7036_v47 }
 0x1fd   :  { %v1457_v12 = vadd.f32 %v1456_v4, %v1455_v19  ;;  %v1060_v4 = vmul.f32 %v7787_v41, %v7787_v41  ;;  %v1462_v19 = vsel %vm489_vm0, %v1058_v37, 0.0  ;;  %v7823_v37 = vsub.f32 %v6171_v49, %v7036_v47 }
 0x1ff   :  { %v1459_v3 = vadd.f32 %v1458_v32, %v1457_v12  ;;  %v1061_v32 = vmul.f32 %v7796_v20, %v7796_v20  ;;  %v1464_v12 = vsel %vm489_vm0, %v1059_v21, 0.0  ;;  %v7832_v21 = vsub.f32 %v6172_v44, %v7036_v47 }
 0x201   :  { %v1461_v62 = vadd.f32 %v1460_v25, %v1459_v3  ;;  %v1062_v25 = vmul.f32 %v7805_v11, %v7805_v11  ;;  %v1466_v3 = vsel %vm489_vm0, %v1060_v4, 0.0  ;;  %v7841_v4 = vsub.f32 %v6173_v40, %v7036_v47 }
 0x203   :  { %v1463_v58 = vadd.f32 %v1462_v19, %v1461_v62  ;;  %v1063_v19 = vmul.f32 %v7814_v8, %v7814_v8  ;;  %v1468_v62 = vsel %vm489_vm0, %v1061_v32, 0.0  ;;  %10976 = vst [vmem:[#allocation60_spill] sm:$0xff] %v7841_v4  ;;  %v7850_v32 = vsub.f32 %v6174_v35, %v7036_v47 }
 0x205   :  { %v1465_v53 = vadd.f32 %v1464_v12, %v1463_v58  ;;  %v1064_v12 = vmul.f32 %v7823_v37, %v7823_v37  ;;  %v1470_v58 = vsel %vm489_vm0, %v1062_v25, 0.0  ;;  %10977 = vst [vmem:[#allocation61_spill] sm:$0xff] %v7850_v32  ;;  %v7859_v25 = vsub.f32 %v6175_v31, %v7036_v47 }
 0x207   :  { %v1467_v49 = vadd.f32 %v1466_v3, %v1465_v53  ;;  %v1065_v3 = vmul.f32 %v7832_v21, %v7832_v21  ;;  %v1472_v53 = vsel %vm489_vm0, %v1063_v19, 0.0  ;;  %10978 = vst [vmem:[#allocation62_spill] sm:$0xff] %v7859_v25  ;;  %v7868_v19 = vsub.f32 %v6176_v26, %v7036_v47 }
 0x209   :  { %v1469_v44 = vadd.f32 %v1468_v62, %v1467_v49  ;;  %v1066_v62 = vmul.f32 %v7841_v4, %v7841_v4  ;;  %v1474_v49 = vsel %vm489_vm0, %v1064_v12, 0.0  ;;  %10979 = vst [vmem:[#allocation63_spill] sm:$0xff] %v7868_v19  ;;  %v7877_v12 = vsub.f32 %v6177_v22, %v7036_v47 }
 0x20b   :  { %v1471_v40 = vadd.f32 %v1470_v58, %v1469_v44  ;;  %v1067_v58 = vmul.f32 %v7850_v32, %v7850_v32  ;;  %v1476_v44 = vsel %vm489_vm0, %v1065_v3, 0.0  ;;  %10980 = vst [vmem:[#allocation64_spill] sm:$0xff] %v7877_v12  ;;  %v7886_v3 = vsub.f32 %v6178_v17, %v7036_v47 }
 0x20d   :  { %v1473_v35 = vadd.f32 %v1472_v53, %v1471_v40  ;;  %v1068_v53 = vmul.f32 %v7859_v25, %v7859_v25  ;;  %v1478_v40 = vsel %vm489_vm0, %v1066_v62, 0.0  ;;  %10981 = vst [vmem:[#allocation65_spill] sm:$0xff] %v7886_v3  ;;  %v7895_v62 = vsub.f32 %v6179_v13, %v7036_v47 }
 0x20f   :  { %v1475_v31 = vadd.f32 %v1474_v49, %v1473_v35  ;;  %v1069_v49 = vmul.f32 %v7868_v19, %v7868_v19  ;;  %v1480_v35 = vsel %vm489_vm0, %v1067_v58, 0.0  ;;  %10982 = vst [vmem:[#allocation66_spill] sm:$0xff] %v7895_v62  ;;  %v7904_v58 = vsub.f32 %v6180_v5, %v7036_v47 }
 0x210   :  { %v174_v19 = vlaneseq }
 0x211   :  { %v1477_v26 = vadd.f32 %v1476_v44, %v1475_v31  ;;  %v1070_v44 = vmul.f32 %v7877_v12, %v7877_v12  ;;  %v1482_v31 = vsel %vm489_vm0, %v1068_v53, 0.0  ;;  %10983 = vst [vmem:[#allocation67_spill] sm:$0xff] %v7904_v58  ;;  %v6181_v12 = vld [vmem:[%s10796_s0 + $0x358] sm:$0xff] }
 0x212   :  { %v7913_v53 = vsub.f32 %v6181_v12, %v7036_v47  ;;  %v175_v2 = vshrl.u32 %v174_v19, 7 }
 0x213   :  { %v1479_v22 = vadd.f32 %v1478_v40, %v1477_v26  ;;  %v1071_v40 = vmul.f32 %v7886_v3, %v7886_v3  ;;  %v1484_v26 = vsel %vm489_vm0, %v1069_v49, 0.0  ;;  %v6182_v3 = vld [vmem:[%s10796_s0 + $0x360] sm:$0xff] }
 0x214   :  { %10984 = vst [vmem:[#allocation68_spill] sm:$0xff] %v7913_v53  ;;  %v7922_v49 = vsub.f32 %v6182_v3, %v7036_v47 }
 0x215   :  { %v1481_v17 = vadd.f32 %v1480_v35, %v1479_v22  ;;  %v1072_v35 = vmul.f32 %v7895_v62, %v7895_v62  ;;  %v1486_v22 = vsel %vm489_vm0, %v1070_v44, 0.0  ;;  %v6183_v62 = vld [vmem:[%s10796_s0 + $0x368] sm:$0xff] }
 0x216   :  { %10985 = vst [vmem:[#allocation69_spill] sm:$0xff] %v7922_v49  ;;  %v7931_v44 = vsub.f32 %v6183_v62, %v7036_v47 }
 0x217   :  { %v1483_v13 = vadd.f32 %v1482_v31, %v1481_v17  ;;  %v1073_v31 = vmul.f32 %v7904_v58, %v7904_v58  ;;  %v1488_v17 = vsel %vm489_vm0, %v1071_v40, 0.0  ;;  %v6184_v58 = vld [vmem:[%s10796_s0 + $0x370] sm:$0xff] }
 0x218   :  { %10986 = vst [vmem:[#allocation70_spill] sm:$0xff] %v7931_v44  ;;  %v7940_v40 = vsub.f32 %v6184_v58, %v7036_v47 }
 0x219   :  { %v1485_v5 = vadd.f32 %v1484_v26, %v1483_v13  ;;  %v1074_v26 = vmul.f32 %v7913_v53, %v7913_v53  ;;  %v1490_v13 = vsel %vm489_vm0, %v1072_v35, 0.0  ;;  %v6185_v53 = vld [vmem:[%s10796_s0 + $0x378] sm:$0xff] }
 0x21a   :  { %10987 = vst [vmem:[#allocation71_spill] sm:$0xff] %v7940_v40  ;;  %v7949_v35 = vsub.f32 %v6185_v53, %v7036_v47 }
 0x21b   :  { %v1487_v12 = vadd.f32 %v1486_v22, %v1485_v5  ;;  %v1075_v22 = vmul.f32 %v7922_v49, %v7922_v49  ;;  %v1492_v5 = vsel %vm489_vm0, %v1073_v31, 0.0  ;;  %v6186_v49 = vld [vmem:[%s10796_s0 + $0x380] sm:$0xff] }
 0x21c   :  { %10988 = vst [vmem:[#allocation72_spill] sm:$0xff] %v7949_v35  ;;  %v7958_v31 = vsub.f32 %v6186_v49, %v7036_v47 }
 0x21d   :  { %v1489_v3 = vadd.f32 %v1488_v17, %v1487_v12  ;;  %v1076_v17 = vmul.f32 %v7931_v44, %v7931_v44  ;;  %v1494_v12 = vsel %vm489_vm0, %v1074_v26, 0.0  ;;  %v6187_v44 = vld [vmem:[%s10796_s0 + $0x388] sm:$0xff] }
 0x21e   :  { %10989 = vst [vmem:[#allocation73_spill] sm:$0xff] %v7958_v31  ;;  %v7967_v26 = vsub.f32 %v6187_v44, %v7036_v47 }
 0x21f   :  { %v1491_v62 = vadd.f32 %v1490_v13, %v1489_v3  ;;  %v1077_v13 = vmul.f32 %v7940_v40, %v7940_v40  ;;  %v1496_v3 = vsel %vm489_vm0, %v1075_v22, 0.0  ;;  %v6188_v40 = vld [vmem:[%s10796_s0 + $0x390] sm:$0xff] }
 0x220   :  { %10990 = vst [vmem:[#allocation74_spill] sm:$0xff] %v7967_v26  ;;  %v7976_v22 = vsub.f32 %v6188_v40, %v7036_v47 }
 0x221   :  { %v1493_v58 = vadd.f32 %v1492_v5, %v1491_v62  ;;  %v1078_v5 = vmul.f32 %v7949_v35, %v7949_v35  ;;  %v1498_v62 = vsel %vm489_vm0, %v1076_v17, 0.0  ;;  %v6189_v35 = vld [vmem:[%s10796_s0 + $0x398] sm:$0xff] }
 0x222   :  { %10991 = vst [vmem:[#allocation75_spill] sm:$0xff] %v7976_v22  ;;  %v7985_v17 = vsub.f32 %v6189_v35, %v7036_v47 }
 0x223   :  { %v1495_v53 = vadd.f32 %v1494_v12, %v1493_v58  ;;  %v1079_v12 = vmul.f32 %v7958_v31, %v7958_v31  ;;  %v1500_v58 = vsel %vm489_vm0, %v1077_v13, 0.0  ;;  %v6190_v31 = vld [vmem:[%s10796_s0 + $0x3a0] sm:$0xff] }
 0x224   :  { %10992 = vst [vmem:[#allocation76_spill] sm:$0xff] %v7985_v17  ;;  %v7994_v13 = vsub.f32 %v6190_v31, %v7036_v47 }
 0x225   :  { %v1497_v49 = vadd.f32 %v1496_v3, %v1495_v53  ;;  %v1080_v3 = vmul.f32 %v7967_v26, %v7967_v26  ;;  %v1502_v53 = vsel %vm489_vm0, %v1078_v5, 0.0  ;;  %v6191_v26 = vld [vmem:[%s10796_s0 + $0x3a8] sm:$0xff] }
 0x226   :  { %10993 = vst [vmem:[#allocation77_spill] sm:$0xff] %v7994_v13  ;;  %v8003_v5 = vsub.f32 %v6191_v26, %v7036_v47 }
 0x227   :  { %v1499_v44 = vadd.f32 %v1498_v62, %v1497_v49  ;;  %v1081_v62 = vmul.f32 %v7976_v22, %v7976_v22  ;;  %v1504_v49 = vsel %vm489_vm0, %v1079_v12, 0.0  ;;  %v6192_v22 = vld [vmem:[%s10796_s0 + $0x3b0] sm:$0xff] }
 0x228   :  { %10994 = vst [vmem:[#allocation78_spill] sm:$0xff] %v8003_v5  ;;  %v8012_v12 = vsub.f32 %v6192_v22, %v7036_v47 }
 0x229   :  { %v1501_v40 = vadd.f32 %v1500_v58, %v1499_v44  ;;  %v1082_v58 = vmul.f32 %v7985_v17, %v7985_v17  ;;  %v1506_v44 = vsel %vm489_vm0, %v1080_v3, 0.0  ;;  %v6193_v17 = vld [vmem:[%s10796_s0 + $0x3b8] sm:$0xff] }
 0x22a   :  { %10995 = vst [vmem:[#allocation79_spill] sm:$0xff] %v8012_v12  ;;  %v8021_v3 = vsub.f32 %v6193_v17, %v7036_v47 }
 0x22b   :  { %v1503_v35 = vadd.f32 %v1502_v53, %v1501_v40  ;;  %v1083_v53 = vmul.f32 %v7994_v13, %v7994_v13  ;;  %v1508_v40 = vsel %vm489_vm0, %v1081_v62, 0.0  ;;  %v6194_v13 = vld [vmem:[%s10796_s0 + $0x3c0] sm:$0xff] }
 0x22c   :  { %10996 = vst [vmem:[#allocation80_spill] sm:$0xff] %v8021_v3  ;;  %v8030_v62 = vsub.f32 %v6194_v13, %v7036_v47 }
 0x22d   :  { %v1505_v31 = vadd.f32 %v1504_v49, %v1503_v35  ;;  %v1084_v49 = vmul.f32 %v8003_v5, %v8003_v5  ;;  %v1510_v35 = vsel %vm489_vm0, %v1082_v58, 0.0  ;;  %v6195_v5 = vld [vmem:[%s10796_s0 + $0x3c8] sm:$0xff] }
 0x22e   :  { %10997 = vst [vmem:[#allocation81_spill] sm:$0xff] %v8030_v62  ;;  %v8039_v58 = vsub.f32 %v6195_v5, %v7036_v47 }
 0x22f   :  { %v1507_v26 = vadd.f32 %v1506_v44, %v1505_v31  ;;  %v1085_v44 = vmul.f32 %v8012_v12, %v8012_v12  ;;  %v1512_v31 = vsel %vm489_vm0, %v1083_v53, 0.0  ;;  %v6196_v12 = vld [vmem:[%s10796_s0 + $0x3d0] sm:$0xff] }
 0x230   :  { %10998 = vst [vmem:[#allocation82_spill] sm:$0xff] %v8039_v58  ;;  %v8048_v53 = vsub.f32 %v6196_v12, %v7036_v47 }
 0x231   :  { %v1509_v22 = vadd.f32 %v1508_v40, %v1507_v26  ;;  %v1086_v40 = vmul.f32 %v8021_v3, %v8021_v3  ;;  %v1514_v26 = vsel %vm489_vm0, %v1084_v49, 0.0  ;;  %v6197_v3 = vld [vmem:[%s10796_s0 + $0x3d8] sm:$0xff] }
 0x232   :  { %10999 = vst [vmem:[#allocation83_spill] sm:$0xff] %v8048_v53  ;;  %v8057_v49 = vsub.f32 %v6197_v3, %v7036_v47 }
 0x233   :  { %v1511_v17 = vadd.f32 %v1510_v35, %v1509_v22  ;;  %v1087_v35 = vmul.f32 %v8030_v62, %v8030_v62  ;;  %v1516_v22 = vsel %vm489_vm0, %v1085_v44, 0.0  ;;  %v6198_v62 = vld [vmem:[%s10796_s0 + $0x3e0] sm:$0xff] }
 0x234   :  { %11000 = vst [vmem:[#allocation84_spill] sm:$0xff] %v8057_v49  ;;  %v8066_v44 = vsub.f32 %v6198_v62, %v7036_v47 }
 0x235   :  { %v1513_v13 = vadd.f32 %v1512_v31, %v1511_v17  ;;  %v1088_v31 = vmul.f32 %v8039_v58, %v8039_v58  ;;  %v1518_v17 = vsel %vm489_vm0, %v1086_v40, 0.0  ;;  %v6199_v58 = vld [vmem:[%s10796_s0 + $0x3e8] sm:$0xff] }
 0x236   :  { %11001 = vst [vmem:[#allocation85_spill] sm:$0xff] %v8066_v44  ;;  %v8075_v40 = vsub.f32 %v6199_v58, %v7036_v47 }
 0x237   :  { %v1515_v5 = vadd.f32 %v1514_v26, %v1513_v13  ;;  %v1089_v26 = vmul.f32 %v8048_v53, %v8048_v53  ;;  %v1520_v13 = vsel %vm489_vm0, %v1087_v35, 0.0  ;;  %v6200_v53 = vld [vmem:[%s10796_s0 + $0x3f0] sm:$0xff] }
 0x238   :  { %11002 = vst [vmem:[#allocation86_spill] sm:$0xff] %v8075_v40  ;;  %v8084_v35 = vsub.f32 %v6200_v53, %v7036_v47 }
 0x239   :  { %v1517_v12 = vadd.f32 %v1516_v22, %v1515_v5  ;;  %v1090_v22 = vmul.f32 %v8057_v49, %v8057_v49  ;;  %v1522_v5 = vsel %vm489_vm0, %v1088_v31, 0.0  ;;  %v6201_v49 = vld [vmem:[%s10796_s0 + $0x3f8] sm:$0xff] }
 0x23a   :  { %11003 = vst [vmem:[#allocation87_spill] sm:$0xff] %v8084_v35  ;;  %v8093_v31 = vsub.f32 %v6201_v49, %v7036_v47 }
 0x23b   :  { %v1519_v3 = vadd.f32 %v1518_v17, %v1517_v12  ;;  %v1091_v17 = vmul.f32 %v8066_v44, %v8066_v44  ;;  %v1524_v12 = vsel %vm489_vm0, %v1089_v26, 0.0  ;;  %v6202_v44 = vld [vmem:[%s10796_s0 + $0x400] sm:$0xff] }
 0x23c   :  { %11004 = vst [vmem:[#allocation88_spill] sm:$0xff] %v8093_v31  ;;  %v8102_v26 = vsub.f32 %v6202_v44, %v7036_v47 }
 0x23d   :  { %v1521_v62 = vadd.f32 %v1520_v13, %v1519_v3  ;;  %v1092_v13 = vmul.f32 %v8075_v40, %v8075_v40  ;;  %v1526_v3 = vsel %vm489_vm0, %v1090_v22, 0.0  ;;  %v6203_v40 = vld [vmem:[%s10796_s0 + $0x408] sm:$0xff] }
 0x23e   :  { %11005 = vst [vmem:[#allocation89_spill] sm:$0xff] %v8102_v26  ;;  %v8111_v22 = vsub.f32 %v6203_v40, %v7036_v47 }
 0x23f   :  { %v1523_v58 = vadd.f32 %v1522_v5, %v1521_v62  ;;  %v1093_v5 = vmul.f32 %v8084_v35, %v8084_v35  ;;  %v1528_v62 = vsel %vm489_vm0, %v1091_v17, 0.0  ;;  %v6204_v35 = vld [vmem:[%s10796_s0 + $0x410] sm:$0xff] }
 0x240   :  { %11006 = vst [vmem:[#allocation90_spill] sm:$0xff] %v8111_v22  ;;  %v8120_v17 = vsub.f32 %v6204_v35, %v7036_v47 }
 0x241   :  { %v1525_v53 = vadd.f32 %v1524_v12, %v1523_v58  ;;  %v1094_v12 = vmul.f32 %v8093_v31, %v8093_v31  ;;  %v1530_v58 = vsel %vm489_vm0, %v1092_v13, 0.0  ;;  %v6205_v31 = vld [vmem:[%s10796_s0 + $0x418] sm:$0xff] }
 0x242   :  { %11007 = vst [vmem:[#allocation91_spill] sm:$0xff] %v8120_v17  ;;  %v8129_v13 = vsub.f32 %v6205_v31, %v7036_v47 }
 0x243   :  { %v1527_v49 = vadd.f32 %v1526_v3, %v1525_v53  ;;  %v1095_v3 = vmul.f32 %v8102_v26, %v8102_v26  ;;  %v1532_v53 = vsel %vm489_vm0, %v1093_v5, 0.0  ;;  %v6206_v26 = vld [vmem:[%s10796_s0 + $0x420] sm:$0xff] }
 0x244   :  { %11008 = vst [vmem:[#allocation92_spill] sm:$0xff] %v8129_v13  ;;  %v8138_v5 = vsub.f32 %v6206_v26, %v7036_v47 }
 0x245   :  { %v1529_v44 = vadd.f32 %v1528_v62, %v1527_v49  ;;  %v1096_v62 = vmul.f32 %v8111_v22, %v8111_v22  ;;  %v1534_v49 = vsel %vm489_vm0, %v1094_v12, 0.0  ;;  %v6207_v22 = vld [vmem:[%s10796_s0 + $0x428] sm:$0xff] }
 0x246   :  { %11009 = vst [vmem:[#allocation93_spill] sm:$0xff] %v8138_v5  ;;  %v8147_v12 = vsub.f32 %v6207_v22, %v7036_v47 }
 0x247   :  { %v1531_v40 = vadd.f32 %v1530_v58, %v1529_v44  ;;  %v1097_v58 = vmul.f32 %v8120_v17, %v8120_v17  ;;  %v1536_v44 = vsel %vm489_vm0, %v1095_v3, 0.0  ;;  %v6208_v17 = vld [vmem:[%s10796_s0 + $0x430] sm:$0xff] }
 0x248   :  { %11010 = vst [vmem:[#allocation94_spill] sm:$0xff] %v8147_v12  ;;  %v8156_v3 = vsub.f32 %v6208_v17, %v7036_v47 }
 0x249   :  { %v1533_v35 = vadd.f32 %v1532_v53, %v1531_v40  ;;  %v1098_v53 = vmul.f32 %v8129_v13, %v8129_v13  ;;  %v1538_v40 = vsel %vm489_vm0, %v1096_v62, 0.0  ;;  %v6209_v13 = vld [vmem:[%s10796_s0 + $0x438] sm:$0xff] }
 0x24a   :  { %11011 = vst [vmem:[#allocation95_spill] sm:$0xff] %v8156_v3  ;;  %v8165_v62 = vsub.f32 %v6209_v13, %v7036_v47 }
 0x24b   :  { %v1535_v31 = vadd.f32 %v1534_v49, %v1533_v35  ;;  %v1099_v49 = vmul.f32 %v8138_v5, %v8138_v5  ;;  %v1540_v35 = vsel %vm489_vm0, %v1097_v58, 0.0  ;;  %v6210_v5 = vld [vmem:[%s10796_s0 + $0x440] sm:$0xff] }
 0x24c   :  { %11012 = vst [vmem:[#allocation96_spill] sm:$0xff] %v8165_v62  ;;  %v8174_v58 = vsub.f32 %v6210_v5, %v7036_v47 }
 0x24d   :  { %v1537_v26 = vadd.f32 %v1536_v44, %v1535_v31  ;;  %v1100_v44 = vmul.f32 %v8147_v12, %v8147_v12  ;;  %v1542_v31 = vsel %vm489_vm0, %v1098_v53, 0.0  ;;  %v6211_v12 = vld [vmem:[%s10796_s0 + $0x448] sm:$0xff] }
 0x24e   :  { %11013 = vst [vmem:[#allocation97_spill] sm:$0xff] %v8174_v58  ;;  %v8183_v53 = vsub.f32 %v6211_v12, %v7036_v47 }
 0x24f   :  { %v1539_v22 = vadd.f32 %v1538_v40, %v1537_v26  ;;  %v1101_v40 = vmul.f32 %v8156_v3, %v8156_v3  ;;  %v1544_v26 = vsel %vm489_vm0, %v1099_v49, 0.0  ;;  %v6212_v3 = vld [vmem:[%s10796_s0 + $0x450] sm:$0xff] }
 0x250   :  { %11014 = vst [vmem:[#allocation98_spill] sm:$0xff] %v8183_v53  ;;  %v8192_v49 = vsub.f32 %v6212_v3, %v7036_v47 }
 0x251   :  { %v1541_v17 = vadd.f32 %v1540_v35, %v1539_v22  ;;  %v1102_v35 = vmul.f32 %v8165_v62, %v8165_v62  ;;  %v1546_v22 = vsel %vm489_vm0, %v1100_v44, 0.0  ;;  %v6213_v62 = vld [vmem:[%s10796_s0 + $0x458] sm:$0xff] }
 0x252   :  { %11015 = vst [vmem:[#allocation99_spill] sm:$0xff] %v8192_v49  ;;  %v8201_v44 = vsub.f32 %v6213_v62, %v7036_v47 }
 0x253   :  { %v1543_v13 = vadd.f32 %v1542_v31, %v1541_v17  ;;  %v1103_v31 = vmul.f32 %v8174_v58, %v8174_v58  ;;  %v1548_v17 = vsel %vm489_vm0, %v1101_v40, 0.0  ;;  %v6214_v58 = vld [vmem:[%s10796_s0 + $0x460] sm:$0xff] }
 0x254   :  { %11016 = vst [vmem:[#allocation100_spill] sm:$0xff] %v8201_v44  ;;  %v8210_v40 = vsub.f32 %v6214_v58, %v7036_v47 }
 0x255   :  { %v1545_v5 = vadd.f32 %v1544_v26, %v1543_v13  ;;  %v1104_v26 = vmul.f32 %v8183_v53, %v8183_v53  ;;  %v1550_v13 = vsel %vm489_vm0, %v1102_v35, 0.0  ;;  %v6215_v53 = vld [vmem:[%s10796_s0 + $0x468] sm:$0xff] }
 0x256   :  { %11017 = vst [vmem:[#allocation101_spill] sm:$0xff] %v8210_v40  ;;  %v8219_v35 = vsub.f32 %v6215_v53, %v7036_v47 }
 0x257   :  { %v1547_v12 = vadd.f32 %v1546_v22, %v1545_v5  ;;  %v1105_v22 = vmul.f32 %v8192_v49, %v8192_v49  ;;  %v1552_v5 = vsel %vm489_vm0, %v1103_v31, 0.0  ;;  %v6216_v49 = vld [vmem:[%s10796_s0 + $0x470] sm:$0xff] }
 0x258   :  { %11018 = vst [vmem:[#allocation102_spill] sm:$0xff] %v8219_v35  ;;  %v8228_v31 = vsub.f32 %v6216_v49, %v7036_v47 }
 0x259   :  { %v1549_v3 = vadd.f32 %v1548_v17, %v1547_v12  ;;  %v1106_v17 = vmul.f32 %v8201_v44, %v8201_v44  ;;  %v1554_v12 = vsel %vm489_vm0, %v1104_v26, 0.0  ;;  %v6217_v44 = vld [vmem:[%s10796_s0 + $0x478] sm:$0xff] }
 0x25a   :  { %11019 = vst [vmem:[#allocation103_spill] sm:$0xff] %v8228_v31  ;;  %v8237_v26 = vsub.f32 %v6217_v44, %v7036_v47 }
 0x25b   :  { %v1551_v62 = vadd.f32 %v1550_v13, %v1549_v3  ;;  %v1107_v13 = vmul.f32 %v8210_v40, %v8210_v40  ;;  %v1556_v3 = vsel %vm489_vm0, %v1105_v22, 0.0  ;;  %v6218_v40 = vld [vmem:[%s10796_s0 + $0x480] sm:$0xff] }
 0x25c   :  { %11020 = vst [vmem:[#allocation104_spill] sm:$0xff] %v8237_v26  ;;  %v8246_v22 = vsub.f32 %v6218_v40, %v7036_v47 }
 0x25d   :  { %v1553_v58 = vadd.f32 %v1552_v5, %v1551_v62  ;;  %v1108_v5 = vmul.f32 %v8219_v35, %v8219_v35  ;;  %v1558_v62 = vsel %vm489_vm0, %v1106_v17, 0.0  ;;  %v6219_v35 = vld [vmem:[%s10796_s0 + $0x488] sm:$0xff] }
 0x25e   :  { %11021 = vst [vmem:[#allocation105_spill] sm:$0xff] %v8246_v22  ;;  %v8255_v17 = vsub.f32 %v6219_v35, %v7036_v47 }
 0x25f   :  { %v1555_v53 = vadd.f32 %v1554_v12, %v1553_v58  ;;  %v1109_v12 = vmul.f32 %v8228_v31, %v8228_v31  ;;  %v1560_v58 = vsel %vm489_vm0, %v1107_v13, 0.0  ;;  %v6220_v31 = vld [vmem:[%s10796_s0 + $0x490] sm:$0xff] }
 0x260   :  { %11022 = vst [vmem:[#allocation106_spill] sm:$0xff] %v8255_v17  ;;  %v8264_v13 = vsub.f32 %v6220_v31, %v7036_v47 }
 0x261   :  { %v1557_v49 = vadd.f32 %v1556_v3, %v1555_v53  ;;  %v1110_v3 = vmul.f32 %v8237_v26, %v8237_v26  ;;  %v1562_v53 = vsel %vm489_vm0, %v1108_v5, 0.0  ;;  %v6221_v26 = vld [vmem:[%s10796_s0 + $0x498] sm:$0xff] }
 0x262   :  { %11023 = vst [vmem:[#allocation107_spill] sm:$0xff] %v8264_v13  ;;  %v8273_v5 = vsub.f32 %v6221_v26, %v7036_v47 }
 0x263   :  { %v1559_v44 = vadd.f32 %v1558_v62, %v1557_v49  ;;  %v1111_v62 = vmul.f32 %v8246_v22, %v8246_v22  ;;  %v1564_v49 = vsel %vm489_vm0, %v1109_v12, 0.0  ;;  %v6222_v22 = vld [vmem:[%s10796_s0 + $0x4a0] sm:$0xff] }
 0x264   :  { %11024 = vst [vmem:[#allocation108_spill] sm:$0xff] %v8273_v5  ;;  %v8282_v12 = vsub.f32 %v6222_v22, %v7036_v47 }
 0x265   :  { %v1561_v40 = vadd.f32 %v1560_v58, %v1559_v44  ;;  %v1112_v58 = vmul.f32 %v8255_v17, %v8255_v17  ;;  %v1566_v44 = vsel %vm489_vm0, %v1110_v3, 0.0  ;;  %v6223_v17 = vld [vmem:[%s10796_s0 + $0x4a8] sm:$0xff] }
 0x266   :  { %11025 = vst [vmem:[#allocation109_spill] sm:$0xff] %v8282_v12  ;;  %v8291_v3 = vsub.f32 %v6223_v17, %v7036_v47 }
 0x267   :  { %v1563_v35 = vadd.f32 %v1562_v53, %v1561_v40  ;;  %v1113_v53 = vmul.f32 %v8264_v13, %v8264_v13  ;;  %v1568_v40 = vsel %vm489_vm0, %v1111_v62, 0.0  ;;  %v6224_v13 = vld [vmem:[%s10796_s0 + $0x4b0] sm:$0xff] }
 0x268   :  { %11026 = vst [vmem:[#allocation110_spill] sm:$0xff] %v8291_v3  ;;  %v8300_v62 = vsub.f32 %v6224_v13, %v7036_v47 }
 0x269   :  { %v1565_v31 = vadd.f32 %v1564_v49, %v1563_v35  ;;  %v1114_v49 = vmul.f32 %v8273_v5, %v8273_v5  ;;  %v1570_v35 = vsel %vm489_vm0, %v1112_v58, 0.0  ;;  %v6225_v5 = vld [vmem:[%s10796_s0 + $0x4b8] sm:$0xff] }
 0x26a   :  { %11027 = vst [vmem:[#allocation111_spill] sm:$0xff] %v8300_v62  ;;  %v8309_v58 = vsub.f32 %v6225_v5, %v7036_v47 }
 0x26b   :  { %v1567_v26 = vadd.f32 %v1566_v44, %v1565_v31  ;;  %v1115_v44 = vmul.f32 %v8282_v12, %v8282_v12  ;;  %v1572_v31 = vsel %vm489_vm0, %v1113_v53, 0.0  ;;  %v1574_v13 = vsel %vm489_vm0, %v1114_v49, 0.0  ;;  %v6226_v12 = vld [vmem:[%s10796_s0 + $0x4c0] sm:$0xff] }
 0x26c   :  { %11028 = vst [vmem:[#allocation112_spill] sm:$0xff] %v8309_v58  ;;  %v8318_v53 = vsub.f32 %v6226_v12, %v7036_v47 }
 0x26d   :  { %v1569_v22 = vadd.f32 %v1568_v40, %v1567_v26  ;;  %v1116_v40 = vmul.f32 %v8291_v3, %v8291_v3  ;;  %v6227_v3 = vld [vmem:[%s10796_s0 + $0x4c8] sm:$0xff] }
 0x26e   :  { %11029 = vst [vmem:[#allocation113_spill] sm:$0xff] %v8318_v53  ;;  %v8327_v49 = vsub.f32 %v6227_v3, %v7036_v47  ;;  %v1119_v19 = vmul.f32 %v8318_v53, %v8318_v53  ;;  %v6229_v3 = vld [vmem:[%s10796_s0 + $0x4e0] sm:$0xff] }
 0x26f   :  { %v1571_v17 = vadd.f32 %v1570_v35, %v1569_v22  ;;  %v1117_v35 = vmul.f32 %v8300_v62, %v8300_v62  ;;  %v1576_v22 = vsel %vm489_vm0, %v1115_v44, 0.0  ;;  %v1578_v12 = vsel %vm489_vm0, %v1116_v40, 0.0  ;;  %v6228_v62 = vld [vmem:[%s10796_s0 + $0x4d0] sm:$0xff] }
 0x270   :  { %11030 = vst [vmem:[#allocation114_spill] sm:$0xff] %v8327_v49  ;;  %v8336_v44 = vsub.f32 %v6228_v62, %v7036_v47  ;;  %v1120_v53 = vmul.f32 %v8327_v49, %v8327_v49 }
 0x271   :  { %v1573_v26 = vadd.f32 %v1572_v31, %v1571_v17  ;;  %v1118_v31 = vmul.f32 %v8309_v58, %v8309_v58 }
 0x272   :  { %11031 = vst [vmem:[#allocation115_spill] sm:$0xff] %v8336_v44  ;;  %v1121_v25 = vmul.f32 %v8336_v44, %v8336_v44 }
 0x273   :  { %v1575_v5 = vadd.f32 %v1574_v13, %v1573_v26  ;;  %v1580_v13 = vsel %vm489_vm0, %v1117_v35, 0.0  ;;  %v8345_v26 = vsub.f32 %v6229_v3, %v7036_v47  ;;  %v1582_v35 = vsel %vm489_vm0, %v1118_v31, 0.0 }
 0x274   :  { %v1584_v3 = vsel %vm489_vm0, %v1119_v19, 0.0  ;;  %v1588_v49 = vsel %vm489_vm0, %v1121_v25, 0.0  ;;  %v8372_v25 = vld [vmem:[%s10797_s1] ss:$0 sm:$0xff] }
 0x275   :  { %v1577_v17 = vadd.f32 %v1576_v22, %v1575_v5  ;;  %11032 = vst [vmem:[#allocation116_spill] sm:$0xff] %v8345_v26  ;;  %v331_v22 = vadd.s32 1248, %v175_v2  ;;  %v6230_v5 = vld [vmem:[%s10796_s0 + $0x4d8] sm:$0xff]  ;;  %v1123_v2 = vmul.f32 %v8345_v26, %v8345_v26 }
 0x276   :  { %v8351_v62 = vsub.f32 %v6230_v5, %v7036_v47 }
 0x277   :  { %v1579_v40 = vadd.f32 %v1578_v12, %v1577_v17  ;;  %vm488_vm2 = vcmp.lt.s32.totalorder %v331_v22, 1250  ;;  %v1586_v17 = vsel %vm489_vm0, %v1120_v53, 0.0 }
 0x278   :  { %11033 = vst [vmem:[#allocation117_spill] sm:$0xff] %v8351_v62  ;;  %v1122_v47 = vmul.f32 %v8351_v62, %v8351_v62  ;;  %v1280_v31 = vsel %vm488_vm2, %v1123_v2, 0.0 }
 0x279   :  { %v1581_v58 = vadd.f32 %v1580_v13, %v1579_v40  ;;  %v1592_v19 = vsel %vm489_vm0, %v1280_v31, 0.0 }
 0x27a   :  { %v1590_v40 = vsel %vm489_vm0, %v1122_v47, 0.0 }
 0x27b   :  { %v1583_v12 = vadd.f32 %v1582_v35, %v1581_v58 }
 0x27d   :  { %v1585_v5 = vadd.f32 %v1584_v3, %v1583_v12 }
 0x27f   :  { %v1587_v13 = vadd.f32 %v1586_v17, %v1585_v5 }
 0x281   :  { %v1589_v44 = vadd.f32 %v1588_v49, %v1587_v13 }
 0x283   :  { %v1591_v63 = vadd.f32 %v1590_v40, %v1589_v44 }
 0x285   :  { %v1593_v32 = vadd.f32 %v1592_v19, %v1591_v63 }
 0x287   :  { %v1594_v26 = vrot.slane %v1593_v32, 4 }
 0x289   :  { %v1595_v58 = vadd.f32 %v1594_v26, %v1593_v32 }
 0x28b   :  { %v1596_v22 = vrot.slane %v1595_v58, 2 }
 0x28d   :  { %v1597_v35 = vadd.f32 %v1596_v22, %v1595_v58 }
 0x28f   :  { %v1598_v60 = vrot.slane %v1597_v35, 1 }
 0x291   :  { %v1599_v62 = vadd.f32 %v1598_v60, %v1597_v35 }
 0x293   :  { %v1600_v4 = vmul.f32 0.0008, %v1599_v62 }
 0x295   :  { %v1601_v53 = vadd.f32 1e-05, %v1600_v4  ;;  %v8385_v4 = vld [vmem:[%s10798_s2] ss:$0 sm:$0xff] }
 0x297   :  { %5486 = vrsqrt.f32 %v1601_v53 }
 0x2a1   :  { %v8367_v3 = vpop.eup %5486 }
 0x2a2   :  { %v1603_v49 = vmul.f32 %v8367_v3, %v7040_v50  ;;  %v1682_v63 = vmul.f32 %v8367_v3, %v7661_v10  ;;  %v1604_v32 = vmul.f32 %v8367_v3, %v7044_v52  ;;  %v1683_v60 = vmul.f32 %v8367_v3, %v7670_v15 }
 0x2a3   :  { %v1605_v44 = vmul.f32 %v8367_v3, %v7048_v55  ;;  %v1684_v50 = vmul.f32 %v8367_v3, %v7679_v29  ;;  %v1606_v10 = vmul.f32 %v8367_v3, %v7052_v56  ;;  %v1685_v52 = vmul.f32 %v8367_v3, %v7688_v61 }
 0x2a4   :  { %v1767_v26 = vmul.f32 %v8372_v25, %v1603_v49  ;;  %v1846_v15 = vmul.f32 %v8372_v25, %v1682_v63  ;;  %v1768_v62 = vmul.f32 %v8372_v25, %v1604_v32  ;;  %v1847_v2 = vmul.f32 %v8372_v25, %v1683_v60 }
 0x2a5   :  { %v1769_v12 = vmul.f32 %v8372_v25, %v1605_v44  ;;  %v1848_v55 = vmul.f32 %v8372_v25, %v1684_v50  ;;  %v1770_v29 = vmul.f32 %v8372_v25, %v1606_v10  ;;  %v1849_v47 = vmul.f32 %v8372_v25, %v1685_v52 }
 0x2a6   :  { %v8404_v56 = vadd.f32 %v8385_v4, %v1767_v26  ;;  %v8407_v61 = vadd.f32 %v8385_v4, %v1846_v15  ;;  %v8410_v17 = vadd.f32 %v8385_v4, %v1768_v62  ;;  %v8413_v5 = vadd.f32 %v8385_v4, %v1847_v2 }
 0x2a7   :  { %v8416_v31 = vadd.f32 %v8385_v4, %v1769_v12  ;;  %v8419_v13 = vadd.f32 %v8385_v4, %v1848_v55  ;;  %v8422_v40 = vadd.f32 %v8385_v4, %v1770_v29  ;;  %v8425_v19 = vadd.f32 %v8385_v4, %v1849_v47 }
 0x2a8   :  { %v2088_v58 = vsub.f32 0.0, %v8404_v56  ;;  %v2167_v22 = vsub.f32 0.0, %v8407_v61  ;;  %v2089_v35 = vsub.f32 0.0, %v8410_v17  ;;  %v2168_v53 = vsub.f32 0.0, %v8413_v5 }
 0x2a9   :  { %v2090_v49 = vsub.f32 0.0, %v8416_v31  ;;  %v2169_v63 = vsub.f32 0.0, %v8419_v13  ;;  %v2091_v32 = vsub.f32 0.0, %v8422_v40  ;;  %v2170_v60 = vsub.f32 0.0, %v8425_v19 }
 0x2aa   :  { %v2245_v44 = vmul.f32 1.442695, %v2088_v58  ;;  %v2403_v50 = vmul.f32 1.442695, %v2167_v22  ;;  %v2247_v10 = vmul.f32 1.442695, %v2089_v35  ;;  %v1607_v52 = vmul.f32 %v8367_v3, %v7056_v59 }
 0x2ab   :  { %v2405_v26 = vmul.f32 1.442695, %v2168_v53  ;;  %v2249_v15 = vmul.f32 1.442695, %v2090_v49  ;;  %v2407_v62 = vmul.f32 1.442695, %v2169_v63  ;;  %v1686_v2 = vmul.f32 %v8367_v3, %v7697_v46 }
 0x2ac   :  { %5488 = vpow2.f32 %v2245_v44  ;;  %v2251_v12 = vmul.f32 1.442695, %v2091_v32  ;;  %v2409_v55 = vmul.f32 1.442695, %v2170_v60  ;;  %v1771_v29 = vmul.f32 %v8372_v25, %v1607_v52 }
 0x2ad   :  { %5490 = vpow2.f32 %v2403_v50  ;;  %v1850_v47 = vmul.f32 %v8372_v25, %v1686_v2  ;;  %v1608_v58 = vmul.f32 %v8367_v3, %v7066_v9  ;;  %v1687_v59 = vmul.f32 %v8367_v3, %v7706_v34 }
 0x2ae   :  { %5492 = vpow2.f32 %v2247_v10  ;;  %v8446_v22 = vadd.f32 %v8385_v4, %v1771_v29  ;;  %v1609_v46 = vmul.f32 %v8367_v3, %v7072_v14  ;;  %v1688_v35 = vmul.f32 %v8367_v3, %v7715_v0 }
 0x2af   :  { %5494 = vpow2.f32 %v2405_v26  ;;  %v8453_v53 = vadd.f32 %v8385_v4, %v1850_v47  ;;  %v1772_v49 = vmul.f32 %v8372_v25, %v1608_v58  ;;  %v1851_v9 = vmul.f32 %v8372_v25, %v1687_v59 }
 0x2b0   :  { %5496 = vpow2.f32 %v2249_v15  ;;  %v2092_v34 = vsub.f32 0.0, %v8446_v22  ;;  %v1773_v63 = vmul.f32 %v8372_v25, %v1609_v46  ;;  %v1852_v32 = vmul.f32 %v8372_v25, %v1688_v35 }
 0x2b1   :  { %5498 = vpow2.f32 %v2407_v62  ;;  %v2171_v14 = vsub.f32 0.0, %v8453_v53  ;;  %v8462_v0 = vadd.f32 %v8385_v4, %v1772_v49  ;;  %v8465_v60 = vadd.f32 %v8385_v4, %v1851_v9 }
 0x2b2   :  { %5500 = vpow2.f32 %v2251_v12  ;;  %v2253_v44 = vmul.f32 1.442695, %v2092_v34  ;;  %v8468_v50 = vadd.f32 %v8385_v4, %v1773_v63  ;;  %v8471_v10 = vadd.f32 %v8385_v4, %v1852_v32 }
 0x2b3   :  { %5502 = vpow2.f32 %v2409_v55  ;;  %v2411_v52 = vmul.f32 1.442695, %v2171_v14  ;;  %v2093_v26 = vsub.f32 0.0, %v8462_v0  ;;  %v2172_v15 = vsub.f32 0.0, %v8465_v60 }
 0x2b4   :  { %5504 = vpow2.f32 %v2253_v44  ;;  %v2094_v62 = vsub.f32 0.0, %v8468_v50  ;;  %v2173_v2 = vsub.f32 0.0, %v8471_v10  ;;  %v1610_v12 = vmul.f32 %v8367_v3, %v7081_v18 }
 0x2b5   :  { %5506 = vpow2.f32 %v2411_v52  ;;  %v2255_v29 = vmul.f32 1.442695, %v2093_v26  ;;  %v2413_v47 = vmul.f32 1.442695, %v2172_v15  ;;  %v1689_v58 = vmul.f32 %v8367_v3, %v7724_v16 }
 0x2b6   :  { %v5489_v55 = vpop.eup %5488  ;;  %v8481_v59 = vmul.f32 1.442695, %v2094_v62  ;;  %v8483_v46 = vmul.f32 1.442695, %v2173_v2  ;;  %v1774_v35 = vmul.f32 %v8372_v25, %v1610_v12  ;;  %v1611_v49 = vmul.f32 %v8367_v3, %v7088_v23 }
 0x2b7   :  { %v5491_v9 = vpop.eup %5490  ;;  %v2559_v34 = vadd.f32 1.0, %v5489_v55  ;;  %5508 = vpow2.f32 %v2255_v29  ;;  %v1853_v18 = vmul.f32 %v8372_v25, %v1689_v58  ;;  %v1690_v63 = vmul.f32 %v8367_v3, %v7733_v43 }
 0x2b8   :  { %v5493_v32 = vpop.eup %5492  ;;  %v2638_v16 = vadd.f32 1.0, %v5491_v9  ;;  %5510 = vpow2.f32 %v2413_v47  ;;  %v8492_v14 = vadd.f32 %v8385_v4, %v1774_v35  ;;  %v1775_v44 = vmul.f32 %v8372_v25, %v1611_v49 }
 0x2b9   :  { %v5495_v52 = vpop.eup %5494  ;;  %5512 = vrcp.f32 %v2559_v34  ;;  %v2560_v26 = vadd.f32 1.0, %v5493_v32  ;;  %v8496_v23 = vadd.f32 %v8385_v4, %v1853_v18  ;;  %v1854_v15 = vmul.f32 %v8372_v25, %v1690_v63 }
 0x2ba   :  { %v5497_v62 = vpop.eup %5496  ;;  %5514 = vrcp.f32 %v2638_v16  ;;  %v2639_v2 = vadd.f32 1.0, %v5495_v52  ;;  %v2095_v43 = vsub.f32 0.0, %v8492_v14  ;;  %v8501_v12 = vadd.f32 %v8385_v4, %v1775_v44 }
 0x2bb   :  { %v5499_v29 = vpop.eup %5498  ;;  %5516 = vrcp.f32 %v2560_v26  ;;  %v2561_v47 = vadd.f32 1.0, %v5497_v62  ;;  %v2174_v58 = vsub.f32 0.0, %v8496_v23  ;;  %v8505_v55 = vadd.f32 %v8385_v4, %v1854_v15 }
 0x2bc   :  { %v5501_v35 = vpop.eup %5500  ;;  %5518 = vrcp.f32 %v2639_v2  ;;  %v2640_v49 = vadd.f32 1.0, %v5499_v29  ;;  %v2259_v9 = vmul.f32 1.442695, %v2095_v43  ;;  %v2096_v34 = vsub.f32 0.0, %v8501_v12 }
 0x2bd   :  { %v5503_v18 = vpop.eup %5502  ;;  %5520 = vrcp.f32 %v2561_v47  ;;  %v2562_v63 = vadd.f32 1.0, %v5501_v35  ;;  %v2417_v32 = vmul.f32 1.442695, %v2174_v58  ;;  %v2175_v16 = vsub.f32 0.0, %v8505_v55 }
 0x2be   :  { %v5505_v44 = vpop.eup %5504  ;;  %5522 = vrcp.f32 %v2640_v49  ;;  %v2641_v52 = vadd.f32 1.0, %v5503_v18  ;;  %v2261_v26 = vmul.f32 1.442695, %v2096_v34  ;;  %v1612_v15 = vmul.f32 %v8367_v3, %v7095_v24 }
 0x2bf   :  { %v5507_v62 = vpop.eup %5506  ;;  %5524 = vrcp.f32 %v2562_v63  ;;  %v2563_v2 = vadd.f32 1.0, %v5505_v44  ;;  %v2419_v29 = vmul.f32 1.442695, %v2175_v16  ;;  %v1691_v43 = vmul.f32 %v8367_v3, %v7742_v1 }
 0x2c0   :  { %5526 = vrcp.f32 %v2641_v52  ;;  %v2642_v47 = vadd.f32 1.0, %v5507_v62  ;;  %v1776_v58 = vmul.f32 %v8372_v25, %v1612_v15  ;;  %v1613_v35 = vmul.f32 %v8367_v3, %v7102_v27 }
 0x2c1   :  { %v5509_v49 = vpop.eup %5508  ;;  %5528 = vrcp.f32 %v2563_v2  ;;  %v1855_v34 = vmul.f32 %v8372_v25, %v1691_v43  ;;  %v1692_v24 = vmul.f32 %v8367_v3, %v7751_v28  ;;  %v1614_v18 = vmul.f32 %v8367_v3, %v7109_v30 }
 0x2c2   :  { %v5511_v63 = vpop.eup %5510  ;;  %5530 = vrcp.f32 %v2642_v47  ;;  %v2564_v1 = vadd.f32 1.0, %v5509_v49  ;;  %v8522_v16 = vadd.f32 %v8385_v4, %v1776_v58  ;;  %v1777_v44 = vmul.f32 %v8372_v25, %v1613_v35 }
 0x2c3   :  { %v5513_v52 = vpop.eup %5512  ;;  %v2643_v27 = vadd.f32 1.0, %v5511_v63  ;;  %5532 = vpow2.f32 %v8481_v59  ;;  %v8527_v15 = vadd.f32 %v8385_v4, %v1855_v34  ;;  %v1856_v28 = vmul.f32 %v8372_v25, %v1692_v24 }
 0x2c4   :  { %v5515_v62 = vpop.eup %5514  ;;  %v3030_v30 = vmul.f32 %v5513_v52, %v8404_v56  ;;  %5534 = vrcp.f32 %v2564_v1  ;;  %v2097_v2 = vsub.f32 0.0, %v8522_v16  ;;  %v8533_v43 = vadd.f32 %v8385_v4, %v1777_v44 }
 0x2c5   :  { %v5517_v47 = vpop.eup %5516  ;;  %v3109_v58 = vmul.f32 %v5515_v62, %v8407_v61  ;;  %5536 = vrcp.f32 %v2643_v27  ;;  %v2176_v59 = vsub.f32 0.0, %v8527_v15  ;;  %v8538_v35 = vadd.f32 %v8385_v4, %v1856_v28 }
 0x2c6   :  { %v5519_v49 = vpop.eup %5518  ;;  %5003 = vmatmul.mubr.msk.f32.vlgmr.msra.gmra.mrb[0].mxu0 %vm489_vm0, %v3030_v30  ;;  %v3031_v56 = vmul.f32 %v5517_v47, %v8410_v17  ;;  %5538 = vpow2.f32 %v8483_v46  ;;  %v2263_v34 = vmul.f32 1.442695, %v2097_v2  ;;  %v2098_v24 = vsub.f32 0.0, %v8533_v43 }
 0x2c7   :  { %v5521_v63 = vpop.eup %5520  ;;  %v11034_v1 = vmov 0.0   ;;  %5240 = vmatmul.mubr.msk.f32.vlgmr.msra.gmra.mrb[0].mxu1 %vm489_vm0, %v3109_v58  ;;  %v3110_v61 = vmul.f32 %v5519_v49, %v8413_v5  ;;  %5540 = vpow2.f32 %v2259_v9  ;;  %v2421_v44 = vmul.f32 1.442695, %v2176_v59 }
 0x2c8   :  { %5005 = vmatprep.mubr.msk.f32.mxu0 %vm6239_vm1, %v11034_v1  ;;  %v2177_v52 = vsub.f32 0.0, %v8538_v35  ;;  %v5523_v27 = vpop.eup %5522  ;;  %5242 = vmatprep.mubr.msk.f32.mxu1 %vm6239_vm1, %v11034_v1  ;;  %v3032_v17 = vmul.f32 %v5521_v63, %v8416_v31  ;;  %5542 = vpow2.f32 %v2417_v32  ;;  %v2265_v46 = vmul.f32 1.442695, %v2098_v24 }
 0x2c9   :  { %v1778_v28 = vmul.f32 %v8372_v25, %v1614_v18  ;;  %v5525_v62 = vpop.eup %5524  ;;  %v3111_v30 = vmul.f32 %v5523_v27, %v8419_v13  ;;  %5544 = vpow2.f32 %v2261_v26  ;;  %v1693_v5 = vmul.f32 %v8367_v3, %v7760_v38 }
 0x2ca   :  { %v2423_v2 = vmul.f32 1.442695, %v2177_v52  ;;  %v5527_v9 = vpop.eup %5526  ;;  %5006 = vmatmul.mubr.msk.f32.gmra.mrb[2].mxu0 %vm489_vm0, %v3031_v56  ;;  %v3033_v47 = vmul.f32 %v5525_v62, %v8422_v40  ;;  %5546 = vpow2.f32 %v2419_v29  ;;  %v1615_v32 = vmul.f32 %v8367_v3, %v7116_v33 }
 0x2cb   :  { %v8559_v31 = vadd.f32 %v8385_v4, %v1778_v28  ;;  %v5529_v18 = vpop.eup %5528  ;;  %5008 = vmatprep.mubr.msk.f32.mxu0 %vm6239_vm1, %v11034_v1  ;;  %5243 = vmatmul.mubr.msk.f32.gmra.mrb[2].mxu1 %vm489_vm0, %v3110_v61  ;;  %v3112_v38 = vmul.f32 %v5527_v9, %v8425_v19  ;;  %5548 = vpow2.f32 %v2263_v34  ;;  %v1857_v13 = vmul.f32 %v8372_v25, %v1693_v5 }
 0x2cc   :  { %v1694_v40 = vmul.f32 %v8367_v3, %v7769_v7  ;;  %v5531_v26 = vpop.eup %5530  ;;  %5245 = vmatprep.mubr.msk.f32.mxu1 %vm6239_vm1, %v11034_v1  ;;  %v3034_v33 = vmul.f32 %v5529_v18, %v8446_v22  ;;  %5550 = vpow2.f32 %v2421_v44  ;;  %v1779_v58 = vmul.f32 %v8372_v25, %v1615_v32 }
 0x2cd   :  { %v2099_v29 = vsub.f32 0.0, %v8559_v31  ;;  %v5533_v59 = vpop.eup %5532  ;;  %v3113_v19 = vmul.f32 %v5531_v26, %v8453_v53  ;;  %5552 = vpow2.f32 %v2265_v46  ;;  %v8577_v49 = vadd.f32 %v8385_v4, %v1857_v13 }
 0x2ce   :  { %v1858_v7 = vmul.f32 %v8372_v25, %v1694_v40  ;;  %v5535_v56 = vpop.eup %5534  ;;  %5009 = vmatmul.mubr.msk.f32.gmra.mrb[4].mxu0 %vm489_vm0, %v3032_v17  ;;  %v2565_v34 = vadd.f32 1.0, %v5533_v59  ;;  %5554 = vpow2.f32 %v2423_v2  ;;  %v8582_v24 = vadd.f32 %v8385_v4, %v1779_v58 }
 0x2cf   :  { %v2267_v22 = vmul.f32 1.442695, %v2099_v29  ;;  %v5537_v63 = vpop.eup %5536  ;;  %5011 = vmatprep.mubr.msk.f32.mxu0 %vm6239_vm1, %v11034_v1  ;;  %5246 = vmatmul.mubr.msk.f32.gmra.mrb[4].mxu1 %vm489_vm0, %v3111_v30  ;;  %v8588_v53 = vmul.f32 %v5535_v56, %v8462_v0  ;;  %v2178_v61 = vsub.f32 0.0, %v8577_v49  ;;  %v1616_v52 = vmul.f32 %v8367_v3, %v7123_v36 }
 0x2d0   :  { %v8592_v44 = vadd.f32 %v8385_v4, %v1858_v7  ;;  %v5539_v27 = vpop.eup %5538  ;;  %5248 = vmatprep.mubr.msk.f32.mxu1 %vm6239_vm1, %v11034_v1  ;;  %v8599_v17 = vmul.f32 %v5537_v63, %v8465_v60  ;;  %5556 = vrcp.f32 %v2565_v34  ;;  %v2100_v46 = vsub.f32 0.0, %v8582_v24 }
 0x2d1   :  { %v1695_v0 = vmul.f32 %v8367_v3, %v7778_v6  ;;  %v5541_v28 = vpop.eup %5540  ;;  %v2644_v62 = vadd.f32 1.0, %v5539_v27  ;;  %5558 = vpow2.f32 %v2267_v22  ;;  %v8604_v30 = vmul.f32 1.442695, %v2178_v61 }
 0x2d2   :  { %v2179_v36 = vsub.f32 0.0, %v8592_v44  ;;  %v5543_v2 = vpop.eup %5542  ;;  %5012 = vmatmul.mubr.msk.f32.gmra.mrb[6].mxu0 %vm489_vm0, %v3033_v47  ;;  %v2566_v5 = vadd.f32 1.0, %v5541_v28  ;;  %v2269_v9 = vmul.f32 1.442695, %v2100_v46  ;;  %v1780_v60 = vmul.f32 %v8372_v25, %v1616_v52 }
 0x2d3   :  { %v1859_v32 = vmul.f32 %v8372_v25, %v1695_v0  ;;  %v5545_v18 = vpop.eup %5544  ;;  %5014 = vmatprep.mubr.msk.f32.mxu0 %vm6239_vm1, %v11034_v1  ;;  %5249 = vmatmul.mubr.msk.f32.gmra.mrb[6].mxu1 %vm489_vm0, %v3112_v38  ;;  %5560 = vrcp.f32 %v2644_v62  ;;  %v2645_v6 = vadd.f32 1.0, %v5543_v2  ;;  %v1617_v40 = vmul.f32 %v8367_v3, %v7130_v39 }
 0x2d4   :  { %v8613_v13 = vmul.f32 1.442695, %v2179_v36  ;;  %v5547_v47 = vpop.eup %5546  ;;  %5251 = vmatprep.mubr.msk.f32.mxu1 %vm6239_vm1, %v11034_v1  ;;  %5562 = vrcp.f32 %v2566_v5  ;;  %v2567_v26 = vadd.f32 1.0, %v5545_v18  ;;  %v8620_v29 = vadd.f32 %v8385_v4, %v1780_v60 }
 0x2d5   :  { %v8623_v58 = vadd.f32 %v8385_v4, %v1859_v32  ;;  %v5549_v38 = vpop.eup %5548  ;;  %5564 = vrcp.f32 %v2645_v6  ;;  %v2646_v59 = vadd.f32 1.0, %v5547_v47  ;;  %v1781_v7 = vmul.f32 %v8372_v25, %v1617_v40 }
 0x2d6   :  { %v1696_v39 = vmul.f32 %v8367_v3, %v7787_v41  ;;  %v5551_v56 = vpop.eup %5550  ;;  %5015 = vmatmul.mubr.msk.f32.gmra.mrb[8].mxu0 %vm489_vm0, %v3034_v33  ;;  %5566 = vrcp.f32 %v2567_v26  ;;  %v2568_v34 = vadd.f32 1.0, %v5549_v38  ;;  %v2101_v22 = vsub.f32 0.0, %v8620_v29 }
 0x2d7   :  { %v2180_v63 = vsub.f32 0.0, %v8623_v58  ;;  %v5553_v61 = vpop.eup %5552  ;;  %5017 = vmatprep.mubr.msk.f32.mxu0 %vm6239_vm1, %v11034_v1  ;;  %5252 = vmatmul.mubr.msk.f32.gmra.mrb[8].mxu1 %vm489_vm0, %v3113_v19  ;;  %5568 = vrcp.f32 %v2646_v59  ;;  %v2647_v52 = vadd.f32 1.0, %v5551_v56  ;;  %v8635_v27 = vadd.f32 %v8385_v4, %v1781_v7 }
 0x2d8   :  { %v1860_v41 = vmul.f32 %v8372_v25, %v1696_v39  ;;  %v5555_v33 = vpop.eup %5554  ;;  %5254 = vmatprep.mubr.msk.f32.mxu1 %vm6239_vm1, %v11034_v1  ;;  %5570 = vrcp.f32 %v2568_v34  ;;  %v2569_v46 = vadd.f32 1.0, %v5553_v61  ;;  %v2271_v0 = vmul.f32 1.442695, %v2101_v22 }
 0x2d9   :  { %v2429_v28 = vmul.f32 1.442695, %v2180_v63  ;;  %5572 = vrcp.f32 %v2647_v52  ;;  %v2648_v62 = vadd.f32 1.0, %v5555_v33  ;;  %v2102_v36 = vsub.f32 0.0, %v8635_v27 }
 0x2da   :  { %v8642_v19 = vadd.f32 %v8385_v4, %v1860_v41  ;;  %v5557_v2 = vpop.eup %5556  ;;  %5018 = vmatmul.mubr.msk.f32.gmra.mrb[10].mxu0 %vm489_vm0, %v8588_v53  ;;  %5574 = vrcp.f32 %v2569_v46  ;;  %v1618_v5 = vmul.f32 %v8367_v3, %v7137_v42  ;;  %v1697_v60 = vmul.f32 %v8367_v3, %v7796_v20 }
 0x2db   :  { %v1619_v32 = vmul.f32 %v8367_v3, %v7144_v45  ;;  %v5559_v18 = vpop.eup %5558  ;;  %5020 = vmatprep.mubr.msk.f32.mxu0 %vm6239_vm1, %v11034_v1  ;;  %5255 = vmatmul.mubr.msk.f32.gmra.mrb[10].mxu1 %vm489_vm0, %v8599_v17  ;;  %v3036_v6 = vmul.f32 %v5557_v2, %v8468_v50  ;;  %5576 = vrcp.f32 %v2648_v62  ;;  %v2273_v53 = vmul.f32 1.442695, %v2102_v36 }
 0x2dc   :  { %v2181_v40 = vsub.f32 0.0, %v8642_v19  ;;  %5257 = vmatprep.mubr.msk.f32.mxu1 %vm6239_vm1, %v11034_v1  ;;  %v2570_v42 = vadd.f32 1.0, %v5559_v18  ;;  %5578 = vpow2.f32 %v8604_v30  ;;  %v1782_v45 = vmul.f32 %v8372_v25, %v1618_v5 }
 0x2dd   :  { %v1861_v20 = vmul.f32 %v8372_v25, %v1697_v60  ;;  %v5561_v47 = vpop.eup %5560  ;;  %5580 = vpow2.f32 %v2269_v9  ;;  %v1783_v17 = vmul.f32 %v8372_v25, %v1619_v32  ;;  %v1698_v50 = vmul.f32 %v8367_v3, %v7805_v11 }
 0x2de   :  { %v2431_v26 = vmul.f32 1.442695, %v2181_v40  ;;  %v5563_v38 = vpop.eup %5562  ;;  %5021 = vmatmul.mubr.msk.f32.gmra.mrb[12].mxu0 %vm489_vm0, %v3036_v6  ;;  %v3115_v59 = vmul.f32 %v5561_v47, %v8471_v10  ;;  %5582 = vrcp.f32 %v2570_v42  ;;  %v8669_v30 = vadd.f32 %v8385_v4, %v1782_v45 }
 0x2df   :  { %v8672_v7 = vadd.f32 %v8385_v4, %v1861_v20  ;;  %v5565_v39 = vpop.eup %5564  ;;  %5023 = vmatprep.mubr.msk.f32.mxu0 %vm6239_vm1, %v11034_v1  ;;  %v3037_v9 = vmul.f32 %v5563_v38, %v8492_v14  ;;  %5584 = vpow2.f32 %v8613_v13  ;;  %v8679_v11 = vadd.f32 %v8385_v4, %v1783_v17 }
 0x2e0   :  { %v1862_v10 = vmul.f32 %v8372_v25, %v1698_v50  ;;  %v5567_v56 = vpop.eup %5566  ;;  %5258 = vmatmul.mubr.msk.f32.gmra.mrb[12].mxu1 %vm489_vm0, %v3115_v59  ;;  %v3116_v34 = vmul.f32 %v5565_v39, %v8496_v23  ;;  %5586 = vpow2.f32 %v2271_v0  ;;  %v2103_v22 = vsub.f32 0.0, %v8669_v30 }
 0x2e1   :  { %v2182_v63 = vsub.f32 0.0, %v8672_v7  ;;  %v5569_v61 = vpop.eup %5568  ;;  %5260 = vmatprep.mubr.msk.f32.mxu1 %vm6239_vm1, %v11034_v1  ;;  %v3038_v14 = vmul.f32 %v5567_v56, %v8501_v12  ;;  %5588 = vpow2.f32 %v2429_v28  ;;  %v2104_v13 = vsub.f32 0.0, %v8679_v11 }
 0x2e2   :  { %v8691_v52 = vadd.f32 %v8385_v4, %v1862_v10  ;;  %v5571_v41 = vpop.eup %5570  ;;  %5024 = vmatmul.mubr.msk.f32.gmra.mrb[14].mxu0 %vm489_vm0, %v3037_v9  ;;  %v3117_v23 = vmul.f32 %v5569_v61, %v8505_v55  ;;  %5590 = vpow2.f32 %v2273_v53  ;;  %v2275_v33 = vmul.f32 1.442695, %v2103_v22 }
 0x2e3   :  { %v2433_v46 = vmul.f32 1.442695, %v2182_v63  ;;  %v5573_v0 = vpop.eup %5572  ;;  %5026 = vmatprep.mubr.msk.f32.mxu0 %vm6239_vm1, %v11034_v1  ;;  %v3039_v12 = vmul.f32 %v5571_v41, %v8522_v16  ;;  %5592 = vpow2.f32 %v2431_v26  ;;  %v2277_v28 = vmul.f32 1.442695, %v2104_v13 }
 0x2e4   :  { %v2183_v62 = vsub.f32 0.0, %v8691_v52  ;;  %v5575_v36 = vpop.eup %5574  ;;  %5261 = vmatmul.mubr.msk.f32.gmra.mrb[14].mxu1 %vm489_vm0, %v3116_v34  ;;  %v3118_v2 = vmul.f32 %v5573_v0, %v8527_v15  ;;  %5594 = vpow2.f32 %v2275_v33  ;;  %v1620_v55 = vmul.f32 %v8367_v3, %v7151_v48 }
 0x2e5   :  { %v1699_v5 = vmul.f32 %v8367_v3, %v7814_v8  ;;  %v5577_v60 = vpop.eup %5576  ;;  %5263 = vmatprep.mubr.msk.f32.mxu1 %vm6239_vm1, %v11034_v1  ;;  %v3040_v16 = vmul.f32 %v5575_v36, %v8533_v43  ;;  %5596 = vpow2.f32 %v2433_v46  ;;  %v1621_v18 = vmul.f32 %v8367_v3, %v7158_v51 }
 0x2e6   :  { %v2435_v32 = vmul.f32 1.442695, %v2183_v62  ;;  %v5579_v6 = vpop.eup %5578  ;;  %5027 = vmatmul.mubr.msk.f32.gmra.mrb[16].mxu0 %vm489_vm0, %v3038_v14  ;;  %v3119_v15 = vmul.f32 %v5577_v60, %v8538_v35  ;;  %5598 = vpow2.f32 %v2277_v28  ;;  %v1784_v48 = vmul.f32 %v8372_v25, %v1620_v55 }
 0x2e7   :  { %v1863_v8 = vmul.f32 %v8372_v25, %v1699_v5  ;;  %v5581_v53 = vpop.eup %5580  ;;  %5029 = vmatprep.mubr.msk.f32.mxu0 %vm6239_vm1, %v11034_v1  ;;  %v2649_v43 = vadd.f32 1.0, %v5579_v6  ;;  %v1785_v40 = vmul.f32 %v8372_v25, %v1621_v18  ;;  %v1700_v51 = vmul.f32 %v8367_v3, %v7823_v37 }
 0x2e8   :  { %5600 = vpow2.f32 %v2435_v32  ;;  %v5583_v42 = vpop.eup %5582  ;;  %5264 = vmatmul.mubr.msk.f32.gmra.mrb[16].mxu1 %vm489_vm0, %v3117_v23  ;;  %v2571_v35 = vadd.f32 1.0, %v5581_v53  ;;  %v8721_v45 = vadd.f32 %v8385_v4, %v1784_v48  ;;  %v1622_v47 = vmul.f32 %v8367_v3, %v7165_v54  ;;  %v11035_v48 = vld [vmem:[#allocation60_spill] sm:$0xff] }
 0x2e9   :  { %v8724_v20 = vadd.f32 %v8385_v4, %v1863_v8  ;;  %v5585_v26 = vpop.eup %5584  ;;  %5266 = vmatprep.mubr.msk.f32.mxu1 %vm6239_vm1, %v11034_v1  ;;  %v3041_v17 = vmul.f32 %v5583_v42, %v8559_v31  ;;  %5602 = vrcp.f32 %v2649_v43  ;;  %v8732_v37 = vadd.f32 %v8385_v4, %v1785_v40  ;;  %v11036_v42 = vld [vmem:[#allocation2_spill] sm:$0xff] }
 0x2ea   :  { %v1864_v50 = vmul.f32 %v8372_v25, %v1700_v51  ;;  %v5587_v38 = vpop.eup %5586  ;;  %5030 = vmatmul.mubr.msk.f32.gmra.mrb[18].mxu0 %vm489_vm0, %v3039_v12  ;;  %5604 = vrcp.f32 %v2571_v35  ;;  %v2650_v59 = vadd.f32 1.0, %v5585_v26  ;;  %v2105_v39 = vsub.f32 0.0, %v8721_v45 }
 0x2eb   :  { %v2184_v54 = vsub.f32 0.0, %v8724_v20  ;;  %v5589_v9 = vpop.eup %5588  ;;  %5032 = vmatprep.mubr.msk.f32.mxu0 %vm6239_vm1, %v11034_v1  ;;  %v2572_v31 = vadd.f32 1.0, %v5587_v38  ;;  %v2106_v10 = vsub.f32 0.0, %v8732_v37  ;;  %v1786_v34 = vmul.f32 %v8372_v25, %v1622_v47 }
 0x2ec   :  { %v8742_v56 = vadd.f32 %v8385_v4, %v1864_v50  ;;  %v5591_v22 = vpop.eup %5590  ;;  %5267 = vmatmul.mubr.msk.f32.gmra.mrb[18].mxu1 %vm489_vm0, %v3118_v2  ;;  %5606 = vrcp.f32 %v2650_v59  ;;  %v2651_v63 = vadd.f32 1.0, %v5589_v9  ;;  %v2279_v61 = vmul.f32 1.442695, %v2105_v39  ;;  %v11037_v50 = vld [vmem:[#allocation61_spill] sm:$0xff] }
 0x2ed   :  { %v2437_v14 = vmul.f32 1.442695, %v2184_v54  ;;  %v5593_v13 = vpop.eup %5592  ;;  %5269 = vmatprep.mubr.msk.f32.mxu1 %vm6239_vm1, %v11034_v1  ;;  %5608 = vrcp.f32 %v2572_v31  ;;  %v2573_v41 = vadd.f32 1.0, %v5591_v22  ;;  %v2281_v23 = vmul.f32 1.442695, %v2106_v10 }
 0x2ee   :  { %v2185_v33 = vsub.f32 0.0, %v8742_v56  ;;  %v5595_v46 = vpop.eup %5594  ;;  %5033 = vmatmul.mubr.msk.f32.gmra.mrb[20].mxu0 %vm489_vm0, %v3040_v16  ;;  %5610 = vrcp.f32 %v2651_v63  ;;  %v2652_v0 = vadd.f32 1.0, %v5593_v13  ;;  %v8751_v12 = vadd.f32 %v8385_v4, %v1786_v34 }
 0x2ef   :  { %v1701_v28 = vmul.f32 %v8367_v3, %v7832_v21  ;;  %v5597_v62 = vpop.eup %5596  ;;  %5035 = vmatprep.mubr.msk.f32.mxu0 %vm6239_vm1, %v11034_v1  ;;  %5612 = vrcp.f32 %v2573_v41  ;;  %v2574_v36 = vadd.f32 1.0, %v5595_v46  ;;  %v1623_v55 = vmul.f32 %v8367_v3, %v7172_v57  ;;  %v11038_v46 = vld [vmem:[#allocation3_spill] sm:$0xff] }
 0x2f0   :  { %v2439_v2 = vmul.f32 1.442695, %v2185_v33  ;;  %v5599_v5 = vpop.eup %5598  ;;  %5270 = vmatmul.mubr.msk.f32.gmra.mrb[20].mxu1 %vm489_vm0, %v3119_v15  ;;  %5614 = vrcp.f32 %v2652_v0  ;;  %v2653_v60 = vadd.f32 1.0, %v5597_v62  ;;  %v2107_v16 = vsub.f32 0.0, %v8751_v12 }
 0x2f1   :  { %v1865_v32 = vmul.f32 %v8372_v25, %v1701_v28  ;;  %5272 = vmatprep.mubr.msk.f32.mxu1 %vm6239_vm1, %v11034_v1  ;;  %5616 = vrcp.f32 %v2574_v36  ;;  %v2575_v18 = vadd.f32 1.0, %v5599_v5  ;;  %v1787_v6 = vmul.f32 %v8372_v25, %v1623_v55  ;;  %v11039_v5 = vld [vmem:[#allocation62_spill] sm:$0xff] }
 0x2f2   :  { %v5601_v21 = vpop.eup %5600  ;;  %v1702_v57 = vmul.f32 %v8367_v3, %v11035_v48  ;;  %5036 = vmatmul.mubr.msk.f32.gmra.mrb[22].mxu0 %vm489_vm0, %v3041_v17  ;;  %5618 = vrcp.f32 %v2653_v60  ;;  %v2283_v8 = vmul.f32 1.442695, %v2107_v16  ;;  %v1624_v35 = vmul.f32 %v8367_v3, %v11036_v42  ;;  %v11042_v42 = vld [vmem:[#allocation5_spill] sm:$0xff] }
 0x2f3   :  { %v2654_v15 = vadd.f32 1.0, %v5601_v21  ;;  %v8769_v53 = vadd.f32 %v8385_v4, %v1865_v32  ;;  %v5603_v43 = vpop.eup %5602  ;;  %5038 = vmatprep.mubr.msk.f32.mxu0 %vm6239_vm1, %v11034_v1  ;;  %5620 = vrcp.f32 %v2575_v18  ;;  %v8774_v40 = vadd.f32 %v8385_v4, %v1787_v6 }
 0x2f4   :  { %v1866_v51 = vmul.f32 %v8372_v25, %v1702_v57  ;;  %v5605_v47 = vpop.eup %5604  ;;  %v3120_v26 = vmul.f32 %v5603_v43, %v8577_v49  ;;  %v1703_v38 = vmul.f32 %v8367_v3, %v11037_v50  ;;  %v1788_v49 = vmul.f32 %v8372_v25, %v1624_v35  ;;  %v11040_v57 = vld [vmem:[#allocation4_spill] sm:$0xff] }
 0x2f5   :  { %5622 = vrcp.f32 %v2654_v15  ;;  %v2186_v17 = vsub.f32 0.0, %v8769_v53  ;;  %v3042_v59 = vmul.f32 %v5605_v47, %v8582_v24  ;;  %v2108_v39 = vsub.f32 0.0, %v8774_v40 }
 0x2f6   :  { %5624 = vpow2.f32 %v2279_v61  ;;  %v8786_v54 = vadd.f32 %v8385_v4, %v1866_v51  ;;  %v5607_v9 = vpop.eup %5606  ;;  %5273 = vmatmul.mubr.msk.f32.gmra.mrb[22].mxu1 %vm489_vm0, %v3120_v26  ;;  %v1867_v10 = vmul.f32 %v8372_v25, %v1703_v38  ;;  %v8800_v13 = vadd.f32 %v8385_v4, %v1788_v49 }
 0x2f7   :  { %5626 = vpow2.f32 %v2437_v14  ;;  %v2441_v31 = vmul.f32 1.442695, %v2186_v17  ;;  %v5609_v34 = vpop.eup %5608  ;;  %5039 = vmatmul.mubr.msk.f32.gmra.mrb[24].mxu0 %vm489_vm0, %v3042_v59  ;;  %5275 = vmatprep.mubr.msk.f32.mxu1 %vm6239_vm1, %v11034_v1  ;;  %v3121_v24 = vmul.f32 %v5607_v9, %v8592_v44  ;;  %v2285_v22 = vmul.f32 1.442695, %v2108_v39 }
 0x2f8   :  { %5628 = vpow2.f32 %v2281_v23  ;;  %v2187_v63 = vsub.f32 0.0, %v8786_v54  ;;  %v5611_v61 = vpop.eup %5610  ;;  %5041 = vmatprep.mubr.msk.f32.mxu0 %vm6239_vm1, %v11034_v1  ;;  %v3043_v14 = vmul.f32 %v5609_v34, %v8620_v29  ;;  %v8803_v41 = vadd.f32 %v8385_v4, %v1867_v10  ;;  %v11043_v10 = vld [vmem:[#allocation64_spill] sm:$0xff] }
 0x2f9   :  { %5630 = vpow2.f32 %v2439_v2  ;;  %v5613_v33 = vpop.eup %5612  ;;  %v3122_v44 = vmul.f32 %v5611_v61, %v8623_v58  ;;  %v1625_v0 = vmul.f32 %v8367_v3, %v11038_v46  ;;  %v2109_v62 = vsub.f32 0.0, %v8800_v13 }
 0x2fa   :  { %5632 = vpow2.f32 %v2283_v8  ;;  %v2443_v23 = vmul.f32 1.442695, %v2187_v63  ;;  %v5615_v28 = vpop.eup %5614  ;;  %5276 = vmatmul.mubr.msk.f32.gmra.mrb[24].mxu1 %vm489_vm0, %v3121_v24  ;;  %v3044_v29 = vmul.f32 %v5613_v33, %v8635_v27  ;;  %v2188_v36 = vsub.f32 0.0, %v8803_v41 }
 0x2fb   :  { %5634 = vpow2.f32 %v2441_v31  ;;  %v5617_v2 = vpop.eup %5616  ;;  %5042 = vmatmul.mubr.msk.f32.gmra.mrb[26].mxu0 %vm489_vm0, %v3043_v14  ;;  %5278 = vmatprep.mubr.msk.f32.mxu1 %vm6239_vm1, %v11034_v1  ;;  %v3123_v58 = vmul.f32 %v5615_v28, %v8642_v19  ;;  %v1789_v55 = vmul.f32 %v8372_v25, %v1625_v0  ;;  %v1704_v60 = vmul.f32 %v8367_v3, %v11039_v5 }
 0x2fc   :  { %5636 = vpow2.f32 %v2285_v22  ;;  %v5619_v27 = vpop.eup %5618  ;;  %5044 = vmatprep.mubr.msk.f32.mxu0 %vm6239_vm1, %v11034_v1  ;;  %v3045_v16 = vmul.f32 %v5617_v2, %v8669_v30  ;;  %v2287_v32 = vmul.f32 1.442695, %v2109_v62  ;;  %v2445_v21 = vmul.f32 1.442695, %v2188_v36  ;;  %v11041_v30 = vld [vmem:[#allocation63_spill] sm:$0xff] }
 0x2fd   :  { %5638 = vpow2.f32 %v2443_v23  ;;  %v5621_v18 = vpop.eup %5620  ;;  %v3124_v6 = vmul.f32 %v5619_v27, %v8672_v7  ;;  %v8824_v19 = vadd.f32 %v8385_v4, %v1789_v55  ;;  %v1868_v48 = vmul.f32 %v8372_v25, %v1704_v60  ;;  %v8857_v22 = vld [vmem:[%s10798_s2] ss:$0 sm:$0xff] }
 0x2fe   :  { %v1626_v15 = vmul.f32 %v8367_v3, %v11040_v57  ;;  %5279 = vmatmul.mubr.msk.f32.gmra.mrb[26].mxu1 %vm489_vm0, %v3122_v44  ;;  %v3046_v43 = vmul.f32 %v5621_v18, %v8679_v11  ;;  %5640 = vpow2.f32 %v2287_v32  ;;  %v1705_v51 = vmul.f32 %v8367_v3, %v11041_v30  ;;  %v8879_v2 = vld [vmem:[%s10797_s1] ss:$0 sm:$0xff]  ;;  %v11045_v57 = vld [vmem:[#allocation65_spill] sm:$0xff] }
 0x2ff   :  { %v5623_v8 = vpop.eup %5622  ;;  %v1627_v7 = vmul.f32 %v8367_v3, %v11042_v42  ;;  %5045 = vmatmul.mubr.msk.f32.gmra.mrb[28].mxu0 %vm489_vm0, %v3044_v29  ;;  %5281 = vmatprep.mubr.msk.f32.mxu1 %vm6239_vm1, %v11034_v1  ;;  %5642 = vpow2.f32 %v2445_v21  ;;  %v2110_v26 = vsub.f32 0.0, %v8824_v19  ;;  %v8843_v11 = vadd.f32 %v8385_v4, %v1868_v48 }
 0x300   :  { %v5625_v35 = vpop.eup %5624  ;;  %v8839_v47 = vmul.f32 %v5623_v8, %v8691_v52  ;;  %5047 = vmatprep.mubr.msk.f32.mxu0 %vm6239_vm1, %v11034_v1  ;;  %v1790_v38 = vmul.f32 %v8372_v25, %v1626_v15  ;;  %v1869_v59 = vmul.f32 %v8372_v25, %v1705_v51  ;;  %v1706_v4 = vmul.f32 %v8367_v3, %v11043_v10  ;;  %v11046_v8 = vld [vmem:[#allocation7_spill] sm:$0xff] }
 0x301   :  { %v5627_v17 = vpop.eup %5626  ;;  %v2576_v50 = vadd.f32 1.0, %v5625_v35  ;;  %v1791_v39 = vmul.f32 %v8372_v25, %v1627_v7  ;;  %v2289_v31 = vmul.f32 1.442695, %v2110_v26  ;;  %v2189_v49 = vsub.f32 0.0, %v8843_v11  ;;  %v11047_v7 = vld [vmem:[#allocation66_spill] sm:$0xff] }
 0x302   :  { %v5629_v9 = vpop.eup %5628  ;;  %v2655_v52 = vadd.f32 1.0, %v5627_v17  ;;  %5282 = vmatmul.mubr.msk.f32.gmra.mrb[28].mxu1 %vm489_vm0, %v3123_v58  ;;  %v8860_v25 = vadd.f32 %v8857_v22, %v1790_v38  ;;  %v8863_v63 = vadd.f32 %v8857_v22, %v1869_v59  ;;  %v1870_v58 = vmul.f32 %v8879_v2, %v1706_v4 }
 0x303   :  { %v5631_v34 = vpop.eup %5630  ;;  %5644 = vrcp.f32 %v2576_v50  ;;  %v2577_v24 = vadd.f32 1.0, %v5629_v9  ;;  %5048 = vmatmul.mubr.msk.f32.gmra.mrb[30].mxu0 %vm489_vm0, %v3045_v16  ;;  %5284 = vmatprep.mubr.msk.f32.mxu1 %vm6239_vm1, %v11034_v1  ;;  %v2447_v33 = vmul.f32 1.442695, %v2189_v49  ;;  %v8869_v44 = vadd.f32 %v8857_v22, %v1791_v39 }
 0x304   :  { %v5633_v61 = vpop.eup %5632  ;;  %5646 = vrcp.f32 %v2655_v52  ;;  %v2656_v14 = vadd.f32 1.0, %v5631_v34  ;;  %5050 = vmatprep.mubr.msk.f32.mxu0 %vm6239_vm1, %v11034_v1  ;;  %v2111_v0 = vsub.f32 0.0, %v8860_v25  ;;  %v2190_v28 = vsub.f32 0.0, %v8863_v63 }
 0x305   :  { %v5635_v23 = vpop.eup %5634  ;;  %5648 = vrcp.f32 %v2577_v24  ;;  %v2578_v46 = vadd.f32 1.0, %v5633_v61  ;;  %v2112_v36 = vsub.f32 0.0, %v8869_v44  ;;  %v8887_v21 = vadd.f32 %v8857_v22, %v1870_v58 }
 0x306   :  { %v5637_v29 = vpop.eup %5636  ;;  %5650 = vrcp.f32 %v2656_v14  ;;  %v2657_v62 = vadd.f32 1.0, %v5635_v23  ;;  %5285 = vmatmul.mubr.msk.f32.gmra.mrb[30].mxu1 %vm489_vm0, %v3124_v6  ;;  %v2291_v60 = vmul.f32 1.442695, %v2111_v0  ;;  %v2449_v27 = vmul.f32 1.442695, %v2190_v28  ;;  %v11044_v6 = vld [vmem:[#allocation6_spill] sm:$0xff] }
 0x307   :  { %v5639_v55 = vpop.eup %5638  ;;  %5652 = vrcp.f32 %v2578_v46  ;;  %v2579_v5 = vadd.f32 1.0, %v5637_v29  ;;  %5051 = vmatmul.mubr.msk.f32.gmra.mrb[32].mxu0 %vm489_vm0, %v3046_v43  ;;  %5287 = vmatprep.mubr.msk.f32.mxu1 %vm6239_vm1, %v11034_v1  ;;  %v2293_v32 = vmul.f32 1.442695, %v2112_v36  ;;  %v1628_v48 = vmul.f32 %v8367_v3, %v11044_v6 }
 0x308   :  { %5654 = vrcp.f32 %v2657_v62  ;;  %v2658_v16 = vadd.f32 1.0, %v5639_v55  ;;  %v5641_v18 = vpop.eup %5640  ;;  %5053 = vmatprep.mubr.msk.f32.mxu0 %vm6239_vm1, %v11034_v1  ;;  %v1707_v15 = vmul.f32 %v8367_v3, %v11045_v57  ;;  %v1629_v43 = vmul.f32 %v8367_v3, %v11046_v8  ;;  %v11051_v57 = vld [vmem:[#allocation68_spill] sm:$0xff] }
 0x309   :  { %5656 = vrcp.f32 %v2579_v5  ;;  %v5643_v30 = vpop.eup %5642  ;;  %v2580_v51 = vadd.f32 1.0, %v5641_v18  ;;  %v2191_v42 = vsub.f32 0.0, %v8887_v21  ;;  %v1708_v35 = vmul.f32 %v8367_v3, %v11047_v7  ;;  %v11049_v18 = vld [vmem:[#allocation67_spill] sm:$0xff] }
 0x30a   :  { %5658 = vrcp.f32 %v2658_v16  ;;  %5288 = vmatmul.mubr.msk.f32.gmra.mrb[32].mxu1 %vm489_vm0, %v8839_v47  ;;  %v2659_v26 = vadd.f32 1.0, %v5643_v30  ;;  %v1792_v17 = vmul.f32 %v8879_v2, %v1628_v48  ;;  %v1871_v50 = vmul.f32 %v8879_v2, %v1707_v15  ;;  %v11050_v48 = vld [vmem:[#allocation9_spill] sm:$0xff] }
 0x30b   :  { %5660 = vpow2.f32 %v2289_v31  ;;  %5290 = vmatprep.mubr.msk.f32.mxu1 %vm6239_vm1, %v11034_v1  ;;  %v2451_v38 = vmul.f32 1.442695, %v2191_v42  ;;  %v1793_v59 = vmul.f32 %v8879_v2, %v1629_v43  ;;  %v1872_v39 = vmul.f32 %v8879_v2, %v1708_v35  ;;  %v11048_v31 = vld [vmem:[#allocation8_spill] sm:$0xff] }
 0x30c   :  { %5662 = vrcp.f32 %v2580_v51  ;;  %v8909_v52 = vadd.f32 %v8857_v22, %v1792_v17  ;;  %v8912_v47 = vadd.f32 %v8857_v22, %v1871_v50  ;;  %v1630_v49 = vmul.f32 %v8367_v3, %v11048_v31  ;;  %v11052_v50 = vld [vmem:[#allocation10_spill] sm:$0xff] }
 0x30d   :  { %v5645_v9 = vpop.eup %5644  ;;  %5664 = vrcp.f32 %v2659_v26  ;;  %v8918_v34 = vadd.f32 %v8857_v22, %v1793_v59  ;;  %v8921_v24 = vadd.f32 %v8857_v22, %v1872_v39  ;;  %v1710_v15 = vmul.f32 %v8367_v3, %v11051_v57 }
 0x30e   :  { %v5647_v10 = vpop.eup %5646  ;;  %v3047_v4 = vmul.f32 %v5645_v9, %v8721_v45  ;;  %5666 = vpow2.f32 %v2447_v33  ;;  %v2113_v23 = vsub.f32 0.0, %v8909_v52  ;;  %v2192_v46 = vsub.f32 0.0, %v8912_v47 }
 0x30f   :  { %v5649_v61 = vpop.eup %5648  ;;  %v3126_v14 = vmul.f32 %v5647_v10, %v8724_v20  ;;  %5668 = vpow2.f32 %v2291_v60  ;;  %v2114_v33 = vsub.f32 0.0, %v8918_v34  ;;  %v2193_v28 = vsub.f32 0.0, %v8921_v24 }
 0x310   :  { %v5651_v0 = vpop.eup %5650  ;;  %5054 = vmatmul.mubr.msk.f32.gmra.mrb[34].mxu0 %vm489_vm0, %v3047_v4  ;;  %v3048_v45 = vmul.f32 %v5649_v61, %v8732_v37  ;;  %5670 = vpow2.f32 %v2449_v27  ;;  %v2295_v62 = vmul.f32 1.442695, %v2113_v23  ;;  %v2453_v36 = vmul.f32 1.442695, %v2192_v46 }
 0x311   :  { %v5653_v29 = vpop.eup %5652  ;;  %5056 = vmatprep.mubr.msk.f32.mxu0 %vm6239_vm1, %v11034_v1  ;;  %5291 = vmatmul.mubr.msk.f32.gmra.mrb[34].mxu1 %vm489_vm0, %v3126_v14  ;;  %v3127_v20 = vmul.f32 %v5651_v0, %v8742_v56  ;;  %5672 = vpow2.f32 %v2293_v32  ;;  %v2297_v55 = vmul.f32 1.442695, %v2114_v33  ;;  %v2455_v5 = vmul.f32 1.442695, %v2193_v28  ;;  %v11053_v0 = vld [vmem:[#allocation69_spill] sm:$0xff] }
 0x312   :  { %v5655_v58 = vpop.eup %5654  ;;  %5293 = vmatprep.mubr.msk.f32.mxu1 %vm6239_vm1, %v11034_v1  ;;  %v3049_v37 = vmul.f32 %v5653_v29, %v8751_v12  ;;  %5674 = vpow2.f32 %v2451_v38  ;;  %v1794_v16 = vmul.f32 %v8879_v2, %v1630_v49  ;;  %v1709_v56 = vmul.f32 %v8367_v3, %v11049_v18 }
 0x313   :  { %v5657_v60 = vpop.eup %5656  ;;  %v3128_v27 = vmul.f32 %v5655_v58, %v8769_v53  ;;  %5676 = vpow2.f32 %v2295_v62  ;;  %v1631_v12 = vmul.f32 %v8367_v3, %v11050_v48  ;;  %v1874_v7 = vmul.f32 %v8879_v2, %v1710_v15 }
 0x314   :  { %v5659_v32 = vpop.eup %5658  ;;  %5057 = vmatmul.mubr.msk.f32.gmra.mrb[36].mxu0 %vm489_vm0, %v3048_v45  ;;  %v3050_v6 = vmul.f32 %v5657_v60, %v8774_v40  ;;  %5678 = vpow2.f32 %v2453_v36  ;;  %v8952_v43 = vadd.f32 %v8857_v22, %v1794_v16  ;;  %v1873_v40 = vmul.f32 %v8879_v2, %v1709_v56  ;;  %v11054_v56 = vld [vmem:[#allocation11_spill] sm:$0xff] }
 0x315   :  { %v5661_v8 = vpop.eup %5660  ;;  %5059 = vmatprep.mubr.msk.f32.mxu0 %vm6239_vm1, %v11034_v1  ;;  %5294 = vmatmul.mubr.msk.f32.gmra.mrb[36].mxu1 %vm489_vm0, %v3127_v20  ;;  %v3129_v53 = vmul.f32 %v5659_v32, %v8786_v54  ;;  %5680 = vpow2.f32 %v2297_v55  ;;  %v1795_v42 = vmul.f32 %v8879_v2, %v1631_v12  ;;  %v1632_v38 = vmul.f32 %v8367_v3, %v11052_v50 }
 0x316   :  { %v5663_v30 = vpop.eup %5662  ;;  %5296 = vmatprep.mubr.msk.f32.mxu1 %vm6239_vm1, %v11034_v1  ;;  %v2581_v51 = vadd.f32 1.0, %v5661_v8  ;;  %5682 = vpow2.f32 %v2455_v5  ;;  %v2115_v54 = vsub.f32 0.0, %v8952_v43  ;;  %v8962_v17 = vadd.f32 %v8857_v22, %v1873_v40 }
 0x317   :  { %v5665_v35 = vpop.eup %5664  ;;  %v3051_v26 = vmul.f32 %v5663_v30, %v8800_v13  ;;  %v8969_v9 = vadd.f32 %v8857_v22, %v1795_v42  ;;  %v8972_v31 = vadd.f32 %v8857_v22, %v1874_v7  ;;  %v1796_v61 = vmul.f32 %v8879_v2, %v1632_v38 }
 0x318   :  { %v5667_v59 = vpop.eup %5666  ;;  %5060 = vmatmul.mubr.msk.f32.gmra.mrb[38].mxu0 %vm489_vm0, %v3049_v37  ;;  %v3130_v39 = vmul.f32 %v5665_v35, %v8803_v41  ;;  %5684 = vrcp.f32 %v2581_v51  ;;  %v2299_v10 = vmul.f32 1.442695, %v2115_v54  ;;  %v2194_v4 = vsub.f32 0.0, %v8962_v17  ;;  %v11056_v35 = vld [vmem:[#allocation12_spill] sm:$0xff] }
 0x319   :  { %v5669_v13 = vpop.eup %5668  ;;  %5062 = vmatprep.mubr.msk.f32.mxu0 %vm6239_vm1, %v11034_v1  ;;  %5297 = vmatmul.mubr.msk.f32.gmra.mrb[38].mxu1 %vm489_vm0, %v3128_v27  ;;  %v2660_v49 = vadd.f32 1.0, %v5667_v59  ;;  %v2116_v23 = vsub.f32 0.0, %v8969_v9  ;;  %v2195_v46 = vsub.f32 0.0, %v8972_v31  ;;  %v1711_v45 = vmul.f32 %v8367_v3, %v11053_v0  ;;  %v11057_v59 = vld [vmem:[#allocation71_spill] sm:$0xff]  ;;  %v11058_v0 = vld [vmem:[#allocation13_spill] sm:$0xff] }
 0x31a   :  { %v5671_v41 = vpop.eup %5670  ;;  %5299 = vmatprep.mubr.msk.f32.mxu1 %vm6239_vm1, %v11034_v1  ;;  %v2582_v14 = vadd.f32 1.0, %v5669_v13  ;;  %v2457_v29 = vmul.f32 1.442695, %v2194_v4  ;;  %v8986_v20 = vadd.f32 %v8857_v22, %v1796_v61  ;;  %v1633_v32 = vmul.f32 %v8367_v3, %v11054_v56 }
 0x31b   :  { %v5673_v33 = vpop.eup %5672  ;;  %5686 = vrcp.f32 %v2660_v49  ;;  %v2661_v28 = vadd.f32 1.0, %v5671_v41  ;;  %v2301_v58 = vmul.f32 1.442695, %v2116_v23  ;;  %v2459_v37 = vmul.f32 1.442695, %v2195_v46 }
 0x31c   :  { %v5675_v62 = vpop.eup %5674  ;;  %5063 = vmatmul.mubr.msk.f32.gmra.mrb[40].mxu0 %vm489_vm0, %v3050_v6  ;;  %5688 = vrcp.f32 %v2582_v14  ;;  %v2583_v36 = vadd.f32 1.0, %v5673_v33  ;;  %v2117_v60 = vsub.f32 0.0, %v8986_v20  ;;  %v1875_v27 = vmul.f32 %v8879_v2, %v1711_v45  ;;  %v11055_v6 = vld [vmem:[#allocation70_spill] sm:$0xff]  ;;  %v11059_v45 = vld [vmem:[#allocation72_spill] sm:$0xff] }
 0x31d   :  { %v5677_v55 = vpop.eup %5676  ;;  %5065 = vmatprep.mubr.msk.f32.mxu0 %vm6239_vm1, %v11034_v1  ;;  %5300 = vmatmul.mubr.msk.f32.gmra.mrb[40].mxu1 %vm489_vm0, %v3129_v53  ;;  %5690 = vrcp.f32 %v2661_v28  ;;  %v2662_v5 = vadd.f32 1.0, %v5675_v62  ;;  %v1712_v48 = vmul.f32 %v8367_v3, %v11055_v6  ;;  %v1797_v30 = vmul.f32 %v8879_v2, %v1633_v32 }
 0x31e   :  { %v5679_v16 = vpop.eup %5678  ;;  %5302 = vmatprep.mubr.msk.f32.mxu1 %vm6239_vm1, %v11034_v1  ;;  %5692 = vrcp.f32 %v2583_v36  ;;  %v2584_v18 = vadd.f32 1.0, %v5677_v55  ;;  %v2303_v15 = vmul.f32 1.442695, %v2117_v60  ;;  %v9001_v8 = vadd.f32 %v8857_v22, %v1875_v27 }
 0x31f   :  { %v5681_v12 = vpop.eup %5680  ;;  %5694 = vrcp.f32 %v2662_v5  ;;  %v2663_v57 = vadd.f32 1.0, %v5679_v16  ;;  %v1876_v51 = vmul.f32 %v8879_v2, %v1712_v48  ;;  %v1634_v54 = vmul.f32 %v8367_v3, %v11056_v35  ;;  %v11061_v35 = vld [vmem:[#allocation73_spill] sm:$0xff] }
 0x320   :  { %v5683_v53 = vpop.eup %5682  ;;  %5066 = vmatmul.mubr.msk.f32.gmra.mrb[42].mxu0 %vm489_vm0, %v3051_v26  ;;  %5696 = vrcp.f32 %v2584_v18  ;;  %v2585_v40 = vadd.f32 1.0, %v5681_v12  ;;  %v2196_v7 = vsub.f32 0.0, %v9001_v8  ;;  %v9015_v26 = vadd.f32 %v8857_v22, %v1797_v30 }
 0x321   :  { %5068 = vmatprep.mubr.msk.f32.mxu0 %vm6239_vm1, %v11034_v1  ;;  %5303 = vmatmul.mubr.msk.f32.gmra.mrb[42].mxu1 %vm489_vm0, %v3130_v39  ;;  %5698 = vrcp.f32 %v2663_v57  ;;  %v2664_v42 = vadd.f32 1.0, %v5683_v53  ;;  %v9018_v38 = vadd.f32 %v8857_v22, %v1876_v51  ;;  %v1713_v39 = vmul.f32 %v8367_v3, %v11057_v59 }
 0x322   :  { %v5685_v50 = vpop.eup %5684  ;;  %5305 = vmatprep.mubr.msk.f32.mxu1 %vm6239_vm1, %v11034_v1  ;;  %5700 = vrcp.f32 %v2585_v40  ;;  %v2461_v49 = vmul.f32 1.442695, %v2196_v7  ;;  %v1798_v4 = vmul.f32 %v8879_v2, %v1634_v54  ;;  %v2118_v61 = vsub.f32 0.0, %v9015_v26 }
 0x323   :  { %v3052_v13 = vmul.f32 %v5685_v50, %v8824_v19  ;;  %5702 = vrcp.f32 %v2664_v42  ;;  %v2197_v41 = vsub.f32 0.0, %v9018_v38  ;;  %v1877_v14 = vmul.f32 %v8879_v2, %v1713_v39 }
 0x324   :  { %5704 = vpow2.f32 %v2299_v10  ;;  %v9029_v46 = vadd.f32 %v8857_v22, %v1798_v4  ;;  %v1635_v19 = vmul.f32 %v8367_v3, %v11058_v0  ;;  %v1714_v33 = vmul.f32 %v8367_v3, %v11059_v45  ;;  %v11064_v45 = vld [vmem:[#allocation16_spill] sm:$0xff] }
 0x325   :  { %v5687_v23 = vpop.eup %5686  ;;  %5069 = vmatmul.mubr.msk.f32.gmra.mrb[44].mxu0 %vm489_vm0, %v3052_v13  ;;  %5706 = vpow2.f32 %v2457_v29  ;;  %v2305_v62 = vmul.f32 1.442695, %v2118_v61  ;;  %v2463_v36 = vmul.f32 1.442695, %v2197_v41  ;;  %v9041_v60 = vadd.f32 %v8857_v22, %v1877_v14  ;;  %v11062_v13 = vld [vmem:[#allocation15_spill] sm:$0xff]  ;;  %v11063_v14 = vld [vmem:[#allocation74_spill] sm:$0xff] }
 0x326   :  { %v5689_v10 = vpop.eup %5688  ;;  %5071 = vmatprep.mubr.msk.f32.mxu0 %vm6239_vm1, %v11034_v1  ;;  %v3131_v28 = vmul.f32 %v5687_v23, %v8843_v11  ;;  %5708 = vpow2.f32 %v2301_v58  ;;  %v2119_v5 = vsub.f32 0.0, %v9029_v46  ;;  %v1799_v11 = vmul.f32 %v8879_v2, %v1635_v19 }
 0x327   :  { %v5691_v55 = vpop.eup %5690  ;;  %v3053_v29 = vmul.f32 %v5689_v10, %v8860_v25  ;;  %5710 = vpow2.f32 %v2459_v37  ;;  %v1878_v58 = vmul.f32 %v8879_v2, %v1714_v33  ;;  %v2198_v56 = vsub.f32 0.0, %v9041_v60 }
 0x328   :  { %v5693_v27 = vpop.eup %5692  ;;  %5306 = vmatmul.mubr.msk.f32.gmra.mrb[44].mxu1 %vm489_vm0, %v3131_v28  ;;  %v3132_v16 = vmul.f32 %v5691_v55, %v8863_v63  ;;  %5712 = vpow2.f32 %v2303_v15  ;;  %v2307_v37 = vmul.f32 1.442695, %v2119_v5  ;;  %v9056_v6 = vadd.f32 %v8857_v22, %v1799_v11  ;;  %v11060_v15 = vld [vmem:[#allocation14_spill] sm:$0xff] }
 0x329   :  { %v5695_v18 = vpop.eup %5694  ;;  %5072 = vmatmul.mubr.msk.f32.gmra.mrb[46].mxu0 %vm489_vm0, %v3053_v29  ;;  %5308 = vmatprep.mubr.msk.f32.mxu1 %vm6239_vm1, %v11034_v1  ;;  %v3054_v25 = vmul.f32 %v5693_v27, %v8869_v44  ;;  %5714 = vpow2.f32 %v2461_v49  ;;  %v9059_v48 = vadd.f32 %v8857_v22, %v1878_v58  ;;  %v2465_v57 = vmul.f32 1.442695, %v2198_v56 }
 0x32a   :  { %v5697_v32 = vpop.eup %5696  ;;  %5074 = vmatprep.mubr.msk.f32.mxu0 %vm6239_vm1, %v11034_v1  ;;  %v3133_v63 = vmul.f32 %v5695_v18, %v8887_v21  ;;  %5716 = vpow2.f32 %v2305_v62  ;;  %v1636_v53 = vmul.f32 %v8367_v3, %v11060_v15  ;;  %v2120_v30 = vsub.f32 0.0, %v9056_v6 }
 0x32b   :  { %v5699_v12 = vpop.eup %5698  ;;  %v3055_v44 = vmul.f32 %v5697_v32, %v8909_v52  ;;  %5718 = vpow2.f32 %v2463_v36  ;;  %v2199_v51 = vsub.f32 0.0, %v9059_v48  ;;  %v1715_v54 = vmul.f32 %v8367_v3, %v11061_v35 }
 0x32c   :  { %v5701_v40 = vpop.eup %5700  ;;  %5309 = vmatmul.mubr.msk.f32.gmra.mrb[46].mxu1 %vm489_vm0, %v3132_v16  ;;  %v3134_v21 = vmul.f32 %v5699_v12, %v8912_v47  ;;  %5720 = vpow2.f32 %v2307_v37  ;;  %v1800_v7 = vmul.f32 %v8879_v2, %v1636_v53  ;;  %v2309_v59 = vmul.f32 1.442695, %v2120_v30 }
 0x32d   :  { %v5703_v42 = vpop.eup %5702  ;;  %5075 = vmatmul.mubr.msk.f32.gmra.mrb[48].mxu0 %vm489_vm0, %v3054_v25  ;;  %5311 = vmatprep.mubr.msk.f32.mxu1 %vm6239_vm1, %v11034_v1  ;;  %v3056_v52 = vmul.f32 %v5701_v40, %v8918_v34  ;;  %5722 = vpow2.f32 %v2465_v57  ;;  %v9078_v39 = vmul.f32 1.442695, %v2199_v51  ;;  %v1637_v49 = vmul.f32 %v8367_v3, %v11062_v13 }
 0x32e   :  { %v5705_v47 = vpop.eup %5704  ;;  %5077 = vmatprep.mubr.msk.f32.mxu0 %vm6239_vm1, %v11034_v1  ;;  %v3135_v50 = vmul.f32 %v5703_v42, %v8921_v24  ;;  %v9083_v61 = vadd.f32 %v8857_v22, %v1800_v7  ;;  %v1879_v41 = vmul.f32 %v8879_v2, %v1715_v54  ;;  %v1716_v23 = vmul.f32 %v8367_v3, %v11063_v14  ;;  %v11068_v14 = vld [vmem:[#allocation18_spill] sm:$0xff] }
 0x32f   :  { %v5707_v4 = vpop.eup %5706  ;;  %v2586_v34 = vadd.f32 1.0, %v5705_v47  ;;  %5724 = vpow2.f32 %v2309_v59  ;;  %v1801_v19 = vmul.f32 %v8879_v2, %v1637_v49  ;;  %v1638_v33 = vmul.f32 %v8367_v3, %v11064_v45  ;;  %v11066_v47 = vld [vmem:[#allocation17_spill] sm:$0xff] }
 0x330   :  { %v5709_v0 = vpop.eup %5708  ;;  %5312 = vmatmul.mubr.msk.f32.gmra.mrb[48].mxu1 %vm489_vm0, %v3133_v63  ;;  %v2665_v24 = vadd.f32 1.0, %v5707_v4  ;;  %v2121_v62 = vsub.f32 0.0, %v9083_v61  ;;  %v9097_v36 = vadd.f32 %v8857_v22, %v1879_v41  ;;  %v1880_v27 = vmul.f32 %v8879_v2, %v1716_v23  ;;  %v11067_v4 = vld [vmem:[#allocation76_spill] sm:$0xff] }
 0x331   :  { %v5711_v10 = vpop.eup %5710  ;;  %5078 = vmatmul.mubr.msk.f32.gmra.mrb[50].mxu0 %vm489_vm0, %v3055_v44  ;;  %5314 = vmatprep.mubr.msk.f32.mxu1 %vm6239_vm1, %v11034_v1  ;;  %5726 = vrcp.f32 %v2586_v34  ;;  %v2587_v28 = vadd.f32 1.0, %v5709_v0  ;;  %v9102_v5 = vadd.f32 %v8857_v22, %v1801_v19  ;;  %v1802_v57 = vmul.f32 %v8879_v2, %v1638_v33  ;;  %v11069_v0 = vld [vmem:[#allocation77_spill] sm:$0xff] }
 0x332   :  { %v5713_v55 = vpop.eup %5712  ;;  %5080 = vmatprep.mubr.msk.f32.mxu0 %vm6239_vm1, %v11034_v1  ;;  %5728 = vrcp.f32 %v2665_v24  ;;  %v2666_v29 = vadd.f32 1.0, %v5711_v10  ;;  %v2311_v58 = vmul.f32 1.442695, %v2121_v62  ;;  %v2200_v18 = vsub.f32 0.0, %v9097_v36 }
 0x333   :  { %v5715_v16 = vpop.eup %5714  ;;  %5730 = vrcp.f32 %v2587_v28  ;;  %v2588_v11 = vadd.f32 1.0, %v5713_v55  ;;  %v2122_v56 = vsub.f32 0.0, %v9102_v5  ;;  %v9109_v32 = vadd.f32 %v8857_v22, %v1880_v27 }
 0x334   :  { %v5717_v25 = vpop.eup %5716  ;;  %5315 = vmatmul.mubr.msk.f32.gmra.mrb[50].mxu1 %vm489_vm0, %v3134_v21  ;;  %5732 = vrcp.f32 %v2666_v29  ;;  %v2667_v37 = vadd.f32 1.0, %v5715_v16  ;;  %v2469_v44 = vmul.f32 1.442695, %v2200_v18  ;;  %v9119_v42 = vadd.f32 %v8857_v22, %v1802_v57 }
 0x335   :  { %v5719_v63 = vpop.eup %5718  ;;  %5081 = vmatmul.mubr.msk.f32.gmra.mrb[52].mxu0 %vm489_vm0, %v3056_v52  ;;  %5317 = vmatprep.mubr.msk.f32.mxu1 %vm6239_vm1, %v11034_v1  ;;  %5734 = vrcp.f32 %v2588_v11  ;;  %v2589_v12 = vadd.f32 1.0, %v5717_v25  ;;  %v2313_v40 = vmul.f32 1.442695, %v2122_v56  ;;  %v2201_v21 = vsub.f32 0.0, %v9109_v32  ;;  %v11065_v52 = vld [vmem:[#allocation75_spill] sm:$0xff] }
 0x336   :  { %v5721_v15 = vpop.eup %5720  ;;  %5083 = vmatprep.mubr.msk.f32.mxu0 %vm6239_vm1, %v11034_v1  ;;  %5736 = vrcp.f32 %v2667_v37  ;;  %v2668_v53 = vadd.f32 1.0, %v5719_v63  ;;  %v1717_v7 = vmul.f32 %v8367_v3, %v11065_v52  ;;  %v1639_v59 = vmul.f32 %v8367_v3, %v11066_v47 }
 0x337   :  { %v5723_v30 = vpop.eup %5722  ;;  %5738 = vrcp.f32 %v2589_v12  ;;  %v2590_v51 = vadd.f32 1.0, %v5721_v15  ;;  %v2471_v54 = vmul.f32 1.442695, %v2201_v21  ;;  %v2123_v13 = vsub.f32 0.0, %v9119_v42 }
 0x338   :  { %5318 = vmatmul.mubr.msk.f32.gmra.mrb[52].mxu1 %vm489_vm0, %v3135_v50  ;;  %5740 = vrcp.f32 %v2668_v53  ;;  %v2669_v35 = vadd.f32 1.0, %v5723_v30  ;;  %v1881_v49 = vmul.f32 %v8879_v2, %v1717_v7  ;;  %v1718_v34 = vmul.f32 %v8367_v3, %v11067_v4 }
 0x339   :  { %5320 = vmatprep.mubr.msk.f32.mxu1 %vm6239_vm1, %v11034_v1  ;;  %5742 = vrcp.f32 %v2590_v51  ;;  %v5725_v41 = vpop.eup %5724  ;;  %v1803_v50 = vmul.f32 %v8879_v2, %v1639_v59  ;;  %v1640_v23 = vmul.f32 %v8367_v3, %v11068_v14  ;;  %v1719_v24 = vmul.f32 %v8367_v3, %v11069_v0 }
 0x33a   :  { %5744 = vrcp.f32 %v2669_v35  ;;  %v2591_v45 = vadd.f32 1.0, %v5725_v41  ;;  %v2315_v33 = vmul.f32 1.442695, %v2123_v13  ;;  %v9139_v10 = vadd.f32 %v8857_v22, %v1881_v49  ;;  %v11071_v13 = vld [vmem:[#allocation78_spill] sm:$0xff]  ;;  %v11072_v41 = vld [vmem:[#allocation20_spill] sm:$0xff] }
 0x33b   :  { %v5727_v19 = vpop.eup %5726  ;;  %5746 = vpow2.f32 %v9078_v39  ;;  %v9143_v55 = vadd.f32 %v8857_v22, %v1803_v50  ;;  %v1882_v29 = vmul.f32 %v8879_v2, %v1718_v34  ;;  %v1804_v39 = vmul.f32 %v8879_v2, %v1640_v23 }
 0x33c   :  { %v5729_v28 = vpop.eup %5728  ;;  %v3057_v62 = vmul.f32 %v5727_v19, %v8952_v43  ;;  %5748 = vpow2.f32 %v2311_v58  ;;  %v2202_v11 = vsub.f32 0.0, %v9139_v10  ;;  %v1720_v49 = vmul.f32 %v8367_v3, %v11071_v13 }
 0x33d   :  { %v5731_v27 = vpop.eup %5730  ;;  %v3136_v16 = vmul.f32 %v5729_v28, %v8962_v17  ;;  %5750 = vrcp.f32 %v2591_v45  ;;  %v2124_v43 = vsub.f32 0.0, %v9143_v55  ;;  %v9153_v58 = vadd.f32 %v8857_v22, %v1882_v29 }
 0x33e   :  { %v5733_v18 = vpop.eup %5732  ;;  %5084 = vmatmul.mubr.msk.f32.gmra.mrb[54].mxu0 %vm489_vm0, %v3057_v62  ;;  %v3058_v25 = vmul.f32 %v5731_v27, %v8969_v9  ;;  %5752 = vpow2.f32 %v2469_v44  ;;  %v2473_v56 = vmul.f32 1.442695, %v2202_v11  ;;  %v9160_v63 = vadd.f32 %v8857_v22, %v1804_v39  ;;  %v11074_v62 = vld [vmem:[#allocation21_spill] sm:$0xff] }
 0x33f   :  { %v5735_v37 = vpop.eup %5734  ;;  %5086 = vmatprep.mubr.msk.f32.mxu0 %vm6239_vm1, %v11034_v1  ;;  %5321 = vmatmul.mubr.msk.f32.gmra.mrb[54].mxu1 %vm489_vm0, %v3136_v16  ;;  %v3137_v17 = vmul.f32 %v5733_v18, %v8972_v31  ;;  %5754 = vpow2.f32 %v2313_v40  ;;  %v2317_v44 = vmul.f32 1.442695, %v2124_v43  ;;  %v2203_v57 = vsub.f32 0.0, %v9153_v58 }
 0x340   :  { %v5737_v9 = vpop.eup %5736  ;;  %5323 = vmatprep.mubr.msk.f32.mxu1 %vm6239_vm1, %v11034_v1  ;;  %v3059_v12 = vmul.f32 %v5735_v37, %v8986_v20  ;;  %5756 = vpow2.f32 %v2471_v54  ;;  %v2125_v31 = vsub.f32 0.0, %v9160_v63  ;;  %v1883_v40 = vmul.f32 %v8879_v2, %v1719_v24  ;;  %v11070_v20 = vld [vmem:[#allocation19_spill] sm:$0xff] }
 0x341   :  { %v5739_v15 = vpop.eup %5738  ;;  %v3138_v53 = vmul.f32 %v5737_v9, %v9001_v8  ;;  %5758 = vpow2.f32 %v2315_v33  ;;  %v2475_v51 = vmul.f32 1.442695, %v2203_v57  ;;  %v1641_v52 = vmul.f32 %v8367_v3, %v11070_v20  ;;  %v11073_v24 = vld [vmem:[#allocation79_spill] sm:$0xff] }
 0x342   :  { %v5741_v21 = vpop.eup %5740  ;;  %5087 = vmatmul.mubr.msk.f32.gmra.mrb[56].mxu0 %vm489_vm0, %v3058_v25  ;;  %v3060_v30 = vmul.f32 %v5739_v15, %v9015_v26  ;;  %5760 = vpow2.f32 %v2473_v56  ;;  %v2319_v35 = vmul.f32 1.442695, %v2125_v31  ;;  %v9178_v54 = vadd.f32 %v8857_v22, %v1883_v40 }
 0x343   :  { %v5743_v7 = vpop.eup %5742  ;;  %5089 = vmatprep.mubr.msk.f32.mxu0 %vm6239_vm1, %v11034_v1  ;;  %5324 = vmatmul.mubr.msk.f32.gmra.mrb[56].mxu1 %vm489_vm0, %v3137_v17  ;;  %v3139_v8 = vmul.f32 %v5741_v21, %v9018_v38  ;;  %5762 = vpow2.f32 %v2317_v44  ;;  %v1805_v59 = vmul.f32 %v8879_v2, %v1641_v52  ;;  %v1642_v50 = vmul.f32 %v8367_v3, %v11072_v41 }
 0x344   :  { %v5745_v47 = vpop.eup %5744  ;;  %5326 = vmatprep.mubr.msk.f32.mxu1 %vm6239_vm1, %v11034_v1  ;;  %v3061_v26 = vmul.f32 %v5743_v7, %v9029_v46  ;;  %5764 = vpow2.f32 %v2475_v51  ;;  %v2204_v34 = vsub.f32 0.0, %v9178_v54  ;;  %v1884_v0 = vmul.f32 %v8879_v2, %v1720_v49 }
 0x345   :  { %v5747_v4 = vpop.eup %5746  ;;  %v3140_v38 = vmul.f32 %v5745_v47, %v9041_v60  ;;  %5766 = vpow2.f32 %v2319_v35  ;;  %v9192_v46 = vadd.f32 %v8857_v22, %v1805_v59  ;;  %v1721_v19 = vmul.f32 %v8367_v3, %v11073_v24  ;;  %v11075_v47 = vld [vmem:[#allocation80_spill] sm:$0xff]  ;;  %v11078_v24 = vld [vmem:[#allocation23_spill] sm:$0xff] }
 0x346   :  { %v5749_v14 = vpop.eup %5748  ;;  %5090 = vmatmul.mubr.msk.f32.gmra.mrb[58].mxu0 %vm489_vm0, %v3059_v12  ;;  %v2670_v23 = vadd.f32 1.0, %v5747_v4  ;;  %v2477_v33 = vmul.f32 1.442695, %v2204_v34  ;;  %v1806_v28 = vmul.f32 %v8879_v2, %v1642_v50  ;;  %v1643_v29 = vmul.f32 %v8367_v3, %v11074_v62  ;;  %v11076_v34 = vld [vmem:[#allocation22_spill] sm:$0xff] }
 0x347   :  { %v5751_v45 = vpop.eup %5750  ;;  %5092 = vmatprep.mubr.msk.f32.mxu0 %vm6239_vm1, %v11034_v1  ;;  %5327 = vmatmul.mubr.msk.f32.gmra.mrb[58].mxu1 %vm489_vm0, %v3138_v53  ;;  %v2592_v60 = vadd.f32 1.0, %v5749_v14  ;;  %v2126_v11 = vsub.f32 0.0, %v9192_v46  ;;  %v9208_v39 = vadd.f32 %v8857_v22, %v1884_v0  ;;  %v1885_v37 = vmul.f32 %v8879_v2, %v1721_v19  ;;  %v11077_v0 = vld [vmem:[#allocation81_spill] sm:$0xff] }
 0x348   :  { %v5753_v27 = vpop.eup %5752  ;;  %5329 = vmatprep.mubr.msk.f32.mxu1 %vm6239_vm1, %v11034_v1  ;;  %v3062_v16 = vmul.f32 %v5751_v45, %v9056_v6  ;;  %5768 = vrcp.f32 %v2670_v23  ;;  %v9211_v43 = vadd.f32 %v8857_v22, %v1806_v28  ;;  %v1807_v21 = vmul.f32 %v8879_v2, %v1643_v29  ;;  %v11079_v28 = vld [vmem:[#allocation82_spill] sm:$0xff] }
 0x349   :  { %v5755_v18 = vpop.eup %5754  ;;  %5770 = vrcp.f32 %v2592_v60  ;;  %v2671_v25 = vadd.f32 1.0, %v5753_v27  ;;  %v2321_v6 = vmul.f32 1.442695, %v2126_v11  ;;  %v2205_v9 = vsub.f32 0.0, %v9208_v39 }
 0x34a   :  { %v5757_v17 = vpop.eup %5756  ;;  %5093 = vmatmul.mubr.msk.f32.gmra.mrb[60].mxu0 %vm489_vm0, %v3060_v30  ;;  %v2593_v56 = vadd.f32 1.0, %v5755_v18  ;;  %5772 = vpow2.f32 %v2477_v33  ;;  %v2127_v57 = vsub.f32 0.0, %v9211_v43  ;;  %v9221_v15 = vadd.f32 %v8857_v22, %v1885_v37 }
 0x34b   :  { %v5759_v12 = vpop.eup %5758  ;;  %5095 = vmatprep.mubr.msk.f32.mxu0 %vm6239_vm1, %v11034_v1  ;;  %5330 = vmatmul.mubr.msk.f32.gmra.mrb[60].mxu1 %vm489_vm0, %v3139_v8  ;;  %5774 = vrcp.f32 %v2671_v25  ;;  %v2672_v44 = vadd.f32 1.0, %v5757_v17  ;;  %v2479_v40 = vmul.f32 1.442695, %v2205_v9  ;;  %v9229_v35 = vadd.f32 %v8857_v22, %v1807_v21 }
 0x34c   :  { %v5761_v53 = vpop.eup %5760  ;;  %5332 = vmatprep.mubr.msk.f32.mxu1 %vm6239_vm1, %v11034_v1  ;;  %5776 = vrcp.f32 %v2593_v56  ;;  %v2594_v31 = vadd.f32 1.0, %v5759_v12  ;;  %v2323_v20 = vmul.f32 1.442695, %v2127_v57  ;;  %v2206_v52 = vsub.f32 0.0, %v9221_v15 }
 0x34d   :  { %v5763_v30 = vpop.eup %5762  ;;  %5778 = vrcp.f32 %v2672_v44  ;;  %v2673_v51 = vadd.f32 1.0, %v5761_v53  ;;  %v1722_v59 = vmul.f32 %v8367_v3, %v11075_v47  ;;  %v2128_v50 = vsub.f32 0.0, %v9229_v35 }
 0x34e   :  { %v5765_v7 = vpop.eup %5764  ;;  %5096 = vmatmul.mubr.msk.f32.gmra.mrb[62].mxu0 %vm489_vm0, %v3061_v26  ;;  %5780 = vrcp.f32 %v2594_v31  ;;  %v2595_v8 = vadd.f32 1.0, %v5763_v30  ;;  %v2481_v4 = vmul.f32 1.442695, %v2206_v52  ;;  %v1644_v26 = vmul.f32 %v8367_v3, %v11076_v34 }
 0x34f   :  { %v5767_v13 = vpop.eup %5766  ;;  %5098 = vmatprep.mubr.msk.f32.mxu0 %vm6239_vm1, %v11034_v1  ;;  %5333 = vmatmul.mubr.msk.f32.gmra.mrb[62].mxu1 %vm489_vm0, %v3140_v38  ;;  %5782 = vrcp.f32 %v2673_v51  ;;  %v2674_v49 = vadd.f32 1.0, %v5765_v7  ;;  %v1886_v14 = vmul.f32 %v8879_v2, %v1722_v59  ;;  %v1723_v38 = vmul.f32 %v8367_v3, %v11077_v0 }
 0x350   :  { %5335 = vmatprep.mubr.msk.f32.mxu1 %vm6239_vm1, %v11034_v1  ;;  %5784 = vrcp.f32 %v2595_v8  ;;  %v2596_v41 = vadd.f32 1.0, %v5767_v13  ;;  %v1808_v23 = vmul.f32 %v8879_v2, %v1644_v26  ;;  %v1645_v19 = vmul.f32 %v8367_v3, %v11078_v24  ;;  %v11081_v26 = vld [vmem:[#allocation83_spill] sm:$0xff] }
 0x351   :  { %5786 = vrcp.f32 %v2674_v49  ;;  %v2325_v60 = vmul.f32 1.442695, %v2128_v50  ;;  %v9249_v33 = vadd.f32 %v8857_v22, %v1886_v14  ;;  %v1724_v62 = vmul.f32 %v8367_v3, %v11079_v28 }
 0x352   :  { %v5769_v45 = vpop.eup %5768  ;;  %5099 = vmatmul.mubr.msk.f32.gmra.mrb[64].mxu0 %vm489_vm0, %v3062_v16  ;;  %5788 = vrcp.f32 %v2596_v41  ;;  %v9257_v11 = vadd.f32 %v8857_v22, %v1808_v23  ;;  %v1887_v16 = vmul.f32 %v8879_v2, %v1723_v38  ;;  %v1809_v17 = vmul.f32 %v8879_v2, %v1645_v19  ;;  %v9308_v38 = vld [vmem:[%s10798_s2] ss:$0 sm:$0xff]  ;;  %v11083_v19 = vld [vmem:[#allocation84_spill] sm:$0xff] }
 0x353   :  { %v5771_v29 = vpop.eup %5770  ;;  %5101 = vmatprep.mubr.msk.f32.mxu0 %vm6239_vm1, %v11034_v1  ;;  %v3141_v27 = vmul.f32 %v5769_v45, %v9059_v48  ;;  %5790 = vpow2.f32 %v2321_v6  ;;  %v2207_v37 = vsub.f32 0.0, %v9249_v33  ;;  %v1725_v41 = vmul.f32 %v8367_v3, %v11081_v26 }
 0x354   :  { %v5773_v18 = vpop.eup %5772  ;;  %v3063_v25 = vmul.f32 %v5771_v29, %v9083_v61  ;;  %5792 = vpow2.f32 %v2479_v40  ;;  %v2129_v48 = vsub.f32 0.0, %v9257_v11  ;;  %v9266_v6 = vadd.f32 %v8857_v22, %v1887_v16  ;;  %v11084_v29 = vld [vmem:[#allocation26_spill] sm:$0xff] }
 0x355   :  { %v5775_v56 = vpop.eup %5774  ;;  %5336 = vmatmul.mubr.msk.f32.gmra.mrb[64].mxu1 %vm489_vm0, %v3141_v27  ;;  %v2675_v9 = vadd.f32 1.0, %v5773_v18  ;;  %5794 = vpow2.f32 %v2323_v20  ;;  %v2483_v44 = vmul.f32 1.442695, %v2207_v37  ;;  %v9273_v57 = vadd.f32 %v8857_v22, %v1809_v17  ;;  %v9331_v17 = vld [vmem:[%s10797_s1] ss:$0 sm:$0xff] }
 0x356   :  { %v5777_v12 = vpop.eup %5776  ;;  %5102 = vmatmul.mubr.msk.f32.gmra.mrb[66].mxu0 %vm489_vm0, %v3063_v25  ;;  %5338 = vmatprep.mubr.msk.f32.mxu1 %vm6239_vm1, %v11034_v1  ;;  %v3142_v61 = vmul.f32 %v5775_v56, %v9097_v36  ;;  %5796 = vpow2.f32 %v2481_v4  ;;  %v2327_v40 = vmul.f32 1.442695, %v2129_v48  ;;  %v2208_v21 = vsub.f32 0.0, %v9266_v6 }
 0x357   :  { %v5779_v53 = vpop.eup %5778  ;;  %5104 = vmatprep.mubr.msk.f32.mxu0 %vm6239_vm1, %v11034_v1  ;;  %v3064_v31 = vmul.f32 %v5777_v12, %v9102_v5  ;;  %5798 = vrcp.f32 %v2675_v9  ;;  %v2130_v36 = vsub.f32 0.0, %v9273_v57  ;;  %v1888_v20 = vmul.f32 %v8879_v2, %v1724_v62  ;;  %v11080_v5 = vld [vmem:[#allocation24_spill] sm:$0xff] }
 0x358   :  { %v5781_v30 = vpop.eup %5780  ;;  %v3143_v51 = vmul.f32 %v5779_v53, %v9109_v32  ;;  %5800 = vpow2.f32 %v2325_v60  ;;  %v2485_v8 = vmul.f32 1.442695, %v2208_v21  ;;  %v1646_v47 = vmul.f32 %v8367_v3, %v11080_v5 }
 0x359   :  { %v5783_v52 = vpop.eup %5782  ;;  %5339 = vmatmul.mubr.msk.f32.gmra.mrb[66].mxu1 %vm489_vm0, %v3142_v61  ;;  %v3065_v7 = vmul.f32 %v5781_v30, %v9119_v42  ;;  %5802 = vpow2.f32 %v2483_v44  ;;  %v2329_v13 = vmul.f32 1.442695, %v2130_v36  ;;  %v9291_v49 = vadd.f32 %v8857_v22, %v1888_v20  ;;  %v11082_v22 = vld [vmem:[#allocation25_spill] sm:$0xff] }
 0x35a   :  { %v5785_v59 = vpop.eup %5784  ;;  %5105 = vmatmul.mubr.msk.f32.gmra.mrb[68].mxu0 %vm489_vm0, %v3064_v31  ;;  %5341 = vmatprep.mubr.msk.f32.mxu1 %vm6239_vm1, %v11034_v1  ;;  %v3144_v32 = vmul.f32 %v5783_v52, %v9139_v10  ;;  %5804 = vpow2.f32 %v2327_v40  ;;  %v1810_v34 = vmul.f32 %v8879_v2, %v1646_v47  ;;  %v1647_v23 = vmul.f32 %v8367_v3, %v11082_v22 }
 0x35b   :  { %v5787_v4 = vpop.eup %5786  ;;  %5107 = vmatprep.mubr.msk.f32.mxu0 %vm6239_vm1, %v11034_v1  ;;  %v3066_v42 = vmul.f32 %v5785_v59, %v9143_v55  ;;  %5806 = vpow2.f32 %v2485_v8  ;;  %v2209_v14 = vsub.f32 0.0, %v9291_v49  ;;  %v1726_v45 = vmul.f32 %v8367_v3, %v11083_v19  ;;  %v11088_v19 = vld [vmem:[#allocation28_spill] sm:$0xff] }
 0x35c   :  { %v5789_v50 = vpop.eup %5788  ;;  %v3145_v10 = vmul.f32 %v5787_v4, %v9153_v58  ;;  %5808 = vpow2.f32 %v2329_v13  ;;  %v9311_v24 = vadd.f32 %v9308_v38, %v1810_v34  ;;  %v1889_v58 = vmul.f32 %v8879_v2, %v1725_v41  ;;  %v11085_v4 = vld [vmem:[#allocation85_spill] sm:$0xff] }
 0x35d   :  { %v5791_v0 = vpop.eup %5790  ;;  %5342 = vmatmul.mubr.msk.f32.gmra.mrb[68].mxu1 %vm489_vm0, %v3143_v51  ;;  %v3067_v55 = vmul.f32 %v5789_v50, %v9160_v63  ;;  %v2487_v28 = vmul.f32 1.442695, %v2209_v14  ;;  %v1811_v62 = vmul.f32 %v8879_v2, %v1647_v23  ;;  %v1648_v27 = vmul.f32 %v8367_v3, %v11084_v29  ;;  %v11086_v50 = vld [vmem:[#allocation27_spill] sm:$0xff] }
 0x35e   :  { %v5793_v60 = vpop.eup %5792  ;;  %5108 = vmatmul.mubr.msk.f32.gmra.mrb[70].mxu0 %vm489_vm0, %v3065_v7  ;;  %5344 = vmatprep.mubr.msk.f32.mxu1 %vm6239_vm1, %v11034_v1  ;;  %v2597_v63 = vadd.f32 1.0, %v5791_v0  ;;  %v2131_v25 = vsub.f32 0.0, %v9311_v24  ;;  %v9326_v37 = vadd.f32 %v9308_v38, %v1889_v58  ;;  %v1890_v2 = vmul.f32 %v9331_v17, %v1726_v45 }
 0x35f   :  { %v5795_v16 = vpop.eup %5794  ;;  %5110 = vmatprep.mubr.msk.f32.mxu0 %vm6239_vm1, %v11034_v1  ;;  %v2676_v18 = vadd.f32 1.0, %v5793_v60  ;;  %v9335_v48 = vadd.f32 %v9308_v38, %v1811_v62  ;;  %v1812_v12 = vmul.f32 %v9331_v17, %v1648_v27  ;;  %v1649_v14 = vmul.f32 %v8367_v3, %v11086_v50  ;;  %v11090_v62 = vld [vmem:[#allocation29_spill] sm:$0xff]  ;;  %v11091_v50 = vld [vmem:[#allocation88_spill] sm:$0xff] }
 0x360   :  { %v5797_v56 = vpop.eup %5796  ;;  %5810 = vrcp.f32 %v2597_v63  ;;  %v2598_v9 = vadd.f32 1.0, %v5795_v16  ;;  %v2331_v53 = vmul.f32 1.442695, %v2131_v25  ;;  %v2210_v31 = vsub.f32 0.0, %v9326_v37  ;;  %v11089_v63 = vld [vmem:[#allocation87_spill] sm:$0xff] }
 0x361   :  { %v5799_v61 = vpop.eup %5798  ;;  %5345 = vmatmul.mubr.msk.f32.gmra.mrb[70].mxu1 %vm489_vm0, %v3144_v32  ;;  %5812 = vrcp.f32 %v2676_v18  ;;  %v2677_v44 = vadd.f32 1.0, %v5797_v56  ;;  %v2132_v30 = vsub.f32 0.0, %v9335_v48  ;;  %v9346_v51 = vadd.f32 %v9308_v38, %v1890_v2 }
 0x362   :  { %v5801_v40 = vpop.eup %5800  ;;  %5111 = vmatmul.mubr.msk.f32.gmra.mrb[72].mxu0 %vm489_vm0, %v3066_v42  ;;  %5347 = vmatprep.mubr.msk.f32.mxu1 %vm6239_vm1, %v11034_v1  ;;  %v3146_v21 = vmul.f32 %v5799_v61, %v9178_v54  ;;  %5814 = vrcp.f32 %v2598_v9  ;;  %v2489_v52 = vmul.f32 1.442695, %v2210_v31  ;;  %v9351_v7 = vadd.f32 %v9308_v38, %v1812_v12 }
 0x363   :  { %v5803_v36 = vpop.eup %5802  ;;  %5113 = vmatprep.mubr.msk.f32.mxu0 %vm6239_vm1, %v11034_v1  ;;  %5816 = vrcp.f32 %v2677_v44  ;;  %v2599_v20 = vadd.f32 1.0, %v5801_v40  ;;  %v2333_v54 = vmul.f32 1.442695, %v2132_v30  ;;  %v2211_v47 = vsub.f32 0.0, %v9346_v51 }
 0x364   :  { %v5805_v8 = vpop.eup %5804  ;;  %v2678_v5 = vadd.f32 1.0, %v5803_v36  ;;  %5818 = vpow2.f32 %v2487_v28  ;;  %v2133_v13 = vsub.f32 0.0, %v9351_v7  ;;  %v1727_v42 = vmul.f32 %v8367_v3, %v11085_v4 }
 0x365   :  { %v5807_v59 = vpop.eup %5806  ;;  %5348 = vmatmul.mubr.msk.f32.gmra.mrb[72].mxu1 %vm489_vm0, %v3145_v10  ;;  %5820 = vrcp.f32 %v2599_v20  ;;  %v2600_v32 = vadd.f32 1.0, %v5805_v8  ;;  %v2491_v41 = vmul.f32 1.442695, %v2211_v47  ;;  %v1813_v0 = vmul.f32 %v9331_v17, %v1649_v14 }
 0x366   :  { %v5809_v34 = vpop.eup %5808  ;;  %5114 = vmatmul.mubr.msk.f32.gmra.mrb[74].mxu0 %vm489_vm0, %v3067_v55  ;;  %5350 = vmatprep.mubr.msk.f32.mxu1 %vm6239_vm1, %v11034_v1  ;;  %5822 = vrcp.f32 %v2678_v5  ;;  %v2679_v26 = vadd.f32 1.0, %v5807_v59  ;;  %v2335_v22 = vmul.f32 1.442695, %v2133_v13  ;;  %v1891_v23 = vmul.f32 %v9331_v17, %v1727_v42  ;;  %v11087_v55 = vld [vmem:[#allocation86_spill] sm:$0xff] }
 0x367   :  { %5116 = vmatprep.mubr.msk.f32.mxu0 %vm6239_vm1, %v11034_v1  ;;  %5824 = vrcp.f32 %v2600_v32  ;;  %v2601_v10 = vadd.f32 1.0, %v5809_v34  ;;  %v1728_v58 = vmul.f32 %v8367_v3, %v11087_v55  ;;  %v1650_v45 = vmul.f32 %v8367_v3, %v11088_v19 }
 0x368   :  { %5826 = vrcp.f32 %v2679_v26  ;;  %v9373_v60 = vadd.f32 %v9308_v38, %v1891_v23  ;;  %v1729_v28 = vmul.f32 %v8367_v3, %v11089_v63  ;;  %v1651_v29 = vmul.f32 %v8367_v3, %v11090_v62  ;;  %v11092_v23 = vld [vmem:[#allocation30_spill] sm:$0xff] }
 0x369   :  { %5351 = vmatmul.mubr.msk.f32.gmra.mrb[74].mxu1 %vm489_vm0, %v3146_v21  ;;  %5828 = vrcp.f32 %v2601_v10  ;;  %v9382_v16 = vadd.f32 %v9308_v38, %v1813_v0  ;;  %v1892_v18 = vmul.f32 %v9331_v17, %v1728_v58  ;;  %v1814_v25 = vmul.f32 %v9331_v17, %v1650_v45  ;;  %v11093_v45 = vld [vmem:[#allocation89_spill] sm:$0xff] }
 0x36a   :  { %v5811_v27 = vpop.eup %5810  ;;  %5353 = vmatprep.mubr.msk.f32.mxu1 %vm6239_vm1, %v11034_v1  ;;  %5830 = vpow2.f32 %v2331_v53  ;;  %v2212_v9 = vsub.f32 0.0, %v9373_v60  ;;  %v1893_v12 = vmul.f32 %v9331_v17, %v1729_v28  ;;  %v1730_v14 = vmul.f32 %v8367_v3, %v11091_v50 }
 0x36b   :  { %v5813_v2 = vpop.eup %5812  ;;  %v3068_v56 = vmul.f32 %v5811_v27, %v9192_v46  ;;  %5832 = vpow2.f32 %v2489_v52  ;;  %v2134_v53 = vsub.f32 0.0, %v9382_v16  ;;  %v9392_v31 = vadd.f32 %v9308_v38, %v1892_v18 }
 0x36c   :  { %v5815_v61 = vpop.eup %5814  ;;  %v3147_v44 = vmul.f32 %v5813_v2, %v9208_v39  ;;  %5834 = vpow2.f32 %v2333_v54  ;;  %v2493_v46 = vmul.f32 1.442695, %v2212_v9  ;;  %v9397_v30 = vadd.f32 %v9308_v38, %v1814_v25 }
 0x36d   :  { %v5817_v40 = vpop.eup %5816  ;;  %5117 = vmatmul.mubr.msk.f32.gmra.mrb[76].mxu0 %vm489_vm0, %v3068_v56  ;;  %v3069_v21 = vmul.f32 %v5815_v61, %v9211_v43  ;;  %5836 = vpow2.f32 %v2491_v41  ;;  %v2337_v20 = vmul.f32 1.442695, %v2134_v53  ;;  %v2213_v52 = vsub.f32 0.0, %v9392_v31 }
 0x36e   :  { %v5819_v36 = vpop.eup %5818  ;;  %5119 = vmatprep.mubr.msk.f32.mxu0 %vm6239_vm1, %v11034_v1  ;;  %5354 = vmatmul.mubr.msk.f32.gmra.mrb[76].mxu1 %vm489_vm0, %v3147_v44  ;;  %v3148_v39 = vmul.f32 %v5817_v40, %v9221_v15  ;;  %5838 = vpow2.f32 %v2335_v22  ;;  %v2135_v5 = vsub.f32 0.0, %v9397_v30  ;;  %v9408_v54 = vadd.f32 %v9308_v38, %v1893_v12 }
 0x36f   :  { %v5821_v8 = vpop.eup %5820  ;;  %5356 = vmatprep.mubr.msk.f32.mxu1 %vm6239_vm1, %v11034_v1  ;;  %v2680_v43 = vadd.f32 1.0, %v5819_v36  ;;  %5840 = vpow2.f32 %v2493_v46  ;;  %v2495_v59 = vmul.f32 1.442695, %v2213_v52  ;;  %v1815_v15 = vmul.f32 %v9331_v17, %v1651_v29  ;;  %v11094_v29 = vld [vmem:[#allocation31_spill] sm:$0xff] }
 0x370   :  { %v5823_v47 = vpop.eup %5822  ;;  %5842 = vpow2.f32 %v2337_v20  ;;  %v3070_v13 = vmul.f32 %v5821_v8, %v9229_v35  ;;  %v2339_v4 = vmul.f32 1.442695, %v2135_v5  ;;  %v2214_v42 = vsub.f32 0.0, %v9408_v54 }
 0x371   :  { %v5825_v32 = vpop.eup %5824  ;;  %5120 = vmatmul.mubr.msk.f32.gmra.mrb[78].mxu0 %vm489_vm0, %v3069_v21  ;;  %5844 = vrcp.f32 %v2680_v43  ;;  %v3149_v26 = vmul.f32 %v5823_v47, %v9249_v33  ;;  %v9419_v41 = vadd.f32 %v9308_v38, %v1815_v15  ;;  %v1652_v0 = vmul.f32 %v8367_v3, %v11092_v23 }
 0x372   :  { %v5827_v34 = vpop.eup %5826  ;;  %5122 = vmatprep.mubr.msk.f32.mxu0 %vm6239_vm1, %v11034_v1  ;;  %5357 = vmatmul.mubr.msk.f32.gmra.mrb[78].mxu1 %vm489_vm0, %v3148_v39  ;;  %5846 = vpow2.f32 %v2495_v59  ;;  %v3071_v10 = vmul.f32 %v5825_v32, %v9257_v11  ;;  %v2497_v22 = vmul.f32 1.442695, %v2214_v42  ;;  %v1894_v19 = vmul.f32 %v9331_v17, %v1730_v14 }
 0x373   :  { %v5829_v35 = vpop.eup %5828  ;;  %5359 = vmatprep.mubr.msk.f32.mxu1 %vm6239_vm1, %v11034_v1  ;;  %5848 = vpow2.f32 %v2339_v4  ;;  %v3150_v33 = vmul.f32 %v5827_v34, %v9266_v6  ;;  %v1731_v63 = vmul.f32 %v8367_v3, %v11093_v45  ;;  %v1816_v11 = vmul.f32 %v9331_v17, %v1652_v0  ;;  %v11095_v34 = vld [vmem:[#allocation90_spill] sm:$0xff]  ;;  %v11097_v0 = vld [vmem:[#allocation91_spill] sm:$0xff]  ;;  %v11098_v45 = vld [vmem:[#allocation33_spill] sm:$0xff] }
 0x374   :  { %v5831_v55 = vpop.eup %5830  ;;  %v3072_v58 = vmul.f32 %v5829_v35, %v9273_v57  ;;  %5850 = vpow2.f32 %v2497_v22  ;;  %v1653_v27 = vmul.f32 %v8367_v3, %v11094_v29  ;;  %v2136_v57 = vsub.f32 0.0, %v9419_v41 }
 0x375   :  { %v5833_v28 = vpop.eup %5832  ;;  %5123 = vmatmul.mubr.msk.f32.gmra.mrb[80].mxu0 %vm489_vm0, %v3070_v13  ;;  %v2602_v62 = vadd.f32 1.0, %v5831_v55  ;;  %v9442_v25 = vadd.f32 %v9308_v38, %v1894_v19  ;;  %v1895_v2 = vmul.f32 %v9331_v17, %v1731_v63  ;;  %v9448_v12 = vadd.f32 %v9308_v38, %v1816_v11 }
 0x376   :  { %v5835_v18 = vpop.eup %5834  ;;  %5125 = vmatprep.mubr.msk.f32.mxu0 %vm6239_vm1, %v11034_v1  ;;  %5360 = vmatmul.mubr.msk.f32.gmra.mrb[80].mxu1 %vm489_vm0, %v3149_v26  ;;  %v2681_v6 = vadd.f32 1.0, %v5833_v28  ;;  %v1817_v61 = vmul.f32 %v9331_v17, %v1653_v27  ;;  %v2341_v43 = vmul.f32 1.442695, %v2136_v57  ;;  %v1732_v26 = vmul.f32 %v8367_v3, %v11095_v34 }
 0x377   :  { %v5837_v56 = vpop.eup %5836  ;;  %5362 = vmatprep.mubr.msk.f32.mxu1 %vm6239_vm1, %v11034_v1  ;;  %5852 = vrcp.f32 %v2602_v62  ;;  %v2603_v9 = vadd.f32 1.0, %v5835_v18  ;;  %v2215_v40 = vsub.f32 0.0, %v9442_v25  ;;  %v9453_v21 = vadd.f32 %v9308_v38, %v1895_v2 }
 0x378   :  { %v5839_v44 = vpop.eup %5838  ;;  %5854 = vrcp.f32 %v2681_v6  ;;  %v2682_v53 = vadd.f32 1.0, %v5837_v56  ;;  %v2137_v39 = vsub.f32 0.0, %v9448_v12  ;;  %v9458_v20 = vadd.f32 %v9308_v38, %v1817_v61  ;;  %v11099_v6 = vld [vmem:[#allocation92_spill] sm:$0xff] }
 0x379   :  { %v5841_v46 = vpop.eup %5840  ;;  %5126 = vmatmul.mubr.msk.f32.gmra.mrb[82].mxu0 %vm489_vm0, %v3071_v10  ;;  %5856 = vrcp.f32 %v2603_v9  ;;  %v2604_v36 = vadd.f32 1.0, %v5839_v44  ;;  %v2216_v5 = vsub.f32 0.0, %v9453_v21  ;;  %v2499_v15 = vmul.f32 1.442695, %v2215_v40  ;;  %v11096_v10 = vld [vmem:[#allocation32_spill] sm:$0xff] }
 0x37a   :  { %v5843_v52 = vpop.eup %5842  ;;  %5128 = vmatprep.mubr.msk.f32.mxu0 %vm6239_vm1, %v11034_v1  ;;  %5363 = vmatmul.mubr.msk.f32.gmra.mrb[82].mxu1 %vm489_vm0, %v3150_v33  ;;  %5858 = vrcp.f32 %v2682_v53  ;;  %v2683_v8 = vadd.f32 1.0, %v5841_v46  ;;  %v2138_v32 = vsub.f32 0.0, %v9458_v20  ;;  %v2343_v42 = vmul.f32 1.442695, %v2137_v39 }
 0x37b   :  { %v5845_v47 = vpop.eup %5844  ;;  %5365 = vmatprep.mubr.msk.f32.mxu1 %vm6239_vm1, %v11034_v1  ;;  %5860 = vrcp.f32 %v2604_v36  ;;  %v2605_v59 = vadd.f32 1.0, %v5843_v52  ;;  %v2501_v35 = vmul.f32 1.442695, %v2216_v5  ;;  %v1654_v22 = vmul.f32 %v8367_v3, %v11096_v10 }
 0x37c   :  { %v5847_v13 = vpop.eup %5846  ;;  %v3151_v4 = vmul.f32 %v5845_v47, %v9291_v49  ;;  %5862 = vrcp.f32 %v2683_v8  ;;  %v1896_v23 = vmul.f32 %v9331_v17, %v1732_v26  ;;  %v1733_v55 = vmul.f32 %v8367_v3, %v11097_v0 }
 0x37d   :  { %v5849_v50 = vpop.eup %5848  ;;  %5129 = vmatmul.mubr.msk.f32.gmra.mrb[84].mxu0 %vm489_vm0, %v3072_v58  ;;  %5864 = vrcp.f32 %v2605_v59  ;;  %v2684_v14 = vadd.f32 1.0, %v5847_v13  ;;  %v2345_v58 = vmul.f32 1.442695, %v2138_v32  ;;  %v1818_v19 = vmul.f32 %v9331_v17, %v1654_v22  ;;  %v11102_v22 = vld [vmem:[#allocation35_spill] sm:$0xff] }
 0x37e   :  { %5131 = vmatprep.mubr.msk.f32.mxu0 %vm6239_vm1, %v11034_v1  ;;  %5366 = vmatmul.mubr.msk.f32.gmra.mrb[84].mxu1 %vm489_vm0, %v3151_v4  ;;  %v2606_v49 = vadd.f32 1.0, %v5849_v50  ;;  %5866 = vpow2.f32 %v2341_v43  ;;  %v5851_v33 = vpop.eup %5850  ;;  %v1655_v63 = vmul.f32 %v8367_v3, %v11098_v45  ;;  %v9485_v62 = vadd.f32 %v9308_v38, %v1896_v23  ;;  %v11101_v50 = vld [vmem:[#allocation93_spill] sm:$0xff] }
 0x37f   :  { %5368 = vmatprep.mubr.msk.f32.mxu1 %vm6239_vm1, %v11034_v1  ;;  %5868 = vrcp.f32 %v2684_v14  ;;  %v2685_v28 = vadd.f32 1.0, %v5851_v33  ;;  %v1897_v11 = vmul.f32 %v9331_v17, %v1733_v55  ;;  %v9489_v27 = vadd.f32 %v9308_v38, %v1818_v19  ;;  %v11103_v33 = vld [vmem:[#allocation94_spill] sm:$0xff] }
 0x380   :  { %5870 = vrcp.f32 %v2606_v49  ;;  %v1819_v18 = vmul.f32 %v9331_v17, %v1655_v63  ;;  %v1734_v57 = vmul.f32 %v8367_v3, %v11099_v6  ;;  %v2217_v9 = vsub.f32 0.0, %v9485_v62 }
 0x381   :  { %v5853_v29 = vpop.eup %5852  ;;  %5872 = vpow2.f32 %v2499_v15  ;;  %v9497_v61 = vadd.f32 %v9308_v38, %v1897_v11  ;;  %v2139_v40 = vsub.f32 0.0, %v9489_v27  ;;  %v1735_v14 = vmul.f32 %v8367_v3, %v11101_v50 }
 0x382   :  { %v5855_v2 = vpop.eup %5854  ;;  %v3073_v56 = vmul.f32 %v5853_v29, %v9311_v24  ;;  %5874 = vrcp.f32 %v2685_v28  ;;  %v9502_v46 = vadd.f32 %v9308_v38, %v1819_v18  ;;  %v2503_v39 = vmul.f32 1.442695, %v2217_v9  ;;  %v11104_v9 = vld [vmem:[#allocation36_spill] sm:$0xff] }
 0x383   :  { %v5857_v44 = vpop.eup %5856  ;;  %v3152_v53 = vmul.f32 %v5855_v2, %v9326_v37  ;;  %5876 = vpow2.f32 %v2343_v42  ;;  %v2218_v52 = vsub.f32 0.0, %v9497_v61  ;;  %v2347_v43 = vmul.f32 1.442695, %v2139_v40 }
 0x384   :  { %v5859_v36 = vpop.eup %5858  ;;  %5132 = vmatmul.mubr.msk.f32.gmra.mrb[86].mxu0 %vm489_vm0, %v3073_v56  ;;  %v3074_v24 = vmul.f32 %v5857_v44, %v9335_v48  ;;  %5878 = vpow2.f32 %v2501_v35  ;;  %v2140_v5 = vsub.f32 0.0, %v9502_v46  ;;  %v1898_v15 = vmul.f32 %v9331_v17, %v1734_v57 }
 0x385   :  { %v5861_v8 = vpop.eup %5860  ;;  %5134 = vmatprep.mubr.msk.f32.mxu0 %vm6239_vm1, %v11034_v1  ;;  %5369 = vmatmul.mubr.msk.f32.gmra.mrb[86].mxu1 %vm489_vm0, %v3152_v53  ;;  %v3153_v37 = vmul.f32 %v5859_v36, %v9346_v51  ;;  %5880 = vpow2.f32 %v2345_v58  ;;  %v2505_v59 = vmul.f32 1.442695, %v2218_v52  ;;  %v11100_v51 = vld [vmem:[#allocation34_spill] sm:$0xff]  ;;  %v1899_v55 = vmul.f32 %v9331_v17, %v1735_v14 }
 0x386   :  { %v5863_v47 = vpop.eup %5862  ;;  %5371 = vmatprep.mubr.msk.f32.mxu1 %vm6239_vm1, %v11034_v1  ;;  %v3075_v48 = vmul.f32 %v5861_v8, %v9351_v7  ;;  %5882 = vpow2.f32 %v2503_v39  ;;  %v2349_v4 = vmul.f32 1.442695, %v2140_v5  ;;  %v1656_v42 = vmul.f32 %v8367_v3, %v11100_v51 }
 0x387   :  { %v5865_v32 = vpop.eup %5864  ;;  %v3154_v13 = vmul.f32 %v5863_v47, %v9373_v60  ;;  %5884 = vpow2.f32 %v2347_v43  ;;  %v9522_v7 = vadd.f32 %v9308_v38, %v1898_v15  ;;  %v1736_v58 = vmul.f32 %v8367_v3, %v11103_v33  ;;  %v11108_v33 = vld [vmem:[#allocation38_spill] sm:$0xff] }
 0x388   :  { %v5867_v34 = vpop.eup %5866  ;;  %5135 = vmatmul.mubr.msk.f32.gmra.mrb[88].mxu0 %vm489_vm0, %v3074_v24  ;;  %v3076_v26 = vmul.f32 %v5865_v32, %v9382_v16  ;;  %5886 = vpow2.f32 %v2505_v59  ;;  %v1820_v10 = vmul.f32 %v9331_v17, %v1656_v42  ;;  %v1657_v16 = vmul.f32 %v8367_v3, %v11102_v22  ;;  %v11105_v42 = vld [vmem:[#allocation95_spill] sm:$0xff] }
 0x389   :  { %v5869_v35 = vpop.eup %5868  ;;  %5137 = vmatprep.mubr.msk.f32.mxu0 %vm6239_vm1, %v11034_v1  ;;  %5372 = vmatmul.mubr.msk.f32.gmra.mrb[88].mxu1 %vm489_vm0, %v3153_v37  ;;  %v2607_v60 = vadd.f32 1.0, %v5867_v34  ;;  %5888 = vpow2.f32 %v2349_v4  ;;  %v2219_v0 = vsub.f32 0.0, %v9522_v7  ;;  %v9546_v18 = vadd.f32 %v9308_v38, %v1899_v55 }
 0x38a   :  { %v5871_v49 = vpop.eup %5870  ;;  %5374 = vmatprep.mubr.msk.f32.mxu1 %vm6239_vm1, %v11034_v1  ;;  %v3155_v23 = vmul.f32 %v5869_v35, %v9392_v31  ;;  %v9541_v63 = vadd.f32 %v9308_v38, %v1820_v10  ;;  %v1821_v28 = vmul.f32 %v9331_v17, %v1657_v16  ;;  %v1900_v6 = vmul.f32 %v9331_v17, %v1736_v58  ;;  %v11106_v35 = vld [vmem:[#allocation37_spill] sm:$0xff]  ;;  %v11107_v16 = vld [vmem:[#allocation96_spill] sm:$0xff] }
 0x38b   :  { %v5873_v19 = vpop.eup %5872  ;;  %v3077_v45 = vmul.f32 %v5871_v49, %v9397_v30  ;;  %5890 = vrcp.f32 %v2607_v60  ;;  %v2507_v29 = vmul.f32 1.442695, %v2219_v0  ;;  %v1658_v44 = vmul.f32 %v8367_v3, %v11104_v9 }
 0x38c   :  { %v5875_v11 = vpop.eup %5874  ;;  %5138 = vmatmul.mubr.msk.f32.gmra.mrb[90].mxu0 %vm489_vm0, %v3075_v48  ;;  %v2686_v31 = vadd.f32 1.0, %v5873_v19  ;;  %v2141_v2 = vsub.f32 0.0, %v9541_v63  ;;  %v9555_v56 = vadd.f32 %v9308_v38, %v1821_v28  ;;  %v2220_v36 = vsub.f32 0.0, %v9546_v18 }
 0x38d   :  { %v5877_v57 = vpop.eup %5876  ;;  %5140 = vmatprep.mubr.msk.f32.mxu0 %vm6239_vm1, %v11034_v1  ;;  %5375 = vmatmul.mubr.msk.f32.gmra.mrb[90].mxu1 %vm489_vm0, %v3154_v13  ;;  %v3156_v30 = vmul.f32 %v5875_v11, %v9408_v54  ;;  %v9563_v24 = vadd.f32 %v9308_v38, %v1900_v6  ;;  %v1822_v32 = vmul.f32 %v9331_v17, %v1658_v44 }
 0x38e   :  { %v5879_v53 = vpop.eup %5878  ;;  %5377 = vmatprep.mubr.msk.f32.mxu1 %vm6239_vm1, %v11034_v1  ;;  %5892 = vrcp.f32 %v2686_v31  ;;  %v2608_v40 = vadd.f32 1.0, %v5877_v57  ;;  %v2351_v52 = vmul.f32 1.442695, %v2141_v2  ;;  %v2142_v8 = vsub.f32 0.0, %v9555_v56 }
 0x38f   :  { %v5881_v54 = vpop.eup %5880  ;;  %v2687_v39 = vadd.f32 1.0, %v5879_v53  ;;  %5894 = vpow2.f32 %v2507_v29  ;;  %v2509_v5 = vmul.f32 1.442695, %v2220_v36  ;;  %v2221_v47 = vsub.f32 0.0, %v9563_v24 }
 0x390   :  { %v5883_v37 = vpop.eup %5882  ;;  %5141 = vmatmul.mubr.msk.f32.gmra.mrb[92].mxu0 %vm489_vm0, %v3076_v26  ;;  %5896 = vrcp.f32 %v2608_v40  ;;  %v2609_v43 = vadd.f32 1.0, %v5881_v54  ;;  %v2353_v15 = vmul.f32 1.442695, %v2142_v8  ;;  %v1737_v34 = vmul.f32 %v8367_v3, %v11105_v42 }
 0x391   :  { %v5885_v48 = vpop.eup %5884  ;;  %5143 = vmatprep.mubr.msk.f32.mxu0 %vm6239_vm1, %v11034_v1  ;;  %5378 = vmatmul.mubr.msk.f32.gmra.mrb[92].mxu1 %vm489_vm0, %v3155_v23  ;;  %5898 = vrcp.f32 %v2687_v39  ;;  %v2688_v59 = vadd.f32 1.0, %v5883_v37  ;;  %v2511_v51 = vmul.f32 1.442695, %v2221_v47  ;;  %v9577_v14 = vadd.f32 %v9308_v38, %v1822_v32 }
 0x392   :  { %v5887_v13 = vpop.eup %5886  ;;  %5380 = vmatprep.mubr.msk.f32.mxu1 %vm6239_vm1, %v11034_v1  ;;  %5900 = vrcp.f32 %v2609_v43  ;;  %v2610_v4 = vadd.f32 1.0, %v5885_v48  ;;  %v1659_v60 = vmul.f32 %v8367_v3, %v11106_v35  ;;  %v1901_v22 = vmul.f32 %v9331_v17, %v1737_v34  ;;  %v11110_v34 = vld [vmem:[#allocation39_spill] sm:$0xff] }
 0x393   :  { %v5889_v26 = vpop.eup %5888  ;;  %5902 = vrcp.f32 %v2688_v59  ;;  %v2689_v50 = vadd.f32 1.0, %v5887_v13  ;;  %v1738_v49 = vmul.f32 %v8367_v3, %v11107_v16  ;;  %v2143_v0 = vsub.f32 0.0, %v9577_v14 }
 0x394   :  { %5144 = vmatmul.mubr.msk.f32.gmra.mrb[94].mxu0 %vm489_vm0, %v3077_v45  ;;  %5904 = vrcp.f32 %v2610_v4  ;;  %v2611_v10 = vadd.f32 1.0, %v5889_v26  ;;  %v1823_v55 = vmul.f32 %v9331_v17, %v1659_v60  ;;  %v1660_v58 = vmul.f32 %v8367_v3, %v11108_v33 }
 0x395   :  { %v5891_v23 = vpop.eup %5890  ;;  %5146 = vmatprep.mubr.msk.f32.mxu0 %vm6239_vm1, %v11034_v1  ;;  %5381 = vmatmul.mubr.msk.f32.gmra.mrb[94].mxu1 %vm489_vm0, %v3156_v30  ;;  %5906 = vrcp.f32 %v2689_v50  ;;  %v9596_v45 = vadd.f32 %v9308_v38, %v1901_v22  ;;  %v1902_v28 = vmul.f32 %v9331_v17, %v1738_v49  ;;  %v2355_v11 = vmul.f32 1.442695, %v2143_v0  ;;  %v11109_v30 = vld [vmem:[#allocation97_spill] sm:$0xff]  ;;  %v11112_v0 = vld [vmem:[#allocation40_spill] sm:$0xff] }
 0x396   :  { %v3078_v19 = vmul.f32 %v5891_v23, %v9419_v41  ;;  %5383 = vmatprep.mubr.msk.f32.mxu1 %vm6239_vm1, %v11034_v1  ;;  %5908 = vrcp.f32 %v2611_v10  ;;  %v9600_v31 = vadd.f32 %v9308_v38, %v1823_v55  ;;  %v1824_v29 = vmul.f32 %v9331_v17, %v1660_v58  ;;  %v11111_v10 = vld [vmem:[#allocation98_spill] sm:$0xff] }
 0x397   :  { %5910 = vpow2.f32 %v2351_v52  ;;  %v2222_v41 = vsub.f32 0.0, %v9596_v45  ;;  %v9606_v57 = vadd.f32 %v9308_v38, %v1902_v28  ;;  %v1739_v2 = vmul.f32 %v8367_v3, %v11109_v30 }
 0x398   :  { %v5893_v6 = vpop.eup %5892  ;;  %5147 = vmatmul.mubr.msk.f32.gmra.mrb[96].mxu0 %vm489_vm0, %v3078_v19  ;;  %5912 = vpow2.f32 %v2509_v5  ;;  %v2144_v53 = vsub.f32 0.0, %v9600_v31  ;;  %v9615_v40 = vadd.f32 %v9308_v38, %v1824_v29  ;;  %v1740_v22 = vmul.f32 %v8367_v3, %v11111_v10 }
 0x399   :  { %v5895_v9 = vpop.eup %5894  ;;  %5149 = vmatprep.mubr.msk.f32.mxu0 %vm6239_vm1, %v11034_v1  ;;  %v3157_v44 = vmul.f32 %v5893_v6, %v9442_v25  ;;  %5914 = vpow2.f32 %v2353_v15  ;;  %v3728_v54 = vpop.f32.mrb[0].mxu0  ;;  %v2513_v52 = vmul.f32 1.442695, %v2222_v41  ;;  %v2223_v8 = vsub.f32 0.0, %v9606_v57  ;;  %v11113_v41 = vld [vmem:[#allocation99_spill] sm:$0xff] }
 0x39a   :  { %v5897_v36 = vpop.eup %5896  ;;  %v2690_v39 = vadd.f32 1.0, %v5895_v9  ;;  %5916 = vpow2.f32 %v2511_v51  ;;  %4513 = vst.msk [vmem:[%s10799_s4] sm:$0xff] %vm4512_vm3, %v3728_v54  ;;  %v5004_v25 = vpop.f32.mrb[1].mxu0  ;;  %v2357_v47 = vmul.f32 1.442695, %v2144_v53  ;;  %v2145_v48 = vsub.f32 0.0, %v9615_v40 }
 0x39b   :  { %v5899_v37 = vpop.eup %5898  ;;  %5384 = vmatmul.mubr.msk.f32.gmra.mrb[96].mxu1 %vm489_vm0, %v3157_v44  ;;  %v3079_v43 = vmul.f32 %v5897_v36, %v9448_v12  ;;  %v4123_v5 = vpop.f32.mrb[0].mxu1  ;;  %5918 = vpow2.f32 %v2355_v11  ;;  %v2515_v32 = vmul.f32 1.442695, %v2223_v8  ;;  %v1903_v13 = vmul.f32 %v9331_v17, %v1739_v2  ;;  %v11114_v54 = vld [vmem:[#allocation41_spill] sm:$0xff] }
 0x39c   :  { %v5901_v59 = vpop.eup %5900  ;;  %5386 = vmatprep.mubr.msk.f32.mxu1 %vm6239_vm1, %v11034_v1  ;;  %v3158_v15 = vmul.f32 %v5899_v37, %v9453_v21  ;;  %5920 = vrcp.f32 %v2690_v39  ;;  %4592 = vst.msk [vmem:[%s10799_s4 + $0x278] sm:$0xff] %vm4512_vm3, %v4123_v5  ;;  %v5241_v12 = vpop.f32.mrb[1].mxu1  ;;  %v2359_v42 = vmul.f32 1.442695, %v2145_v48  ;;  %v1661_v21 = vmul.f32 %v8367_v3, %v11110_v34 }
 0x39d   :  { %v5903_v4 = vpop.eup %5902  ;;  %5150 = vmatmul.mubr.msk.f32.gmra.mrb[98].mxu0 %vm489_vm0, %v3079_v43  ;;  %v3080_v51 = vmul.f32 %v5901_v59, %v9458_v20  ;;  %5922 = vpow2.f32 %v2513_v52  ;;  %v3733_v35 = vpop.f32.mrb[2].mxu0  ;;  %v9641_v60 = vadd.f32 %v9308_v38, %v1903_v13  ;;  %v1662_v55 = vmul.f32 %v8367_v3, %v11112_v0 }
 0x39e   :  { %v5905_v26 = vpop.eup %5904  ;;  %5152 = vmatprep.mubr.msk.f32.mxu0 %vm6239_vm1, %v11034_v1  ;;  %v3159_v50 = vmul.f32 %v5903_v4, %v9485_v62  ;;  %5924 = vpow2.f32 %v2357_v47  ;;  %4514 = vst.msk [vmem:[%s10799_s4 + $0x8] sm:$0xff] %vm4512_vm3, %v3733_v35  ;;  %v5007_v49 = vpop.f32.mrb[3].mxu0  ;;  %v1825_v23 = vmul.f32 %v9331_v17, %v1661_v21  ;;  %v1904_v28 = vmul.f32 %v9331_v17, %v1740_v22 }
 0x39f   :  { %v5907_v20 = vpop.eup %5906  ;;  %5387 = vmatmul.mubr.msk.f32.gmra.mrb[98].mxu1 %vm489_vm0, %v3158_v15  ;;  %v3081_v16 = vmul.f32 %v5905_v26, %v9489_v27  ;;  %v4128_v62 = vpop.f32.mrb[2].mxu1  ;;  %5926 = vpow2.f32 %v2515_v32  ;;  %v2224_v19 = vsub.f32 0.0, %v9641_v60  ;;  %v1741_v30 = vmul.f32 %v8367_v3, %v11113_v41 }
 0x3a0   :  { %v5909_v33 = vpop.eup %5908  ;;  %5389 = vmatprep.mubr.msk.f32.mxu1 %vm6239_vm1, %v11034_v1  ;;  %v3160_v58 = vmul.f32 %v5907_v20, %v9497_v61  ;;  %4593 = vst.msk [vmem:[%s10799_s4 + $0x280] sm:$0xff] %vm4512_vm3, %v4128_v62  ;;  %v5244_v27 = vpop.f32.mrb[3].mxu1  ;;  %5928 = vpow2.f32 %v2359_v42  ;;  %v9666_v6 = vadd.f32 %v9308_v38, %v1825_v23  ;;  %v1826_v61 = vmul.f32 %v9331_v17, %v1662_v55  ;;  %v11115_v55 = vld [vmem:[#allocation100_spill] sm:$0xff] }
 0x3a1   :  { %v5911_v11 = vpop.eup %5910  ;;  %5153 = vmatmul.mubr.msk.f32.gmra.mrb[100].mxu0 %vm489_vm0, %v3080_v51  ;;  %v3082_v29 = vmul.f32 %v5909_v33, %v9502_v46  ;;  %v3738_v44 = vpop.f32.mrb[4].mxu0  ;;  %v2517_v53 = vmul.f32 1.442695, %v2224_v19  ;;  %v9674_v36 = vadd.f32 %v9308_v38, %v1904_v28  ;;  %v1663_v46 = vmul.f32 %v8367_v3, %v11114_v54  ;;  %v11116_v28 = vld [vmem:[#allocation42_spill] sm:$0xff] }
 0x3a2   :  { %v5913_v2 = vpop.eup %5912  ;;  %5155 = vmatprep.mubr.msk.f32.mxu0 %vm6239_vm1, %v11034_v1  ;;  %v2612_v9 = vadd.f32 1.0, %v5911_v11  ;;  %4515 = vst.msk [vmem:[%s10799_s4 + $0x10] sm:$0xff] %vm4512_vm3, %v3738_v44  ;;  %v5010_v8 = vpop.f32.mrb[5].mxu0  ;;  %v2146_v43 = vsub.f32 0.0, %v9666_v6  ;;  %v9685_v25 = vadd.f32 %v9308_v38, %v1826_v61  ;;  %v1905_v5 = vmul.f32 %v9331_v17, %v1741_v30 }
 0x3a3   :  { %v5915_v39 = vpop.eup %5914  ;;  %5390 = vmatmul.mubr.msk.f32.gmra.mrb[100].mxu1 %vm489_vm0, %v3159_v50  ;;  %v2691_v52 = vadd.f32 1.0, %v5913_v2  ;;  %v4133_v37 = vpop.f32.mrb[4].mxu1  ;;  %v2225_v15 = vsub.f32 0.0, %v9674_v36  ;;  %v1827_v12 = vmul.f32 %v9331_v17, %v1663_v46  ;;  %v1742_v33 = vmul.f32 %v8367_v3, %v11115_v55  ;;  %v11117_v8 = vld [vmem:[#allocation101_spill] sm:$0xff] }
 0x3a4   :  { %v5917_v47 = vpop.eup %5916  ;;  %5392 = vmatprep.mubr.msk.f32.mxu1 %vm6239_vm1, %v11034_v1  ;;  %5930 = vrcp.f32 %v2612_v9  ;;  %v2613_v48 = vadd.f32 1.0, %v5915_v39  ;;  %4594 = vst.msk [vmem:[%s10799_s4 + $0x288] sm:$0xff] %vm4512_vm3, %v4133_v37  ;;  %v5247_v59 = vpop.f32.mrb[5].mxu1  ;;  %v2361_v4 = vmul.f32 1.442695, %v2146_v43  ;;  %v2147_v51 = vsub.f32 0.0, %v9685_v25 }
 0x3a5   :  { %v5919_v32 = vpop.eup %5918  ;;  %5156 = vmatmul.mubr.msk.f32.gmra.mrb[102].mxu0 %vm489_vm0, %v3081_v16  ;;  %5932 = vrcp.f32 %v2691_v52  ;;  %v2692_v13 = vadd.f32 1.0, %v5917_v47  ;;  %v3743_v21 = vpop.f32.mrb[6].mxu0  ;;  %v2519_v26 = vmul.f32 1.442695, %v2225_v15  ;;  %v9701_v50 = vadd.f32 %v9308_v38, %v1905_v5  ;;  %v11118_v43 = vld [vmem:[#allocation43_spill] sm:$0xff]  ;;  %v11120_v15 = vld [vmem:[#allocation44_spill] sm:$0xff] }
 0x3a6   :  { %v5921_v42 = vpop.eup %5920  ;;  %5158 = vmatprep.mubr.msk.f32.mxu0 %vm6239_vm1, %v11034_v1  ;;  %5934 = vrcp.f32 %v2613_v48  ;;  %v2614_v34 = vadd.f32 1.0, %v5919_v32  ;;  %4516 = vst.msk [vmem:[%s10799_s4 + $0x18] sm:$0xff] %vm4512_vm3, %v3743_v21  ;;  %v5013_v22 = vpop.f32.mrb[7].mxu0  ;;  %v2363_v16 = vmul.f32 1.442695, %v2147_v51  ;;  %v9710_v49 = vadd.f32 %v9308_v38, %v1827_v12  ;;  %v11119_v48 = vld [vmem:[#allocation102_spill] sm:$0xff] }
 0x3a7   :  { %v5923_v35 = vpop.eup %5922  ;;  %5393 = vmatmul.mubr.msk.f32.gmra.mrb[102].mxu1 %vm489_vm0, %v3160_v58  ;;  %v3161_v10 = vmul.f32 %v5921_v42, %v9522_v7  ;;  %5936 = vrcp.f32 %v2692_v13  ;;  %v4138_v20 = vpop.f32.mrb[6].mxu1  ;;  %v2226_v0 = vsub.f32 0.0, %v9701_v50  ;;  %v1664_v11 = vmul.f32 %v8367_v3, %v11116_v28 }
 0x3a8   :  { %v5925_v62 = vpop.eup %5924  ;;  %5395 = vmatprep.mubr.msk.f32.mxu1 %vm6239_vm1, %v11034_v1  ;;  %5938 = vrcp.f32 %v2614_v34  ;;  %v2693_v23 = vadd.f32 1.0, %v5923_v35  ;;  %4595 = vst.msk [vmem:[%s10799_s4 + $0x290] sm:$0xff] %vm4512_vm3, %v4138_v20  ;;  %v5250_v7 = vpop.f32.mrb[7].mxu1  ;;  %v2148_v19 = vsub.f32 0.0, %v9710_v49  ;;  %v1906_v9 = vmul.f32 %v9331_v17, %v1742_v33 }
 0x3a9   :  { %v5927_v58 = vpop.eup %5926  ;;  %5159 = vmatmul.mubr.msk.f32.gmra.mrb[104].mxu0 %vm489_vm0, %v3082_v29  ;;  %v2615_v27 = vadd.f32 1.0, %v5925_v62  ;;  %5940 = vpow2.f32 %v2517_v53  ;;  %v3748_v41 = vpop.f32.mrb[8].mxu0  ;;  %v2521_v2 = vmul.f32 1.442695, %v2226_v0  ;;  %v1828_v46 = vmul.f32 %v9331_v17, %v1664_v11  ;;  %v9772_v7 = vld [vmem:[%s10798_s2] ss:$0 sm:$0xff] }
 0x3aa   :  { %v5929_v61 = vpop.eup %5928  ;;  %5161 = vmatprep.mubr.msk.f32.mxu0 %vm6239_vm1, %v11034_v1  ;;  %5942 = vrcp.f32 %v2693_v23  ;;  %v2694_v30 = vadd.f32 1.0, %v5927_v58  ;;  %4517 = vst.msk [vmem:[%s10799_s4 + $0x20] sm:$0xff] %vm4512_vm3, %v3748_v41  ;;  %v5016_v29 = vpop.f32.mrb[9].mxu0  ;;  %v2365_v54 = vmul.f32 1.442695, %v2148_v19  ;;  %v9741_v52 = vadd.f32 %v9308_v38, %v1906_v9 }
 0x3ab   :  { %5396 = vmatmul.mubr.msk.f32.gmra.mrb[104].mxu1 %vm489_vm0, %v3161_v10  ;;  %5944 = vrcp.f32 %v2615_v27  ;;  %v2616_v44 = vadd.f32 1.0, %v5929_v61  ;;  %v4143_v53 = vpop.f32.mrb[8].mxu1  ;;  %v1743_v37 = vmul.f32 %v8367_v3, %v11117_v8  ;;  %v1665_v5 = vmul.f32 %v8367_v3, %v11118_v43  ;;  %v9801_v61 = vld [vmem:[%s10797_s1] ss:$0 sm:$0xff]  ;;  %v11121_v8 = vld [vmem:[#allocation103_spill] sm:$0xff] }
 0x3ac   :  { %5398 = vmatprep.mubr.msk.f32.mxu1 %vm6239_vm1, %v11034_v1  ;;  %5946 = vrcp.f32 %v2694_v30  ;;  %4596 = vst.msk [vmem:[%s10799_s4 + $0x298] sm:$0xff] %vm4512_vm3, %v4143_v53  ;;  %v5253_v39 = vpop.f32.mrb[9].mxu1  ;;  %v9748_v47 = vadd.f32 %v9308_v38, %v1828_v46  ;;  %v1744_v59 = vmul.f32 %v8367_v3, %v11119_v48  ;;  %v1666_v12 = vmul.f32 %v8367_v3, %v11120_v15 }
 0x3ad   :  { %5948 = vrcp.f32 %v2616_v44  ;;  %v3753_v13 = vpop.f32.mrb[10].mxu0  ;;  %v2227_v51 = vsub.f32 0.0, %v9741_v52  ;;  %v1907_v42 = vmul.f32 %v9331_v17, %v1743_v37  ;;  %v1829_v34 = vmul.f32 %v9331_v17, %v1665_v5 }
 0x3ae   :  { %v5931_v32 = vpop.eup %5930  ;;  %5950 = vpow2.f32 %v2361_v4  ;;  %4518 = vst.msk [vmem:[%s10799_s4 + $0x28] sm:$0xff] %vm4512_vm3, %v3753_v13  ;;  %v5019_v38 = vpop.f32.mrb[11].mxu0  ;;  %v2149_v22 = vsub.f32 0.0, %v9748_v47  ;;  %v1908_v4 = vmul.f32 %v9331_v17, %v1744_v59  ;;  %v1830_v41 = vmul.f32 %v9801_v61, %v1666_v12  ;;  %v11122_v59 = vld [vmem:[#allocation45_spill] sm:$0xff] }
 0x3af   :  { %v5933_v21 = vpop.eup %5932  ;;  %v3083_v35 = vmul.f32 %v5931_v32, %v9541_v63  ;;  %v4148_v10 = vpop.f32.mrb[10].mxu1  ;;  %5952 = vpow2.f32 %v2519_v26  ;;  %v2523_v23 = vmul.f32 1.442695, %v2227_v51  ;;  %v9775_v26 = vadd.f32 %v9772_v7, %v1907_v42 }
 0x3b0   :  { %v5935_v20 = vpop.eup %5934  ;;  %v3162_v62 = vmul.f32 %v5933_v21, %v9546_v18  ;;  %4597 = vst.msk [vmem:[%s10799_s4 + $0x2a0] sm:$0xff] %vm4512_vm3, %v4148_v10  ;;  %v5256_v63 = vpop.f32.mrb[11].mxu1  ;;  %5954 = vpow2.f32 %v2363_v16  ;;  %v2367_v0 = vmul.f32 1.442695, %v2149_v22  ;;  %v9780_v55 = vadd.f32 %v9772_v7, %v1829_v34 }
 0x3b1   :  { %v5937_v17 = vpop.eup %5936  ;;  %5162 = vmatmul.mubr.msk.f32.gmra.mrb[106].mxu0 %vm489_vm0, %v3083_v35  ;;  %v3084_v18 = vmul.f32 %v5935_v20, %v9555_v56  ;;  %5956 = vpow2.f32 %v2521_v2  ;;  %v3758_v58 = vpop.f32.mrb[12].mxu0  ;;  %v2228_v27 = vsub.f32 0.0, %v9775_v26  ;;  %v9788_v19 = vadd.f32 %v9772_v7, %v1908_v4 }
 0x3b2   :  { %v5939_v16 = vpop.eup %5938  ;;  %5164 = vmatprep.mubr.msk.f32.mxu0 %vm6239_vm1, %v11034_v1  ;;  %5399 = vmatmul.mubr.msk.f32.gmra.mrb[106].mxu1 %vm489_vm0, %v3162_v62  ;;  %v3163_v33 = vmul.f32 %v5937_v17, %v9563_v24  ;;  %5958 = vpow2.f32 %v2365_v54  ;;  %4519 = vst.msk [vmem:[%s10799_s4 + $0x30] sm:$0xff] %vm4512_vm3, %v3758_v58  ;;  %v5022_v11 = vpop.f32.mrb[13].mxu0  ;;  %v2150_v24 = vsub.f32 0.0, %v9780_v55  ;;  %v9812_v39 = vadd.f32 %v9772_v7, %v1830_v41 }
 0x3b3   :  { %v5941_v56 = vpop.eup %5940  ;;  %5401 = vmatprep.mubr.msk.f32.mxu1 %vm6239_vm1, %v11034_v1  ;;  %v3085_v28 = vmul.f32 %v5939_v16, %v9577_v14  ;;  %5960 = vpow2.f32 %v2523_v23  ;;  %v4153_v9 = vpop.f32.mrb[12].mxu1  ;;  %v2525_v14 = vmul.f32 1.442695, %v2228_v27  ;;  %v2229_v29 = vsub.f32 0.0, %v9788_v19 }
 0x3b4   :  { %v5943_v30 = vpop.eup %5942  ;;  %v2695_v2 = vadd.f32 1.0, %v5941_v56  ;;  %5962 = vpow2.f32 %v2367_v0  ;;  %4598 = vst.msk [vmem:[%s10799_s4 + $0x2a8] sm:$0xff] %vm4512_vm3, %v4153_v9  ;;  %v5259_v54 = vpop.f32.mrb[13].mxu1  ;;  %v2369_v46 = vmul.f32 1.442695, %v2150_v24  ;;  %v1745_v37 = vmul.f32 %v8367_v3, %v11121_v8  ;;  %v11124_v0 = vld [vmem:[#allocation46_spill] sm:$0xff] }
 0x3b5   :  { %v5945_v44 = vpop.eup %5944  ;;  %5165 = vmatmul.mubr.msk.f32.gmra.mrb[108].mxu0 %vm489_vm0, %v3084_v18  ;;  %v3164_v53 = vmul.f32 %v5943_v30, %v9596_v45  ;;  %v3763_v5 = vpop.f32.mrb[14].mxu0  ;;  %v2527_v48 = vmul.f32 1.442695, %v2229_v29  ;;  %v1667_v15 = vmul.f32 %v8367_v3, %v11122_v59  ;;  %v1668_v16 = vmul.f32 %v8367_v3, %v11124_v0 }
 0x3b6   :  { %v5947_v43 = vpop.eup %5946  ;;  %5167 = vmatprep.mubr.msk.f32.mxu0 %vm6239_vm1, %v11034_v1  ;;  %5402 = vmatmul.mubr.msk.f32.gmra.mrb[108].mxu1 %vm489_vm0, %v3163_v33  ;;  %v3086_v45 = vmul.f32 %v5945_v44, %v9600_v31  ;;  %5964 = vrcp.f32 %v2695_v2  ;;  %4520 = vst.msk [vmem:[%s10799_s4 + $0x38] sm:$0xff] %vm4512_vm3, %v3763_v5  ;;  %v5025_v13 = vpop.f32.mrb[15].mxu0  ;;  %v2151_v31 = vsub.f32 0.0, %v9812_v39  ;;  %v1909_v51 = vmul.f32 %v9801_v61, %v1745_v37 }
 0x3b7   :  { %v5949_v12 = vpop.eup %5948  ;;  %5404 = vmatprep.mubr.msk.f32.mxu1 %vm6239_vm1, %v11034_v1  ;;  %v3165_v32 = vmul.f32 %v5947_v43, %v9606_v57  ;;  %5966 = vpow2.f32 %v2525_v14  ;;  %v4158_v21 = vpop.f32.mrb[14].mxu1  ;;  %v1831_v35 = vmul.f32 %v9801_v61, %v1667_v15  ;;  %v11123_v57 = vld [vmem:[#allocation104_spill] sm:$0xff]  ;;  %v1832_v54 = vmul.f32 %v9801_v61, %v1668_v16 }
 0x3b8   :  { %v5951_v42 = vpop.eup %5950  ;;  %v9832_v34 = vmul.f32 %v5949_v12, %v9615_v40  ;;  %5968 = vpow2.f32 %v2369_v46  ;;  %v1746_v38 = vmul.f32 %v8367_v3, %v11123_v57  ;;  %4599 = vst.msk [vmem:[%s10799_s4 + $0x2b0] sm:$0xff] %vm4512_vm3, %v4158_v21  ;;  %v5262_v4 = vpop.f32.mrb[15].mxu1  ;;  %v9842_v40 = vmul.f32 1.442695, %v2151_v31  ;;  %v11126_v31 = vld [vmem:[#allocation47_spill] sm:$0xff] }
 0x3b9   :  { %v5953_v10 = vpop.eup %5952  ;;  %5168 = vmatmul.mubr.msk.f32.gmra.mrb[110].mxu0 %vm489_vm0, %v3085_v28  ;;  %v2617_v22 = vadd.f32 1.0, %v5951_v42  ;;  %5970 = vpow2.f32 %v2527_v48  ;;  %v9845_v20 = vadd.f32 %v9772_v7, %v1909_v51  ;;  %v3768_v23 = vpop.f32.mrb[16].mxu0  ;;  %v9851_v17 = vadd.f32 %v9772_v7, %v1831_v35  ;;  %v11125_v28 = vld [vmem:[#allocation105_spill] sm:$0xff]  ;;  %v11127_v42 = vld [vmem:[#allocation106_spill] sm:$0xff] }
 0x3ba   :  { %v5955_v62 = vpop.eup %5954  ;;  %5170 = vmatprep.mubr.msk.f32.mxu0 %vm6239_vm1, %v11034_v1  ;;  %5405 = vmatmul.mubr.msk.f32.gmra.mrb[110].mxu1 %vm489_vm0, %v3164_v53  ;;  %v2696_v63 = vadd.f32 1.0, %v5953_v10  ;;  %v1910_v18 = vmul.f32 %v9801_v61, %v1746_v38  ;;  %4521 = vst.msk [vmem:[%s10799_s4 + $0x40] sm:$0xff] %vm4512_vm3, %v3768_v23  ;;  %v5028_v27 = vpop.f32.mrb[17].mxu0  ;;  %v1747_v11 = vmul.f32 %v8367_v3, %v11125_v28 }
 0x3bb   :  { %v5957_v33 = vpop.eup %5956  ;;  %5407 = vmatprep.mubr.msk.f32.mxu1 %vm6239_vm1, %v11034_v1  ;;  %5972 = vrcp.f32 %v2617_v22  ;;  %v2618_v58 = vadd.f32 1.0, %v5955_v62  ;;  %v2230_v56 = vsub.f32 0.0, %v9845_v20  ;;  %v4163_v30 = vpop.f32.mrb[16].mxu1  ;;  %v2152_v2 = vsub.f32 0.0, %v9851_v17 }
 0x3bc   :  { %v5959_v24 = vpop.eup %5958  ;;  %5974 = vrcp.f32 %v2696_v63  ;;  %v2697_v41 = vadd.f32 1.0, %v5957_v33  ;;  %v9867_v9 = vadd.f32 %v9772_v7, %v1910_v18  ;;  %4600 = vst.msk [vmem:[%s10799_s4 + $0x2b8] sm:$0xff] %vm4512_vm3, %v4163_v30  ;;  %v5265_v44 = vpop.f32.mrb[17].mxu1  ;;  %v9886_v59 = vadd.f32 %v9772_v7, %v1832_v54 }
 0x3bd   :  { %v5961_v14 = vpop.eup %5960  ;;  %5171 = vmatmul.mubr.msk.f32.gmra.mrb[112].mxu0 %vm489_vm0, %v3086_v45  ;;  %5976 = vrcp.f32 %v2618_v58  ;;  %v2619_v29 = vadd.f32 1.0, %v5959_v24  ;;  %v2529_v53 = vmul.f32 1.442695, %v2230_v56  ;;  %v3773_v37 = vpop.f32.mrb[18].mxu0  ;;  %v2373_v43 = vmul.f32 1.442695, %v2152_v2 }
 0x3be   :  { %v5963_v46 = vpop.eup %5962  ;;  %5173 = vmatprep.mubr.msk.f32.mxu0 %vm6239_vm1, %v11034_v1  ;;  %5408 = vmatmul.mubr.msk.f32.gmra.mrb[112].mxu1 %vm489_vm0, %v3165_v32  ;;  %5978 = vrcp.f32 %v2697_v41  ;;  %v2698_v8 = vadd.f32 1.0, %v5961_v14  ;;  %v2231_v45 = vsub.f32 0.0, %v9867_v9  ;;  %4522 = vst.msk [vmem:[%s10799_s4 + $0x48] sm:$0xff] %vm4512_vm3, %v3773_v37  ;;  %v5031_v48 = vpop.f32.mrb[19].mxu0  ;;  %v1911_v15 = vmul.f32 %v9801_v61, %v1747_v11  ;;  %v11128_v41 = vld [vmem:[#allocation48_spill] sm:$0xff]  ;;  %v11129_v2 = vld [vmem:[#allocation107_spill] sm:$0xff] }
 0x3bf   :  { %5410 = vmatprep.mubr.msk.f32.mxu1 %vm6239_vm1, %v11034_v1  ;;  %5980 = vrcp.f32 %v2619_v29  ;;  %v2620_v5 = vadd.f32 1.0, %v5963_v46  ;;  %v4168_v32 = vpop.f32.mrb[18].mxu1  ;;  %v1669_v51 = vmul.f32 %v8367_v3, %v11126_v31  ;;  %v1748_v21 = vmul.f32 %v8367_v3, %v11127_v42 }
 0x3c0   :  { %v5965_v12 = vpop.eup %5964  ;;  %5982 = vrcp.f32 %v2698_v8  ;;  %v2531_v13 = vmul.f32 1.442695, %v2231_v45  ;;  %4601 = vst.msk [vmem:[%s10799_s4 + $0x2c0] sm:$0xff] %vm4512_vm3, %v4168_v32  ;;  %v5268_v38 = vpop.f32.mrb[19].mxu1  ;;  %v2153_v10 = vsub.f32 0.0, %v9886_v59  ;;  %v9902_v22 = vadd.f32 %v9772_v7, %v1911_v15 }
 0x3c1   :  { %v5967_v35 = vpop.eup %5966  ;;  %5174 = vmatmul.mubr.msk.f32.gmra.mrb[114].mxu0 %vm489_vm0, %v9832_v34  ;;  %v3166_v57 = vmul.f32 %v5965_v12, %v9641_v60  ;;  %5984 = vrcp.f32 %v2620_v5  ;;  %v3778_v34 = vpop.f32.mrb[20].mxu0  ;;  %v1833_v60 = vmul.f32 %v9801_v61, %v1669_v51  ;;  %v1912_v63 = vmul.f32 %v9801_v61, %v1748_v21  ;;  %v11130_v21 = vld [vmem:[#allocation49_spill] sm:$0xff] }
 0x3c2   :  { %v5969_v4 = vpop.eup %5968  ;;  %5176 = vmatprep.mubr.msk.f32.mxu0 %vm6239_vm1, %v11034_v1  ;;  %v2699_v62 = vadd.f32 1.0, %v5967_v35  ;;  %5986 = vpow2.f32 %v9842_v40  ;;  %4523 = vst.msk [vmem:[%s10799_s4 + $0x50] sm:$0xff] %vm4512_vm3, %v3778_v34  ;;  %v5034_v0 = vpop.f32.mrb[21].mxu0  ;;  %v2375_v16 = vmul.f32 1.442695, %v2153_v10  ;;  %v2232_v33 = vsub.f32 0.0, %v9902_v22 }
 0x3c3   :  { %v5971_v23 = vpop.eup %5970  ;;  %5411 = vmatmul.mubr.msk.f32.gmra.mrb[114].mxu1 %vm489_vm0, %v3166_v57  ;;  %v2621_v18 = vadd.f32 1.0, %v5969_v4  ;;  %5988 = vpow2.f32 %v2529_v53  ;;  %v4173_v58 = vpop.f32.mrb[20].mxu1  ;;  %v9918_v27 = vadd.f32 %v9772_v7, %v1833_v60  ;;  %v9921_v56 = vadd.f32 %v9772_v7, %v1912_v63  ;;  %v11131_v57 = vld [vmem:[#allocation108_spill] sm:$0xff] }
 0x3c4   :  { %5413 = vmatprep.mubr.msk.f32.mxu1 %vm6239_vm1, %v11034_v1  ;;  %5990 = vrcp.f32 %v2699_v62  ;;  %v2700_v40 = vadd.f32 1.0, %v5971_v23  ;;  %4602 = vst.msk [vmem:[%s10799_s4 + $0x2c8] sm:$0xff] %vm4512_vm3, %v4173_v58  ;;  %v5271_v11 = vpop.f32.mrb[21].mxu1  ;;  %v2533_v24 = vmul.f32 1.442695, %v2232_v33  ;;  %v1670_v30 = vmul.f32 %v8367_v3, %v11128_v41 }
 0x3c5   :  { %v5973_v28 = vpop.eup %5972  ;;  %5992 = vrcp.f32 %v2621_v18  ;;  %v1749_v14 = vmul.f32 %v8367_v3, %v11129_v2  ;;  %v3783_v53 = vpop.f32.mrb[22].mxu0  ;;  %v2154_v54 = vsub.f32 0.0, %v9918_v27  ;;  %v2233_v46 = vsub.f32 0.0, %v9921_v56  ;;  %v11133_v2 = vld [vmem:[#allocation109_spill] sm:$0xff] }
 0x3c6   :  { %v5975_v29 = vpop.eup %5974  ;;  %v3088_v44 = vmul.f32 %v5973_v28, %v9666_v6  ;;  %5994 = vrcp.f32 %v2700_v40  ;;  %4524 = vst.msk [vmem:[%s10799_s4 + $0x58] sm:$0xff] %vm4512_vm3, %v3783_v53  ;;  %v5037_v45 = vpop.f32.mrb[23].mxu0  ;;  %v1834_v5 = vmul.f32 %v9801_v61, %v1670_v30  ;;  %v1671_v35 = vmul.f32 %v8367_v3, %v11130_v21  ;;  %v11132_v40 = vld [vmem:[#allocation50_spill] sm:$0xff] }
 0x3c7   :  { %v5977_v8 = vpop.eup %5976  ;;  %v3167_v37 = vmul.f32 %v5975_v29, %v9674_v36  ;;  %5996 = vpow2.f32 %v2373_v43  ;;  %v1913_v6 = vmul.f32 %v9801_v61, %v1749_v14  ;;  %v2377_v12 = vmul.f32 1.442695, %v2154_v54 }
 0x3c8   :  { %v5979_v48 = vpop.eup %5978  ;;  %5177 = vmatmul.mubr.msk.f32.gmra.mrb[116].mxu0 %vm489_vm0, %v3088_v44  ;;  %v3089_v15 = vmul.f32 %v5977_v8, %v9685_v25  ;;  %5998 = vpow2.f32 %v2531_v13  ;;  %v2535_v32 = vmul.f32 1.442695, %v2233_v46  ;;  %v9948_v31 = vadd.f32 %v9772_v7, %v1834_v5  ;;  %v11134_v8 = vld [vmem:[#allocation51_spill] sm:$0xff] }
 0x3c9   :  { %v5981_v36 = vpop.eup %5980  ;;  %5179 = vmatprep.mubr.msk.f32.mxu0 %vm6239_vm1, %v11034_v1  ;;  %5414 = vmatmul.mubr.msk.f32.gmra.mrb[116].mxu1 %vm489_vm0, %v3167_v37  ;;  %v3168_v43 = vmul.f32 %v5979_v48, %v9701_v50  ;;  %6000 = vpow2.f32 %v2375_v16  ;;  %v9951_v51 = vadd.f32 %v9772_v7, %v1913_v6  ;;  %v4178_v13 = vpop.f32.mrb[22].mxu1  ;;  %v1750_v50 = vmul.f32 %v8367_v3, %v11131_v57 }
 0x3ca   :  { %v5983_v42 = vpop.eup %5982  ;;  %5416 = vmatprep.mubr.msk.f32.mxu1 %vm6239_vm1, %v11034_v1  ;;  %v3090_v25 = vmul.f32 %v5981_v36, %v9710_v49  ;;  %6002 = vpow2.f32 %v2533_v24  ;;  %4603 = vst.msk [vmem:[%s10799_s4 + $0x2d0] sm:$0xff] %vm4512_vm3, %v4178_v13  ;;  %v3788_v4 = vpop.f32.mrb[24].mxu0  ;;  %v2155_v49 = vsub.f32 0.0, %v9948_v31  ;;  %v1835_v23 = vmul.f32 %v9801_v61, %v1671_v35 }
 0x3cb   :  { %v5985_v38 = vpop.eup %5984  ;;  %v3169_v10 = vmul.f32 %v5983_v42, %v9741_v52  ;;  %v5274_v62 = vpop.f32.mrb[23].mxu1  ;;  %6004 = vpow2.f32 %v2377_v12  ;;  %v2234_v34 = vsub.f32 0.0, %v9951_v51  ;;  %4525 = vst.msk [vmem:[%s10799_s4 + $0x60] sm:$0xff] %vm4512_vm3, %v3788_v4  ;;  %v1914_v18 = vmul.f32 %v9801_v61, %v1750_v50 }
 0x3cc   :  { %v5987_v60 = vpop.eup %5986  ;;  %5180 = vmatmul.mubr.msk.f32.gmra.mrb[118].mxu0 %vm489_vm0, %v3089_v15  ;;  %v3091_v63 = vmul.f32 %v5985_v38, %v9748_v47  ;;  %v5040_v52 = vpop.f32.mrb[25].mxu0  ;;  %6006 = vpow2.f32 %v2535_v32  ;;  %v2379_v33 = vmul.f32 1.442695, %v2155_v49  ;;  %v1672_v58 = vmul.f32 %v8367_v3, %v11132_v40 }
 0x3cd   :  { %v5989_v0 = vpop.eup %5988  ;;  %5182 = vmatprep.mubr.msk.f32.mxu0 %vm6239_vm1, %v11034_v1  ;;  %5417 = vmatmul.mubr.msk.f32.gmra.mrb[118].mxu1 %vm489_vm0, %v3168_v43  ;;  %v2622_v16 = vadd.f32 1.0, %v5987_v60  ;;  %v2537_v47 = vmul.f32 1.442695, %v2234_v34  ;;  %v4183_v24 = vpop.f32.mrb[24].mxu1  ;;  %v9983_v41 = vadd.f32 %v9772_v7, %v1835_v23  ;;  %v9986_v30 = vadd.f32 %v9772_v7, %v1914_v18  ;;  %v11135_v34 = vld [vmem:[#allocation110_spill] sm:$0xff]  ;;  %v11136_v52 = vld [vmem:[#allocation52_spill] sm:$0xff] }
 0x3ce   :  { %v5991_v28 = vpop.eup %5990  ;;  %5419 = vmatprep.mubr.msk.f32.mxu1 %vm6239_vm1, %v11034_v1  ;;  %v2701_v11 = vadd.f32 1.0, %v5989_v0  ;;  %v1751_v14 = vmul.f32 %v8367_v3, %v11133_v2  ;;  %4604 = vst.msk [vmem:[%s10799_s4 + $0x2d8] sm:$0xff] %vm4512_vm3, %v4183_v24  ;;  %v3793_v53 = vpop.f32.mrb[26].mxu0  ;;  %v1836_v46 = vmul.f32 %v9801_v61, %v1672_v58  ;;  %v1673_v37 = vmul.f32 %v8367_v3, %v11134_v8 }
 0x3cf   :  { %v5993_v29 = vpop.eup %5992  ;;  %v3170_v44 = vmul.f32 %v5991_v28, %v9775_v26  ;;  %6008 = vrcp.f32 %v2622_v16  ;;  %v5277_v54 = vpop.f32.mrb[25].mxu1  ;;  %4526 = vst.msk [vmem:[%s10799_s4 + $0x68] sm:$0xff] %vm4512_vm3, %v3793_v53  ;;  %v2156_v6 = vsub.f32 0.0, %v9983_v41  ;;  %v2235_v48 = vsub.f32 0.0, %v9986_v30 }
 0x3d0   :  { %v5995_v45 = vpop.eup %5994  ;;  %5183 = vmatmul.mubr.msk.f32.gmra.mrb[120].mxu0 %vm489_vm0, %v3090_v25  ;;  %v3092_v5 = vmul.f32 %v5993_v29, %v9780_v55  ;;  %6010 = vrcp.f32 %v2701_v11  ;;  %v5043_v26 = vpop.f32.mrb[27].mxu0  ;;  %v10011_v55 = vadd.f32 %v9772_v7, %v1836_v46  ;;  %v1915_v32 = vmul.f32 %v9801_v61, %v1751_v14  ;;  %v11137_v46 = vld [vmem:[#allocation111_spill] sm:$0xff] }
 0x3d1   :  { %v5997_v15 = vpop.eup %5996  ;;  %5185 = vmatprep.mubr.msk.f32.mxu0 %vm6239_vm1, %v11034_v1  ;;  %5420 = vmatmul.mubr.msk.f32.gmra.mrb[120].mxu1 %vm489_vm0, %v3169_v10  ;;  %v3171_v12 = vmul.f32 %v5995_v45, %v9788_v19  ;;  %6012 = vpow2.f32 %v2379_v33  ;;  %v4188_v42 = vpop.f32.mrb[26].mxu1  ;;  %v2381_v25 = vmul.f32 1.442695, %v2156_v6  ;;  %v10016_v13 = vmul.f32 1.442695, %v2235_v48  ;;  %v11139_v6 = vld [vmem:[#allocation112_spill] sm:$0xff] }
 0x3d2   :  { %v5999_v36 = vpop.eup %5998  ;;  %5422 = vmatprep.mubr.msk.f32.mxu1 %vm6239_vm1, %v11034_v1  ;;  %v2623_v43 = vadd.f32 1.0, %v5997_v15  ;;  %6014 = vpow2.f32 %v2537_v47  ;;  %4605 = vst.msk [vmem:[%s10799_s4 + $0x2e0] sm:$0xff] %vm4512_vm3, %v4188_v42  ;;  %v3798_v19 = vpop.f32.mrb[28].mxu0  ;;  %v2157_v50 = vsub.f32 0.0, %v10011_v55  ;;  %v10024_v38 = vadd.f32 %v9772_v7, %v1915_v32 }
 0x3d3   :  { %v6001_v21 = vpop.eup %6000  ;;  %v2702_v35 = vadd.f32 1.0, %v5999_v36  ;;  %v5280_v57 = vpop.f32.mrb[27].mxu1  ;;  %v1837_v10 = vmul.f32 %v9801_v61, %v1673_v37  ;;  %4527 = vst.msk [vmem:[%s10799_s4 + $0x70] sm:$0xff] %vm4512_vm3, %v3798_v19  ;;  %v1752_v60 = vmul.f32 %v8367_v3, %v11135_v34  ;;  %v1674_v23 = vmul.f32 %v8367_v3, %v11136_v52 }
 0x3d4   :  { %v6003_v4 = vpop.eup %6002  ;;  %5186 = vmatmul.mubr.msk.f32.gmra.mrb[122].mxu0 %vm489_vm0, %v3091_v63  ;;  %6016 = vrcp.f32 %v2623_v43  ;;  %v2624_v62 = vadd.f32 1.0, %v6001_v21  ;;  %v5046_v49 = vpop.f32.mrb[29].mxu0  ;;  %v2383_v0 = vmul.f32 1.442695, %v2157_v50  ;;  %v2236_v16 = vsub.f32 0.0, %v10024_v38 }
 0x3d5   :  { %v6005_v18 = vpop.eup %6004  ;;  %5188 = vmatprep.mubr.msk.f32.mxu0 %vm6239_vm1, %v11034_v1  ;;  %5423 = vmatmul.mubr.msk.f32.gmra.mrb[122].mxu1 %vm489_vm0, %v3170_v44  ;;  %6018 = vrcp.f32 %v2702_v35  ;;  %v2703_v63 = vadd.f32 1.0, %v6003_v4  ;;  %v4193_v40 = vpop.f32.mrb[28].mxu1  ;;  %v10043_v58 = vadd.f32 %v9772_v7, %v1837_v10  ;;  %v1916_v28 = vmul.f32 %v9801_v61, %v1752_v60 }
 0x3d6   :  { %v6007_v33 = vpop.eup %6006  ;;  %5425 = vmatprep.mubr.msk.f32.mxu1 %vm6239_vm1, %v11034_v1  ;;  %6020 = vrcp.f32 %v2624_v62  ;;  %v2625_v47 = vadd.f32 1.0, %v6005_v18  ;;  %4606 = vst.msk [vmem:[%s10799_s4 + $0x2e8] sm:$0xff] %vm4512_vm3, %v4193_v40  ;;  %v3803_v24 = vpop.f32.mrb[30].mxu0  ;;  %v2541_v14 = vmul.f32 1.442695, %v2236_v16  ;;  %v1838_v29 = vmul.f32 %v9801_v61, %v1674_v23  ;;  %v11140_v18 = vld [vmem:[#allocation54_spill] sm:$0xff] }
 0x3d7   :  { %6022 = vrcp.f32 %v2703_v63  ;;  %v2704_v11 = vadd.f32 1.0, %v6007_v33  ;;  %v5283_v2 = vpop.f32.mrb[29].mxu1  ;;  %4528 = vst.msk [vmem:[%s10799_s4 + $0x78] sm:$0xff] %vm4512_vm3, %v3803_v24  ;;  %v5049_v44 = vpop.f32.mrb[31].mxu0  ;;  %v2158_v53 = vsub.f32 0.0, %v10043_v58  ;;  %v10058_v54 = vadd.f32 %v9772_v7, %v1916_v28  ;;  %v11141_v40 = vld [vmem:[#allocation113_spill] sm:$0xff] }
 0x3d8   :  { %5189 = vmatmul.mubr.msk.f32.gmra.mrb[124].mxu0 %vm489_vm0, %v3092_v5  ;;  %6024 = vrcp.f32 %v2625_v47  ;;  %v1753_v8 = vmul.f32 %v8367_v3, %v11137_v46  ;;  %v10066_v45 = vadd.f32 %v9772_v7, %v1838_v29  ;;  %v11138_v5 = vld [vmem:[#allocation53_spill] sm:$0xff]  ;;  %v1754_v48 = vmul.f32 %v8367_v3, %v11139_v6 }
 0x3d9   :  { %v6009_v37 = vpop.eup %6008  ;;  %5191 = vmatprep.mubr.msk.f32.mxu0 %vm6239_vm1, %v11034_v1  ;;  %5426 = vmatmul.mubr.msk.f32.gmra.mrb[124].mxu1 %vm489_vm0, %v3171_v12  ;;  %6026 = vrcp.f32 %v2704_v11  ;;  %v1675_v26 = vmul.f32 %v8367_v3, %v11138_v5  ;;  %v4198_v36 = vpop.f32.mrb[30].mxu1  ;;  %v2385_v43 = vmul.f32 1.442695, %v2158_v53  ;;  %v2237_v12 = vsub.f32 0.0, %v10058_v54 }
 0x3da   :  { %v6011_v15 = vpop.eup %6010  ;;  %v3093_v32 = vmul.f32 %v6009_v37, %v9812_v39  ;;  %5428 = vmatprep.mubr.msk.f32.mxu1 %vm6239_vm1, %v11034_v1  ;;  %6028 = vpow2.f32 %v2381_v25  ;;  %4607 = vst.msk [vmem:[%s10799_s4 + $0x2f0] sm:$0xff] %vm4512_vm3, %v4198_v36  ;;  %v3808_v35 = vpop.f32.mrb[32].mxu0  ;;  %v2159_v39 = vsub.f32 0.0, %v10066_v45  ;;  %v1917_v25 = vmul.f32 %v9801_v61, %v1753_v8 }
 0x3db   :  { %v6013_v42 = vpop.eup %6012  ;;  %v3172_v21 = vmul.f32 %v6011_v15, %v9845_v20  ;;  %v5286_v19 = vpop.f32.mrb[31].mxu1  ;;  %6030 = vpow2.f32 %v10016_v13  ;;  %4529 = vst.msk [vmem:[%s10799_s4 + $0x80] sm:$0xff] %vm4512_vm3, %v3808_v35  ;;  %v2543_v10 = vmul.f32 1.442695, %v2237_v12  ;;  %v1839_v4 = vmul.f32 %v9801_v61, %v1675_v26 }
 0x3dc   :  { %v6015_v57 = vpop.eup %6014  ;;  %5192 = vmatmul.mubr.msk.f32.gmra.mrb[126].mxu0 %vm489_vm0, %v3093_v32  ;;  %v2626_v50 = vadd.f32 1.0, %v6013_v42  ;;  %v5052_v20 = vpop.f32.mrb[33].mxu0  ;;  %6032 = vpow2.f32 %v2383_v0  ;;  %v2387_v62 = vmul.f32 1.442695, %v2159_v39  ;;  %v10094_v49 = vadd.f32 %v9772_v7, %v1917_v25  ;;  %v11143_v39 = vld [vmem:[#allocation114_spill] sm:$0xff] }
 0x3dd   :  { %5194 = vmatprep.mubr.msk.f32.mxu0 %vm6239_vm1, %v11034_v1  ;;  %5429 = vmatmul.mubr.msk.f32.gmra.mrb[126].mxu1 %vm489_vm0, %v3172_v21  ;;  %v2705_v13 = vadd.f32 1.0, %v6015_v57  ;;  %6034 = vpow2.f32 %v2541_v14  ;;  %v4203_v60 = vpop.f32.mrb[32].mxu1  ;;  %v10099_v52 = vadd.f32 %v9772_v7, %v1839_v4  ;;  %v1918_v23 = vmul.f32 %v9801_v61, %v1754_v48 }
 0x3de   :  { %v6017_v34 = vpop.eup %6016  ;;  %5431 = vmatprep.mubr.msk.f32.mxu1 %vm6239_vm1, %v11034_v1  ;;  %6036 = vrcp.f32 %v2626_v50  ;;  %v1676_v63 = vmul.f32 %v8367_v3, %v11140_v18  ;;  %4608 = vst.msk [vmem:[%s10799_s4 + $0x2f8] sm:$0xff] %vm4512_vm3, %v4203_v60  ;;  %v5289_v33 = vpop.f32.mrb[33].mxu1  ;;  %v2238_v47 = vsub.f32 0.0, %v10094_v49  ;;  %v1755_v28 = vmul.f32 %v8367_v3, %v11141_v40 }
 0x3df   :  { %v6019_v0 = vpop.eup %6018  ;;  %v3094_v16 = vmul.f32 %v6017_v34, %v9851_v17  ;;  %6038 = vrcp.f32 %v2705_v13  ;;  %v2160_v2 = vsub.f32 0.0, %v10099_v52  ;;  %v10115_v17 = vadd.f32 %v9772_v7, %v1918_v23 }
 0x3e0   :  { %v6021_v11 = vpop.eup %6020  ;;  %v3173_v24 = vmul.f32 %v6019_v0, %v9867_v9  ;;  %6040 = vpow2.f32 %v2385_v43  ;;  %v2545_v44 = vmul.f32 1.442695, %v2238_v47  ;;  %v1840_v53 = vmul.f32 %v9801_v61, %v1676_v63 }
 0x3e1   :  { %v6023_v14 = vpop.eup %6022  ;;  %5195 = vmatmul.mubr.msk.f32.gmra.mrb[128].mxu0 %vm489_vm0, %v3094_v16  ;;  %v3095_v29 = vmul.f32 %v6021_v11, %v9886_v59  ;;  %6042 = vpow2.f32 %v2543_v10  ;;  %v2389_v8 = vmul.f32 1.442695, %v2160_v2  ;;  %v2239_v37 = vsub.f32 0.0, %v10115_v17  ;;  %v11144_v10 = vld [vmem:[#allocation56_spill] sm:$0xff] }
 0x3e2   :  { %v6025_v46 = vpop.eup %6024  ;;  %5197 = vmatprep.mubr.msk.f32.mxu0 %vm6239_vm1, %v11034_v1  ;;  %5432 = vmatmul.mubr.msk.f32.gmra.mrb[128].mxu1 %vm489_vm0, %v3173_v24  ;;  %v3174_v9 = vmul.f32 %v6023_v14, %v9902_v22  ;;  %6044 = vpow2.f32 %v2387_v62  ;;  %v10129_v6 = vadd.f32 %v9772_v7, %v1840_v53  ;;  %v1919_v48 = vmul.f32 %v9801_v61, %v1755_v28 }
 0x3e3   :  { %v6027_v5 = vpop.eup %6026  ;;  %5434 = vmatprep.mubr.msk.f32.mxu1 %vm6239_vm1, %v11034_v1  ;;  %v3096_v59 = vmul.f32 %v6025_v46, %v9918_v27  ;;  %v3813_v26 = vpop.f32.mrb[34].mxu0  ;;  %6046 = vpow2.f32 %v2545_v44  ;;  %v2547_v43 = vmul.f32 1.442695, %v2239_v37  ;;  %v11142_v27 = vld [vmem:[#allocation55_spill] sm:$0xff]  ;;  %v1756_v25 = vmul.f32 %v8367_v3, %v11143_v39 }
 0x3e4   :  { %v6029_v15 = vpop.eup %6028  ;;  %v3175_v22 = vmul.f32 %v6027_v5, %v9921_v56  ;;  %4530 = vst.msk [vmem:[%s10799_s4 + $0x88] sm:$0xff] %vm4512_vm3, %v3813_v26  ;;  %v5055_v32 = vpop.f32.mrb[35].mxu0  ;;  %6048 = vpow2.f32 %v2389_v8  ;;  %v1677_v12 = vmul.f32 %v8367_v3, %v11142_v27  ;;  %v2161_v35 = vsub.f32 0.0, %v10129_v6  ;;  %v11145_v37 = vld [vmem:[#allocation115_spill] sm:$0xff] }
 0x3e5   :  { %v4208_v36 = vpop.f32.mrb[34].mxu1  ;;  %v6031_v42 = vpop.eup %6030  ;;  %5198 = vmatmul.mubr.msk.f32.gmra.mrb[130].mxu0 %vm489_vm0, %v3095_v29  ;;  %v2627_v21 = vadd.f32 1.0, %v6029_v15  ;;  %v10146_v19 = vadd.f32 %v9772_v7, %v1919_v48  ;;  %6050 = vpow2.f32 %v2547_v43  ;;  %v1678_v4 = vmul.f32 %v8367_v3, %v11144_v10 }
 0x3e6   :  { %4609 = vst.msk [vmem:[%s10799_s4 + $0x300] sm:$0xff] %vm4512_vm3, %v4208_v36  ;;  %v5292_v56 = vpop.f32.mrb[35].mxu1  ;;  %v6033_v57 = vpop.eup %6032  ;;  %5200 = vmatprep.mubr.msk.f32.mxu0 %vm6239_vm1, %v11034_v1  ;;  %5435 = vmatmul.mubr.msk.f32.gmra.mrb[130].mxu1 %vm489_vm0, %v3174_v9  ;;  %v2706_v50 = vadd.f32 1.0, %v6031_v42  ;;  %v1841_v20 = vmul.f32 %v9801_v61, %v1677_v12  ;;  %v2391_v60 = vmul.f32 1.442695, %v2161_v35  ;;  %v1920_v47 = vmul.f32 %v9801_v61, %v1756_v25  ;;  %v11146_v35 = vld [vmem:[#allocation57_spill] sm:$0xff] }
 0x3e7   :  { %v6035_v13 = vpop.eup %6034  ;;  %5437 = vmatprep.mubr.msk.f32.mxu1 %vm6239_vm1, %v11034_v1  ;;  %6052 = vrcp.f32 %v2627_v21  ;;  %v2628_v62 = vadd.f32 1.0, %v6033_v57  ;;  %v3818_v34 = vpop.f32.mrb[36].mxu0  ;;  %v2240_v23 = vsub.f32 0.0, %v10146_v19  ;;  %v1842_v2 = vmul.f32 %v9801_v61, %v1678_v4 }
 0x3e8   :  { %v6037_v18 = vpop.eup %6036  ;;  %6054 = vrcp.f32 %v2706_v50  ;;  %v2707_v63 = vadd.f32 1.0, %v6035_v13  ;;  %4531 = vst.msk [vmem:[%s10799_s4 + $0x90] sm:$0xff] %vm4512_vm3, %v3818_v34  ;;  %v5058_v0 = vpop.f32.mrb[37].mxu0  ;;  %v10164_v33 = vadd.f32 %v9772_v7, %v1841_v20  ;;  %v10180_v44 = vadd.f32 %v9772_v7, %v1920_v47  ;;  %v11147_v34 = vld [vmem:[#allocation117_spill] sm:$0xff] }
 0x3e9   :  { %v4213_v16 = vpop.f32.mrb[36].mxu1  ;;  %v6039_v40 = vpop.eup %6038  ;;  %5201 = vmatmul.mubr.msk.f32.gmra.mrb[132].mxu0 %vm489_vm0, %v3096_v59  ;;  %v3097_v28 = vmul.f32 %v6037_v18, %v9948_v31  ;;  %6056 = vrcp.f32 %v2628_v62  ;;  %v2549_v24 = vmul.f32 1.442695, %v2240_v23  ;;  %v10185_v8 = vadd.f32 %v9772_v7, %v1842_v2  ;;  %v11148_v23 = vld [vmem:[#allocation58_spill] sm:$0xff] }
 0x3ea   :  { %4610 = vst.msk [vmem:[%s10799_s4 + $0x308] sm:$0xff] %vm4512_vm3, %v4213_v16  ;;  %v5295_v11 = vpop.f32.mrb[37].mxu1  ;;  %v6041_v14 = vpop.eup %6040  ;;  %5203 = vmatprep.mubr.msk.f32.mxu0 %vm6239_vm1, %v11034_v1  ;;  %5438 = vmatmul.mubr.msk.f32.gmra.mrb[132].mxu1 %vm489_vm0, %v3175_v22  ;;  %v3176_v29 = vmul.f32 %v6039_v40, %v9951_v51  ;;  %6058 = vrcp.f32 %v2707_v63  ;;  %v2162_v31 = vsub.f32 0.0, %v10164_v33  ;;  %v1757_v5 = vmul.f32 %v8367_v3, %v11145_v37  ;;  %v11149_v40 = vld [vmem:[#allocation116_spill] sm:$0xff] }
 0x3eb   :  { %v6043_v53 = vpop.eup %6042  ;;  %5440 = vmatprep.mubr.msk.f32.mxu1 %vm6239_vm1, %v11034_v1  ;;  %v2629_v46 = vadd.f32 1.0, %v6041_v14  ;;  %v3823_v9 = vpop.f32.mrb[38].mxu0  ;;  %6060 = vpow2.f32 %v2391_v60  ;;  %v2241_v22 = vsub.f32 0.0, %v10180_v44  ;;  %v2163_v27 = vsub.f32 0.0, %v10185_v8 }
 0x3ec   :  { %v6045_v51 = vpop.eup %6044  ;;  %v2708_v59 = vadd.f32 1.0, %v6043_v53  ;;  %4532 = vst.msk [vmem:[%s10799_s4 + $0x98] sm:$0xff] %vm4512_vm3, %v3823_v9  ;;  %v5061_v26 = vpop.f32.mrb[39].mxu0  ;;  %6062 = vpow2.f32 %v2549_v24  ;;  %v2393_v15 = vmul.f32 1.442695, %v2162_v31  ;;  %v1921_v12 = vmul.f32 %v9801_v61, %v1757_v5 }
 0x3ed   :  { %v4218_v48 = vpop.f32.mrb[38].mxu1  ;;  %v6047_v32 = vpop.eup %6046  ;;  %5204 = vmatmul.mubr.msk.f32.gmra.mrb[134].mxu0 %vm489_vm0, %v3097_v28  ;;  %6064 = vrcp.f32 %v2629_v46  ;;  %v2630_v36 = vadd.f32 1.0, %v6045_v51  ;;  %v2551_v56 = vmul.f32 1.442695, %v2241_v22  ;;  %v1679_v39 = vmul.f32 %v8367_v3, %v11146_v35 }
 0x3ee   :  { %4611 = vst.msk [vmem:[%s10799_s4 + $0x310] sm:$0xff] %vm4512_vm3, %v4218_v48  ;;  %v5298_v43 = vpop.f32.mrb[39].mxu1  ;;  %v6049_v42 = vpop.eup %6048  ;;  %5206 = vmatprep.mubr.msk.f32.mxu0 %vm6239_vm1, %v11034_v1  ;;  %5441 = vmatmul.mubr.msk.f32.gmra.mrb[134].mxu1 %vm489_vm0, %v3176_v29  ;;  %6066 = vrcp.f32 %v2708_v59  ;;  %v2709_v21 = vadd.f32 1.0, %v6047_v32  ;;  %v2395_v50 = vmul.f32 1.442695, %v2163_v27  ;;  %v10209_v20 = vadd.f32 %v9772_v7, %v1921_v12 }
 0x3ef   :  { %5443 = vmatprep.mubr.msk.f32.mxu1 %vm6239_vm1, %v11034_v1  ;;  %6068 = vrcp.f32 %v2630_v36  ;;  %v2631_v25 = vadd.f32 1.0, %v6049_v42  ;;  %v3828_v57 = vpop.f32.mrb[40].mxu0  ;;  %v6051_v10 = vpop.eup %6050  ;;  %v1843_v62 = vmul.f32 %v9801_v61, %v1679_v39  ;;  %v1758_v60 = vmul.f32 %v8367_v3, %v11147_v34 }
 0x3f0   :  { %6070 = vrcp.f32 %v2709_v21  ;;  %4533 = vst.msk [vmem:[%s10799_s4 + $0xa0] sm:$0xff] %vm4512_vm3, %v3828_v57  ;;  %v5064_v4 = vpop.f32.mrb[41].mxu0  ;;  %v4223_v13 = vpop.f32.mrb[40].mxu1  ;;  %v1680_v18 = vmul.f32 %v8367_v3, %v11148_v23  ;;  %v2710_v0 = vadd.f32 1.0, %v6051_v10  ;;  %v2242_v47 = vsub.f32 0.0, %v10209_v20 }
 0x3f1   :  { %v6053_v63 = vpop.eup %6052  ;;  %6072 = vrcp.f32 %v2631_v25  ;;  %4612 = vst.msk [vmem:[%s10799_s4 + $0x318] sm:$0xff] %vm4512_vm3, %v4223_v13  ;;  %v5301_v16 = vpop.f32.mrb[41].mxu1  ;;  %v1759_v28 = vmul.f32 %v8367_v3, %v11149_v40  ;;  %v10229_v2 = vadd.f32 %v9772_v7, %v1843_v62  ;;  %v1922_v14 = vmul.f32 %v9801_v61, %v1758_v60 }
 0x3f2   :  { %v6055_v11 = vpop.eup %6054  ;;  %v3098_v24 = vmul.f32 %v6053_v63, %v9983_v41  ;;  %6074 = vpow2.f32 %v2393_v15  ;;  %v2553_v46 = vmul.f32 1.442695, %v2242_v47  ;;  %v1844_v9 = vmul.f32 %v9801_v61, %v1680_v18 }
 0x3f3   :  { %v6057_v29 = vpop.eup %6056  ;;  %v3177_v31 = vmul.f32 %v6055_v11, %v9986_v30  ;;  %6076 = vrcp.f32 %v2710_v0  ;;  %v3833_v53 = vpop.f32.mrb[42].mxu0  ;;  %v2164_v30 = vsub.f32 0.0, %v10229_v2  ;;  %v10242_v59 = vadd.f32 %v9772_v7, %v1922_v14 }
 0x3f4   :  { %v6059_v37 = vpop.eup %6058  ;;  %5207 = vmatmul.mubr.msk.f32.gmra.mrb[136].mxu0 %vm489_vm0, %v3098_v24  ;;  %v3099_v5 = vmul.f32 %v6057_v29, %v10011_v55  ;;  %4534 = vst.msk [vmem:[%s10799_s4 + $0xa8] sm:$0xff] %vm4512_vm3, %v3833_v53  ;;  %v5067_v41 = vpop.f32.mrb[43].mxu0  ;;  %6078 = vpow2.f32 %v2551_v56  ;;  %v10253_v15 = vadd.f32 %v9772_v7, %v1844_v9  ;;  %v1923_v22 = vmul.f32 %v9801_v61, %v1759_v28  ;;  %v11150_v56 = vld [vmem:[#allocation59_spill] sm:$0xff] }
 0x3f5   :  { %v4228_v51 = vpop.f32.mrb[42].mxu1  ;;  %v6061_v26 = vpop.eup %6060  ;;  %5209 = vmatprep.mubr.msk.f32.mxu0 %vm6239_vm1, %v11034_v1  ;;  %5444 = vmatmul.mubr.msk.f32.gmra.mrb[136].mxu1 %vm489_vm0, %v3177_v31  ;;  %v3178_v55 = vmul.f32 %v6059_v37, %v10024_v38  ;;  %6080 = vpow2.f32 %v2395_v50  ;;  %v2397_v43 = vmul.f32 1.442695, %v2164_v30  ;;  %v2243_v38 = vsub.f32 0.0, %v10242_v59 }
 0x3f6   :  { %4613 = vst.msk [vmem:[%s10799_s4 + $0x320] sm:$0xff] %vm4512_vm3, %v4228_v51  ;;  %v5304_v48 = vpop.f32.mrb[43].mxu1  ;;  %v6063_v32 = vpop.eup %6062  ;;  %5446 = vmatprep.mubr.msk.f32.mxu1 %vm6239_vm1, %v11034_v1  ;;  %v2632_v36 = vadd.f32 1.0, %v6061_v26  ;;  %6082 = vpow2.f32 %v2553_v46  ;;  %v2165_v42 = vsub.f32 0.0, %v10253_v15  ;;  %v10261_v21 = vadd.f32 %v9772_v7, %v1923_v22 }
 0x3f7   :  { %v6065_v27 = vpop.eup %6064  ;;  %v2711_v12 = vadd.f32 1.0, %v6063_v32  ;;  %v1681_v35 = vmul.f32 %v8367_v3, %v11150_v56  ;;  %v2555_v50 = vmul.f32 1.442695, %v2243_v38 }
 0x3f8   :  { %v6067_v39 = vpop.eup %6066  ;;  %5210 = vmatmul.mubr.msk.f32.gmra.mrb[138].mxu0 %vm489_vm0, %v3099_v5  ;;  %v3100_v25 = vmul.f32 %v6065_v27, %v10043_v58  ;;  %6084 = vrcp.f32 %v2632_v36  ;;  %v3838_v57 = vpop.f32.mrb[44].mxu0  ;;  %v2399_v4 = vmul.f32 1.442695, %v2165_v42  ;;  %v2244_v58 = vsub.f32 0.0, %v10261_v21 }
 0x3f9   :  { %v6069_v10 = vpop.eup %6068  ;;  %5212 = vmatprep.mubr.msk.f32.mxu0 %vm6239_vm1, %v11034_v1  ;;  %5447 = vmatmul.mubr.msk.f32.gmra.mrb[138].mxu1 %vm489_vm0, %v3178_v55  ;;  %v3179_v7 = vmul.f32 %v6067_v39, %v10058_v54  ;;  %6086 = vrcp.f32 %v2711_v12  ;;  %4535 = vst.msk [vmem:[%s10799_s4 + $0xb0] sm:$0xff] %vm4512_vm3, %v3838_v57  ;;  %v5070_v3 = vpop.f32.mrb[45].mxu0  ;;  %v1845_v62 = vmul.f32 %v9801_v61, %v1681_v35  ;;  %v6237_v61 = vld [vmem:[%s10798_s2] ss:$0 sm:$0xff] }
 0x3fa   :  { %v6071_v13 = vpop.eup %6070  ;;  %5449 = vmatprep.mubr.msk.f32.mxu1 %vm6239_vm1, %v11034_v1  ;;  %6088 = vpow2.f32 %v2397_v43  ;;  %v2557_v54 = vmul.f32 1.442695, %v2244_v58  ;;  %v3101_v18 = vmul.f32 %v6069_v10, %v10066_v45 }
 0x3fb   :  { %v6073_v34 = vpop.eup %6072  ;;  %v4233_v60 = vpop.f32.mrb[44].mxu1  ;;  %6090 = vpow2.f32 %v2555_v50  ;;  %v10288_v16 = vadd.f32 %v6237_v61, %v1845_v62  ;;  %v3180_v45 = vmul.f32 %v6071_v13, %v10094_v49 }
 0x3fc   :  { %v6075_v23 = vpop.eup %6074  ;;  %5213 = vmatmul.mubr.msk.f32.gmra.mrb[140].mxu0 %vm489_vm0, %v3100_v25  ;;  %4614 = vst.msk [vmem:[%s10799_s4 + $0x328] sm:$0xff] %vm4512_vm3, %v4233_v60  ;;  %v3843_v63 = vpop.f32.mrb[46].mxu0  ;;  %6092 = vpow2.f32 %v2399_v4  ;;  %v3102_v49 = vmul.f32 %v6073_v34, %v10099_v52 }
 0x3fd   :  { %v5307_v0 = vpop.f32.mrb[45].mxu1  ;;  %v6077_v47 = vpop.eup %6076  ;;  %5215 = vmatprep.mubr.msk.f32.mxu0 %vm6239_vm1, %v11034_v1  ;;  %5450 = vmatmul.mubr.msk.f32.gmra.mrb[140].mxu1 %vm489_vm0, %v3179_v7  ;;  %v2633_v40 = vadd.f32 1.0, %v6075_v23  ;;  %4536 = vst.msk [vmem:[%s10799_s4 + $0xb8] sm:$0xff] %vm4512_vm3, %v3843_v63  ;;  %6094 = vpow2.f32 %v2557_v54  ;;  %v2166_v24 = vsub.f32 0.0, %v10288_v16 }
 0x3fe   :  { %v5073_v28 = vpop.f32.mrb[47].mxu0  ;;  %v6079_v11 = vpop.eup %6078  ;;  %5452 = vmatprep.mubr.msk.f32.mxu1 %vm6239_vm1, %v11034_v1  ;;  %v3181_v41 = vmul.f32 %v6077_v47, %v10115_v17 }
 0x3ff   :  { %v6081_v14 = vpop.eup %6080  ;;  %6096 = vrcp.f32 %v2633_v40  ;;  %v2712_v29 = vadd.f32 1.0, %v6079_v11  ;;  %v4238_v31 = vpop.f32.mrb[46].mxu1  ;;  %v2401_v5 = vmul.f32 1.442695, %v2166_v24 }
 0x400   :  { %v6083_v53 = vpop.eup %6082  ;;  %5216 = vmatmul.mubr.msk.f32.gmra.mrb[142].mxu0 %vm489_vm0, %v3101_v18  ;;  %v2634_v46 = vadd.f32 1.0, %v6081_v14  ;;  %4615 = vst.msk [vmem:[%s10799_s4 + $0x330] sm:$0xff] %vm4512_vm3, %v4238_v31  ;;  %v3848_v9 = vpop.f32.mrb[48].mxu0 }
 0x401   :  { %v5310_v37 = vpop.f32.mrb[47].mxu1  ;;  %5218 = vmatprep.mubr.msk.f32.mxu0 %vm6239_vm1, %v11034_v1  ;;  %5453 = vmatmul.mubr.msk.f32.gmra.mrb[142].mxu1 %vm489_vm0, %v3180_v45  ;;  %6098 = vrcp.f32 %v2712_v29  ;;  %v2713_v51 = vadd.f32 1.0, %v6083_v53  ;;  %4537 = vst.msk [vmem:[%s10799_s4 + $0xc0] sm:$0xff] %vm4512_vm3, %v3848_v9  ;;  %v5076_v52 = vpop.f32.mrb[49].mxu0 }
 0x402   :  { %v6085_v30 = vpop.eup %6084  ;;  %5455 = vmatprep.mubr.msk.f32.mxu1 %vm6239_vm1, %v11034_v1  ;;  %6100 = vrcp.f32 %v2634_v46 }
 0x403   :  { %v6087_v26 = vpop.eup %6086  ;;  %6102 = vrcp.f32 %v2713_v51  ;;  %v4243_v55 = vpop.f32.mrb[48].mxu1  ;;  %v3103_v17 = vmul.f32 %v6085_v30, %v10129_v6 }
 0x404   :  { %v6089_v48 = vpop.eup %6088  ;;  %5219 = vmatmul.mubr.msk.f32.gmra.mrb[144].mxu0 %vm489_vm0, %v3102_v49  ;;  %4616 = vst.msk [vmem:[%s10799_s4 + $0x338] sm:$0xff] %vm4512_vm3, %v4243_v55  ;;  %v3853_v22 = vpop.f32.mrb[50].mxu0  ;;  %6104 = vpow2.f32 %v2401_v5  ;;  %v3182_v43 = vmul.f32 %v6087_v26, %v10146_v19 }
 0x405   :  { %v5313_v32 = vpop.f32.mrb[49].mxu1  ;;  %v6091_v36 = vpop.eup %6090  ;;  %5221 = vmatprep.mubr.msk.f32.mxu0 %vm6239_vm1, %v11034_v1  ;;  %5456 = vmatmul.mubr.msk.f32.gmra.mrb[144].mxu1 %vm489_vm0, %v3181_v41  ;;  %v2635_v38 = vadd.f32 1.0, %v6089_v48  ;;  %4538 = vst.msk [vmem:[%s10799_s4 + $0xc8] sm:$0xff] %vm4512_vm3, %v3853_v22 }
 0x406   :  { %v5079_v6 = vpop.f32.mrb[51].mxu0  ;;  %v6093_v27 = vpop.eup %6092  ;;  %5458 = vmatprep.mubr.msk.f32.mxu1 %vm6239_vm1, %v11034_v1  ;;  %v2714_v12 = vadd.f32 1.0, %v6091_v36 }
 0x407   :  { %v6095_v42 = vpop.eup %6094  ;;  %6106 = vrcp.f32 %v2635_v38  ;;  %v2636_v56 = vadd.f32 1.0, %v6093_v27  ;;  %v4248_v35 = vpop.f32.mrb[50].mxu1 }
 0x408   :  { %5222 = vmatmul.mubr.msk.f32.gmra.mrb[146].mxu0 %vm489_vm0, %v3103_v17  ;;  %6108 = vrcp.f32 %v2714_v12  ;;  %v2715_v19 = vadd.f32 1.0, %v6095_v42  ;;  %4617 = vst.msk [vmem:[%s10799_s4 + $0x340] sm:$0xff] %vm4512_vm3, %v4248_v35  ;;  %v3858_v39 = vpop.f32.mrb[52].mxu0  ;;  %v5316_v25 = vpop.f32.mrb[51].mxu1 }
 0x409   :  { %v6097_v57 = vpop.eup %6096  ;;  %5224 = vmatprep.mubr.msk.f32.mxu0 %vm6239_vm1, %v11034_v1  ;;  %5459 = vmatmul.mubr.msk.f32.gmra.mrb[146].mxu1 %vm489_vm0, %v3182_v43  ;;  %6110 = vrcp.f32 %v2636_v56  ;;  %4539 = vst.msk [vmem:[%s10799_s4 + $0xd0] sm:$0xff] %vm4512_vm3, %v3858_v39  ;;  %v5082_v50 = vpop.f32.mrb[53].mxu0 }
 0x40a   :  { %v3104_v10 = vmul.f32 %v6097_v57, %v10164_v33  ;;  %5461 = vmatprep.mubr.msk.f32.mxu1 %vm6239_vm1, %v11034_v1  ;;  %6112 = vrcp.f32 %v2715_v19 }
 0x40b   :  { %v6099_v7 = vpop.eup %6098  ;;  %v4253_v3 = vpop.f32.mrb[52].mxu1 }
 0x40c   :  { %v6101_v4 = vpop.eup %6100  ;;  %5225 = vmatmul.mubr.msk.f32.gmra.mrb[148].mxu0 %vm489_vm0, %v3104_v10  ;;  %v3183_v58 = vmul.f32 %v6099_v7, %v10180_v44  ;;  %4618 = vst.msk [vmem:[%s10799_s4 + $0x348] sm:$0xff] %vm4512_vm3, %v4253_v3  ;;  %v5319_v13 = vpop.f32.mrb[53].mxu1 }
 0x40d   :  { %v6103_v62 = vpop.eup %6102  ;;  %5227 = vmatprep.mubr.msk.f32.mxu0 %vm6239_vm1, %v11034_v1  ;;  %v3105_v33 = vmul.f32 %v6101_v4, %v10185_v8 }
 0x40e   :  { %v6105_v34 = vpop.eup %6104  ;;  %5462 = vmatmul.mubr.msk.f32.gmra.mrb[148].mxu1 %vm489_vm0, %v3183_v58  ;;  %v3184_v60 = vmul.f32 %v6103_v62, %v10209_v20 }
 0x40f   :  { %5464 = vmatprep.mubr.msk.f32.mxu1 %vm6239_vm1, %v11034_v1  ;;  %v2637_v44 = vadd.f32 1.0, %v6105_v34 }
 0x410   :  { %5228 = vmatmul.mubr.msk.f32.gmra.mrb[150].mxu0 %vm489_vm0, %v3105_v33 }
 0x411   :  { %v6107_v54 = vpop.eup %6106  ;;  %5230 = vmatprep.mubr.msk.f32.mxu0 %vm6239_vm1, %v11034_v1  ;;  %6114 = vrcp.f32 %v2637_v44  ;;  %v3863_v23 = vpop.f32.mrb[54].mxu0 }
 0x412   :  { %v6109_v18 = vpop.eup %6108  ;;  %5465 = vmatmul.mubr.msk.f32.gmra.mrb[150].mxu1 %vm489_vm0, %v3184_v60  ;;  %v3106_v8 = vmul.f32 %v6107_v54, %v10229_v2  ;;  %4540 = vst.msk [vmem:[%s10799_s4 + $0xd8] sm:$0xff] %vm4512_vm3, %v3863_v23  ;;  %v5085_v20 = vpop.f32.mrb[55].mxu0 }
 0x413   :  { %v4258_v63 = vpop.f32.mrb[54].mxu1  ;;  %v6111_v0 = vpop.eup %6110  ;;  %5467 = vmatprep.mubr.msk.f32.mxu1 %vm6239_vm1, %v11034_v1  ;;  %v3185_v61 = vmul.f32 %v6109_v18, %v10242_v59 }
 0x414   :  { %4619 = vst.msk [vmem:[%s10799_s4 + $0x350] sm:$0xff] %vm4512_vm3, %v4258_v63  ;;  %v5322_v47 = vpop.f32.mrb[55].mxu1  ;;  %v6113_v2 = vpop.eup %6112  ;;  %5231 = vmatmul.mubr.msk.f32.gmra.mrb[152].mxu0 %vm489_vm0, %v3106_v8  ;;  %v3107_v45 = vmul.f32 %v6111_v0, %v10253_v15 }
 0x415   :  { %5233 = vmatprep.mubr.msk.f32.mxu0 %vm6239_vm1, %v11034_v1  ;;  %v3868_v40 = vpop.f32.mrb[56].mxu0  ;;  %v3186_v28 = vmul.f32 %v6113_v2, %v10261_v21 }
 0x416   :  { %5468 = vmatmul.mubr.msk.f32.gmra.mrb[152].mxu1 %vm489_vm0, %v3185_v61  ;;  %4541 = vst.msk [vmem:[%s10799_s4 + $0xe0] sm:$0xff] %vm4512_vm3, %v3868_v40  ;;  %v5088_v59 = vpop.f32.mrb[57].mxu0  ;;  %v4263_v11 = vpop.f32.mrb[56].mxu1 }
 0x417   :  { %5470 = vmatprep.mubr.msk.f32.mxu1 %vm6239_vm1, %v11034_v1  ;;  %4620 = vst.msk [vmem:[%s10799_s4 + $0x358] sm:$0xff] %vm4512_vm3, %v4263_v11  ;;  %v5325_v15 = vpop.f32.mrb[57].mxu1 }
 0x418   :  { %5234 = vmatmul.mubr.msk.f32.gmra.mrb[154].mxu0 %vm489_vm0, %v3107_v45 }
 0x419   :  { %5236 = vmatprep.mubr.msk.f32.mxu0 %vm6239_vm1, %v11034_v1  ;;  %v3873_v21 = vpop.f32.mrb[58].mxu0 }
 0x41a   :  { %5471 = vmatmul.mubr.msk.f32.gmra.mrb[154].mxu1 %vm489_vm0, %v3186_v28  ;;  %4542 = vst.msk [vmem:[%s10799_s4 + $0xe8] sm:$0xff] %vm4512_vm3, %v3873_v21  ;;  %v5091_v24 = vpop.f32.mrb[59].mxu0  ;;  %v4268_v14 = vpop.f32.mrb[58].mxu1 }
 0x41b   :  { %v6115_v29 = vpop.eup %6114  ;;  %4621 = vst.msk [vmem:[%s10799_s4 + $0x360] sm:$0xff] %vm4512_vm3, %v4268_v14  ;;  %v5328_v31 = vpop.f32.mrb[59].mxu1 }
 0x41c   :  { %v3108_v53 = vmul.f32 %v6115_v29, %v10288_v16 }
 0x41d   :  { %v3878_v1 = vpop.f32.mrb[60].mxu0 }
 0x41e   :  { %5237 = vmatmul.mubr.msk.f32.gmra.mrb[156].mxu0 %vm489_vm0, %v3108_v53  ;;  %4543 = vst.msk [vmem:[%s10799_s4 + $0xf0] sm:$0xff] %vm4512_vm3, %v3878_v1  ;;  %v5094_v49 = vpop.f32.mrb[61].mxu0  ;;  %v4273_v46 = vpop.f32.mrb[60].mxu1 }
 0x41f   :  { %4622 = vst.msk [vmem:[%s10799_s4 + $0x368] sm:$0xff] %vm4512_vm3, %v4273_v46  ;;  %v5331_v9 = vpop.f32.mrb[61].mxu1 }
 0x421   :  { %v3883_v37 = vpop.f32.mrb[62].mxu0 }
 0x422   :  { %4544 = vst.msk [vmem:[%s10799_s4 + $0xf8] sm:$0xff] %vm4512_vm3, %v3883_v37  ;;  %v5097_v16 = vpop.f32.mrb[63].mxu0  ;;  %v4278_v5 = vpop.f32.mrb[62].mxu1 }
 0x423   :  { %4623 = vst.msk [vmem:[%s10799_s4 + $0x370] sm:$0xff] %vm4512_vm3, %v4278_v5  ;;  %v5334_v41 = vpop.f32.mrb[63].mxu1 }
 0x425   :  { %v3888_v51 = vpop.f32.mrb[64].mxu0 }
 0x426   :  { %4545 = vst.msk [vmem:[%s10799_s4 + $0x100] sm:$0xff] %vm4512_vm3, %v3888_v51  ;;  %v5100_v52 = vpop.f32.mrb[65].mxu0 }
 0x428   :  { %v4283_v30 = vpop.f32.mrb[64].mxu1 }
 0x429   :  { %4624 = vst.msk [vmem:[%s10799_s4 + $0x378] sm:$0xff] %vm4512_vm3, %v4283_v30  ;;  %v3893_v26 = vpop.f32.mrb[66].mxu0  ;;  %v5337_v55 = vpop.f32.mrb[65].mxu1 }
 0x42a   :  { %4546 = vst.msk [vmem:[%s10799_s4 + $0x108] sm:$0xff] %vm4512_vm3, %v3893_v26  ;;  %v5103_v48 = vpop.f32.mrb[67].mxu0 }
 0x42c   :  { %v4288_v17 = vpop.f32.mrb[66].mxu1 }
 0x42d   :  { %4625 = vst.msk [vmem:[%s10799_s4 + $0x380] sm:$0xff] %vm4512_vm3, %v4288_v17  ;;  %v3898_v22 = vpop.f32.mrb[68].mxu0  ;;  %v5340_v32 = vpop.f32.mrb[67].mxu1 }
 0x42e   :  { %4547 = vst.msk [vmem:[%s10799_s4 + $0x110] sm:$0xff] %vm4512_vm3, %v3898_v22  ;;  %v5106_v36 = vpop.f32.mrb[69].mxu0 }
 0x430   :  { %v4293_v43 = vpop.f32.mrb[68].mxu1 }
 0x431   :  { %4626 = vst.msk [vmem:[%s10799_s4 + $0x388] sm:$0xff] %vm4512_vm3, %v4293_v43  ;;  %v3903_v38 = vpop.f32.mrb[70].mxu0  ;;  %v5343_v6 = vpop.f32.mrb[69].mxu1 }
 0x432   :  { %4548 = vst.msk [vmem:[%s10799_s4 + $0x118] sm:$0xff] %vm4512_vm3, %v3903_v38  ;;  %v5109_v27 = vpop.f32.mrb[71].mxu0 }
 0x434   :  { %v4298_v12 = vpop.f32.mrb[70].mxu1 }
 0x435   :  { %4627 = vst.msk [vmem:[%s10799_s4 + $0x390] sm:$0xff] %vm4512_vm3, %v4298_v12  ;;  %v3908_v42 = vpop.f32.mrb[72].mxu0  ;;  %v5346_v56 = vpop.f32.mrb[71].mxu1 }
 0x436   :  { %4549 = vst.msk [vmem:[%s10799_s4 + $0x120] sm:$0xff] %vm4512_vm3, %v3908_v42  ;;  %v5112_v35 = vpop.f32.mrb[73].mxu0 }
 0x438   :  { %v4303_v19 = vpop.f32.mrb[72].mxu1 }
 0x439   :  { %4628 = vst.msk [vmem:[%s10799_s4 + $0x398] sm:$0xff] %vm4512_vm3, %v4303_v19  ;;  %v3913_v39 = vpop.f32.mrb[74].mxu0  ;;  %v5349_v25 = vpop.f32.mrb[73].mxu1 }
 0x43a   :  { %4550 = vst.msk [vmem:[%s10799_s4 + $0x128] sm:$0xff] %vm4512_vm3, %v3913_v39  ;;  %v5115_v57 = vpop.f32.mrb[75].mxu0 }
 0x43c   :  { %v4308_v50 = vpop.f32.mrb[74].mxu1 }
 0x43d   :  { %4629 = vst.msk [vmem:[%s10799_s4 + $0x3a0] sm:$0xff] %vm4512_vm3, %v4308_v50  ;;  %v5352_v10 = vpop.f32.mrb[75].mxu1 }
 0x440   :  { %v3918_v7 = vpop.f32.mrb[76].mxu0 }
 0x441   :  { %4551 = vst.msk [vmem:[%s10799_s4 + $0x130] sm:$0xff] %vm4512_vm3, %v3918_v7  ;;  %v5118_v3 = vpop.f32.mrb[77].mxu0  ;;  %v4313_v4 = vpop.f32.mrb[76].mxu1 }
 0x442   :  { %4630 = vst.msk [vmem:[%s10799_s4 + $0x3a8] sm:$0xff] %vm4512_vm3, %v4313_v4  ;;  %v5355_v58 = vpop.f32.mrb[77].mxu1 }
 0x444   :  { %v3923_v13 = vpop.f32.mrb[78].mxu0 }
 0x445   :  { %4552 = vst.msk [vmem:[%s10799_s4 + $0x138] sm:$0xff] %vm4512_vm3, %v3923_v13  ;;  %v5121_v62 = vpop.f32.mrb[79].mxu0  ;;  %v4318_v33 = vpop.f32.mrb[78].mxu1 }
 0x446   :  { %4631 = vst.msk [vmem:[%s10799_s4 + $0x3b0] sm:$0xff] %vm4512_vm3, %v4318_v33  ;;  %v5358_v34 = vpop.f32.mrb[79].mxu1 }
 0x448   :  { %v3928_v60 = vpop.f32.mrb[80].mxu0 }
 0x449   :  { %4553 = vst.msk [vmem:[%s10799_s4 + $0x140] sm:$0xff] %vm4512_vm3, %v3928_v60  ;;  %v5124_v44 = vpop.f32.mrb[81].mxu0  ;;  %v4323_v54 = vpop.f32.mrb[80].mxu1 }
 0x44a   :  { %4632 = vst.msk [vmem:[%s10799_s4 + $0x3b8] sm:$0xff] %vm4512_vm3, %v4323_v54  ;;  %v5361_v23 = vpop.f32.mrb[81].mxu1 }
 0x44c   :  { %v3933_v18 = vpop.f32.mrb[82].mxu0 }
 0x44d   :  { %4554 = vst.msk [vmem:[%s10799_s4 + $0x148] sm:$0xff] %vm4512_vm3, %v3933_v18  ;;  %v5127_v8 = vpop.f32.mrb[83].mxu0  ;;  %v4328_v20 = vpop.f32.mrb[82].mxu1 }
 0x44e   :  { %4633 = vst.msk [vmem:[%s10799_s4 + $0x3c0] sm:$0xff] %vm4512_vm3, %v4328_v20  ;;  %v5364_v63 = vpop.f32.mrb[83].mxu1 }
 0x450   :  { %v3938_v0 = vpop.f32.mrb[84].mxu0 }
 0x451   :  { %4555 = vst.msk [vmem:[%s10799_s4 + $0x150] sm:$0xff] %vm4512_vm3, %v3938_v0  ;;  %v5130_v61 = vpop.f32.mrb[85].mxu0  ;;  %v4333_v47 = vpop.f32.mrb[84].mxu1 }
 0x452   :  { %4634 = vst.msk [vmem:[%s10799_s4 + $0x3c8] sm:$0xff] %vm4512_vm3, %v4333_v47  ;;  %v5367_v2 = vpop.f32.mrb[85].mxu1 }
 0x457   :  { %v3943_v45 = vpop.f32.mrb[86].mxu0 }
 0x458   :  { %4556 = vst.msk [vmem:[%s10799_s4 + $0x158] sm:$0xff] %vm4512_vm3, %v3943_v45  ;;  %v5133_v40 = vpop.f32.mrb[87].mxu0  ;;  %v4338_v28 = vpop.f32.mrb[86].mxu1 }
 0x459   :  { %4635 = vst.msk [vmem:[%s10799_s4 + $0x3d0] sm:$0xff] %vm4512_vm3, %v4338_v28  ;;  %v5370_v59 = vpop.f32.mrb[87].mxu1 }
 0x45b   :  { %v3948_v11 = vpop.f32.mrb[88].mxu0 }
 0x45c   :  { %4557 = vst.msk [vmem:[%s10799_s4 + $0x160] sm:$0xff] %vm4512_vm3, %v3948_v11  ;;  %v5136_v15 = vpop.f32.mrb[89].mxu0  ;;  %v4343_v21 = vpop.f32.mrb[88].mxu1 }
 0x45d   :  { %4636 = vst.msk [vmem:[%s10799_s4 + $0x3d8] sm:$0xff] %vm4512_vm3, %v4343_v21  ;;  %v5373_v24 = vpop.f32.mrb[89].mxu1 }
 0x45f   :  { %v3953_v14 = vpop.f32.mrb[90].mxu0 }
 0x460   :  { %4558 = vst.msk [vmem:[%s10799_s4 + $0x168] sm:$0xff] %vm4512_vm3, %v3953_v14  ;;  %v5139_v29 = vpop.f32.mrb[91].mxu0  ;;  %v4348_v31 = vpop.f32.mrb[90].mxu1 }
 0x461   :  { %4637 = vst.msk [vmem:[%s10799_s4 + $0x3e0] sm:$0xff] %vm4512_vm3, %v4348_v31  ;;  %v5376_v53 = vpop.f32.mrb[91].mxu1 }
 0x463   :  { %v3958_v1 = vpop.f32.mrb[92].mxu0 }
 0x464   :  { %4559 = vst.msk [vmem:[%s10799_s4 + $0x170] sm:$0xff] %vm4512_vm3, %v3958_v1  ;;  %v5142_v49 = vpop.f32.mrb[93].mxu0  ;;  %v4353_v46 = vpop.f32.mrb[92].mxu1 }
 0x465   :  { %4638 = vst.msk [vmem:[%s10799_s4 + $0x3e8] sm:$0xff] %vm4512_vm3, %v4353_v46  ;;  %v5379_v9 = vpop.f32.mrb[93].mxu1 }
 0x467   :  { %v3963_v37 = vpop.f32.mrb[94].mxu0 }
 0x468   :  { %4560 = vst.msk [vmem:[%s10799_s4 + $0x178] sm:$0xff] %vm4512_vm3, %v3963_v37  ;;  %v5145_v16 = vpop.f32.mrb[95].mxu0  ;;  %v4358_v5 = vpop.f32.mrb[94].mxu1 }
 0x469   :  { %4639 = vst.msk [vmem:[%s10799_s4 + $0x3f0] sm:$0xff] %vm4512_vm3, %v4358_v5  ;;  %v5382_v41 = vpop.f32.mrb[95].mxu1 }
 0x46b   :  { %v3968_v51 = vpop.f32.mrb[96].mxu0 }
 0x46c   :  { %4561 = vst.msk [vmem:[%s10799_s4 + $0x180] sm:$0xff] %vm4512_vm3, %v3968_v51  ;;  %v5148_v52 = vpop.f32.mrb[97].mxu0 }
 0x46e   :  { %v4363_v30 = vpop.f32.mrb[96].mxu1 }
 0x46f   :  { %4640 = vst.msk [vmem:[%s10799_s4 + $0x3f8] sm:$0xff] %vm4512_vm3, %v4363_v30  ;;  %v5385_v26 = vpop.f32.mrb[97].mxu1 }
 0x470   :  { %v3973_v55 = vpop.f32.mrb[98].mxu0 }
 0x471   :  { %4562 = vst.msk [vmem:[%s10799_s4 + $0x188] sm:$0xff] %vm4512_vm3, %v3973_v55  ;;  %v5151_v48 = vpop.f32.mrb[99].mxu0 }
 0x472   :  { %v4368_v17 = vpop.f32.mrb[98].mxu1 }
 0x473   :  { %4641 = vst.msk [vmem:[%s10799_s4 + $0x400] sm:$0xff] %vm4512_vm3, %v4368_v17  ;;  %v5388_v22 = vpop.f32.mrb[99].mxu1 }
 0x474   :  { %v3978_v32 = vpop.f32.mrb[100].mxu0 }
 0x475   :  { %4563 = vst.msk [vmem:[%s10799_s4 + $0x190] sm:$0xff] %vm4512_vm3, %v3978_v32  ;;  %v5154_v36 = vpop.f32.mrb[101].mxu0 }
 0x476   :  { %v4373_v43 = vpop.f32.mrb[100].mxu1 }
 0x477   :  { %4642 = vst.msk [vmem:[%s10799_s4 + $0x408] sm:$0xff] %vm4512_vm3, %v4373_v43  ;;  %v5391_v38 = vpop.f32.mrb[101].mxu1 }
 0x478   :  { %v3983_v6 = vpop.f32.mrb[102].mxu0 }
 0x479   :  { %4564 = vst.msk [vmem:[%s10799_s4 + $0x198] sm:$0xff] %vm4512_vm3, %v3983_v6  ;;  %v5157_v27 = vpop.f32.mrb[103].mxu0 }
 0x47a   :  { %v4378_v12 = vpop.f32.mrb[102].mxu1 }
 0x47b   :  { %4643 = vst.msk [vmem:[%s10799_s4 + $0x410] sm:$0xff] %vm4512_vm3, %v4378_v12  ;;  %v5394_v42 = vpop.f32.mrb[103].mxu1 }
 0x47c   :  { %v3988_v56 = vpop.f32.mrb[104].mxu0 }
 0x47d   :  { %4565 = vst.msk [vmem:[%s10799_s4 + $0x1a0] sm:$0xff] %vm4512_vm3, %v3988_v56  ;;  %v5160_v35 = vpop.f32.mrb[105].mxu0 }
 0x47e   :  { %v4383_v19 = vpop.f32.mrb[104].mxu1 }
 0x47f   :  { %4644 = vst.msk [vmem:[%s10799_s4 + $0x418] sm:$0xff] %vm4512_vm3, %v4383_v19  ;;  %v5397_v39 = vpop.f32.mrb[105].mxu1 }
 0x484   :  { %v3993_v25 = vpop.f32.mrb[106].mxu0 }
 0x485   :  { %4566 = vst.msk [vmem:[%s10799_s4 + $0x1a8] sm:$0xff] %vm4512_vm3, %v3993_v25  ;;  %v5163_v57 = vpop.f32.mrb[107].mxu0  ;;  %v4388_v50 = vpop.f32.mrb[106].mxu1 }
 0x486   :  { %4645 = vst.msk [vmem:[%s10799_s4 + $0x420] sm:$0xff] %vm4512_vm3, %v4388_v50  ;;  %v5400_v10 = vpop.f32.mrb[107].mxu1 }
 0x488   :  { %v3998_v7 = vpop.f32.mrb[108].mxu0 }
 0x489   :  { %4567 = vst.msk [vmem:[%s10799_s4 + $0x1b0] sm:$0xff] %vm4512_vm3, %v3998_v7  ;;  %v5166_v3 = vpop.f32.mrb[109].mxu0  ;;  %v4393_v4 = vpop.f32.mrb[108].mxu1 }
 0x48a   :  { %4646 = vst.msk [vmem:[%s10799_s4 + $0x428] sm:$0xff] %vm4512_vm3, %v4393_v4  ;;  %v5403_v58 = vpop.f32.mrb[109].mxu1 }
 0x48c   :  { %v4003_v13 = vpop.f32.mrb[110].mxu0 }
 0x48d   :  { %4568 = vst.msk [vmem:[%s10799_s4 + $0x1b8] sm:$0xff] %vm4512_vm3, %v4003_v13  ;;  %v5169_v62 = vpop.f32.mrb[111].mxu0  ;;  %v4398_v33 = vpop.f32.mrb[110].mxu1 }
 0x48e   :  { %4647 = vst.msk [vmem:[%s10799_s4 + $0x430] sm:$0xff] %vm4512_vm3, %v4398_v33  ;;  %v5406_v34 = vpop.f32.mrb[111].mxu1 }
 0x490   :  { %v4008_v60 = vpop.f32.mrb[112].mxu0 }
 0x491   :  { %4569 = vst.msk [vmem:[%s10799_s4 + $0x1c0] sm:$0xff] %vm4512_vm3, %v4008_v60  ;;  %v5172_v44 = vpop.f32.mrb[113].mxu0  ;;  %v4403_v54 = vpop.f32.mrb[112].mxu1 }
 0x492   :  { %4648 = vst.msk [vmem:[%s10799_s4 + $0x438] sm:$0xff] %vm4512_vm3, %v4403_v54  ;;  %v5409_v23 = vpop.f32.mrb[113].mxu1 }
 0x494   :  { %v4013_v18 = vpop.f32.mrb[114].mxu0 }
 0x495   :  { %4570 = vst.msk [vmem:[%s10799_s4 + $0x1c8] sm:$0xff] %vm4512_vm3, %v4013_v18  ;;  %v5175_v8 = vpop.f32.mrb[115].mxu0 }
 0x496   :  { %v4408_v20 = vpop.f32.mrb[114].mxu1 }
 0x497   :  { %4649 = vst.msk [vmem:[%s10799_s4 + $0x440] sm:$0xff] %vm4512_vm3, %v4408_v20  ;;  %v5412_v63 = vpop.f32.mrb[115].mxu1 }
 0x49b   :  { %v4018_v0 = vpop.f32.mrb[116].mxu0 }
 0x49c   :  { %4571 = vst.msk [vmem:[%s10799_s4 + $0x1d0] sm:$0xff] %vm4512_vm3, %v4018_v0  ;;  %v5178_v61 = vpop.f32.mrb[117].mxu0  ;;  %v4413_v47 = vpop.f32.mrb[116].mxu1 }
 0x49d   :  { %4650 = vst.msk [vmem:[%s10799_s4 + $0x448] sm:$0xff] %vm4512_vm3, %v4413_v47  ;;  %v5415_v2 = vpop.f32.mrb[117].mxu1 }
 0x49f   :  { %v4023_v45 = vpop.f32.mrb[118].mxu0 }
 0x4a0   :  { %4572 = vst.msk [vmem:[%s10799_s4 + $0x1d8] sm:$0xff] %vm4512_vm3, %v4023_v45  ;;  %v5181_v40 = vpop.f32.mrb[119].mxu0  ;;  %v4418_v28 = vpop.f32.mrb[118].mxu1 }
 0x4a1   :  { %4651 = vst.msk [vmem:[%s10799_s4 + $0x450] sm:$0xff] %vm4512_vm3, %v4418_v28  ;;  %v5418_v59 = vpop.f32.mrb[119].mxu1 }
 0x4a3   :  { %v4028_v11 = vpop.f32.mrb[120].mxu0 }
 0x4a4   :  { %4573 = vst.msk [vmem:[%s10799_s4 + $0x1e0] sm:$0xff] %vm4512_vm3, %v4028_v11  ;;  %v5184_v15 = vpop.f32.mrb[121].mxu0  ;;  %v4423_v21 = vpop.f32.mrb[120].mxu1 }
 0x4a5   :  { %4652 = vst.msk [vmem:[%s10799_s4 + $0x458] sm:$0xff] %vm4512_vm3, %v4423_v21  ;;  %v5421_v24 = vpop.f32.mrb[121].mxu1 }
 0x4a7   :  { %v4033_v14 = vpop.f32.mrb[122].mxu0 }
 0x4a8   :  { %4574 = vst.msk [vmem:[%s10799_s4 + $0x1e8] sm:$0xff] %vm4512_vm3, %v4033_v14  ;;  %v5187_v29 = vpop.f32.mrb[123].mxu0  ;;  %v4428_v31 = vpop.f32.mrb[122].mxu1 }
 0x4a9   :  { %4653 = vst.msk [vmem:[%s10799_s4 + $0x460] sm:$0xff] %vm4512_vm3, %v4428_v31  ;;  %v5424_v53 = vpop.f32.mrb[123].mxu1 }
 0x4ab   :  { %v4038_v1 = vpop.f32.mrb[124].mxu0 }
 0x4ac   :  { %4575 = vst.msk [vmem:[%s10799_s4 + $0x1f0] sm:$0xff] %vm4512_vm3, %v4038_v1  ;;  %v5190_v49 = vpop.f32.mrb[125].mxu0  ;;  %v4433_v46 = vpop.f32.mrb[124].mxu1 }
 0x4ad   :  { %4654 = vst.msk [vmem:[%s10799_s4 + $0x468] sm:$0xff] %vm4512_vm3, %v4433_v46  ;;  %v5427_v9 = vpop.f32.mrb[125].mxu1 }
 0x4af   :  { %v4043_v37 = vpop.f32.mrb[126].mxu0 }
 0x4b0   :  { %4576 = vst.msk [vmem:[%s10799_s4 + $0x1f8] sm:$0xff] %vm4512_vm3, %v4043_v37  ;;  %v5193_v16 = vpop.f32.mrb[127].mxu0  ;;  %v4438_v5 = vpop.f32.mrb[126].mxu1 }
 0x4b1   :  { %4655 = vst.msk [vmem:[%s10799_s4 + $0x470] sm:$0xff] %vm4512_vm3, %v4438_v5  ;;  %v5430_v41 = vpop.f32.mrb[127].mxu1 }
 0x4b4   :  { %v4048_v51 = vpop.f32.mrb[128].mxu0 }
 0x4b5   :  { %4577 = vst.msk [vmem:[%s10799_s4 + $0x200] sm:$0xff] %vm4512_vm3, %v4048_v51  ;;  %v5196_v52 = vpop.f32.mrb[129].mxu0  ;;  %v4443_v30 = vpop.f32.mrb[128].mxu1 }
 0x4b6   :  { %4656 = vst.msk [vmem:[%s10799_s4 + $0x478] sm:$0xff] %vm4512_vm3, %v4443_v30  ;;  %v5433_v26 = vpop.f32.mrb[129].mxu1 }
 0x4b8   :  { %v4053_v55 = vpop.f32.mrb[130].mxu0 }
 0x4b9   :  { %4578 = vst.msk [vmem:[%s10799_s4 + $0x208] sm:$0xff] %vm4512_vm3, %v4053_v55  ;;  %v5199_v48 = vpop.f32.mrb[131].mxu0  ;;  %v4448_v17 = vpop.f32.mrb[130].mxu1 }
 0x4ba   :  { %4657 = vst.msk [vmem:[%s10799_s4 + $0x480] sm:$0xff] %vm4512_vm3, %v4448_v17  ;;  %v5436_v22 = vpop.f32.mrb[131].mxu1 }
 0x4bc   :  { %v4058_v32 = vpop.f32.mrb[132].mxu0 }
 0x4bd   :  { %4579 = vst.msk [vmem:[%s10799_s4 + $0x210] sm:$0xff] %vm4512_vm3, %v4058_v32  ;;  %v5202_v36 = vpop.f32.mrb[133].mxu0  ;;  %v4453_v43 = vpop.f32.mrb[132].mxu1 }
 0x4be   :  { %4658 = vst.msk [vmem:[%s10799_s4 + $0x488] sm:$0xff] %vm4512_vm3, %v4453_v43  ;;  %v5439_v38 = vpop.f32.mrb[133].mxu1 }
 0x4c0   :  { %v4063_v6 = vpop.f32.mrb[134].mxu0 }
 0x4c1   :  { %4580 = vst.msk [vmem:[%s10799_s4 + $0x218] sm:$0xff] %vm4512_vm3, %v4063_v6  ;;  %v5205_v27 = vpop.f32.mrb[135].mxu0  ;;  %v4458_v12 = vpop.f32.mrb[134].mxu1 }
 0x4c2   :  { %4659 = vst.msk [vmem:[%s10799_s4 + $0x490] sm:$0xff] %vm4512_vm3, %v4458_v12  ;;  %v5442_v42 = vpop.f32.mrb[135].mxu1 }
 0x4c7   :  { %v4068_v56 = vpop.f32.mrb[136].mxu0 }
 0x4c8   :  { %4581 = vst.msk [vmem:[%s10799_s4 + $0x220] sm:$0xff] %vm4512_vm3, %v4068_v56  ;;  %v5208_v35 = vpop.f32.mrb[137].mxu0  ;;  %v4463_v19 = vpop.f32.mrb[136].mxu1 }
 0x4c9   :  { %4660 = vst.msk [vmem:[%s10799_s4 + $0x498] sm:$0xff] %vm4512_vm3, %v4463_v19  ;;  %v5445_v39 = vpop.f32.mrb[137].mxu1 }
 0x4cb   :  { %v4073_v25 = vpop.f32.mrb[138].mxu0 }
 0x4cc   :  { %4582 = vst.msk [vmem:[%s10799_s4 + $0x228] sm:$0xff] %vm4512_vm3, %v4073_v25  ;;  %v5211_v57 = vpop.f32.mrb[139].mxu0  ;;  %v4468_v50 = vpop.f32.mrb[138].mxu1 }
 0x4cd   :  { %4661 = vst.msk [vmem:[%s10799_s4 + $0x4a0] sm:$0xff] %vm4512_vm3, %v4468_v50  ;;  %v5448_v10 = vpop.f32.mrb[139].mxu1 }
 0x4cf   :  { %v4078_v7 = vpop.f32.mrb[140].mxu0 }
 0x4d0   :  { %4583 = vst.msk [vmem:[%s10799_s4 + $0x230] sm:$0xff] %vm4512_vm3, %v4078_v7  ;;  %v5214_v3 = vpop.f32.mrb[141].mxu0  ;;  %v4473_v4 = vpop.f32.mrb[140].mxu1 }
 0x4d1   :  { %4662 = vst.msk [vmem:[%s10799_s4 + $0x4a8] sm:$0xff] %vm4512_vm3, %v4473_v4  ;;  %v5451_v58 = vpop.f32.mrb[141].mxu1 }
 0x4d3   :  { %v4083_v13 = vpop.f32.mrb[142].mxu0 }
 0x4d4   :  { %4584 = vst.msk [vmem:[%s10799_s4 + $0x238] sm:$0xff] %vm4512_vm3, %v4083_v13  ;;  %v5217_v62 = vpop.f32.mrb[143].mxu0  ;;  %v4478_v33 = vpop.f32.mrb[142].mxu1 }
 0x4d5   :  { %4663 = vst.msk [vmem:[%s10799_s4 + $0x4b0] sm:$0xff] %vm4512_vm3, %v4478_v33  ;;  %v5454_v34 = vpop.f32.mrb[143].mxu1 }
 0x4d7   :  { %v4088_v60 = vpop.f32.mrb[144].mxu0 }
 0x4d8   :  { %4585 = vst.msk [vmem:[%s10799_s4 + $0x240] sm:$0xff] %vm4512_vm3, %v4088_v60  ;;  %v5220_v44 = vpop.f32.mrb[145].mxu0  ;;  %v4483_v54 = vpop.f32.mrb[144].mxu1 }
 0x4d9   :  { %4664 = vst.msk [vmem:[%s10799_s4 + $0x4b8] sm:$0xff] %vm4512_vm3, %v4483_v54  ;;  %v5457_v23 = vpop.f32.mrb[145].mxu1 }
 0x4db   :  { %v4093_v18 = vpop.f32.mrb[146].mxu0 }
 0x4dc   :  { %4586 = vst.msk [vmem:[%s10799_s4 + $0x248] sm:$0xff] %vm4512_vm3, %v4093_v18  ;;  %v5223_v8 = vpop.f32.mrb[147].mxu0  ;;  %v4488_v20 = vpop.f32.mrb[146].mxu1 }
 0x4dd   :  { %4665 = vst.msk [vmem:[%s10799_s4 + $0x4c0] sm:$0xff] %vm4512_vm3, %v4488_v20  ;;  %v5460_v63 = vpop.f32.mrb[147].mxu1 }
 0x4df   :  { %v4098_v0 = vpop.f32.mrb[148].mxu0 }
 0x4e0   :  { %4587 = vst.msk [vmem:[%s10799_s4 + $0x250] sm:$0xff] %vm4512_vm3, %v4098_v0  ;;  %v5226_v61 = vpop.f32.mrb[149].mxu0 }
 0x4e1   :  { %v4493_v47 = vpop.f32.mrb[148].mxu1 }
 0x4e2   :  { %4666 = vst.msk [vmem:[%s10799_s4 + $0x4c8] sm:$0xff] %vm4512_vm3, %v4493_v47  ;;  %v5463_v2 = vpop.f32.mrb[149].mxu1 }
 0x4e3   :  { %v4103_v45 = vpop.f32.mrb[150].mxu0 }
 0x4e4   :  { %4588 = vst.msk [vmem:[%s10799_s4 + $0x258] sm:$0xff] %vm4512_vm3, %v4103_v45  ;;  %v5229_v40 = vpop.f32.mrb[151].mxu0 }
 0x4e5   :  { %v4498_v28 = vpop.f32.mrb[150].mxu1 }
 0x4e6   :  { %4667 = vst.msk [vmem:[%s10799_s4 + $0x4d0] sm:$0xff] %vm4512_vm3, %v4498_v28  ;;  %v5466_v59 = vpop.f32.mrb[151].mxu1 }
 0x4e7   :  { %v4108_v11 = vpop.f32.mrb[152].mxu0 }
 0x4e8   :  { %4589 = vst.msk [vmem:[%s10799_s4 + $0x260] sm:$0xff] %vm4512_vm3, %v4108_v11  ;;  %v5232_v15 = vpop.f32.mrb[153].mxu0 }
 0x4e9   :  { %v4503_v21 = vpop.f32.mrb[152].mxu1 }
 0x4ea   :  { %4668 = vst.msk [vmem:[%s10799_s4 + $0x4d8] sm:$0xff] %vm4512_vm3, %v4503_v21  ;;  %v5469_v24 = vpop.f32.mrb[153].mxu1 }
 0x4eb   :  { %v4113_v14 = vpop.f32.mrb[154].mxu0 }
 0x4ec   :  { %4590 = vst.msk [vmem:[%s10799_s4 + $0x268] sm:$0xff] %vm4512_vm3, %v4113_v14  ;;  %v5235_v29 = vpop.f32.mrb[155].mxu0 }
 0x4ed   :  { %v4508_v31 = vpop.f32.mrb[154].mxu1 }
 0x4ee   :  { %4669 = vst.msk [vmem:[%s10799_s4 + $0x4e0] sm:$0xff] %vm4512_vm3, %v4508_v31  ;;  %v5472_v53 = vpop.f32.mrb[155].mxu1 }
 0x4f1   :  { %v4118_v1 = vpop.f32.mrb[156].mxu0 }
 0x4f2   :  { %4591 = vst.msk [vmem:[%s10799_s4 + $0x270] sm:$0xff] %vm4512_vm3, %v4118_v1  ;;  %v5238_v49 = vpop.f32.mrb[157].mxu0 }

// kernel: image_decoder_forward.11
= control target key start
LH: loop header
LB: loop body
LE: loop exit
PB: predicated region body
PF: predicated region fallthrough
CT: control target
= control target key end

     0   :  { %vm47_vm0 = vcmask 1041408   ;;  %vm48_vm1 = vcmask 1043458   ;;  %vm50_vm3 = vcmask 1045508   ;;  %vm52_vm5 = vcmask 556038   ;;  %s119_s0 = inlined_call_operand.vmem [shape: f32[2,2500], index: 0, kind: input, shape index: {}]   ;;  %s120_s1 = inlined_call_operand.vmem [shape: f32[2,2500], index: 1, kind: output, shape index: {}]  }
   0x1   :  { %v8_v0 = vld [vmem:[%s119_s0] sm:$0xff]  ;;  %v9_v2 = vld [vmem:[%s119_s0 + $0x8] sm:$0xff]  ;;  %v10_v6 = vld [vmem:[%s119_s0 + $0x10] sm:$0xff] }
   0x2   :  { %v12_v1 = vld [vmem:[%s119_s0 + $0x20] sm:$0xff]  ;;  %v13_v3 = vsub.f32 0.0, %v8_v0  ;;  %v14_v5 = vsub.f32 0.0, %v9_v2  ;;  %v11_v7 = vld [vmem:[%s119_s0 + $0x18] sm:$0xff]  ;;  %v15_v8 = vsub.f32 0.0, %v10_v6  ;;  %vm49_vm2 = vmor %vm48_vm1, %vm47_vm0 }
   0x3   :  { %v17_v4 = vsub.f32 0.0, %v12_v1  ;;  %v16_v9 = vsub.f32 0.0, %v11_v7  ;;  %vm51_vm4 = vmor %vm50_vm3, %vm49_vm2 }
   0x4   :  { %v18_v10 = vmul.f32 1.442695, %v13_v3  ;;  %v20_v11 = vmul.f32 1.442695, %v14_v5  ;;  %v22_v12 = vmul.f32 1.442695, %v15_v8  ;;  %vm53_vm6 = vmor %vm52_vm5, %vm51_vm4 }
   0x5   :  { %v24_v13 = vmul.f32 1.442695, %v16_v9  ;;  %v26_v14 = vmul.f32 1.442695, %v17_v4 }
   0x6   :  { %59 = vpow2.f32 %v18_v10 }
   0x7   :  { %61 = vpow2.f32 %v20_v11 }
   0x8   :  { %63 = vpow2.f32 %v22_v12 }
   0x9   :  { %65 = vpow2.f32 %v24_v13 }
   0xa   :  { %67 = vpow2.f32 %v26_v14 }
  0x10   :  { %v60_v15 = vpop.eup %59 }
  0x11   :  { %v62_v16 = vpop.eup %61  ;;  %v28_v17 = vadd.f32 1.0, %v60_v15 }
  0x12   :  { %v64_v18 = vpop.eup %63  ;;  %v29_v19 = vadd.f32 1.0, %v62_v16 }
  0x13   :  { %v66_v20 = vpop.eup %65  ;;  %69 = vrcp.f32 %v28_v17  ;;  %v30_v21 = vadd.f32 1.0, %v64_v18 }
  0x14   :  { %v68_v22 = vpop.eup %67  ;;  %71 = vrcp.f32 %v29_v19  ;;  %v31_v23 = vadd.f32 1.0, %v66_v20 }
  0x15   :  { %73 = vrcp.f32 %v30_v21  ;;  %v32_v24 = vadd.f32 1.0, %v68_v22 }
  0x16   :  { %75 = vrcp.f32 %v31_v23 }
  0x17   :  { %77 = vrcp.f32 %v32_v24 }
  0x1d   :  { %v70_v25 = vpop.eup %69 }
  0x1e   :  { %v72_v26 = vpop.eup %71  ;;  %43 = vst [vmem:[%s120_s1] sm:$0xff] %v70_v25 }
  0x1f   :  { %v74_v27 = vpop.eup %73  ;;  %44 = vst [vmem:[%s120_s1 + $0x8] sm:$0xff] %v72_v26 }
  0x20   :  { %v76_v28 = vpop.eup %75  ;;  %45 = vst [vmem:[%s120_s1 + $0x10] sm:$0xff] %v74_v27 }
  0x21   :  { %v78_v29 = vpop.eup %77  ;;  %46 = vst [vmem:[%s120_s1 + $0x18] sm:$0xff] %v76_v28 }
  0x22   :  { %54 = vst.msk [vmem:[%s120_s1 + $0x20] sm:$0xff] %vm53_vm6, %v78_v29 }

</bundles_post_ra>
